<compile_context>
chip_gen: v7x
topology: tpu7x:2x2x1
jax: 0.10.0
libtpu: 0.0.40
codegen_flags: <defaults>
</compile_context>

<pallas_src>
import numpy as np
import jax
import jax.numpy as jnp
from jax.experimental import pallas as pl
from jax.experimental.pallas import tpu as pltpu

# ---- small shapes consistent with the module's forward -----------------------
B = 2               # batch
C_IN = 4            # input channels
H = W = 16          # spatial
KH = KW = 3         # conv kernel
C_FEAT = 32         # CAM feature channels
NUM_CLASSES = 10
NCLS_PAD = 128      # logits padded to one full lane tile for a dense store
TEXTURE_SIZE = 2    # texture_size arg (synthetic)
N_FACES = 6         # synthetic stand-in for faces loaded from the .obj file

HP, WP = H + 2, W + 2            # spatially padded ("same" conv, pad=1)
NROWS = B * HP * WP              # 648: flat row r = b*HP*WP + ip*WP + jp
MAXOFF = WP + 1                  # 19: largest |row shift| of a 3x3 tap
NROWS_EXT = NROWS + 2 * MAXOFF   # 686: zero-extended so all 9 shifts are in-bounds
KCOL = KH * KW * C_IN            # 36


def _build_pool_matrix():
    """Constant GAP matrix: 1/(H*W) on each batch's interior (non-pad) rows."""
    pool = np.zeros((B, NROWS), np.float32)
    for b in range(B):
        for i in range(H):
            for j in range(W):
                pool[b, b * HP * WP + (i + 1) * WP + (j + 1)] = 1.0 / (H * W)
    return pool


_POOL_MAT_NP = _build_pool_matrix()


def _das_cam_kernel(x_ref, wc_ref, bc_ref, pool_ref, wf_ref, bf_ref, out_ref):
    """Fused CAM head, one grid step, batch folded into the matmul M dim.

    x_ref   : (NROWS_EXT, C_IN)   zero-extended flat padded-NHWC image rows
    wc_ref  : (KCOL, C_FEAT)      conv weight, rows ordered (ki, kj, c_in)
    bc_ref  : (1, C_FEAT)         conv bias
    pool_ref: (B, NROWS)          constant GAP matrix (1/(H*W) on interior rows)
    wf_ref  : (C_FEAT, NCLS_PAD)  FC weight, zero-padded to 128 classes
    bf_ref  : (1, NCLS_PAD)       FC bias, zero-padded
    out_ref : (B, NCLS_PAD)       padded logits (single lane-dense store)
    """
    # 3x3 "same" conv as 9 statically shifted matmuls accumulated on the MXU.
    # Flat row r is padded pixel (b, ip, jp); tap (ki, kj) needs row
    # r + (ki-1)*WP + (kj-1), which the zero-extension turns into the static
    # slice x_ref[MAXOFF + (ki-1)*WP + (kj-1) + r].  Rows at padding positions
    # compute garbage that the pooling matrix weights with 0.
    acc = None
    for ki in range(KH):
        for kj in range(KW):
            off = MAXOFF + (ki - 1) * WP + (kj - 1)           # static in [0, 2*MAXOFF]
            slab = x_ref[off:off + NROWS, :]                  # (NROWS, C_IN)
            k = ki * KW + kj
            w_k = wc_ref[k * C_IN:(k + 1) * C_IN, :]          # (C_IN, C_FEAT)
            part = jnp.dot(slab, w_k, preferred_element_type=jnp.float32)
            acc = part if acc is None else acc + part
    feat = jnp.maximum(acc + bc_ref[...], 0.0)                # ReLU, (NROWS, C_FEAT)

    # Global-average-pool on the MXU (idle anyway) instead of an XLU
    # cross-sublane reduction; pad / out-of-batch rows carry weight 0.
    pooled = jnp.dot(pool_ref[...], feat,
                     preferred_element_type=jnp.float32)      # (B, C_FEAT)

    logits = jnp.dot(pooled, wf_ref[...],
                     preferred_element_type=jnp.float32) + bf_ref[...]
    out_ref[...] = logits                                     # (B, NCLS_PAD)


def das_model_forward(params, x_nchw, labels):
    """predictions = CAM(x); labels only select the CAM saliency map, which
    forward() discards."""
    del labels
    # Layout glue only (~11 KiB total, no 9x im2col expansion): NCHW -> NHWC,
    # pad spatially for "same" conv, flatten to rows, zero-extend the row axis
    # so every 3x3 tap is a static in-bounds slice inside the kernel.
    x_nhwc = jnp.transpose(x_nchw, (0, 2, 3, 1)).astype(jnp.float32)
    x_pad = jnp.pad(x_nhwc, ((0, 0), (1, 1), (1, 1), (0, 0)))      # (B, HP, WP, C_IN)
    x_flat = x_pad.reshape(NROWS, C_IN)
    x_ext = jnp.pad(x_flat, ((MAXOFF, MAXOFF), (0, 0)))            # (NROWS_EXT, C_IN)

    pool_mat = jnp.asarray(_POOL_MAT_NP)                           # trace-time constant

    out_padded = pl.pallas_call(
        _das_cam_kernel,
        out_shape=jax.ShapeDtypeStruct((B, NCLS_PAD), jnp.float32),
        grid=(1,),                       # single step: batch is in the matmul M dim
        in_specs=[
            pl.BlockSpec((NROWS_EXT, C_IN), lambda i: (0, 0)),
            pl.BlockSpec((KCOL, C_FEAT), lambda i: (0, 0)),
            pl.BlockSpec((1, C_FEAT), lambda i: (0, 0)),
            pl.BlockSpec((B, NROWS), lambda i: (0, 0)),
            pl.BlockSpec((C_FEAT, NCLS_PAD), lambda i: (0, 0)),
            pl.BlockSpec((1, NCLS_PAD), lambda i: (0, 0)),
        ],
        out_specs=pl.BlockSpec((B, NCLS_PAD), lambda i: (0, 0)),
        compiler_params=pltpu.CompilerParams(
            dimension_semantics=("arbitrary",)),   # keep the 1-step grid on one core
    )(x_ext, params["w_conv"], params["b_conv"], pool_mat,
      params["w_fc_pad"], params["b_fc_pad"])

    return out_padded[:, :NUM_CLASSES]             # predictions (logits)


def init_params(key):
    k1, k2 = jax.random.split(key, 2)
    # NOTE: real PyTorch Conv2d weights are (C_out, C_in, KH, KW) and would
    # need a transpose to (KH, KW, C_in, C_out) before this reshape.
    w_conv = jax.random.normal(k1, (KH, KW, C_IN, C_FEAT), jnp.float32) * 0.1
    w_conv = w_conv.reshape(KCOL, C_FEAT)          # rows ordered (ki, kj, c_in)
    b_conv = jnp.zeros((1, C_FEAT), jnp.float32)
    w_fc = jax.random.normal(k2, (C_FEAT, NUM_CLASSES), jnp.float32) * 0.1
    b_fc = jnp.zeros((1, NUM_CLASSES), jnp.float32)
    # Pad FC params to 128 classes once so the kernel's output store is one
    # lane-dense (B, 128) block (sliced back to NUM_CLASSES in the wrapper).
    w_fc_pad = jnp.zeros((C_FEAT, NCLS_PAD), jnp.float32).at[:, :NUM_CLASSES].set(w_fc)
    b_fc_pad = jnp.zeros((1, NCLS_PAD), jnp.float32).at[:, :NUM_CLASSES].set(b_fc)
    # From DASModel.__init__: torch.ones((1, n_faces, ts, ts, ts, 3)) * -0.9
    texture_param = jnp.ones(
        (1, N_FACES, TEXTURE_SIZE, TEXTURE_SIZE, TEXTURE_SIZE, 3),
        jnp.float32) * -0.9                        # unused in forward()
    return {
        "w_conv": w_conv, "b_conv": b_conv,
        "w_fc": w_fc, "b_fc": b_fc,
        "w_fc_pad": w_fc_pad, "b_fc_pad": b_fc_pad,
        "texture_param": texture_param,
    }


def _reference_forward(params, x_nchw):
    """Pure-JAX elementwise/VPU reference used to validate the fused kernel."""
    x = jnp.transpose(x_nchw, (0, 2, 3, 1)).astype(jnp.float32)
    xp = jnp.pad(x, ((0, 0), (1, 1), (1, 1), (0, 0)))
    w = params["w_conv"].reshape(KH, KW, C_IN, C_FEAT)
    conv = jnp.zeros((B, H, W, C_FEAT), jnp.float32)
    for ki in range(KH):
        for kj in range(KW):
            win = xp[:, ki:ki + H, kj:kj + W, :]               # (B, H, W, C_IN)
            conv = conv + (win[..., None] * w[ki, kj]).sum(axis=3)
    feat = jnp.maximum(conv + params["b_conv"][0], 0.0)
    pooled = feat.mean(axis=(1, 2))                            # (B, C_FEAT)
    return (pooled[:, :, None] * params["w_fc"][None]).sum(axis=1) + params["b_fc"]


if __name__ == "__main__":
    key = jax.random.PRNGKey(0)
    kx, kp = jax.random.split(key)
    params = init_params(kp)

    x = jax.random.normal(kx, (B, C_IN, H, W), jnp.float32)    # NCHW like PyTorch
    labels = jnp.zeros((B,), jnp.int32)

    fwd = jax.jit(das_model_forward)
    preds = fwd(params, x, labels)
    jax.block_until_ready(preds)
    assert preds.shape == (B, NUM_CLASSES)

    ref = _reference_forward(params, x)
    assert jnp.allclose(preds, ref, atol=2e-2, rtol=2e-2), "kernel deviates from reference"
    print("KERNEL_OK")
</pallas_src>

<mosaic_0001>
module attributes {stable_mosaic.version = 11 : i64} {
  func.func @_das_cam_kernel(%arg0: i32, %arg1: memref<686x4xf32, #tpu.memory_space<vmem>>, %arg2: memref<36x32xf32, #tpu.memory_space<vmem>>, %arg3: memref<1x32xf32, #tpu.memory_space<vmem>>, %arg4: memref<2x648xf32, #tpu.memory_space<vmem>>, %arg5: memref<32x128xf32, #tpu.memory_space<vmem>>, %arg6: memref<1x128xf32, #tpu.memory_space<vmem>>, %arg7: memref<2x128xf32, #tpu.memory_space<vmem>>) attributes {dimension_semantics = [#tpu.dimension_semantics<arbitrary>], iteration_bounds = array<i64: 1>, scalar_prefetch = 0 : i64, scratch_operands = 0 : i64, tpu.core_type = #tpu.core_type<tc>, window_params = [{pipeline_mode = #tpu.pipeline_mode<synchronous>, transform_indices = @transform_0, window_bounds = array<i64: 686, 4>}, {pipeline_mode = #tpu.pipeline_mode<synchronous>, transform_indices = @transform_1, window_bounds = array<i64: 36, 32>}, {pipeline_mode = #tpu.pipeline_mode<synchronous>, transform_indices = @transform_2, window_bounds = array<i64: 1, 32>}, {pipeline_mode = #tpu.pipeline_mode<synchronous>, transform_indices = @transform_3, window_bounds = array<i64: 2, 648>}, {pipeline_mode = #tpu.pipeline_mode<synchronous>, transform_indices = @transform_4, window_bounds = array<i64: 32, 128>}, {pipeline_mode = #tpu.pipeline_mode<synchronous>, transform_indices = @transform_5, window_bounds = array<i64: 1, 128>}, {pipeline_mode = #tpu.pipeline_mode<synchronous>, transform_indices = @transform_6, window_bounds = array<i64: 2, 128>}]} {
    %c0 = arith.constant 0 : index
    %c0_0 = arith.constant 0 : index
    %0 = vector.load %arg1[%c0, %c0_0] : memref<686x4xf32, #tpu.memory_space<vmem>>, vector<648x4xf32>
    %c0_1 = arith.constant 0 : index
    %c0_2 = arith.constant 0 : index
    %1 = vector.load %arg2[%c0_1, %c0_2] : memref<36x32xf32, #tpu.memory_space<vmem>>, vector<4x32xf32>
    %cst = arith.constant dense<0.000000e+00> : vector<648x32xf32>
    %2 = tpu.matmul %0, %1, %cst {dimension_numbers = #tpu.dot_dimension_numbers<[1], [0], [0], [1], [0, 0, 1, 1], [], []>} : vector<648x4xf32>, vector<4x32xf32>, vector<648x32xf32> -> vector<648x32xf32>
    %c1 = arith.constant 1 : index
    %c0_3 = arith.constant 0 : index
    %3 = vector.load %arg1[%c1, %c0_3] : memref<686x4xf32, #tpu.memory_space<vmem>>, vector<648x4xf32>
    %c4 = arith.constant 4 : index
    %c0_4 = arith.constant 0 : index
    %4 = vector.load %arg2[%c4, %c0_4] : memref<36x32xf32, #tpu.memory_space<vmem>>, vector<4x32xf32>
    %cst_5 = arith.constant dense<0.000000e+00> : vector<648x32xf32>
    %5 = tpu.matmul %3, %4, %cst_5 {dimension_numbers = #tpu.dot_dimension_numbers<[1], [0], [0], [1], [0, 0, 1, 1], [], []>} : vector<648x4xf32>, vector<4x32xf32>, vector<648x32xf32> -> vector<648x32xf32>
    %6 = arith.addf %2, %5 : vector<648x32xf32>
    %c2 = arith.constant 2 : index
    %c0_6 = arith.constant 0 : index
    %7 = vector.load %arg1[%c2, %c0_6] : memref<686x4xf32, #tpu.memory_space<vmem>>, vector<648x4xf32>
    %c8 = arith.constant 8 : index
    %c0_7 = arith.constant 0 : index
    %8 = vector.load %arg2[%c8, %c0_7] : memref<36x32xf32, #tpu.memory_space<vmem>>, vector<4x32xf32>
    %cst_8 = arith.constant dense<0.000000e+00> : vector<648x32xf32>
    %9 = tpu.matmul %7, %8, %cst_8 {dimension_numbers = #tpu.dot_dimension_numbers<[1], [0], [0], [1], [0, 0, 1, 1], [], []>} : vector<648x4xf32>, vector<4x32xf32>, vector<648x32xf32> -> vector<648x32xf32>
    %10 = arith.addf %6, %9 : vector<648x32xf32>
    %c18 = arith.constant 18 : index
    %c0_9 = arith.constant 0 : index
    %11 = vector.load %arg1[%c18, %c0_9] : memref<686x4xf32, #tpu.memory_space<vmem>>, vector<648x4xf32>
    %c12 = arith.constant 12 : index
    %c0_10 = arith.constant 0 : index
    %12 = vector.load %arg2[%c12, %c0_10] : memref<36x32xf32, #tpu.memory_space<vmem>>, vector<4x32xf32>
    %cst_11 = arith.constant dense<0.000000e+00> : vector<648x32xf32>
    %13 = tpu.matmul %11, %12, %cst_11 {dimension_numbers = #tpu.dot_dimension_numbers<[1], [0], [0], [1], [0, 0, 1, 1], [], []>} : vector<648x4xf32>, vector<4x32xf32>, vector<648x32xf32> -> vector<648x32xf32>
    %14 = arith.addf %10, %13 : vector<648x32xf32>
    %c19 = arith.constant 19 : index
    %c0_12 = arith.constant 0 : index
    %15 = vector.load %arg1[%c19, %c0_12] : memref<686x4xf32, #tpu.memory_space<vmem>>, vector<648x4xf32>
    %c16 = arith.constant 16 : index
    %c0_13 = arith.constant 0 : index
    %16 = vector.load %arg2[%c16, %c0_13] : memref<36x32xf32, #tpu.memory_space<vmem>>, vector<4x32xf32>
    %cst_14 = arith.constant dense<0.000000e+00> : vector<648x32xf32>
    %17 = tpu.matmul %15, %16, %cst_14 {dimension_numbers = #tpu.dot_dimension_numbers<[1], [0], [0], [1], [0, 0, 1, 1], [], []>} : vector<648x4xf32>, vector<4x32xf32>, vector<648x32xf32> -> vector<648x32xf32>
    %18 = arith.addf %14, %17 : vector<648x32xf32>
    %c20 = arith.constant 20 : index
    %c0_15 = arith.constant 0 : index
    %19 = vector.load %arg1[%c20, %c0_15] : memref<686x4xf32, #tpu.memory_space<vmem>>, vector<648x4xf32>
    %c20_16 = arith.constant 20 : index
    %c0_17 = arith.constant 0 : index
    %20 = vector.load %arg2[%c20_16, %c0_17] : memref<36x32xf32, #tpu.memory_space<vmem>>, vector<4x32xf32>
    %cst_18 = arith.constant dense<0.000000e+00> : vector<648x32xf32>
    %21 = tpu.matmul %19, %20, %cst_18 {dimension_numbers = #tpu.dot_dimension_numbers<[1], [0], [0], [1], [0, 0, 1, 1], [], []>} : vector<648x4xf32>, vector<4x32xf32>, vector<648x32xf32> -> vector<648x32xf32>
    %22 = arith.addf %18, %21 : vector<648x32xf32>
    %c36 = arith.constant 36 : index
    %c0_19 = arith.constant 0 : index
    %23 = vector.load %arg1[%c36, %c0_19] : memref<686x4xf32, #tpu.memory_space<vmem>>, vector<648x4xf32>
    %c24 = arith.constant 24 : index
    %c0_20 = arith.constant 0 : index
    %24 = vector.load %arg2[%c24, %c0_20] : memref<36x32xf32, #tpu.memory_space<vmem>>, vector<4x32xf32>
    %cst_21 = arith.constant dense<0.000000e+00> : vector<648x32xf32>
    %25 = tpu.matmul %23, %24, %cst_21 {dimension_numbers = #tpu.dot_dimension_numbers<[1], [0], [0], [1], [0, 0, 1, 1], [], []>} : vector<648x4xf32>, vector<4x32xf32>, vector<648x32xf32> -> vector<648x32xf32>
    %26 = arith.addf %22, %25 : vector<648x32xf32>
    %c37 = arith.constant 37 : index
    %c0_22 = arith.constant 0 : index
    %27 = vector.load %arg1[%c37, %c0_22] : memref<686x4xf32, #tpu.memory_space<vmem>>, vector<648x4xf32>
    %c28 = arith.constant 28 : index
    %c0_23 = arith.constant 0 : index
    %28 = vector.load %arg2[%c28, %c0_23] : memref<36x32xf32, #tpu.memory_space<vmem>>, vector<4x32xf32>
    %cst_24 = arith.constant dense<0.000000e+00> : vector<648x32xf32>
    %29 = tpu.matmul %27, %28, %cst_24 {dimension_numbers = #tpu.dot_dimension_numbers<[1], [0], [0], [1], [0, 0, 1, 1], [], []>} : vector<648x4xf32>, vector<4x32xf32>, vector<648x32xf32> -> vector<648x32xf32>
    %30 = arith.addf %26, %29 : vector<648x32xf32>
    %c38 = arith.constant 38 : index
    %c0_25 = arith.constant 0 : index
    %31 = vector.load %arg1[%c38, %c0_25] : memref<686x4xf32, #tpu.memory_space<vmem>>, vector<648x4xf32>
    %c32 = arith.constant 32 : index
    %c0_26 = arith.constant 0 : index
    %32 = vector.load %arg2[%c32, %c0_26] : memref<36x32xf32, #tpu.memory_space<vmem>>, vector<4x32xf32>
    %cst_27 = arith.constant dense<0.000000e+00> : vector<648x32xf32>
    %33 = tpu.matmul %31, %32, %cst_27 {dimension_numbers = #tpu.dot_dimension_numbers<[1], [0], [0], [1], [0, 0, 1, 1], [], []>} : vector<648x4xf32>, vector<4x32xf32>, vector<648x32xf32> -> vector<648x32xf32>
    %34 = arith.addf %30, %33 : vector<648x32xf32>
    %c0_28 = arith.constant 0 : index
    %c0_29 = arith.constant 0 : index
    %35 = vector.load %arg3[%c0_28, %c0_29] : memref<1x32xf32, #tpu.memory_space<vmem>>, vector<1x32xf32>
    %36 = vector.broadcast %35 : vector<1x32xf32> to vector<648x32xf32>
    %37 = arith.addf %34, %36 : vector<648x32xf32>
    %cst_30 = arith.constant 0.000000e+00 : f32
    %38 = vector.broadcast %cst_30 : f32 to vector<648x32xf32>
    %39 = arith.maximumf %37, %38 : vector<648x32xf32>
    %c0_31 = arith.constant 0 : index
    %c0_32 = arith.constant 0 : index
    %40 = vector.load %arg4[%c0_31, %c0_32] : memref<2x648xf32, #tpu.memory_space<vmem>>, vector<2x648xf32>
    %cst_33 = arith.constant dense<0.000000e+00> : vector<2x32xf32>
    %41 = tpu.matmul %40, %39, %cst_33 {dimension_numbers = #tpu.dot_dimension_numbers<[1], [0], [0], [1], [0, 0, 1, 1], [], []>} : vector<2x648xf32>, vector<648x32xf32>, vector<2x32xf32> -> vector<2x32xf32>
    %c0_34 = arith.constant 0 : index
    %c0_35 = arith.constant 0 : index
    %42 = vector.load %arg5[%c0_34, %c0_35] : memref<32x128xf32, #tpu.memory_space<vmem>>, vector<32x128xf32>
    %cst_36 = arith.constant dense<0.000000e+00> : vector<2x128xf32>
    %43 = tpu.matmul %41, %42, %cst_36 {dimension_numbers = #tpu.dot_dimension_numbers<[1], [0], [0], [1], [0, 0, 1, 1], [], []>} : vector<2x32xf32>, vector<32x128xf32>, vector<2x128xf32> -> vector<2x128xf32>
    %c0_37 = arith.constant 0 : index
    %c0_38 = arith.constant 0 : index
    %44 = vector.load %arg6[%c0_37, %c0_38] : memref<1x128xf32, #tpu.memory_space<vmem>>, vector<1x128xf32>
    %45 = vector.broadcast %44 : vector<1x128xf32> to vector<2x128xf32>
    %46 = arith.addf %43, %45 : vector<2x128xf32>
    %c0_39 = arith.constant 0 : index
    %c0_40 = arith.constant 0 : index
    %47 = vector.load %arg7[%c0_39, %c0_40] : memref<2x128xf32, #tpu.memory_space<vmem>>, vector<2x128xf32>
    tpu.vector_store %arg7[%c0_39, %c0_40], %46 {strides = array<i32>} : memref<2x128xf32, #tpu.memory_space<vmem>>, vector<2x128xf32>,
    return
  }
  func.func @transform_0(%arg0: i32) -> (i32, i32) {
    %c0_i32 = arith.constant 0 : i32
    %c0_i32_0 = arith.constant 0 : i32
    %c0_i32_1 = arith.constant 0 : i32
    return %c0_i32, %c0_i32_0 : i32, i32
  }
  func.func @transform_1(%arg0: i32) -> (i32, i32) {
    %c0_i32 = arith.constant 0 : i32
    %c0_i32_0 = arith.constant 0 : i32
    %c0_i32_1 = arith.constant 0 : i32
    return %c0_i32, %c0_i32_0 : i32, i32
  }
  func.func @transform_2(%arg0: i32) -> (i32, i32) {
    %c0_i32 = arith.constant 0 : i32
    %c0_i32_0 = arith.constant 0 : i32
    %c0_i32_1 = arith.constant 0 : i32
    return %c0_i32, %c0_i32_0 : i32, i32
  }
  func.func @transform_3(%arg0: i32) -> (i32, i32) {
    %c0_i32 = arith.constant 0 : i32
    %c0_i32_0 = arith.constant 0 : i32
    %c0_i32_1 = arith.constant 0 : i32
    return %c0_i32, %c0_i32_0 : i32, i32
  }
  func.func @transform_4(%arg0: i32) -> (i32, i32) {
    %c0_i32 = arith.constant 0 : i32
    %c0_i32_0 = arith.constant 0 : i32
    %c0_i32_1 = arith.constant 0 : i32
    return %c0_i32, %c0_i32_0 : i32, i32
  }
  func.func @transform_5(%arg0: i32) -> (i32, i32) {
    %c0_i32 = arith.constant 0 : i32
    %c0_i32_0 = arith.constant 0 : i32
    %c0_i32_1 = arith.constant 0 : i32
    return %c0_i32, %c0_i32_0 : i32, i32
  }
  func.func @transform_6(%arg0: i32) -> (i32, i32) {
    %c0_i32 = arith.constant 0 : i32
    %c0_i32_0 = arith.constant 0 : i32
    %c0_i32_1 = arith.constant 0 : i32
    return %c0_i32, %c0_i32_0 : i32, i32
  }
}

</mosaic_0001>

<bundles_post_ra>
// kernel: das_model_forward.1
= control target key start
LH: loop header
LB: loop body
LE: loop exit
PB: predicated region body
PF: predicated region fallthrough
CT: control target
= control target key end

     0   :  { %vm432_vm0 = vcmask 1043456   ;;  %v18890_v1 = vmov 0.0   ;;  %vm188_vm1 = vcmask 31744   ;;  %vm12191_vm2 = vmmov 0   ;;  %s18883_s0 = inlined_call_operand.vmem [shape: f32[686,4], index: 0, kind: input, shape index: {}]   ;;  %s18884_s1 = inlined_call_operand.vmem [shape: f32[36,32], index: 1, kind: input, shape index: {}]   ;;  %s18885_s2 = inlined_call_operand.vmem [shape: f32[1,32], index: 2, kind: input, shape index: {}]   ;;  %s18886_s3 = inlined_call_operand.vmem [shape: f32[2,648], index: 3, kind: input, shape index: {}]   ;;  %s18887_s4 = inlined_call_operand.vmem [shape: f32[32,128], index: 4, kind: input, shape index: {}]   ;;  %s18888_s5 = inlined_call_operand.vmem [shape: f32[1,128], index: 5, kind: input, shape index: {}]   ;;  %s18889_s6 = inlined_call_operand.hbm [shape: f32[2,128], index: 6, kind: output, shape index: {}]  }
   0x1   :  { %v187_v0 = vld [vmem:[%s18884_s1 + $0x4] sm:$0xf]  ;;  %9847 = vmatprep.subr.mxu0 %v18890_v1  ;;  %12157 = vmatprep.subr.mxu1 %v18890_v1  ;;  %v157_v3 = vld [vmem:[%s18883_s0 + $0x199] sm:$0xff]  ;;  %v107_v4 = vld [vmem:[%s18883_s0 + $0x9] sm:$0xff] }
   0x2   :  { %v106_v2 = vld [vmem:[%s18883_s0 + $0x1] sm:$0xff]  ;;  %9848 = vmatpush3.msk.msra.mxu0 %vm432_vm0, %v187_v0  ;;  %12158 = vmatpush3.msk.msra.mxu1 %vm432_vm0, %v187_v0  ;;  %v108_v6 = vld [vmem:[%s18883_s0 + $0x11] sm:$0xff]  ;;  %v159_v7 = vld [vmem:[%s18883_s0 + $0x1a9] sm:$0xff] }
   0x3   :  { %9849 = vmatprep.mubr.msk.f32.mxu0 %vm12191_vm2, %v18890_v1  ;;  %10002 = vmatprep.mubr.msk.f32.mxu1 %vm12191_vm2, %v18890_v1  ;;  %v158_v5 = vld [vmem:[%s18883_s0 + $0x1a1] sm:$0xff]  ;;  %v109_v8 = vld [vmem:[%s18883_s0 + $0x19] sm:$0xff]  ;;  %v160_v9 = vld [vmem:[%s18883_s0 + $0x1b1] sm:$0xff] }
   0x4   :  { %9850 = vmatmul.mubr.msk.f32.vlgmr.msra.gmra.mrb[0].mxu0 %vm188_vm1, %v106_v2  ;;  %10003 = vmatmul.mubr.msk.f32.vlgmr.msra.gmra.mrb[0].mxu1 %vm188_vm1, %v157_v3  ;;  %v110_v10 = vld [vmem:[%s18883_s0 + $0x21] sm:$0xff]  ;;  %v161_v11 = vld [vmem:[%s18883_s0 + $0x1b9] sm:$0xff]  ;;  %v111_v13 = vld [vmem:[%s18883_s0 + $0x29] sm:$0xff] }
   0x5   :  { %9852 = vmatprep.mubr.msk.f32.mxu0 %vm12191_vm2, %v18890_v1  ;;  %10005 = vmatprep.mubr.msk.f32.mxu1 %vm12191_vm2, %v18890_v1  ;;  %v105_v12 = vld [vmem:[%s18884_s1] sm:$0xf]  ;;  %v1703_v15 = vld [vmem:[%s18884_s1 + $0x8] sm:$0xf]  ;;  %v112_v16 = vld [vmem:[%s18883_s0 + $0x31] sm:$0xff] }
   0x6   :  { %10092 = vmatprep.subr.mxu1 %v18890_v1  ;;  %10337 = vmatprep.subr.mxu0 %v18890_v1  ;;  %v162_v14 = vld [vmem:[%s18883_s0 + $0x1c1] sm:$0xff]  ;;  %v163_v17 = vld [vmem:[%s18883_s0 + $0x1c9] sm:$0xff] }
   0x7   :  { %10093 = vmatpush3.msk.msra.mxu1 %vm432_vm0, %v105_v12  ;;  %10338 = vmatpush3.msk.msra.mxu0 %vm432_vm0, %v1703_v15 }
   0x8   :  { %9853 = vmatmul.mubr.msk.f32.gmra.mrb[2].mxu0 %vm188_vm1, %v107_v4  ;;  %10006 = vmatmul.mubr.msk.f32.gmra.mrb[2].mxu1 %vm188_vm1, %v158_v5 }
   0x9   :  { %9855 = vmatprep.mubr.msk.f32.mxu0 %vm12191_vm2, %v18890_v1  ;;  %10008 = vmatprep.mubr.msk.f32.mxu1 %vm12191_vm2, %v18890_v1 }
   0xa   :  { %10582 = vmatprep.subr.mxu1 %v18890_v1  ;;  %10827 = vmatprep.subr.mxu0 %v18890_v1 }
   0xc   :  { %9856 = vmatmul.mubr.msk.f32.gmra.mrb[4].mxu0 %vm188_vm1, %v108_v6  ;;  %10009 = vmatmul.mubr.msk.f32.gmra.mrb[4].mxu1 %vm188_vm1, %v159_v7 }
   0xd   :  { %9858 = vmatprep.mubr.msk.f32.mxu0 %vm12191_vm2, %v18890_v1  ;;  %10011 = vmatprep.mubr.msk.f32.mxu1 %vm12191_vm2, %v18890_v1 }
  0x10   :  { %9859 = vmatmul.mubr.msk.f32.gmra.mrb[6].mxu0 %vm188_vm1, %v109_v8  ;;  %10012 = vmatmul.mubr.msk.f32.gmra.mrb[6].mxu1 %vm188_vm1, %v160_v9 }
  0x11   :  { %9861 = vmatprep.mubr.msk.f32.mxu0 %vm12191_vm2, %v18890_v1  ;;  %10014 = vmatprep.mubr.msk.f32.mxu1 %vm12191_vm2, %v18890_v1 }
  0x14   :  { %9862 = vmatmul.mubr.msk.f32.gmra.mrb[8].mxu0 %vm188_vm1, %v110_v10  ;;  %10015 = vmatmul.mubr.msk.f32.gmra.mrb[8].mxu1 %vm188_vm1, %v161_v11 }
  0x15   :  { %9864 = vmatprep.mubr.msk.f32.mxu0 %vm12191_vm2, %v18890_v1  ;;  %10017 = vmatprep.mubr.msk.f32.mxu1 %vm12191_vm2, %v18890_v1 }
  0x18   :  { %9865 = vmatmul.mubr.msk.f32.gmra.mrb[10].mxu0 %vm188_vm1, %v111_v13  ;;  %10018 = vmatmul.mubr.msk.f32.gmra.mrb[10].mxu1 %vm188_vm1, %v162_v14 }
  0x19   :  { %9867 = vmatprep.mubr.msk.f32.mxu0 %vm12191_vm2, %v18890_v1  ;;  %10020 = vmatprep.mubr.msk.f32.mxu1 %vm12191_vm2, %v18890_v1 }
  0x1a   :  { %11 = vsyncpa [#allocation3], 0  ;;  %v113_v18 = vld [vmem:[%s18883_s0 + $0x39] sm:$0xff]  ;;  %v164_v19 = vld [vmem:[%s18883_s0 + $0x1d1] sm:$0xff]  ;;  %vm7978_vm3 = vcmask 64512   ;;  %vm8202_vm4 = vcmask 261120  }
  0x1b   :  { %v114_v20 = vld [vmem:[%s18883_s0 + $0x41] sm:$0xff]  ;;  %v165_v21 = vld [vmem:[%s18883_s0 + $0x1d9] sm:$0xff]  ;;  %v115_v22 = vld [vmem:[%s18883_s0 + $0x49] sm:$0xff]  ;;  %s12194_s15 = smov [#allocation2]  }
  0x1c   :  { %9868 = vmatmul.mubr.msk.f32.gmra.mrb[12].mxu0 %vm188_vm1, %v112_v16  ;;  %10021 = vmatmul.mubr.msk.f32.gmra.mrb[12].mxu1 %vm188_vm1, %v163_v17  ;;  %v166_v23 = vld [vmem:[%s18883_s0 + $0x1e1] sm:$0xff]  ;;  %v116_v24 = vld [vmem:[%s18883_s0 + $0x51] sm:$0xff]  ;;  %v167_v25 = vld [vmem:[%s18883_s0 + $0x1e9] sm:$0xff]  ;;  %s8283_s16 = sshll.u32 %s12194_s15, 4  ;;  %s8284_s16 = int_to_ptr.vmem [resolvable:$true] %s8283_s16 }
  0x1d   :  { %9870 = vmatprep.mubr.msk.f32.mxu0 %vm12191_vm2, %v18890_v1  ;;  %10023 = vmatprep.mubr.msk.f32.mxu1 %vm12191_vm2, %v18890_v1  ;;  %v117_v26 = vld [vmem:[%s18883_s0 + $0x59] sm:$0xff]  ;;  %v168_v27 = vld [vmem:[%s18883_s0 + $0x1f1] sm:$0xff]  ;;  %v118_v28 = vld [vmem:[%s18883_s0 + $0x61] sm:$0xff]  ;;  %p12171_p1 = scmp.lt.s32.totalorder %s8284_s16, %s8284_s16 }
  0x1e   :  { %v169_v29 = vld [vmem:[%s18883_s0 + $0x1f9] sm:$0xff]  ;;  %v119_v30 = vld [vmem:[%s18883_s0 + $0x69] sm:$0xff]  ;;  %v170_v31 = vld [vmem:[%s18883_s0 + $0x201] sm:$0xff] }
  0x1f   :  { %v120_v32 = vld [vmem:[%s18883_s0 + $0x71] sm:$0xff]  ;;  %v171_v33 = vld [vmem:[%s18883_s0 + $0x209] sm:$0xff]  ;;  %v121_v34 = vld [vmem:[%s18883_s0 + $0x79] sm:$0xff] }
  0x20   :  { %9871 = vmatmul.mubr.msk.f32.gmra.mrb[14].mxu0 %vm188_vm1, %v113_v18  ;;  %10024 = vmatmul.mubr.msk.f32.gmra.mrb[14].mxu1 %vm188_vm1, %v164_v19  ;;  %v172_v35 = vld [vmem:[%s18883_s0 + $0x211] sm:$0xff]  ;;  %v122_v36 = vld [vmem:[%s18883_s0 + $0x81] sm:$0xff]  ;;  %v173_v37 = vld [vmem:[%s18883_s0 + $0x219] sm:$0xff] }
  0x21   :  { %9873 = vmatprep.mubr.msk.f32.mxu0 %vm12191_vm2, %v18890_v1  ;;  %10026 = vmatprep.mubr.msk.f32.mxu1 %vm12191_vm2, %v18890_v1  ;;  %v123_v38 = vld [vmem:[%s18883_s0 + $0x89] sm:$0xff]  ;;  %v174_v39 = vld [vmem:[%s18883_s0 + $0x221] sm:$0xff]  ;;  %v124_v40 = vld [vmem:[%s18883_s0 + $0x91] sm:$0xff] }
  0x22   :  { %v175_v41 = vld [vmem:[%s18883_s0 + $0x229] sm:$0xff]  ;;  %v125_v42 = vld [vmem:[%s18883_s0 + $0x99] sm:$0xff]  ;;  %v176_v43 = vld [vmem:[%s18883_s0 + $0x231] sm:$0xff] }
  0x23   :  { %v126_v44 = vld [vmem:[%s18883_s0 + $0xa1] sm:$0xff]  ;;  %v177_v45 = vld [vmem:[%s18883_s0 + $0x239] sm:$0xff]  ;;  %v127_v46 = vld [vmem:[%s18883_s0 + $0xa9] sm:$0xff] }
  0x24   :  { %9874 = vmatmul.mubr.msk.f32.gmra.mrb[16].mxu0 %vm188_vm1, %v114_v20  ;;  %10027 = vmatmul.mubr.msk.f32.gmra.mrb[16].mxu1 %vm188_vm1, %v165_v21  ;;  %v178_v47 = vld [vmem:[%s18883_s0 + $0x241] sm:$0xff]  ;;  %v128_v48 = vld [vmem:[%s18883_s0 + $0xb1] sm:$0xff]  ;;  %v179_v49 = vld [vmem:[%s18883_s0 + $0x249] sm:$0xff] }
  0x25   :  { %9876 = vmatprep.mubr.msk.f32.mxu0 %vm12191_vm2, %v18890_v1  ;;  %10029 = vmatprep.mubr.msk.f32.mxu1 %vm12191_vm2, %v18890_v1  ;;  %v129_v50 = vld [vmem:[%s18883_s0 + $0xb9] sm:$0xff]  ;;  %v180_v51 = vld [vmem:[%s18883_s0 + $0x251] sm:$0xff]  ;;  %v130_v52 = vld [vmem:[%s18883_s0 + $0xc1] sm:$0xff] }
  0x26   :  { %v181_v53 = vld [vmem:[%s18883_s0 + $0x259] sm:$0xff]  ;;  %v131_v54 = vld [vmem:[%s18883_s0 + $0xc9] sm:$0xff]  ;;  %v182_v55 = vld [vmem:[%s18883_s0 + $0x261] sm:$0xff] }
  0x27   :  { %v132_v56 = vld [vmem:[%s18883_s0 + $0xd1] sm:$0xff]  ;;  %v183_v57 = vld [vmem:[%s18883_s0 + $0x269] sm:$0xff]  ;;  %v133_v58 = vld [vmem:[%s18883_s0 + $0xd9] sm:$0xff] }
  0x28   :  { %9877 = vmatmul.mubr.msk.f32.gmra.mrb[18].mxu0 %vm188_vm1, %v115_v22  ;;  %10030 = vmatmul.mubr.msk.f32.gmra.mrb[18].mxu1 %vm188_vm1, %v166_v23  ;;  %v184_v59 = vld [vmem:[%s18883_s0 + $0x271] sm:$0xff]  ;;  %v134_v60 = vld [vmem:[%s18883_s0 + $0xe1] sm:$0xff]  ;;  %v185_v61 = vld [vmem:[%s18883_s0 + $0x279] sm:$0xff] }
  0x29   :  { %9879 = vmatprep.mubr.msk.f32.mxu0 %vm12191_vm2, %v18890_v1  ;;  %10032 = vmatprep.mubr.msk.f32.mxu1 %vm12191_vm2, %v18890_v1  ;;  %v135_v62 = vld [vmem:[%s18883_s0 + $0xe9] sm:$0xff]  ;;  %v186_v63 = vld [vmem:[%s18883_s0 + $0x281] sm:$0xff]  ;;  %v136_v0 = vld [vmem:[%s18883_s0 + $0xf1] sm:$0xff] }
  0x2a   :  { %v24_v2 = vld [vmem:[%s18883_s0] sm:$0xff]  ;;  %v25_v4 = vld [vmem:[%s18883_s0 + $0x8] sm:$0xff]  ;;  %v26_v6 = vld [vmem:[%s18883_s0 + $0x10] sm:$0xff] }
  0x2b   :  { %v137_v3 = vld [vmem:[%s18883_s0 + $0xf9] sm:$0xff]  ;;  %v138_v5 = vld [vmem:[%s18883_s0 + $0x101] sm:$0xff]  ;;  %v139_v7 = vld [vmem:[%s18883_s0 + $0x109] sm:$0xff] }
  0x2c   :  { %9880 = vmatmul.mubr.msk.f32.gmra.mrb[20].mxu0 %vm188_vm1, %v116_v24  ;;  %10033 = vmatmul.mubr.msk.f32.gmra.mrb[20].mxu1 %vm188_vm1, %v167_v25  ;;  %v27_v8 = vld [vmem:[%s18883_s0 + $0x18] sm:$0xff]  ;;  %v28_v10 = vld [vmem:[%s18883_s0 + $0x20] sm:$0xff]  ;;  %v29_v12 = vld [vmem:[%s18883_s0 + $0x28] sm:$0xff] }
  0x2d   :  { %9882 = vmatprep.mubr.msk.f32.mxu0 %vm12191_vm2, %v18890_v1  ;;  %10035 = vmatprep.mubr.msk.f32.mxu1 %vm12191_vm2, %v18890_v1  ;;  %v140_v9 = vld [vmem:[%s18883_s0 + $0x111] sm:$0xff]  ;;  %v141_v11 = vld [vmem:[%s18883_s0 + $0x119] sm:$0xff]  ;;  %v142_v13 = vld [vmem:[%s18883_s0 + $0x121] sm:$0xff] }
  0x2e   :  { %v30_v14 = vld [vmem:[%s18883_s0 + $0x30] sm:$0xff]  ;;  %v31_v16 = vld [vmem:[%s18883_s0 + $0x38] sm:$0xff]  ;;  %v32_v18 = vld [vmem:[%s18883_s0 + $0x40] sm:$0xff] }
  0x2f   :  { %v143_v15 = vld [vmem:[%s18883_s0 + $0x129] sm:$0xff]  ;;  %v144_v17 = vld [vmem:[%s18883_s0 + $0x131] sm:$0xff]  ;;  %v145_v19 = vld [vmem:[%s18883_s0 + $0x139] sm:$0xff] }
  0x30   :  { %9883 = vmatmul.mubr.msk.f32.gmra.mrb[22].mxu0 %vm188_vm1, %v117_v26  ;;  %10036 = vmatmul.mubr.msk.f32.gmra.mrb[22].mxu1 %vm188_vm1, %v168_v27  ;;  %v33_v20 = vld [vmem:[%s18883_s0 + $0x48] sm:$0xff]  ;;  %v34_v22 = vld [vmem:[%s18883_s0 + $0x50] sm:$0xff]  ;;  %v35_v24 = vld [vmem:[%s18883_s0 + $0x58] sm:$0xff] }
  0x31   :  { %9885 = vmatprep.mubr.msk.f32.mxu0 %vm12191_vm2, %v18890_v1  ;;  %10038 = vmatprep.mubr.msk.f32.mxu1 %vm12191_vm2, %v18890_v1  ;;  %v146_v21 = vld [vmem:[%s18883_s0 + $0x141] sm:$0xff]  ;;  %v147_v23 = vld [vmem:[%s18883_s0 + $0x149] sm:$0xff]  ;;  %v148_v25 = vld [vmem:[%s18883_s0 + $0x151] sm:$0xff] }
  0x32   :  { %v36_v26 = vld [vmem:[%s18883_s0 + $0x60] sm:$0xff] }
  0x33   :  { %v149_v27 = vld [vmem:[%s18883_s0 + $0x159] sm:$0xff] }
  0x34   :  { %9886 = vmatmul.mubr.msk.f32.gmra.mrb[24].mxu0 %vm188_vm1, %v118_v28  ;;  %10039 = vmatmul.mubr.msk.f32.gmra.mrb[24].mxu1 %vm188_vm1, %v169_v29  ;;  %v37_v28 = vld [vmem:[%s18883_s0 + $0x68] sm:$0xff] }
  0x35   :  { %9888 = vmatprep.mubr.msk.f32.mxu0 %vm12191_vm2, %v18890_v1  ;;  %10041 = vmatprep.mubr.msk.f32.mxu1 %vm12191_vm2, %v18890_v1  ;;  %v150_v29 = vld [vmem:[%s18883_s0 + $0x161] sm:$0xff] }
  0x38   :  { %9889 = vmatmul.mubr.msk.f32.gmra.mrb[26].mxu0 %vm188_vm1, %v119_v30  ;;  %10042 = vmatmul.mubr.msk.f32.gmra.mrb[26].mxu1 %vm188_vm1, %v170_v31  ;;  %v38_v30 = vld [vmem:[%s18883_s0 + $0x70] sm:$0xff] }
  0x39   :  { %9891 = vmatprep.mubr.msk.f32.mxu0 %vm12191_vm2, %v18890_v1  ;;  %10044 = vmatprep.mubr.msk.f32.mxu1 %vm12191_vm2, %v18890_v1  ;;  %v151_v31 = vld [vmem:[%s18883_s0 + $0x169] sm:$0xff] }
  0x3c   :  { %9892 = vmatmul.mubr.msk.f32.gmra.mrb[28].mxu0 %vm188_vm1, %v120_v32  ;;  %10045 = vmatmul.mubr.msk.f32.gmra.mrb[28].mxu1 %vm188_vm1, %v171_v33  ;;  %v39_v32 = vld [vmem:[%s18883_s0 + $0x78] sm:$0xff] }
  0x3d   :  { %9894 = vmatprep.mubr.msk.f32.mxu0 %vm12191_vm2, %v18890_v1  ;;  %10047 = vmatprep.mubr.msk.f32.mxu1 %vm12191_vm2, %v18890_v1  ;;  %v152_v33 = vld [vmem:[%s18883_s0 + $0x171] sm:$0xff] }
  0x40   :  { %9895 = vmatmul.mubr.msk.f32.gmra.mrb[30].mxu0 %vm188_vm1, %v121_v34  ;;  %10048 = vmatmul.mubr.msk.f32.gmra.mrb[30].mxu1 %vm188_vm1, %v172_v35  ;;  %v40_v34 = vld [vmem:[%s18883_s0 + $0x80] sm:$0xff] }
  0x41   :  { %9897 = vmatprep.mubr.msk.f32.mxu0 %vm12191_vm2, %v18890_v1  ;;  %10050 = vmatprep.mubr.msk.f32.mxu1 %vm12191_vm2, %v18890_v1  ;;  %v153_v35 = vld [vmem:[%s18883_s0 + $0x179] sm:$0xff] }
  0x44   :  { %9898 = vmatmul.mubr.msk.f32.gmra.mrb[32].mxu0 %vm188_vm1, %v122_v36  ;;  %10051 = vmatmul.mubr.msk.f32.gmra.mrb[32].mxu1 %vm188_vm1, %v173_v37  ;;  %v41_v36 = vld [vmem:[%s18883_s0 + $0x88] sm:$0xff] }
  0x45   :  { %9900 = vmatprep.mubr.msk.f32.mxu0 %vm12191_vm2, %v18890_v1  ;;  %10053 = vmatprep.mubr.msk.f32.mxu1 %vm12191_vm2, %v18890_v1  ;;  %v154_v37 = vld [vmem:[%s18883_s0 + $0x181] sm:$0xff] }
  0x48   :  { %9901 = vmatmul.mubr.msk.f32.gmra.mrb[34].mxu0 %vm188_vm1, %v123_v38  ;;  %10054 = vmatmul.mubr.msk.f32.gmra.mrb[34].mxu1 %vm188_vm1, %v174_v39  ;;  %v42_v38 = vld [vmem:[%s18883_s0 + $0x90] sm:$0xff] }
  0x49   :  { %9903 = vmatprep.mubr.msk.f32.mxu0 %vm12191_vm2, %v18890_v1  ;;  %10056 = vmatprep.mubr.msk.f32.mxu1 %vm12191_vm2, %v18890_v1  ;;  %v155_v39 = vld [vmem:[%s18883_s0 + $0x189] sm:$0xff] }
  0x4c   :  { %9904 = vmatmul.mubr.msk.f32.gmra.mrb[36].mxu0 %vm188_vm1, %v124_v40  ;;  %10057 = vmatmul.mubr.msk.f32.gmra.mrb[36].mxu1 %vm188_vm1, %v175_v41  ;;  %v43_v40 = vld [vmem:[%s18883_s0 + $0x98] sm:$0xff] }
  0x4d   :  { %9906 = vmatprep.mubr.msk.f32.mxu0 %vm12191_vm2, %v18890_v1  ;;  %10059 = vmatprep.mubr.msk.f32.mxu1 %vm12191_vm2, %v18890_v1  ;;  %v156_v41 = vld [vmem:[%s18883_s0 + $0x191] sm:$0xff] }
  0x50   :  { %9907 = vmatmul.mubr.msk.f32.gmra.mrb[38].mxu0 %vm188_vm1, %v125_v42  ;;  %10060 = vmatmul.mubr.msk.f32.gmra.mrb[38].mxu1 %vm188_vm1, %v176_v43  ;;  %v44_v42 = vld [vmem:[%s18883_s0 + $0xa0] sm:$0xff]  ;;  %v45_v43 = vld [vmem:[%s18883_s0 + $0xa8] sm:$0xff] }
  0x51   :  { %9909 = vmatprep.mubr.msk.f32.mxu0 %vm12191_vm2, %v18890_v1  ;;  %10062 = vmatprep.mubr.msk.f32.mxu1 %vm12191_vm2, %v18890_v1 }
  0x54   :  { %9910 = vmatmul.mubr.msk.f32.gmra.mrb[40].mxu0 %vm188_vm1, %v126_v44  ;;  %10063 = vmatmul.mubr.msk.f32.gmra.mrb[40].mxu1 %vm188_vm1, %v177_v45  ;;  %v1622_v44 = vld [vmem:[%s18883_s0 + $0x2] sm:$0xff]  ;;  %v46_v45 = vld [vmem:[%s18883_s0 + $0xb0] sm:$0xff] }
  0x55   :  { %9912 = vmatprep.mubr.msk.f32.mxu0 %vm12191_vm2, %v18890_v1  ;;  %10065 = vmatprep.mubr.msk.f32.mxu1 %vm12191_vm2, %v18890_v1 }
  0x58   :  { %9913 = vmatmul.mubr.msk.f32.gmra.mrb[42].mxu0 %vm188_vm1, %v127_v46  ;;  %10066 = vmatmul.mubr.msk.f32.gmra.mrb[42].mxu1 %vm188_vm1, %v178_v47  ;;  %v1623_v46 = vld [vmem:[%s18883_s0 + $0xa] sm:$0xff]  ;;  %v47_v47 = vld [vmem:[%s18883_s0 + $0xb8] sm:$0xff] }
  0x59   :  { %9915 = vmatprep.mubr.msk.f32.mxu0 %vm12191_vm2, %v18890_v1  ;;  %10068 = vmatprep.mubr.msk.f32.mxu1 %vm12191_vm2, %v18890_v1 }
  0x5c   :  { %9916 = vmatmul.mubr.msk.f32.gmra.mrb[44].mxu0 %vm188_vm1, %v128_v48  ;;  %10069 = vmatmul.mubr.msk.f32.gmra.mrb[44].mxu1 %vm188_vm1, %v179_v49  ;;  %v1624_v48 = vld [vmem:[%s18883_s0 + $0x12] sm:$0xff] }
  0x5d   :  { %9918 = vmatprep.mubr.msk.f32.mxu0 %vm12191_vm2, %v18890_v1  ;;  %10071 = vmatprep.mubr.msk.f32.mxu1 %vm12191_vm2, %v18890_v1 }
  0x60   :  { %9919 = vmatmul.mubr.msk.f32.gmra.mrb[46].mxu0 %vm188_vm1, %v129_v50  ;;  %10072 = vmatmul.mubr.msk.f32.gmra.mrb[46].mxu1 %vm188_vm1, %v180_v51 }
  0x61   :  { %9921 = vmatprep.mubr.msk.f32.mxu0 %vm12191_vm2, %v18890_v1  ;;  %10074 = vmatprep.mubr.msk.f32.mxu1 %vm12191_vm2, %v18890_v1 }
  0x64   :  { %9922 = vmatmul.mubr.msk.f32.gmra.mrb[48].mxu0 %vm188_vm1, %v130_v52  ;;  %10075 = vmatmul.mubr.msk.f32.gmra.mrb[48].mxu1 %vm188_vm1, %v181_v53  ;;  %v2582_v53 = vld [vmem:[%s18884_s1 + $0xc] sm:$0xf] }
  0x65   :  { %9924 = vmatprep.mubr.msk.f32.mxu0 %vm12191_vm2, %v18890_v1  ;;  %10077 = vmatprep.mubr.msk.f32.mxu1 %vm12191_vm2, %v18890_v1 }
  0x68   :  { %9925 = vmatmul.mubr.msk.f32.gmra.mrb[50].mxu0 %vm188_vm1, %v131_v54  ;;  %10078 = vmatmul.mubr.msk.f32.gmra.mrb[50].mxu1 %vm188_vm1, %v182_v55  ;;  %v3461_v54 = vld [vmem:[%s18884_s1 + $0x10] sm:$0xf]  ;;  %v48_v55 = vld [vmem:[%s18883_s0 + $0xc0] sm:$0xff] }
  0x69   :  { %9927 = vmatprep.mubr.msk.f32.mxu0 %vm12191_vm2, %v18890_v1  ;;  %10080 = vmatprep.mubr.msk.f32.mxu1 %vm12191_vm2, %v18890_v1 }
  0x6c   :  { %9928 = vmatmul.mubr.msk.f32.gmra.mrb[52].mxu0 %vm188_vm1, %v132_v56  ;;  %10081 = vmatmul.mubr.msk.f32.gmra.mrb[52].mxu1 %vm188_vm1, %v183_v57  ;;  %v1625_v56 = vld [vmem:[%s18883_s0 + $0x1a] sm:$0xff] }
  0x6d   :  { %9930 = vmatprep.mubr.msk.f32.mxu0 %vm12191_vm2, %v18890_v1  ;;  %10083 = vmatprep.mubr.msk.f32.mxu1 %vm12191_vm2, %v18890_v1 }
  0x70   :  { %9931 = vmatmul.mubr.msk.f32.gmra.mrb[54].mxu0 %vm188_vm1, %v133_v58  ;;  %10084 = vmatmul.mubr.msk.f32.gmra.mrb[54].mxu1 %vm188_vm1, %v184_v59 }
  0x71   :  { %9933 = vmatprep.mubr.msk.f32.mxu0 %vm12191_vm2, %v18890_v1  ;;  %10086 = vmatprep.mubr.msk.f32.mxu1 %vm12191_vm2, %v18890_v1 }
  0x74   :  { %9934 = vmatmul.mubr.msk.f32.gmra.mrb[56].mxu0 %vm188_vm1, %v134_v60  ;;  %10087 = vmatmul.mubr.msk.f32.gmra.mrb[56].mxu1 %vm188_vm1, %v185_v61  ;;  %v49_v61 = vld [vmem:[%s18883_s0 + $0xc8] sm:$0xff] }
  0x75   :  { %9936 = vmatprep.mubr.msk.f32.mxu0 %vm12191_vm2, %v18890_v1  ;;  %10089 = vmatprep.mubr.msk.f32.mxu1 %vm12191_vm2, %v18890_v1 }
  0x78   :  { %9937 = vmatmul.mubr.msk.f32.gmra.mrb[58].mxu0 %vm188_vm1, %v135_v62  ;;  %10090 = vmatmul.mubr.msk.f32.gmra.mrb[58].mxu1 %vm188_vm1, %v186_v63  ;;  %v1626_v62 = vld [vmem:[%s18883_s0 + $0x22] sm:$0xff] }
  0x79   :  { %9939 = vmatprep.mubr.msk.f32.mxu0 %vm12191_vm2, %v18890_v1  ;;  %10094 = vmatprep.mubr.msk.f32.mxu1 %vm12191_vm2, %v18890_v1 }
  0x7c   :  { %9940 = vmatmul.mubr.msk.f32.gmra.mrb[60].mxu0 %vm188_vm1, %v136_v0  ;;  %10095 = vmatmul.mubr.msk.f32.vlgmr.msra.gmra.mrb[60].mxu1 %vm188_vm1, %v24_v2 }
  0x7d   :  { %9942 = vmatprep.mubr.msk.f32.mxu0 %vm12191_vm2, %v18890_v1  ;;  %10097 = vmatprep.mubr.msk.f32.mxu1 %vm12191_vm2, %v18890_v1 }
  0x7e   :  { %10583 = vmatpush3.msk.msra.mxu1 %vm432_vm0, %v2582_v53 }
  0x7f   :  { %11072 = vmatprep.subr.mxu1 %v18890_v1 }
  0x80   :  { %9943 = vmatmul.mubr.msk.f32.gmra.mrb[62].mxu0 %vm188_vm1, %v137_v3  ;;  %10098 = vmatmul.mubr.msk.f32.gmra.mrb[62].mxu1 %vm188_vm1, %v25_v4  ;;  %v50_v4 = vld [vmem:[%s18883_s0 + $0xd0] sm:$0xff] }
  0x81   :  { %9945 = vmatprep.mubr.msk.f32.mxu0 %vm12191_vm2, %v18890_v1  ;;  %10100 = vmatprep.mubr.msk.f32.mxu1 %vm12191_vm2, %v18890_v1 }
  0x84   :  { %9946 = vmatmul.mubr.msk.f32.gmra.mrb[64].mxu0 %vm188_vm1, %v138_v5  ;;  %10101 = vmatmul.mubr.msk.f32.gmra.mrb[64].mxu1 %vm188_vm1, %v26_v6  ;;  %v1627_v5 = vld [vmem:[%s18883_s0 + $0x2a] sm:$0xff] }
  0x85   :  { %9948 = vmatprep.mubr.msk.f32.mxu0 %vm12191_vm2, %v18890_v1  ;;  %10103 = vmatprep.mubr.msk.f32.mxu1 %vm12191_vm2, %v18890_v1 }
  0x88   :  { %9949 = vmatmul.mubr.msk.f32.gmra.mrb[66].mxu0 %vm188_vm1, %v139_v7  ;;  %10104 = vmatmul.mubr.msk.f32.gmra.mrb[66].mxu1 %vm188_vm1, %v27_v8 }
  0x89   :  { %9951 = vmatprep.mubr.msk.f32.mxu0 %vm12191_vm2, %v18890_v1  ;;  %10106 = vmatprep.mubr.msk.f32.mxu1 %vm12191_vm2, %v18890_v1 }
  0x8c   :  { %9952 = vmatmul.mubr.msk.f32.gmra.mrb[68].mxu0 %vm188_vm1, %v140_v9  ;;  %10107 = vmatmul.mubr.msk.f32.gmra.mrb[68].mxu1 %vm188_vm1, %v28_v10  ;;  %v51_v10 = vld [vmem:[%s18883_s0 + $0xd8] sm:$0xff] }
  0x8d   :  { %9954 = vmatprep.mubr.msk.f32.mxu0 %vm12191_vm2, %v18890_v1  ;;  %10109 = vmatprep.mubr.msk.f32.mxu1 %vm12191_vm2, %v18890_v1 }
  0x90   :  { %9955 = vmatmul.mubr.msk.f32.gmra.mrb[70].mxu0 %vm188_vm1, %v141_v11  ;;  %10110 = vmatmul.mubr.msk.f32.gmra.mrb[70].mxu1 %vm188_vm1, %v29_v12  ;;  %v1628_v11 = vld [vmem:[%s18883_s0 + $0x32] sm:$0xff] }
  0x91   :  { %9957 = vmatprep.mubr.msk.f32.mxu0 %vm12191_vm2, %v18890_v1  ;;  %10112 = vmatprep.mubr.msk.f32.mxu1 %vm12191_vm2, %v18890_v1 }
  0x94   :  { %9958 = vmatmul.mubr.msk.f32.gmra.mrb[72].mxu0 %vm188_vm1, %v142_v13  ;;  %10113 = vmatmul.mubr.msk.f32.gmra.mrb[72].mxu1 %vm188_vm1, %v30_v14 }
  0x95   :  { %9960 = vmatprep.mubr.msk.f32.mxu0 %vm12191_vm2, %v18890_v1  ;;  %10115 = vmatprep.mubr.msk.f32.mxu1 %vm12191_vm2, %v18890_v1 }
  0x98   :  { %9961 = vmatmul.mubr.msk.f32.gmra.mrb[74].mxu0 %vm188_vm1, %v143_v15  ;;  %10116 = vmatmul.mubr.msk.f32.gmra.mrb[74].mxu1 %vm188_vm1, %v31_v16  ;;  %v52_v16 = vld [vmem:[%s18883_s0 + $0xe0] sm:$0xff] }
  0x99   :  { %9963 = vmatprep.mubr.msk.f32.mxu0 %vm12191_vm2, %v18890_v1  ;;  %10118 = vmatprep.mubr.msk.f32.mxu1 %vm12191_vm2, %v18890_v1 }
  0x9c   :  { %9964 = vmatmul.mubr.msk.f32.gmra.mrb[76].mxu0 %vm188_vm1, %v144_v17  ;;  %10119 = vmatmul.mubr.msk.f32.gmra.mrb[76].mxu1 %vm188_vm1, %v32_v18  ;;  %v1629_v17 = vld [vmem:[%s18883_s0 + $0x3a] sm:$0xff] }
  0x9d   :  { %9966 = vmatprep.mubr.msk.f32.mxu0 %vm12191_vm2, %v18890_v1  ;;  %10121 = vmatprep.mubr.msk.f32.mxu1 %vm12191_vm2, %v18890_v1 }
  0xa0   :  { %9967 = vmatmul.mubr.msk.f32.gmra.mrb[78].mxu0 %vm188_vm1, %v145_v19  ;;  %10122 = vmatmul.mubr.msk.f32.gmra.mrb[78].mxu1 %vm188_vm1, %v33_v20 }
  0xa1   :  { %9969 = vmatprep.mubr.msk.f32.mxu0 %vm12191_vm2, %v18890_v1  ;;  %10124 = vmatprep.mubr.msk.f32.mxu1 %vm12191_vm2, %v18890_v1 }
  0xa4   :  { %9970 = vmatmul.mubr.msk.f32.gmra.mrb[80].mxu0 %vm188_vm1, %v146_v21  ;;  %10125 = vmatmul.mubr.msk.f32.gmra.mrb[80].mxu1 %vm188_vm1, %v34_v22  ;;  %v53_v22 = vld [vmem:[%s18883_s0 + $0xe8] sm:$0xff] }
  0xa5   :  { %9972 = vmatprep.mubr.msk.f32.mxu0 %vm12191_vm2, %v18890_v1  ;;  %10127 = vmatprep.mubr.msk.f32.mxu1 %vm12191_vm2, %v18890_v1 }
  0xa8   :  { %9973 = vmatmul.mubr.msk.f32.gmra.mrb[82].mxu0 %vm188_vm1, %v147_v23  ;;  %10128 = vmatmul.mubr.msk.f32.gmra.mrb[82].mxu1 %vm188_vm1, %v35_v24  ;;  %v1630_v23 = vld [vmem:[%s18883_s0 + $0x42] sm:$0xff] }
  0xa9   :  { %9975 = vmatprep.mubr.msk.f32.mxu0 %vm12191_vm2, %v18890_v1  ;;  %10130 = vmatprep.mubr.msk.f32.mxu1 %vm12191_vm2, %v18890_v1 }
  0xac   :  { %9976 = vmatmul.mubr.msk.f32.gmra.mrb[84].mxu0 %vm188_vm1, %v148_v25  ;;  %10131 = vmatmul.mubr.msk.f32.gmra.mrb[84].mxu1 %vm188_vm1, %v36_v26 }
  0xad   :  { %9978 = vmatprep.mubr.msk.f32.mxu0 %vm12191_vm2, %v18890_v1  ;;  %10133 = vmatprep.mubr.msk.f32.mxu1 %vm12191_vm2, %v18890_v1 }
  0xb0   :  { %9979 = vmatmul.mubr.msk.f32.gmra.mrb[86].mxu0 %vm188_vm1, %v149_v27  ;;  %10134 = vmatmul.mubr.msk.f32.gmra.mrb[86].mxu1 %vm188_vm1, %v37_v28  ;;  %v54_v28 = vld [vmem:[%s18883_s0 + $0xf0] sm:$0xff] }
  0xb1   :  { %9981 = vmatprep.mubr.msk.f32.mxu0 %vm12191_vm2, %v18890_v1  ;;  %10136 = vmatprep.mubr.msk.f32.mxu1 %vm12191_vm2, %v18890_v1 }
  0xb4   :  { %9982 = vmatmul.mubr.msk.f32.gmra.mrb[88].mxu0 %vm188_vm1, %v150_v29  ;;  %10137 = vmatmul.mubr.msk.f32.gmra.mrb[88].mxu1 %vm188_vm1, %v38_v30  ;;  %v1631_v29 = vld [vmem:[%s18883_s0 + $0x4a] sm:$0xff] }
  0xb5   :  { %9984 = vmatprep.mubr.msk.f32.mxu0 %vm12191_vm2, %v18890_v1  ;;  %10139 = vmatprep.mubr.msk.f32.mxu1 %vm12191_vm2, %v18890_v1 }
  0xb8   :  { %9985 = vmatmul.mubr.msk.f32.gmra.mrb[90].mxu0 %vm188_vm1, %v151_v31  ;;  %10140 = vmatmul.mubr.msk.f32.gmra.mrb[90].mxu1 %vm188_vm1, %v39_v32 }
  0xb9   :  { %9987 = vmatprep.mubr.msk.f32.mxu0 %vm12191_vm2, %v18890_v1  ;;  %10142 = vmatprep.mubr.msk.f32.mxu1 %vm12191_vm2, %v18890_v1 }
  0xbc   :  { %9988 = vmatmul.mubr.msk.f32.gmra.mrb[92].mxu0 %vm188_vm1, %v152_v33  ;;  %10143 = vmatmul.mubr.msk.f32.gmra.mrb[92].mxu1 %vm188_vm1, %v40_v34  ;;  %v55_v34 = vld [vmem:[%s18883_s0 + $0xf8] sm:$0xff] }
  0xbd   :  { %9990 = vmatprep.mubr.msk.f32.mxu0 %vm12191_vm2, %v18890_v1  ;;  %10145 = vmatprep.mubr.msk.f32.mxu1 %vm12191_vm2, %v18890_v1 }
  0xc0   :  { %9991 = vmatmul.mubr.msk.f32.gmra.mrb[94].mxu0 %vm188_vm1, %v153_v35  ;;  %10146 = vmatmul.mubr.msk.f32.gmra.mrb[94].mxu1 %vm188_vm1, %v41_v36  ;;  %v1632_v35 = vld [vmem:[%s18883_s0 + $0x52] sm:$0xff] }
  0xc1   :  { %9993 = vmatprep.mubr.msk.f32.mxu0 %vm12191_vm2, %v18890_v1  ;;  %10148 = vmatprep.mubr.msk.f32.mxu1 %vm12191_vm2, %v18890_v1 }
  0xc4   :  { %9994 = vmatmul.mubr.msk.f32.gmra.mrb[96].mxu0 %vm188_vm1, %v154_v37  ;;  %10149 = vmatmul.mubr.msk.f32.gmra.mrb[96].mxu1 %vm188_vm1, %v42_v38 }
  0xc5   :  { %9996 = vmatprep.mubr.msk.f32.mxu0 %vm12191_vm2, %v18890_v1  ;;  %10151 = vmatprep.mubr.msk.f32.mxu1 %vm12191_vm2, %v18890_v1 }
  0xc8   :  { %9997 = vmatmul.mubr.msk.f32.gmra.mrb[98].mxu0 %vm188_vm1, %v155_v39  ;;  %10152 = vmatmul.mubr.msk.f32.gmra.mrb[98].mxu1 %vm188_vm1, %v43_v40  ;;  %v56_v40 = vld [vmem:[%s18883_s0 + $0x100] sm:$0xff] }
  0xc9   :  { %9999 = vmatprep.mubr.msk.f32.mxu0 %vm12191_vm2, %v18890_v1  ;;  %10154 = vmatprep.mubr.msk.f32.mxu1 %vm12191_vm2, %v18890_v1 }
  0xcc   :  { %10000 = vmatmul.mubr.msk.f32.gmra.mrb[100].mxu0 %vm188_vm1, %v156_v41  ;;  %10155 = vmatmul.mubr.msk.f32.gmra.mrb[100].mxu1 %vm188_vm1, %v44_v42  ;;  %v1633_v41 = vld [vmem:[%s18883_s0 + $0x5a] sm:$0xff] }
  0xcd   :  { %10157 = vmatprep.mubr.msk.f32.mxu1 %vm12191_vm2, %v18890_v1  ;;  %10339 = vmatprep.mubr.msk.f32.mxu0 %vm12191_vm2, %v18890_v1 }
  0xd0   :  { %10158 = vmatmul.mubr.msk.f32.gmra.mrb[102].mxu1 %vm188_vm1, %v45_v43  ;;  %10340 = vmatmul.mubr.msk.f32.vlgmr.msra.gmra.mrb[102].mxu0 %vm188_vm1, %v1622_v44 }
  0xd1   :  { %10160 = vmatprep.mubr.msk.f32.mxu1 %vm12191_vm2, %v18890_v1  ;;  %10342 = vmatprep.mubr.msk.f32.mxu0 %vm12191_vm2, %v18890_v1 }
  0xd2   :  { %10828 = vmatpush3.msk.msra.mxu0 %vm432_vm0, %v3461_v54  ;;  %v58_v54 = vld [vmem:[%s18883_s0 + $0x110] sm:$0xff] }
  0xd3   :  { %11317 = vmatprep.subr.mxu0 %v18890_v1 }
  0xd4   :  { %10161 = vmatmul.mubr.msk.f32.gmra.mrb[104].mxu1 %vm188_vm1, %v46_v45  ;;  %10343 = vmatmul.mubr.msk.f32.gmra.mrb[104].mxu0 %vm188_vm1, %v1623_v46  ;;  %v57_v46 = vld [vmem:[%s18883_s0 + $0x108] sm:$0xff] }
  0xd5   :  { %10163 = vmatprep.mubr.msk.f32.mxu1 %vm12191_vm2, %v18890_v1  ;;  %10345 = vmatprep.mubr.msk.f32.mxu0 %vm12191_vm2, %v18890_v1 }
  0xd7   :  { %v12895_v49 = vpop.f32.mrb[0].mxu0  ;;  %v12897_v50 = vpop.f32.mrb[0].mxu1 }
  0xd8   :  { %v9851_v51 = vpop.f32.mrb[1].mxu0  ;;  %10164 = vmatmul.mubr.msk.f32.gmra.mrb[106].mxu1 %vm188_vm1, %v47_v47  ;;  %10346 = vmatmul.mubr.msk.f32.gmra.mrb[106].mxu0 %vm188_vm1, %v1624_v48  ;;  %v10004_v52 = vpop.f32.mrb[1].mxu1  ;;  %v1634_v47 = vld [vmem:[%s18883_s0 + $0x62] sm:$0xff] }
  0xd9   :  { %10166 = vmatprep.mubr.msk.f32.mxu1 %vm12191_vm2, %v18890_v1  ;;  %10348 = vmatprep.mubr.msk.f32.mxu0 %vm12191_vm2, %v18890_v1 }
  0xdb   :  { %v12919_v57 = vpop.f32.mrb[2].mxu0  ;;  %v12921_v58 = vpop.f32.mrb[2].mxu1 }
  0xdc   :  { %v9854_v59 = vpop.f32.mrb[3].mxu0  ;;  %10167 = vmatmul.mubr.msk.f32.gmra.mrb[108].mxu1 %vm188_vm1, %v48_v55  ;;  %10349 = vmatmul.mubr.msk.f32.gmra.mrb[108].mxu0 %vm188_vm1, %v1625_v56  ;;  %v10007_v60 = vpop.f32.mrb[3].mxu1  ;;  %v1635_v55 = vld [vmem:[%s18883_s0 + $0x6a] sm:$0xff] }
  0xdd   :  { %10169 = vmatprep.mubr.msk.f32.mxu1 %vm12191_vm2, %v18890_v1  ;;  %10351 = vmatprep.mubr.msk.f32.mxu0 %vm12191_vm2, %v18890_v1 }
  0xdf   :  { %v12937_v63 = vpop.f32.mrb[4].mxu0  ;;  %v12939_v0 = vpop.f32.mrb[4].mxu1 }
  0xe0   :  { %v9857_v2 = vpop.f32.mrb[5].mxu0  ;;  %10170 = vmatmul.mubr.msk.f32.gmra.mrb[110].mxu1 %vm188_vm1, %v49_v61  ;;  %10352 = vmatmul.mubr.msk.f32.gmra.mrb[110].mxu0 %vm188_vm1, %v1626_v62  ;;  %v10010_v3 = vpop.f32.mrb[5].mxu1  ;;  %v59_v62 = vld [vmem:[%s18883_s0 + $0x118] sm:$0xff] }
  0xe1   :  { %10172 = vmatprep.mubr.msk.f32.mxu1 %vm12191_vm2, %v18890_v1  ;;  %10354 = vmatprep.mubr.msk.f32.mxu0 %vm12191_vm2, %v18890_v1  ;;  %v1636_v2 = vld [vmem:[%s18883_s0 + $0x72] sm:$0xff] }
  0xe3   :  { %v12953_v6 = vpop.f32.mrb[6].mxu0  ;;  %v12955_v7 = vpop.f32.mrb[6].mxu1 }
  0xe4   :  { %v9860_v8 = vpop.f32.mrb[7].mxu0  ;;  %10173 = vmatmul.mubr.msk.f32.gmra.mrb[112].mxu1 %vm188_vm1, %v50_v4  ;;  %10355 = vmatmul.mubr.msk.f32.gmra.mrb[112].mxu0 %vm188_vm1, %v1627_v5  ;;  %v10013_v9 = vpop.f32.mrb[7].mxu1 }
  0xe5   :  { %10175 = vmatprep.mubr.msk.f32.mxu1 %vm12191_vm2, %v18890_v1  ;;  %10357 = vmatprep.mubr.msk.f32.mxu0 %vm12191_vm2, %v18890_v1  ;;  %v60_v9 = vld [vmem:[%s18883_s0 + $0x120] sm:$0xff] }
  0xe7   :  { %v12969_v12 = vpop.f32.mrb[8].mxu0  ;;  %v12971_v13 = vpop.f32.mrb[8].mxu1 }
  0xe8   :  { %18892 = vst [vmem:[#allocation5_spill] sm:$0xff] %v12971_v13  ;;  %v9863_v14 = vpop.f32.mrb[9].mxu0  ;;  %10176 = vmatmul.mubr.msk.f32.gmra.mrb[114].mxu1 %vm188_vm1, %v51_v10  ;;  %10358 = vmatmul.mubr.msk.f32.gmra.mrb[114].mxu0 %vm188_vm1, %v1628_v11  ;;  %v10016_v15 = vpop.f32.mrb[9].mxu1  ;;  %v1637_v10 = vld [vmem:[%s18883_s0 + $0x7a] sm:$0xff] }
  0xe9   :  { %10178 = vmatprep.mubr.msk.f32.mxu1 %vm12191_vm2, %v18890_v1  ;;  %10360 = vmatprep.mubr.msk.f32.mxu0 %vm12191_vm2, %v18890_v1 }
  0xeb   :  { %v12985_v18 = vpop.f32.mrb[10].mxu0  ;;  %v12987_v19 = vpop.f32.mrb[10].mxu1 }
  0xec   :  { %18893 = vst [vmem:[#allocation6_spill] sm:$0xff] %v12987_v19  ;;  %v9866_v20 = vpop.f32.mrb[11].mxu0  ;;  %10179 = vmatmul.mubr.msk.f32.gmra.mrb[116].mxu1 %vm188_vm1, %v52_v16  ;;  %10361 = vmatmul.mubr.msk.f32.gmra.mrb[116].mxu0 %vm188_vm1, %v1629_v17  ;;  %v10019_v21 = vpop.f32.mrb[11].mxu1  ;;  %v61_v17 = vld [vmem:[%s18883_s0 + $0x128] sm:$0xff]  ;;  %v98_v19 = vld [vmem:[%s18883_s0 + $0x250] sm:$0xff] }
  0xed   :  { %10181 = vmatprep.mubr.msk.f32.mxu1 %vm12191_vm2, %v18890_v1  ;;  %10363 = vmatprep.mubr.msk.f32.mxu0 %vm12191_vm2, %v18890_v1  ;;  %v1638_v20 = vld [vmem:[%s18883_s0 + $0x82] sm:$0xff] }
  0xef   :  { %v13001_v24 = vpop.f32.mrb[12].mxu0  ;;  %v13003_v25 = vpop.f32.mrb[12].mxu1 }
  0xf0   :  { %18894 = vst [vmem:[#allocation7_spill] sm:$0xff] %v13003_v25  ;;  %v9869_v26 = vpop.f32.mrb[13].mxu0  ;;  %10182 = vmatmul.mubr.msk.f32.gmra.mrb[118].mxu1 %vm188_vm1, %v53_v22  ;;  %10364 = vmatmul.mubr.msk.f32.gmra.mrb[118].mxu0 %vm188_vm1, %v1630_v23  ;;  %v10022_v27 = vpop.f32.mrb[13].mxu1  ;;  %v97_v25 = vld [vmem:[%s18883_s0 + $0x248] sm:$0xff] }
  0xf1   :  { %10184 = vmatprep.mubr.msk.f32.mxu1 %vm12191_vm2, %v18890_v1  ;;  %10366 = vmatprep.mubr.msk.f32.mxu0 %vm12191_vm2, %v18890_v1  ;;  %v62_v27 = vld [vmem:[%s18883_s0 + $0x130] sm:$0xff] }
  0xf3   :  { %v13017_v30 = vpop.f32.mrb[14].mxu0  ;;  %v13019_v31 = vpop.f32.mrb[14].mxu1 }
  0xf4   :  { %18895 = vst [vmem:[#allocation8_spill] sm:$0xff] %v13019_v31  ;;  %v9872_v32 = vpop.f32.mrb[15].mxu0  ;;  %10185 = vmatmul.mubr.msk.f32.gmra.mrb[120].mxu1 %vm188_vm1, %v54_v28  ;;  %10367 = vmatmul.mubr.msk.f32.gmra.mrb[120].mxu0 %vm188_vm1, %v1631_v29  ;;  %v10025_v33 = vpop.f32.mrb[15].mxu1  ;;  %v1639_v28 = vld [vmem:[%s18883_s0 + $0x8a] sm:$0xff]  ;;  %v96_v31 = vld [vmem:[%s18883_s0 + $0x240] sm:$0xff] }
  0xf5   :  { %10187 = vmatprep.mubr.msk.f32.mxu1 %vm12191_vm2, %v18890_v1  ;;  %10369 = vmatprep.mubr.msk.f32.mxu0 %vm12191_vm2, %v18890_v1 }
  0xf7   :  { %v13033_v36 = vpop.f32.mrb[16].mxu0  ;;  %v13035_v37 = vpop.f32.mrb[16].mxu1 }
  0xf8   :  { %18896 = vst [vmem:[#allocation9_spill] sm:$0xff] %v13035_v37  ;;  %v9875_v38 = vpop.f32.mrb[17].mxu0  ;;  %10188 = vmatmul.mubr.msk.f32.gmra.mrb[122].mxu1 %vm188_vm1, %v55_v34  ;;  %10370 = vmatmul.mubr.msk.f32.gmra.mrb[122].mxu0 %vm188_vm1, %v1632_v35  ;;  %v10028_v39 = vpop.f32.mrb[17].mxu1  ;;  %v63_v35 = vld [vmem:[%s18883_s0 + $0x138] sm:$0xff] }
  0xf9   :  { %10190 = vmatprep.mubr.msk.f32.mxu1 %vm12191_vm2, %v18890_v1  ;;  %10372 = vmatprep.mubr.msk.f32.mxu0 %vm12191_vm2, %v18890_v1  ;;  %v1640_v38 = vld [vmem:[%s18883_s0 + $0x92] sm:$0xff] }
  0xfa   :  { %v95_v37 = vld [vmem:[%s18883_s0 + $0x238] sm:$0xff] }
  0xfb   :  { %v13049_v42 = vpop.f32.mrb[18].mxu0  ;;  %v13051_v43 = vpop.f32.mrb[18].mxu1 }
  0xfc   :  { %18897 = vst [vmem:[#allocation10_spill] sm:$0xff] %v13051_v43  ;;  %v9878_v44 = vpop.f32.mrb[19].mxu0  ;;  %10191 = vmatmul.mubr.msk.f32.gmra.mrb[124].mxu1 %vm188_vm1, %v56_v40  ;;  %10373 = vmatmul.mubr.msk.f32.gmra.mrb[124].mxu0 %vm188_vm1, %v1633_v41  ;;  %v10031_v45 = vpop.f32.mrb[19].mxu1  ;;  %v94_v43 = vld [vmem:[%s18883_s0 + $0x230] sm:$0xff] }
  0xfd   :  { %10193 = vmatprep.mubr.msk.f32.mxu1 %vm12191_vm2, %v18890_v1  ;;  %10375 = vmatprep.mubr.msk.f32.mxu0 %vm12191_vm2, %v18890_v1  ;;  %v64_v45 = vld [vmem:[%s18883_s0 + $0x140] sm:$0xff] }
  0xff   :  { %v13065_v48 = vpop.f32.mrb[20].mxu0  ;;  %v13067_v51 = vpop.f32.mrb[20].mxu1 }
 0x100   :  { %18898 = vst [vmem:[#allocation11_spill] sm:$0xff] %v13067_v51  ;;  %v9881_v52 = vpop.f32.mrb[21].mxu0  ;;  %10194 = vmatmul.mubr.msk.f32.gmra.mrb[126].mxu1 %vm188_vm1, %v57_v46  ;;  %10376 = vmatmul.mubr.msk.f32.gmra.mrb[126].mxu0 %vm188_vm1, %v1634_v47  ;;  %v10034_v53 = vpop.f32.mrb[21].mxu1  ;;  %v1641_v46 = vld [vmem:[%s18883_s0 + $0x9a] sm:$0xff]  ;;  %v93_v51 = vld [vmem:[%s18883_s0 + $0x228] sm:$0xff] }
 0x101   :  { %10196 = vmatprep.mubr.msk.f32.mxu1 %vm12191_vm2, %v18890_v1  ;;  %10378 = vmatprep.mubr.msk.f32.mxu0 %vm12191_vm2, %v18890_v1 }
 0x103   :  { %v13081_v56 = vpop.f32.mrb[22].mxu0  ;;  %v13083_v59 = vpop.f32.mrb[22].mxu1 }
 0x104   :  { %18899 = vst [vmem:[#allocation12_spill] sm:$0xff] %v13083_v59  ;;  %v9884_v60 = vpop.f32.mrb[23].mxu0  ;;  %10197 = vmatmul.mubr.msk.f32.gmra.mrb[128].mxu1 %vm188_vm1, %v58_v54  ;;  %10379 = vmatmul.mubr.msk.f32.gmra.mrb[128].mxu0 %vm188_vm1, %v1635_v55  ;;  %v10037_v61 = vpop.f32.mrb[23].mxu1  ;;  %v65_v55 = vld [vmem:[%s18883_s0 + $0x148] sm:$0xff]  ;;  %v92_v59 = vld [vmem:[%s18883_s0 + $0x220] sm:$0xff] }
 0x105   :  { %10199 = vmatprep.mubr.msk.f32.mxu1 %vm12191_vm2, %v18890_v1  ;;  %10381 = vmatprep.mubr.msk.f32.mxu0 %vm12191_vm2, %v18890_v1  ;;  %v1642_v60 = vld [vmem:[%s18883_s0 + $0xa2] sm:$0xff] }
 0x107   :  { %v13097_v3 = vpop.f32.mrb[24].mxu0  ;;  %v13099_v4 = vpop.f32.mrb[24].mxu1 }
 0x108   :  { %18900 = vst [vmem:[#allocation13_spill] sm:$0xff] %v13099_v4  ;;  %v9887_v5 = vpop.f32.mrb[25].mxu0  ;;  %10200 = vmatmul.mubr.msk.f32.gmra.mrb[130].mxu1 %vm188_vm1, %v59_v62  ;;  %10382 = vmatmul.mubr.msk.f32.gmra.mrb[130].mxu0 %vm188_vm1, %v1636_v2  ;;  %v10040_v8 = vpop.f32.mrb[25].mxu1  ;;  %v91_v4 = vld [vmem:[%s18883_s0 + $0x218] sm:$0xff] }
 0x109   :  { %10202 = vmatprep.mubr.msk.f32.mxu1 %vm12191_vm2, %v18890_v1  ;;  %10384 = vmatprep.mubr.msk.f32.mxu0 %vm12191_vm2, %v18890_v1  ;;  %v66_v8 = vld [vmem:[%s18883_s0 + $0x150] sm:$0xff] }
 0x10b   :  { %v13113_v11 = vpop.f32.mrb[26].mxu0  ;;  %v13115_v14 = vpop.f32.mrb[26].mxu1 }
 0x10c   :  { %18901 = vst [vmem:[#allocation14_spill] sm:$0xff] %v13115_v14  ;;  %v9890_v15 = vpop.f32.mrb[27].mxu0  ;;  %10203 = vmatmul.mubr.msk.f32.gmra.mrb[132].mxu1 %vm188_vm1, %v60_v9  ;;  %10385 = vmatmul.mubr.msk.f32.gmra.mrb[132].mxu0 %vm188_vm1, %v1637_v10  ;;  %v10043_v16 = vpop.f32.mrb[27].mxu1  ;;  %v1643_v9 = vld [vmem:[%s18883_s0 + $0xaa] sm:$0xff] }
 0x10d   :  { %10205 = vmatprep.mubr.msk.f32.mxu1 %vm12191_vm2, %v18890_v1  ;;  %10387 = vmatprep.mubr.msk.f32.mxu0 %vm12191_vm2, %v18890_v1  ;;  %v90_v14 = vld [vmem:[%s18883_s0 + $0x210] sm:$0xff] }
 0x10f   :  { %v13129_v21 = vpop.f32.mrb[28].mxu0  ;;  %v13131_v22 = vpop.f32.mrb[28].mxu1 }
 0x110   :  { %18902 = vst [vmem:[#allocation15_spill] sm:$0xff] %v13131_v22  ;;  %v9893_v23 = vpop.f32.mrb[29].mxu0  ;;  %10206 = vmatmul.mubr.msk.f32.gmra.mrb[134].mxu1 %vm188_vm1, %v61_v17  ;;  %10388 = vmatmul.mubr.msk.f32.gmra.mrb[134].mxu0 %vm188_vm1, %v1638_v20  ;;  %v10046_v26 = vpop.f32.mrb[29].mxu1  ;;  %v67_v20 = vld [vmem:[%s18883_s0 + $0x158] sm:$0xff]  ;;  %v89_v22 = vld [vmem:[%s18883_s0 + $0x208] sm:$0xff] }
 0x111   :  { %10208 = vmatprep.mubr.msk.f32.mxu1 %vm12191_vm2, %v18890_v1  ;;  %10390 = vmatprep.mubr.msk.f32.mxu0 %vm12191_vm2, %v18890_v1  ;;  %v1644_v23 = vld [vmem:[%s18883_s0 + $0xb2] sm:$0xff] }
 0x113   :  { %v13145_v29 = vpop.f32.mrb[30].mxu0  ;;  %v13147_v32 = vpop.f32.mrb[30].mxu1 }
 0x114   :  { %18903 = vst [vmem:[#allocation16_spill] sm:$0xff] %v13147_v32  ;;  %v9896_v33 = vpop.f32.mrb[31].mxu0  ;;  %10209 = vmatmul.mubr.msk.f32.gmra.mrb[136].mxu1 %vm188_vm1, %v62_v27  ;;  %10391 = vmatmul.mubr.msk.f32.gmra.mrb[136].mxu0 %vm188_vm1, %v1639_v28  ;;  %v10049_v34 = vpop.f32.mrb[31].mxu1  ;;  %v88_v32 = vld [vmem:[%s18883_s0 + $0x200] sm:$0xff] }
 0x115   :  { %10211 = vmatprep.mubr.msk.f32.mxu1 %vm12191_vm2, %v18890_v1  ;;  %10393 = vmatprep.mubr.msk.f32.mxu0 %vm12191_vm2, %v18890_v1  ;;  %v68_v34 = vld [vmem:[%s18883_s0 + $0x160] sm:$0xff] }
 0x117   :  { %v13161_v39 = vpop.f32.mrb[32].mxu0  ;;  %v13163_v40 = vpop.f32.mrb[32].mxu1 }
 0x118   :  { %18904 = vst [vmem:[#allocation17_spill] sm:$0xff] %v13163_v40  ;;  %v9899_v41 = vpop.f32.mrb[33].mxu0  ;;  %10212 = vmatmul.mubr.msk.f32.gmra.mrb[138].mxu1 %vm188_vm1, %v63_v35  ;;  %10394 = vmatmul.mubr.msk.f32.gmra.mrb[138].mxu0 %vm188_vm1, %v1640_v38  ;;  %v10052_v44 = vpop.f32.mrb[33].mxu1  ;;  %v1645_v35 = vld [vmem:[%s18883_s0 + $0xba] sm:$0xff] }
 0x119   :  { %10214 = vmatprep.mubr.msk.f32.mxu1 %vm12191_vm2, %v18890_v1  ;;  %10396 = vmatprep.mubr.msk.f32.mxu0 %vm12191_vm2, %v18890_v1  ;;  %v87_v40 = vld [vmem:[%s18883_s0 + $0x1f8] sm:$0xff] }
 0x11b   :  { %v13177_v47 = vpop.f32.mrb[34].mxu0  ;;  %v13179_v52 = vpop.f32.mrb[34].mxu1 }
 0x11c   :  { %18905 = vst [vmem:[#allocation18_spill] sm:$0xff] %v13179_v52  ;;  %v9902_v53 = vpop.f32.mrb[35].mxu0  ;;  %10215 = vmatmul.mubr.msk.f32.gmra.mrb[140].mxu1 %vm188_vm1, %v64_v45  ;;  %10397 = vmatmul.mubr.msk.f32.gmra.mrb[140].mxu0 %vm188_vm1, %v1641_v46  ;;  %v10055_v54 = vpop.f32.mrb[35].mxu1  ;;  %v69_v46 = vld [vmem:[%s18883_s0 + $0x168] sm:$0xff]  ;;  %v86_v52 = vld [vmem:[%s18883_s0 + $0x1f0] sm:$0xff] }
 0x11d   :  { %10217 = vmatprep.mubr.msk.f32.mxu1 %vm12191_vm2, %v18890_v1  ;;  %10399 = vmatprep.mubr.msk.f32.mxu0 %vm12191_vm2, %v18890_v1  ;;  %v1646_v53 = vld [vmem:[%s18883_s0 + $0xc2] sm:$0xff] }
 0x11f   :  { %v13193_v61 = vpop.f32.mrb[36].mxu0  ;;  %v13195_v62 = vpop.f32.mrb[36].mxu1 }
 0x120   :  { %18906 = vst [vmem:[#allocation19_spill] sm:$0xff] %v13195_v62  ;;  %v9905_v2 = vpop.f32.mrb[37].mxu0  ;;  %10218 = vmatmul.mubr.msk.f32.gmra.mrb[142].mxu1 %vm188_vm1, %v65_v55  ;;  %10400 = vmatmul.mubr.msk.f32.gmra.mrb[142].mxu0 %vm188_vm1, %v1642_v60  ;;  %v10058_v5 = vpop.f32.mrb[37].mxu1  ;;  %v85_v62 = vld [vmem:[%s18883_s0 + $0x1e8] sm:$0xff] }
 0x121   :  { %10220 = vmatprep.mubr.msk.f32.mxu1 %vm12191_vm2, %v18890_v1  ;;  %10402 = vmatprep.mubr.msk.f32.mxu0 %vm12191_vm2, %v18890_v1  ;;  %v70_v5 = vld [vmem:[%s18883_s0 + $0x170] sm:$0xff] }
 0x123   :  { %v13209_v10 = vpop.f32.mrb[38].mxu0  ;;  %v13211_v15 = vpop.f32.mrb[38].mxu1 }
 0x124   :  { %18907 = vst [vmem:[#allocation20_spill] sm:$0xff] %v13211_v15  ;;  %v9908_v16 = vpop.f32.mrb[39].mxu0  ;;  %10221 = vmatmul.mubr.msk.f32.gmra.mrb[144].mxu1 %vm188_vm1, %v66_v8  ;;  %10403 = vmatmul.mubr.msk.f32.gmra.mrb[144].mxu0 %vm188_vm1, %v1643_v9  ;;  %v10061_v17 = vpop.f32.mrb[39].mxu1  ;;  %v1647_v8 = vld [vmem:[%s18883_s0 + $0xca] sm:$0xff]  ;;  %v84_v15 = vld [vmem:[%s18883_s0 + $0x1e0] sm:$0xff] }
 0x125   :  { %10223 = vmatprep.mubr.msk.f32.mxu1 %vm12191_vm2, %v18890_v1  ;;  %10405 = vmatprep.mubr.msk.f32.mxu0 %vm12191_vm2, %v18890_v1 }
 0x127   :  { %v13225_v26 = vpop.f32.mrb[40].mxu0  ;;  %v13227_v27 = vpop.f32.mrb[40].mxu1 }
 0x128   :  { %18908 = vst [vmem:[#allocation21_spill] sm:$0xff] %v13227_v27  ;;  %v9911_v28 = vpop.f32.mrb[41].mxu0  ;;  %10224 = vmatmul.mubr.msk.f32.gmra.mrb[146].mxu1 %vm188_vm1, %v67_v20  ;;  %10406 = vmatmul.mubr.msk.f32.gmra.mrb[146].mxu0 %vm188_vm1, %v1644_v23  ;;  %v10064_v33 = vpop.f32.mrb[41].mxu1  ;;  %v71_v23 = vld [vmem:[%s18883_s0 + $0x178] sm:$0xff] }
 0x129   :  { %10226 = vmatprep.mubr.msk.f32.mxu1 %vm12191_vm2, %v18890_v1  ;;  %10408 = vmatprep.mubr.msk.f32.mxu0 %vm12191_vm2, %v18890_v1  ;;  %v1648_v28 = vld [vmem:[%s18883_s0 + $0xd2] sm:$0xff] }
 0x12a   :  { %v83_v27 = vld [vmem:[%s18883_s0 + $0x1d8] sm:$0xff] }
 0x12b   :  { %v13241_v38 = vpop.f32.mrb[42].mxu0  ;;  %v13243_v41 = vpop.f32.mrb[42].mxu1 }
 0x12c   :  { %18909 = vst [vmem:[#allocation22_spill] sm:$0xff] %v13243_v41  ;;  %v9914_v44 = vpop.f32.mrb[43].mxu0  ;;  %10227 = vmatmul.mubr.msk.f32.gmra.mrb[148].mxu1 %vm188_vm1, %v68_v34  ;;  %10409 = vmatmul.mubr.msk.f32.gmra.mrb[148].mxu0 %vm188_vm1, %v1645_v35  ;;  %v10067_v45 = vpop.f32.mrb[43].mxu1  ;;  %v82_v41 = vld [vmem:[%s18883_s0 + $0x1d0] sm:$0xff] }
 0x12d   :  { %10229 = vmatprep.mubr.msk.f32.mxu1 %vm12191_vm2, %v18890_v1  ;;  %10411 = vmatprep.mubr.msk.f32.mxu0 %vm12191_vm2, %v18890_v1  ;;  %v72_v45 = vld [vmem:[%s18883_s0 + $0x180] sm:$0xff] }
 0x12f   :  { %v13257_v54 = vpop.f32.mrb[44].mxu0  ;;  %v13259_v55 = vpop.f32.mrb[44].mxu1 }
 0x130   :  { %18910 = vst [vmem:[#allocation23_spill] sm:$0xff] %v13259_v55  ;;  %v9917_v60 = vpop.f32.mrb[45].mxu0  ;;  %10230 = vmatmul.mubr.msk.f32.gmra.mrb[150].mxu1 %vm188_vm1, %v69_v46  ;;  %10412 = vmatmul.mubr.msk.f32.gmra.mrb[150].mxu0 %vm188_vm1, %v1646_v53  ;;  %v10070_v2 = vpop.f32.mrb[45].mxu1  ;;  %v1649_v46 = vld [vmem:[%s18883_s0 + $0xda] sm:$0xff]  ;;  %v81_v55 = vld [vmem:[%s18883_s0 + $0x1c8] sm:$0xff] }
 0x131   :  { %10232 = vmatprep.mubr.msk.f32.mxu1 %vm12191_vm2, %v18890_v1  ;;  %10414 = vmatprep.mubr.msk.f32.mxu0 %vm12191_vm2, %v18890_v1 }
 0x133   :  { %v13273_v9 = vpop.f32.mrb[46].mxu0  ;;  %v13275_v16 = vpop.f32.mrb[46].mxu1 }
 0x134   :  { %18911 = vst [vmem:[#allocation24_spill] sm:$0xff] %v13275_v16  ;;  %v9920_v17 = vpop.f32.mrb[47].mxu0  ;;  %10233 = vmatmul.mubr.msk.f32.gmra.mrb[152].mxu1 %vm188_vm1, %v70_v5  ;;  %10415 = vmatmul.mubr.msk.f32.gmra.mrb[152].mxu0 %vm188_vm1, %v1647_v8  ;;  %v10073_v20 = vpop.f32.mrb[47].mxu1  ;;  %v73_v8 = vld [vmem:[%s18883_s0 + $0x188] sm:$0xff]  ;;  %v80_v16 = vld [vmem:[%s18883_s0 + $0x1c0] sm:$0xff] }
 0x135   :  { %10235 = vmatprep.mubr.msk.f32.mxu1 %vm12191_vm2, %v18890_v1  ;;  %10417 = vmatprep.mubr.msk.f32.mxu0 %vm12191_vm2, %v18890_v1  ;;  %v1650_v17 = vld [vmem:[%s18883_s0 + $0xe2] sm:$0xff] }
 0x137   :  { %v13289_v33 = vpop.f32.mrb[48].mxu0  ;;  %v13291_v34 = vpop.f32.mrb[48].mxu1 }
 0x138   :  { %18912 = vst [vmem:[#allocation25_spill] sm:$0xff] %v13291_v34  ;;  %v9923_v35 = vpop.f32.mrb[49].mxu0  ;;  %10236 = vmatmul.mubr.msk.f32.gmra.mrb[154].mxu1 %vm188_vm1, %v71_v23  ;;  %10418 = vmatmul.mubr.msk.f32.gmra.mrb[154].mxu0 %vm188_vm1, %v1648_v28  ;;  %v10076_v44 = vpop.f32.mrb[49].mxu1  ;;  %v79_v34 = vld [vmem:[%s18883_s0 + $0x1b8] sm:$0xff] }
 0x139   :  { %10238 = vmatprep.mubr.msk.f32.mxu1 %vm12191_vm2, %v18890_v1  ;;  %10420 = vmatprep.mubr.msk.f32.mxu0 %vm12191_vm2, %v18890_v1  ;;  %v74_v44 = vld [vmem:[%s18883_s0 + $0x190] sm:$0xff] }
 0x13b   :  { %v13305_v53 = vpop.f32.mrb[50].mxu0  ;;  %v13307_v60 = vpop.f32.mrb[50].mxu1 }
 0x13c   :  { %18913 = vst [vmem:[#allocation26_spill] sm:$0xff] %v13307_v60  ;;  %v9926_v2 = vpop.f32.mrb[51].mxu0  ;;  %10239 = vmatmul.mubr.msk.f32.gmra.mrb[156].mxu1 %vm188_vm1, %v72_v45  ;;  %10421 = vmatmul.mubr.msk.f32.gmra.mrb[156].mxu0 %vm188_vm1, %v1649_v46  ;;  %v10079_v5 = vpop.f32.mrb[51].mxu1  ;;  %v1651_v45 = vld [vmem:[%s18883_s0 + $0xea] sm:$0xff] }
 0x13d   :  { %10241 = vmatprep.mubr.msk.f32.mxu1 %vm12191_vm2, %v18890_v1  ;;  %10423 = vmatprep.mubr.msk.f32.mxu0 %vm12191_vm2, %v18890_v1  ;;  %v78_v60 = vld [vmem:[%s18883_s0 + $0x1b0] sm:$0xff] }
 0x13f   :  { %v13321_v20 = vpop.f32.mrb[52].mxu0  ;;  %v13323_v23 = vpop.f32.mrb[52].mxu1 }
 0x140   :  { %18914 = vst [vmem:[#allocation27_spill] sm:$0xff] %v13323_v23  ;;  %v9929_v28 = vpop.f32.mrb[53].mxu0  ;;  %10242 = vmatmul.mubr.msk.f32.gmra.mrb[158].mxu1 %vm188_vm1, %v73_v8  ;;  %10424 = vmatmul.mubr.msk.f32.gmra.mrb[158].mxu0 %vm188_vm1, %v1650_v17  ;;  %v10082_v35 = vpop.f32.mrb[53].mxu1  ;;  %v75_v17 = vld [vmem:[%s18883_s0 + $0x198] sm:$0xff]  ;;  %v18918_v23 = vmov 0.0  }
 0x141   :  { %10244 = vmatprep.mubr.msk.f32.mxu1 %vm12191_vm2, %v18890_v1  ;;  %10426 = vmatprep.mubr.msk.f32.mxu0 %vm12191_vm2, %v18890_v1  ;;  %v1652_v28 = vld [vmem:[%s18883_s0 + $0xf2] sm:$0xff] }
 0x143   :  { %v13337_v46 = vpop.f32.mrb[54].mxu0  ;;  %v13339_v2 = vpop.f32.mrb[54].mxu1 }
 0x144   :  { %18915 = vst [vmem:[#allocation28_spill] sm:$0xff] %v13339_v2  ;;  %v9932_v5 = vpop.f32.mrb[55].mxu0  ;;  %10245 = vmatmul.mubr.msk.f32.gmra.mrb[160].mxu1 %vm188_vm1, %v74_v44  ;;  %10427 = vmatmul.mubr.msk.f32.gmra.mrb[160].mxu0 %vm188_vm1, %v1651_v45  ;;  %v10085_v8 = vpop.f32.mrb[55].mxu1  ;;  %v77_v2 = vld [vmem:[%s18883_s0 + $0x1a8] sm:$0xff] }
 0x145   :  { %10247 = vmatprep.mubr.msk.f32.mxu1 %vm12191_vm2, %v18890_v1  ;;  %10429 = vmatprep.mubr.msk.f32.mxu0 %vm12191_vm2, %v18890_v1  ;;  %v76_v8 = vld [vmem:[%s18883_s0 + $0x1a0] sm:$0xff] }
 0x147   :  { %v13353_v35 = vpop.f32.mrb[56].mxu0  ;;  %v13355_v44 = vpop.f32.mrb[56].mxu1 }
 0x148   :  { %18916 = vst [vmem:[#allocation29_spill] sm:$0xff] %v13355_v44  ;;  %v9935_v45 = vpop.f32.mrb[57].mxu0  ;;  %10248 = vmatmul.mubr.msk.f32.gmra.mrb[162].mxu1 %vm188_vm1, %v75_v17  ;;  %10430 = vmatmul.mubr.msk.f32.gmra.mrb[162].mxu0 %vm188_vm1, %v1652_v28  ;;  %v10088_v5 = vpop.f32.mrb[57].mxu1  ;;  %v1653_v44 = vld [vmem:[%s18883_s0 + $0xfa] sm:$0xff] }
 0x149   :  { %10250 = vmatprep.mubr.msk.f32.mxu1 %vm12191_vm2, %v18890_v1  ;;  %10432 = vmatprep.mubr.msk.f32.mxu0 %vm12191_vm2, %v18890_v1 }
 0x14b   :  { %v13369_v45 = vpop.f32.mrb[58].mxu0  ;;  %v13371_v17 = vpop.f32.mrb[58].mxu1 }
 0x14c   :  { %18917 = vst [vmem:[#allocation30_spill] sm:$0xff] %v13371_v17  ;;  %v9938_v28 = vpop.f32.mrb[59].mxu0  ;;  %10251 = vmatmul.mubr.msk.f32.gmra.mrb[164].mxu1 %vm188_vm1, %v76_v8  ;;  %10433 = vmatmul.mubr.msk.f32.gmra.mrb[164].mxu0 %vm188_vm1, %v1653_v44  ;;  %v10091_v5 = vpop.f32.mrb[59].mxu1  ;;  %v1654_v17 = vld [vmem:[%s18883_s0 + $0x102] sm:$0xff] }
 0x14d   :  { %10253 = vmatprep.mubr.msk.f32.mxu1 %vm12191_vm2, %v18890_v1  ;;  %10435 = vmatprep.mubr.msk.f32.mxu0 %vm12191_vm2, %v18890_v1 }
 0x14f   :  { %v13385_v28 = vpop.f32.mrb[60].mxu0  ;;  %v1218_v8 = vpop.f32.mrb[60].mxu1 }
 0x150   :  { %v13388_v44 = vadd.f32 %v1218_v8, %v12895_v49  ;;  %v9941_v5 = vpop.f32.mrb[61].mxu0  ;;  %10254 = vmatmul.mubr.msk.f32.gmra.mrb[166].mxu1 %vm188_vm1, %v77_v2  ;;  %10436 = vmatmul.mubr.msk.f32.gmra.mrb[166].mxu0 %vm188_vm1, %v1654_v17  ;;  %v10096_v1 = vpop.f32.mrb[61].mxu1  ;;  %v1655_v49 = vld [vmem:[%s18883_s0 + $0x10a] sm:$0xff] }
 0x151   :  { %10256 = vmatprep.mubr.msk.f32.mxu1 %vm12191_vm2, %v18918_v23  ;;  %10438 = vmatprep.mubr.msk.f32.mxu0 %vm12191_vm2, %v18918_v23 }
 0x153   :  { %v13402_v8 = vpop.f32.mrb[62].mxu0  ;;  %v1223_v2 = vpop.f32.mrb[62].mxu1 }
 0x154   :  { %v13405_v17 = vadd.f32 %v1223_v2, %v12919_v57  ;;  %v9944_v1 = vpop.f32.mrb[63].mxu0  ;;  %10257 = vmatmul.mubr.msk.f32.gmra.mrb[168].mxu1 %vm188_vm1, %v78_v60  ;;  %10439 = vmatmul.mubr.msk.f32.gmra.mrb[168].mxu0 %vm188_vm1, %v1655_v49  ;;  %v10099_v5 = vpop.f32.mrb[63].mxu1  ;;  %v1656_v57 = vld [vmem:[%s18883_s0 + $0x112] sm:$0xff] }
 0x155   :  { %10259 = vmatprep.mubr.msk.f32.mxu1 %vm12191_vm2, %v18918_v23  ;;  %10441 = vmatprep.mubr.msk.f32.mxu0 %vm12191_vm2, %v18918_v23 }
 0x157   :  { %v13419_v2 = vpop.f32.mrb[64].mxu0  ;;  %v1228_v60 = vpop.f32.mrb[64].mxu1 }
 0x158   :  { %v13422_v49 = vadd.f32 %v1228_v60, %v12937_v63  ;;  %v9947_v1 = vpop.f32.mrb[65].mxu0  ;;  %10260 = vmatmul.mubr.msk.f32.gmra.mrb[170].mxu1 %vm188_vm1, %v79_v34  ;;  %10442 = vmatmul.mubr.msk.f32.gmra.mrb[170].mxu0 %vm188_vm1, %v1656_v57  ;;  %v10102_v5 = vpop.f32.mrb[65].mxu1  ;;  %v1657_v63 = vld [vmem:[%s18883_s0 + $0x11a] sm:$0xff] }
 0x159   :  { %10262 = vmatprep.mubr.msk.f32.mxu1 %vm12191_vm2, %v18918_v23  ;;  %10444 = vmatprep.mubr.msk.f32.mxu0 %vm12191_vm2, %v18918_v23 }
 0x15b   :  { %v13436_v60 = vpop.f32.mrb[66].mxu0  ;;  %v1233_v34 = vpop.f32.mrb[66].mxu1 }
 0x15c   :  { %v13439_v57 = vadd.f32 %v1233_v34, %v12953_v6  ;;  %v9950_v1 = vpop.f32.mrb[67].mxu0  ;;  %10263 = vmatmul.mubr.msk.f32.gmra.mrb[172].mxu1 %vm188_vm1, %v80_v16  ;;  %10445 = vmatmul.mubr.msk.f32.gmra.mrb[172].mxu0 %vm188_vm1, %v1657_v63  ;;  %v10105_v5 = vpop.f32.mrb[67].mxu1  ;;  %v1658_v6 = vld [vmem:[%s18883_s0 + $0x122] sm:$0xff] }
 0x15d   :  { %10265 = vmatprep.mubr.msk.f32.mxu1 %vm12191_vm2, %v18918_v23  ;;  %10447 = vmatprep.mubr.msk.f32.mxu0 %vm12191_vm2, %v18918_v23 }
 0x15f   :  { %v13453_v34 = vpop.f32.mrb[68].mxu0  ;;  %v1238_v16 = vpop.f32.mrb[68].mxu1 }
 0x160   :  { %v13456_v63 = vadd.f32 %v1238_v16, %v12969_v12  ;;  %v9953_v1 = vpop.f32.mrb[69].mxu0  ;;  %10266 = vmatmul.mubr.msk.f32.gmra.mrb[174].mxu1 %vm188_vm1, %v81_v55  ;;  %10448 = vmatmul.mubr.msk.f32.gmra.mrb[174].mxu0 %vm188_vm1, %v1658_v6  ;;  %v10108_v5 = vpop.f32.mrb[69].mxu1  ;;  %v1659_v12 = vld [vmem:[%s18883_s0 + $0x12a] sm:$0xff] }
 0x161   :  { %10268 = vmatprep.mubr.msk.f32.mxu1 %vm12191_vm2, %v18918_v23  ;;  %10450 = vmatprep.mubr.msk.f32.mxu0 %vm12191_vm2, %v18918_v23 }
 0x163   :  { %v13470_v16 = vpop.f32.mrb[70].mxu0  ;;  %v1243_v55 = vpop.f32.mrb[70].mxu1 }
 0x164   :  { %v13473_v6 = vadd.f32 %v1243_v55, %v12985_v18  ;;  %v9956_v1 = vpop.f32.mrb[71].mxu0  ;;  %10269 = vmatmul.mubr.msk.f32.gmra.mrb[176].mxu1 %vm188_vm1, %v82_v41  ;;  %10451 = vmatmul.mubr.msk.f32.gmra.mrb[176].mxu0 %vm188_vm1, %v1659_v12  ;;  %v10111_v5 = vpop.f32.mrb[71].mxu1  ;;  %v1660_v18 = vld [vmem:[%s18883_s0 + $0x132] sm:$0xff] }
 0x165   :  { %10271 = vmatprep.mubr.msk.f32.mxu1 %vm12191_vm2, %v18918_v23  ;;  %10453 = vmatprep.mubr.msk.f32.mxu0 %vm12191_vm2, %v18918_v23 }
 0x167   :  { %v13487_v55 = vpop.f32.mrb[72].mxu0  ;;  %v1248_v41 = vpop.f32.mrb[72].mxu1 }
 0x168   :  { %v13490_v12 = vadd.f32 %v1248_v41, %v13001_v24  ;;  %v9959_v1 = vpop.f32.mrb[73].mxu0  ;;  %10272 = vmatmul.mubr.msk.f32.gmra.mrb[178].mxu1 %vm188_vm1, %v83_v27  ;;  %10454 = vmatmul.mubr.msk.f32.gmra.mrb[178].mxu0 %vm188_vm1, %v1660_v18  ;;  %v10114_v5 = vpop.f32.mrb[73].mxu1  ;;  %v1661_v24 = vld [vmem:[%s18883_s0 + $0x13a] sm:$0xff] }
 0x169   :  { %10274 = vmatprep.mubr.msk.f32.mxu1 %vm12191_vm2, %v18918_v23  ;;  %10456 = vmatprep.mubr.msk.f32.mxu0 %vm12191_vm2, %v18918_v23 }
 0x16b   :  { %v13504_v41 = vpop.f32.mrb[74].mxu0  ;;  %v1253_v27 = vpop.f32.mrb[74].mxu1 }
 0x16c   :  { %v13507_v18 = vadd.f32 %v1253_v27, %v13017_v30  ;;  %v9962_v1 = vpop.f32.mrb[75].mxu0  ;;  %10275 = vmatmul.mubr.msk.f32.gmra.mrb[180].mxu1 %vm188_vm1, %v84_v15  ;;  %10457 = vmatmul.mubr.msk.f32.gmra.mrb[180].mxu0 %vm188_vm1, %v1661_v24  ;;  %v10117_v5 = vpop.f32.mrb[75].mxu1  ;;  %v1662_v30 = vld [vmem:[%s18883_s0 + $0x142] sm:$0xff] }
 0x16d   :  { %10277 = vmatprep.mubr.msk.f32.mxu1 %vm12191_vm2, %v18918_v23  ;;  %10459 = vmatprep.mubr.msk.f32.mxu0 %vm12191_vm2, %v18918_v23 }
 0x16f   :  { %v13521_v27 = vpop.f32.mrb[76].mxu0  ;;  %v1258_v15 = vpop.f32.mrb[76].mxu1 }
 0x170   :  { %v13524_v24 = vadd.f32 %v1258_v15, %v13033_v36  ;;  %v9965_v1 = vpop.f32.mrb[77].mxu0  ;;  %10278 = vmatmul.mubr.msk.f32.gmra.mrb[182].mxu1 %vm188_vm1, %v85_v62  ;;  %10460 = vmatmul.mubr.msk.f32.gmra.mrb[182].mxu0 %vm188_vm1, %v1662_v30  ;;  %v10120_v5 = vpop.f32.mrb[77].mxu1  ;;  %v1663_v36 = vld [vmem:[%s18883_s0 + $0x14a] sm:$0xff] }
 0x171   :  { %10280 = vmatprep.mubr.msk.f32.mxu1 %vm12191_vm2, %v18918_v23  ;;  %10462 = vmatprep.mubr.msk.f32.mxu0 %vm12191_vm2, %v18918_v23 }
 0x173   :  { %v13538_v15 = vpop.f32.mrb[78].mxu0  ;;  %v1263_v62 = vpop.f32.mrb[78].mxu1 }
 0x174   :  { %v13541_v30 = vadd.f32 %v1263_v62, %v13049_v42  ;;  %v9968_v1 = vpop.f32.mrb[79].mxu0  ;;  %10281 = vmatmul.mubr.msk.f32.gmra.mrb[184].mxu1 %vm188_vm1, %v86_v52  ;;  %10463 = vmatmul.mubr.msk.f32.gmra.mrb[184].mxu0 %vm188_vm1, %v1663_v36  ;;  %v10123_v5 = vpop.f32.mrb[79].mxu1  ;;  %v1664_v42 = vld [vmem:[%s18883_s0 + $0x152] sm:$0xff] }
 0x175   :  { %10283 = vmatprep.mubr.msk.f32.mxu1 %vm12191_vm2, %v18918_v23  ;;  %10465 = vmatprep.mubr.msk.f32.mxu0 %vm12191_vm2, %v18918_v23 }
 0x177   :  { %v13555_v62 = vpop.f32.mrb[80].mxu0  ;;  %v1268_v52 = vpop.f32.mrb[80].mxu1 }
 0x178   :  { %v13558_v36 = vadd.f32 %v1268_v52, %v13065_v48  ;;  %v9971_v1 = vpop.f32.mrb[81].mxu0  ;;  %10284 = vmatmul.mubr.msk.f32.gmra.mrb[186].mxu1 %vm188_vm1, %v87_v40  ;;  %10466 = vmatmul.mubr.msk.f32.gmra.mrb[186].mxu0 %vm188_vm1, %v1664_v42  ;;  %v10126_v5 = vpop.f32.mrb[81].mxu1  ;;  %v1665_v48 = vld [vmem:[%s18883_s0 + $0x15a] sm:$0xff] }
 0x179   :  { %10286 = vmatprep.mubr.msk.f32.mxu1 %vm12191_vm2, %v18918_v23  ;;  %10468 = vmatprep.mubr.msk.f32.mxu0 %vm12191_vm2, %v18918_v23 }
 0x17b   :  { %v13572_v52 = vpop.f32.mrb[82].mxu0  ;;  %v1273_v40 = vpop.f32.mrb[82].mxu1 }
 0x17c   :  { %v13575_v42 = vadd.f32 %v1273_v40, %v13081_v56  ;;  %v9974_v1 = vpop.f32.mrb[83].mxu0  ;;  %10287 = vmatmul.mubr.msk.f32.gmra.mrb[188].mxu1 %vm188_vm1, %v88_v32  ;;  %10469 = vmatmul.mubr.msk.f32.gmra.mrb[188].mxu0 %vm188_vm1, %v1665_v48  ;;  %v10129_v5 = vpop.f32.mrb[83].mxu1  ;;  %v1666_v56 = vld [vmem:[%s18883_s0 + $0x162] sm:$0xff] }
 0x17d   :  { %10289 = vmatprep.mubr.msk.f32.mxu1 %vm12191_vm2, %v18918_v23  ;;  %10471 = vmatprep.mubr.msk.f32.mxu0 %vm12191_vm2, %v18918_v23 }
 0x17f   :  { %v13589_v40 = vpop.f32.mrb[84].mxu0  ;;  %v1278_v32 = vpop.f32.mrb[84].mxu1 }
 0x180   :  { %v13592_v48 = vadd.f32 %v1278_v32, %v13097_v3  ;;  %v9977_v1 = vpop.f32.mrb[85].mxu0  ;;  %10290 = vmatmul.mubr.msk.f32.gmra.mrb[190].mxu1 %vm188_vm1, %v89_v22  ;;  %10472 = vmatmul.mubr.msk.f32.gmra.mrb[190].mxu0 %vm188_vm1, %v1666_v56  ;;  %v10132_v5 = vpop.f32.mrb[85].mxu1  ;;  %v1667_v3 = vld [vmem:[%s18883_s0 + $0x16a] sm:$0xff] }
 0x181   :  { %10292 = vmatprep.mubr.msk.f32.mxu1 %vm12191_vm2, %v18918_v23  ;;  %10474 = vmatprep.mubr.msk.f32.mxu0 %vm12191_vm2, %v18918_v23 }
 0x183   :  { %v13606_v32 = vpop.f32.mrb[86].mxu0  ;;  %v1283_v22 = vpop.f32.mrb[86].mxu1 }
 0x184   :  { %v13609_v56 = vadd.f32 %v1283_v22, %v13113_v11  ;;  %v9980_v1 = vpop.f32.mrb[87].mxu0  ;;  %10293 = vmatmul.mubr.msk.f32.gmra.mrb[192].mxu1 %vm188_vm1, %v90_v14  ;;  %10475 = vmatmul.mubr.msk.f32.gmra.mrb[192].mxu0 %vm188_vm1, %v1667_v3  ;;  %v10135_v5 = vpop.f32.mrb[87].mxu1  ;;  %v1668_v11 = vld [vmem:[%s18883_s0 + $0x172] sm:$0xff] }
 0x185   :  { %10295 = vmatprep.mubr.msk.f32.mxu1 %vm12191_vm2, %v18918_v23  ;;  %10477 = vmatprep.mubr.msk.f32.mxu0 %vm12191_vm2, %v18918_v23 }
 0x187   :  { %v13623_v22 = vpop.f32.mrb[88].mxu0  ;;  %v1288_v14 = vpop.f32.mrb[88].mxu1 }
 0x188   :  { %v13626_v3 = vadd.f32 %v1288_v14, %v13129_v21  ;;  %v9983_v1 = vpop.f32.mrb[89].mxu0  ;;  %10296 = vmatmul.mubr.msk.f32.gmra.mrb[194].mxu1 %vm188_vm1, %v91_v4  ;;  %10478 = vmatmul.mubr.msk.f32.gmra.mrb[194].mxu0 %vm188_vm1, %v1668_v11  ;;  %v10138_v5 = vpop.f32.mrb[89].mxu1  ;;  %v1669_v21 = vld [vmem:[%s18883_s0 + $0x17a] sm:$0xff] }
 0x189   :  { %10298 = vmatprep.mubr.msk.f32.mxu1 %vm12191_vm2, %v18918_v23  ;;  %10480 = vmatprep.mubr.msk.f32.mxu0 %vm12191_vm2, %v18918_v23 }
 0x18b   :  { %v13640_v14 = vpop.f32.mrb[90].mxu0  ;;  %v1293_v4 = vpop.f32.mrb[90].mxu1 }
 0x18c   :  { %v13643_v11 = vadd.f32 %v1293_v4, %v13145_v29  ;;  %v9986_v1 = vpop.f32.mrb[91].mxu0  ;;  %10299 = vmatmul.mubr.msk.f32.gmra.mrb[196].mxu1 %vm188_vm1, %v92_v59  ;;  %10481 = vmatmul.mubr.msk.f32.gmra.mrb[196].mxu0 %vm188_vm1, %v1669_v21  ;;  %v10141_v5 = vpop.f32.mrb[91].mxu1  ;;  %v1670_v29 = vld [vmem:[%s18883_s0 + $0x182] sm:$0xff] }
 0x18d   :  { %10301 = vmatprep.mubr.msk.f32.mxu1 %vm12191_vm2, %v18918_v23  ;;  %10483 = vmatprep.mubr.msk.f32.mxu0 %vm12191_vm2, %v18918_v23 }
 0x18f   :  { %v13657_v4 = vpop.f32.mrb[92].mxu0  ;;  %v1298_v59 = vpop.f32.mrb[92].mxu1 }
 0x190   :  { %v13660_v21 = vadd.f32 %v1298_v59, %v13161_v39  ;;  %v9989_v1 = vpop.f32.mrb[93].mxu0  ;;  %10302 = vmatmul.mubr.msk.f32.gmra.mrb[198].mxu1 %vm188_vm1, %v93_v51  ;;  %10484 = vmatmul.mubr.msk.f32.gmra.mrb[198].mxu0 %vm188_vm1, %v1670_v29  ;;  %v10144_v5 = vpop.f32.mrb[93].mxu1  ;;  %v1671_v39 = vld [vmem:[%s18883_s0 + $0x18a] sm:$0xff] }
 0x191   :  { %10304 = vmatprep.mubr.msk.f32.mxu1 %vm12191_vm2, %v18918_v23  ;;  %10486 = vmatprep.mubr.msk.f32.mxu0 %vm12191_vm2, %v18918_v23 }
 0x193   :  { %v13674_v59 = vpop.f32.mrb[94].mxu0  ;;  %v1303_v51 = vpop.f32.mrb[94].mxu1 }
 0x194   :  { %v13677_v29 = vadd.f32 %v1303_v51, %v13177_v47  ;;  %v9992_v1 = vpop.f32.mrb[95].mxu0  ;;  %10305 = vmatmul.mubr.msk.f32.gmra.mrb[200].mxu1 %vm188_vm1, %v94_v43  ;;  %10487 = vmatmul.mubr.msk.f32.gmra.mrb[200].mxu0 %vm188_vm1, %v1671_v39  ;;  %v10147_v5 = vpop.f32.mrb[95].mxu1  ;;  %v1672_v47 = vld [vmem:[%s18883_s0 + $0x192] sm:$0xff] }
 0x195   :  { %10307 = vmatprep.mubr.msk.f32.mxu1 %vm12191_vm2, %v18918_v23  ;;  %10489 = vmatprep.mubr.msk.f32.mxu0 %vm12191_vm2, %v18918_v23 }
 0x197   :  { %v13691_v51 = vpop.f32.mrb[96].mxu0  ;;  %v1308_v43 = vpop.f32.mrb[96].mxu1 }
 0x198   :  { %v13694_v39 = vadd.f32 %v1308_v43, %v13193_v61  ;;  %v9995_v1 = vpop.f32.mrb[97].mxu0  ;;  %10308 = vmatmul.mubr.msk.f32.gmra.mrb[202].mxu1 %vm188_vm1, %v95_v37  ;;  %10490 = vmatmul.mubr.msk.f32.gmra.mrb[202].mxu0 %vm188_vm1, %v1672_v47  ;;  %v10150_v5 = vpop.f32.mrb[97].mxu1  ;;  %v1673_v61 = vld [vmem:[%s18883_s0 + $0x19a] sm:$0xff] }
 0x199   :  { %10310 = vmatprep.mubr.msk.f32.mxu1 %vm12191_vm2, %v18918_v23  ;;  %10492 = vmatprep.mubr.msk.f32.mxu0 %vm12191_vm2, %v18918_v23 }
 0x19b   :  { %v13708_v43 = vpop.f32.mrb[98].mxu0  ;;  %v1313_v37 = vpop.f32.mrb[98].mxu1 }
 0x19c   :  { %v13711_v47 = vadd.f32 %v1313_v37, %v13209_v10  ;;  %v9998_v1 = vpop.f32.mrb[99].mxu0  ;;  %10311 = vmatmul.mubr.msk.f32.gmra.mrb[204].mxu1 %vm188_vm1, %v96_v31  ;;  %10493 = vmatmul.mubr.msk.f32.gmra.mrb[204].mxu0 %vm188_vm1, %v1673_v61  ;;  %v10153_v5 = vpop.f32.mrb[99].mxu1  ;;  %v1674_v10 = vld [vmem:[%s18883_s0 + $0x1a2] sm:$0xff] }
 0x19d   :  { %10313 = vmatprep.mubr.msk.f32.mxu1 %vm12191_vm2, %v18918_v23  ;;  %10495 = vmatprep.mubr.msk.f32.mxu0 %vm12191_vm2, %v18918_v23 }
 0x19f   :  { %v13725_v37 = vpop.f32.mrb[100].mxu0  ;;  %v1318_v31 = vpop.f32.mrb[100].mxu1 }
 0x1a0   :  { %v13728_v61 = vadd.f32 %v1318_v31, %v13225_v26  ;;  %v10001_v1 = vpop.f32.mrb[101].mxu0  ;;  %10314 = vmatmul.mubr.msk.f32.gmra.mrb[206].mxu1 %vm188_vm1, %v97_v25  ;;  %10496 = vmatmul.mubr.msk.f32.gmra.mrb[206].mxu0 %vm188_vm1, %v1674_v10  ;;  %v10156_v5 = vpop.f32.mrb[101].mxu1  ;;  %v1675_v26 = vld [vmem:[%s18883_s0 + $0x1aa] sm:$0xff] }
 0x1a1   :  { %10316 = vmatprep.mubr.msk.f32.mxu1 %vm12191_vm2, %v18918_v23  ;;  %10498 = vmatprep.mubr.msk.f32.mxu0 %vm12191_vm2, %v18918_v23 }
 0x1a3   :  { %v1323_v31 = vpop.f32.mrb[102].mxu1  ;;  %v2016_v1 = vpop.f32.mrb[102].mxu0 }
 0x1a4   :  { %v13743_v25 = vadd.f32 %v1323_v31, %v13241_v38  ;;  %v13746_v10 = vadd.f32 %v2016_v1, %v13388_v44  ;;  %10317 = vmatmul.mubr.msk.f32.gmra.mrb[208].mxu1 %vm188_vm1, %v98_v19  ;;  %v10341_v5 = vpop.f32.mrb[103].mxu0  ;;  %10499 = vmatmul.mubr.msk.f32.gmra.mrb[208].mxu0 %vm188_vm1, %v1675_v26  ;;  %v10159_v13 = vpop.f32.mrb[103].mxu1  ;;  %v99_v38 = vld [vmem:[%s18883_s0 + $0x258] sm:$0xff] }
 0x1a5   :  { %10319 = vmatprep.mubr.msk.f32.mxu1 %vm12191_vm2, %v18918_v23  ;;  %10501 = vmatprep.mubr.msk.f32.mxu0 %vm12191_vm2, %v18918_v23  ;;  %v1676_v44 = vld [vmem:[%s18883_s0 + $0x1b2] sm:$0xff] }
 0x1a7   :  { %v1328_v31 = vpop.f32.mrb[104].mxu1  ;;  %v2021_v19 = vpop.f32.mrb[104].mxu0 }
 0x1a8   :  { %v13761_v1 = vadd.f32 %v1328_v31, %v13257_v54  ;;  %v13764_v13 = vadd.f32 %v2021_v19, %v13405_v17  ;;  %10320 = vmatmul.mubr.msk.f32.gmra.mrb[210].mxu1 %vm188_vm1, %v99_v38  ;;  %v10344_v26 = vpop.f32.mrb[105].mxu0  ;;  %10502 = vmatmul.mubr.msk.f32.gmra.mrb[210].mxu0 %vm188_vm1, %v1676_v44  ;;  %v10162_v5 = vpop.f32.mrb[105].mxu1  ;;  %v100_v54 = vld [vmem:[%s18883_s0 + $0x260] sm:$0xff] }
 0x1a9   :  { %10322 = vmatprep.mubr.msk.f32.mxu1 %vm12191_vm2, %v18918_v23  ;;  %10504 = vmatprep.mubr.msk.f32.mxu0 %vm12191_vm2, %v18918_v23  ;;  %v1677_v17 = vld [vmem:[%s18883_s0 + $0x1ba] sm:$0xff] }
 0x1ab   :  { %v1333_v31 = vpop.f32.mrb[106].mxu1  ;;  %v2026_v38 = vpop.f32.mrb[106].mxu0 }
 0x1ac   :  { %v13779_v19 = vadd.f32 %v1333_v31, %v13273_v9  ;;  %v13782_v44 = vadd.f32 %v2026_v38, %v13422_v49  ;;  %10323 = vmatmul.mubr.msk.f32.gmra.mrb[212].mxu1 %vm188_vm1, %v100_v54  ;;  %v10347_v26 = vpop.f32.mrb[107].mxu0  ;;  %10505 = vmatmul.mubr.msk.f32.gmra.mrb[212].mxu0 %vm188_vm1, %v1677_v17  ;;  %v10165_v5 = vpop.f32.mrb[107].mxu1  ;;  %v101_v9 = vld [vmem:[%s18883_s0 + $0x268] sm:$0xff] }
 0x1ad   :  { %10325 = vmatprep.mubr.msk.f32.mxu1 %vm12191_vm2, %v18918_v23  ;;  %10507 = vmatprep.mubr.msk.f32.mxu0 %vm12191_vm2, %v18918_v23  ;;  %v1678_v49 = vld [vmem:[%s18883_s0 + $0x1c2] sm:$0xff] }
 0x1af   :  { %v1338_v31 = vpop.f32.mrb[108].mxu1  ;;  %v2031_v54 = vpop.f32.mrb[108].mxu0 }
 0x1b0   :  { %v13797_v38 = vadd.f32 %v1338_v31, %v13289_v33  ;;  %v13800_v17 = vadd.f32 %v2031_v54, %v13439_v57  ;;  %10326 = vmatmul.mubr.msk.f32.gmra.mrb[214].mxu1 %vm188_vm1, %v101_v9  ;;  %v10350_v26 = vpop.f32.mrb[109].mxu0  ;;  %10508 = vmatmul.mubr.msk.f32.gmra.mrb[214].mxu0 %vm188_vm1, %v1678_v49  ;;  %v10168_v5 = vpop.f32.mrb[109].mxu1  ;;  %v102_v33 = vld [vmem:[%s18883_s0 + $0x270] sm:$0xff] }
 0x1b1   :  { %10328 = vmatprep.mubr.msk.f32.mxu1 %vm12191_vm2, %v18918_v23  ;;  %10510 = vmatprep.mubr.msk.f32.mxu0 %vm12191_vm2, %v18918_v23  ;;  %v1679_v57 = vld [vmem:[%s18883_s0 + $0x1ca] sm:$0xff] }
 0x1b3   :  { %v1343_v31 = vpop.f32.mrb[110].mxu1  ;;  %v2036_v9 = vpop.f32.mrb[110].mxu0 }
 0x1b4   :  { %v13815_v54 = vadd.f32 %v1343_v31, %v13305_v53  ;;  %v13818_v49 = vadd.f32 %v2036_v9, %v13456_v63  ;;  %10329 = vmatmul.mubr.msk.f32.gmra.mrb[216].mxu1 %vm188_vm1, %v102_v33  ;;  %v10353_v26 = vpop.f32.mrb[111].mxu0  ;;  %10511 = vmatmul.mubr.msk.f32.gmra.mrb[216].mxu0 %vm188_vm1, %v1679_v57  ;;  %v10171_v5 = vpop.f32.mrb[111].mxu1  ;;  %v103_v53 = vld [vmem:[%s18883_s0 + $0x278] sm:$0xff] }
 0x1b5   :  { %10331 = vmatprep.mubr.msk.f32.mxu1 %vm12191_vm2, %v18918_v23  ;;  %10513 = vmatprep.mubr.msk.f32.mxu0 %vm12191_vm2, %v18918_v23  ;;  %v1680_v63 = vld [vmem:[%s18883_s0 + $0x1d2] sm:$0xff] }
 0x1b7   :  { %v1348_v31 = vpop.f32.mrb[112].mxu1  ;;  %v2041_v33 = vpop.f32.mrb[112].mxu0 }
 0x1b8   :  { %v13833_v9 = vadd.f32 %v1348_v31, %v13321_v20  ;;  %v13836_v57 = vadd.f32 %v2041_v33, %v13473_v6  ;;  %10332 = vmatmul.mubr.msk.f32.gmra.mrb[218].mxu1 %vm188_vm1, %v103_v53  ;;  %v10356_v26 = vpop.f32.mrb[113].mxu0  ;;  %10514 = vmatmul.mubr.msk.f32.gmra.mrb[218].mxu0 %vm188_vm1, %v1680_v63  ;;  %v10174_v5 = vpop.f32.mrb[113].mxu1  ;;  %v104_v20 = vld [vmem:[%s18883_s0 + $0x280] sm:$0xff] }
 0x1b9   :  { %10334 = vmatprep.mubr.msk.f32.mxu1 %vm12191_vm2, %v18918_v23  ;;  %10516 = vmatprep.mubr.msk.f32.mxu0 %vm12191_vm2, %v18918_v23  ;;  %v1681_v6 = vld [vmem:[%s18883_s0 + $0x1da] sm:$0xff] }
 0x1bb   :  { %v1353_v31 = vpop.f32.mrb[114].mxu1  ;;  %v2046_v53 = vpop.f32.mrb[114].mxu0 }
 0x1bc   :  { %v13851_v33 = vadd.f32 %v1353_v31, %v13337_v46  ;;  %v13854_v63 = vadd.f32 %v2046_v53, %v13490_v12  ;;  %10335 = vmatmul.mubr.msk.f32.gmra.mrb[220].mxu1 %vm188_vm1, %v104_v20  ;;  %v10359_v26 = vpop.f32.mrb[115].mxu0  ;;  %10517 = vmatmul.mubr.msk.f32.gmra.mrb[220].mxu0 %vm188_vm1, %v1681_v6  ;;  %v10177_v5 = vpop.f32.mrb[115].mxu1  ;;  %v1682_v46 = vld [vmem:[%s18883_s0 + $0x1e2] sm:$0xff]  ;;  %v2501_v12 = vld [vmem:[%s18883_s0 + $0x12] sm:$0xff] }
 0x1bd   :  { %10519 = vmatprep.mubr.msk.f32.mxu0 %vm12191_vm2, %v18918_v23  ;;  %10584 = vmatprep.mubr.msk.f32.mxu1 %vm12191_vm2, %v18918_v23 }
 0x1bf   :  { %v1358_v31 = vpop.f32.mrb[116].mxu1  ;;  %v2051_v20 = vpop.f32.mrb[116].mxu0 }
 0x1c0   :  { %v13869_v53 = vadd.f32 %v1358_v31, %v13353_v35  ;;  %v13872_v6 = vadd.f32 %v2051_v20, %v13507_v18  ;;  %v10362_v26 = vpop.f32.mrb[117].mxu0  ;;  %10520 = vmatmul.mubr.msk.f32.gmra.mrb[222].mxu0 %vm188_vm1, %v1682_v46  ;;  %10585 = vmatmul.mubr.msk.f32.vlgmr.msra.gmra.mrb[222].mxu1 %vm188_vm1, %v2501_v12  ;;  %v10180_v5 = vpop.f32.mrb[117].mxu1  ;;  %v1683_v35 = vld [vmem:[%s18883_s0 + $0x1ea] sm:$0xff]  ;;  %v2502_v18 = vld [vmem:[%s18883_s0 + $0x1a] sm:$0xff] }
 0x1c1   :  { %10522 = vmatprep.mubr.msk.f32.mxu0 %vm12191_vm2, %v18918_v23  ;;  %10587 = vmatprep.mubr.msk.f32.mxu1 %vm12191_vm2, %v18918_v23 }
 0x1c3   :  { %v1363_v31 = vpop.f32.mrb[118].mxu1  ;;  %v2056_v20 = vpop.f32.mrb[118].mxu0 }
 0x1c4   :  { %v13887_v46 = vadd.f32 %v1363_v31, %v13369_v45  ;;  %v13890_v12 = vadd.f32 %v2056_v20, %v13524_v24  ;;  %v10365_v26 = vpop.f32.mrb[119].mxu0  ;;  %10523 = vmatmul.mubr.msk.f32.gmra.mrb[224].mxu0 %vm188_vm1, %v1683_v35  ;;  %10588 = vmatmul.mubr.msk.f32.gmra.mrb[224].mxu1 %vm188_vm1, %v2502_v18  ;;  %v10183_v5 = vpop.f32.mrb[119].mxu1  ;;  %v1684_v45 = vld [vmem:[%s18883_s0 + $0x1f2] sm:$0xff]  ;;  %v2503_v24 = vld [vmem:[%s18883_s0 + $0x22] sm:$0xff] }
 0x1c5   :  { %10525 = vmatprep.mubr.msk.f32.mxu0 %vm12191_vm2, %v18918_v23  ;;  %10590 = vmatprep.mubr.msk.f32.mxu1 %vm12191_vm2, %v18918_v23 }
 0x1c7   :  { %v1368_v31 = vpop.f32.mrb[120].mxu1  ;;  %v2061_v20 = vpop.f32.mrb[120].mxu0 }
 0x1c8   :  { %v13905_v35 = vadd.f32 %v1368_v31, %v13385_v28  ;;  %v13908_v18 = vadd.f32 %v2061_v20, %v13541_v30  ;;  %v10368_v26 = vpop.f32.mrb[121].mxu0  ;;  %10526 = vmatmul.mubr.msk.f32.gmra.mrb[226].mxu0 %vm188_vm1, %v1684_v45  ;;  %10591 = vmatmul.mubr.msk.f32.gmra.mrb[226].mxu1 %vm188_vm1, %v2503_v24  ;;  %v10186_v5 = vpop.f32.mrb[121].mxu1  ;;  %v1685_v28 = vld [vmem:[%s18883_s0 + $0x1fa] sm:$0xff]  ;;  %v2504_v30 = vld [vmem:[%s18883_s0 + $0x2a] sm:$0xff] }
 0x1c9   :  { %10528 = vmatprep.mubr.msk.f32.mxu0 %vm12191_vm2, %v18918_v23  ;;  %10593 = vmatprep.mubr.msk.f32.mxu1 %vm12191_vm2, %v18918_v23 }
 0x1cb   :  { %v1373_v31 = vpop.f32.mrb[122].mxu1  ;;  %v2066_v20 = vpop.f32.mrb[122].mxu0 }
 0x1cc   :  { %v13923_v45 = vadd.f32 %v1373_v31, %v13402_v8  ;;  %v13926_v24 = vadd.f32 %v2066_v20, %v13558_v36  ;;  %v10371_v26 = vpop.f32.mrb[123].mxu0  ;;  %10529 = vmatmul.mubr.msk.f32.gmra.mrb[228].mxu0 %vm188_vm1, %v1685_v28  ;;  %10594 = vmatmul.mubr.msk.f32.gmra.mrb[228].mxu1 %vm188_vm1, %v2504_v30  ;;  %v10189_v5 = vpop.f32.mrb[123].mxu1  ;;  %v1686_v8 = vld [vmem:[%s18883_s0 + $0x202] sm:$0xff]  ;;  %v2505_v36 = vld [vmem:[%s18883_s0 + $0x32] sm:$0xff] }
 0x1cd   :  { %10531 = vmatprep.mubr.msk.f32.mxu0 %vm12191_vm2, %v18918_v23  ;;  %10596 = vmatprep.mubr.msk.f32.mxu1 %vm12191_vm2, %v18918_v23 }
 0x1cf   :  { %v1378_v31 = vpop.f32.mrb[124].mxu1  ;;  %v2071_v20 = vpop.f32.mrb[124].mxu0 }
 0x1d0   :  { %v13941_v28 = vadd.f32 %v1378_v31, %v13419_v2  ;;  %v13944_v30 = vadd.f32 %v2071_v20, %v13575_v42  ;;  %v10374_v26 = vpop.f32.mrb[125].mxu0  ;;  %10532 = vmatmul.mubr.msk.f32.gmra.mrb[230].mxu0 %vm188_vm1, %v1686_v8  ;;  %10597 = vmatmul.mubr.msk.f32.gmra.mrb[230].mxu1 %vm188_vm1, %v2505_v36  ;;  %v10192_v5 = vpop.f32.mrb[125].mxu1  ;;  %v1687_v2 = vld [vmem:[%s18883_s0 + $0x20a] sm:$0xff]  ;;  %v2506_v42 = vld [vmem:[%s18883_s0 + $0x3a] sm:$0xff] }
 0x1d1   :  { %10534 = vmatprep.mubr.msk.f32.mxu0 %vm12191_vm2, %v18918_v23  ;;  %10599 = vmatprep.mubr.msk.f32.mxu1 %vm12191_vm2, %v18918_v23 }
 0x1d3   :  { %v1383_v31 = vpop.f32.mrb[126].mxu1  ;;  %v2076_v20 = vpop.f32.mrb[126].mxu0 }
 0x1d4   :  { %v13959_v8 = vadd.f32 %v1383_v31, %v13436_v60  ;;  %v13962_v36 = vadd.f32 %v2076_v20, %v13592_v48  ;;  %v10377_v26 = vpop.f32.mrb[127].mxu0  ;;  %10535 = vmatmul.mubr.msk.f32.gmra.mrb[232].mxu0 %vm188_vm1, %v1687_v2  ;;  %10600 = vmatmul.mubr.msk.f32.gmra.mrb[232].mxu1 %vm188_vm1, %v2506_v42  ;;  %v10195_v5 = vpop.f32.mrb[127].mxu1  ;;  %v1688_v60 = vld [vmem:[%s18883_s0 + $0x212] sm:$0xff]  ;;  %v2507_v48 = vld [vmem:[%s18883_s0 + $0x42] sm:$0xff] }
 0x1d5   :  { %10537 = vmatprep.mubr.msk.f32.mxu0 %vm12191_vm2, %v18918_v23  ;;  %10602 = vmatprep.mubr.msk.f32.mxu1 %vm12191_vm2, %v18918_v23 }
 0x1d7   :  { %v1388_v31 = vpop.f32.mrb[128].mxu1  ;;  %v2081_v20 = vpop.f32.mrb[128].mxu0 }
 0x1d8   :  { %v13977_v2 = vadd.f32 %v1388_v31, %v13453_v34  ;;  %v13980_v42 = vadd.f32 %v2081_v20, %v13609_v56  ;;  %v10380_v26 = vpop.f32.mrb[129].mxu0  ;;  %10538 = vmatmul.mubr.msk.f32.gmra.mrb[234].mxu0 %vm188_vm1, %v1688_v60  ;;  %10603 = vmatmul.mubr.msk.f32.gmra.mrb[234].mxu1 %vm188_vm1, %v2507_v48  ;;  %v10198_v5 = vpop.f32.mrb[129].mxu1  ;;  %v1689_v34 = vld [vmem:[%s18883_s0 + $0x21a] sm:$0xff]  ;;  %v2508_v56 = vld [vmem:[%s18883_s0 + $0x4a] sm:$0xff] }
 0x1d9   :  { %10540 = vmatprep.mubr.msk.f32.mxu0 %vm12191_vm2, %v18918_v23  ;;  %10605 = vmatprep.mubr.msk.f32.mxu1 %vm12191_vm2, %v18918_v23 }
 0x1db   :  { %v1393_v31 = vpop.f32.mrb[130].mxu1  ;;  %v2086_v20 = vpop.f32.mrb[130].mxu0 }
 0x1dc   :  { %v13995_v60 = vadd.f32 %v1393_v31, %v13470_v16  ;;  %v13998_v48 = vadd.f32 %v2086_v20, %v13626_v3  ;;  %v10383_v26 = vpop.f32.mrb[131].mxu0  ;;  %10541 = vmatmul.mubr.msk.f32.gmra.mrb[236].mxu0 %vm188_vm1, %v1689_v34  ;;  %10606 = vmatmul.mubr.msk.f32.gmra.mrb[236].mxu1 %vm188_vm1, %v2508_v56  ;;  %v10201_v5 = vpop.f32.mrb[131].mxu1  ;;  %v1690_v16 = vld [vmem:[%s18883_s0 + $0x222] sm:$0xff]  ;;  %v2509_v3 = vld [vmem:[%s18883_s0 + $0x52] sm:$0xff] }
 0x1dd   :  { %10543 = vmatprep.mubr.msk.f32.mxu0 %vm12191_vm2, %v18918_v23  ;;  %10608 = vmatprep.mubr.msk.f32.mxu1 %vm12191_vm2, %v18918_v23 }
 0x1df   :  { %v1398_v31 = vpop.f32.mrb[132].mxu1  ;;  %v2091_v20 = vpop.f32.mrb[132].mxu0 }
 0x1e0   :  { %v14013_v34 = vadd.f32 %v1398_v31, %v13487_v55  ;;  %v14016_v56 = vadd.f32 %v2091_v20, %v13643_v11  ;;  %v10386_v26 = vpop.f32.mrb[133].mxu0  ;;  %10544 = vmatmul.mubr.msk.f32.gmra.mrb[238].mxu0 %vm188_vm1, %v1690_v16  ;;  %10609 = vmatmul.mubr.msk.f32.gmra.mrb[238].mxu1 %vm188_vm1, %v2509_v3  ;;  %v10204_v5 = vpop.f32.mrb[133].mxu1  ;;  %v1691_v55 = vld [vmem:[%s18883_s0 + $0x22a] sm:$0xff]  ;;  %v2510_v11 = vld [vmem:[%s18883_s0 + $0x5a] sm:$0xff] }
 0x1e1   :  { %10546 = vmatprep.mubr.msk.f32.mxu0 %vm12191_vm2, %v18918_v23  ;;  %10611 = vmatprep.mubr.msk.f32.mxu1 %vm12191_vm2, %v18918_v23 }
 0x1e3   :  { %v1403_v31 = vpop.f32.mrb[134].mxu1  ;;  %v2096_v20 = vpop.f32.mrb[134].mxu0 }
 0x1e4   :  { %v14031_v16 = vadd.f32 %v1403_v31, %v13504_v41  ;;  %v14034_v3 = vadd.f32 %v2096_v20, %v13660_v21  ;;  %v10389_v26 = vpop.f32.mrb[135].mxu0  ;;  %10547 = vmatmul.mubr.msk.f32.gmra.mrb[240].mxu0 %vm188_vm1, %v1691_v55  ;;  %10612 = vmatmul.mubr.msk.f32.gmra.mrb[240].mxu1 %vm188_vm1, %v2510_v11  ;;  %v10207_v5 = vpop.f32.mrb[135].mxu1  ;;  %v1692_v41 = vld [vmem:[%s18883_s0 + $0x232] sm:$0xff]  ;;  %v2511_v21 = vld [vmem:[%s18883_s0 + $0x62] sm:$0xff] }
 0x1e5   :  { %10549 = vmatprep.mubr.msk.f32.mxu0 %vm12191_vm2, %v18918_v23  ;;  %10614 = vmatprep.mubr.msk.f32.mxu1 %vm12191_vm2, %v18918_v23 }
 0x1e7   :  { %v1408_v31 = vpop.f32.mrb[136].mxu1  ;;  %v2101_v20 = vpop.f32.mrb[136].mxu0 }
 0x1e8   :  { %v14049_v55 = vadd.f32 %v1408_v31, %v13521_v27  ;;  %v14052_v11 = vadd.f32 %v2101_v20, %v13677_v29  ;;  %v10392_v26 = vpop.f32.mrb[137].mxu0  ;;  %10550 = vmatmul.mubr.msk.f32.gmra.mrb[242].mxu0 %vm188_vm1, %v1692_v41  ;;  %10615 = vmatmul.mubr.msk.f32.gmra.mrb[242].mxu1 %vm188_vm1, %v2511_v21  ;;  %v10210_v5 = vpop.f32.mrb[137].mxu1  ;;  %v1693_v27 = vld [vmem:[%s18883_s0 + $0x23a] sm:$0xff]  ;;  %v2512_v29 = vld [vmem:[%s18883_s0 + $0x6a] sm:$0xff] }
 0x1e9   :  { %10552 = vmatprep.mubr.msk.f32.mxu0 %vm12191_vm2, %v18918_v23  ;;  %10617 = vmatprep.mubr.msk.f32.mxu1 %vm12191_vm2, %v18918_v23 }
 0x1eb   :  { %v1413_v31 = vpop.f32.mrb[138].mxu1  ;;  %v2106_v20 = vpop.f32.mrb[138].mxu0 }
 0x1ec   :  { %v14067_v41 = vadd.f32 %v1413_v31, %v13538_v15  ;;  %v14070_v21 = vadd.f32 %v2106_v20, %v13694_v39  ;;  %v10395_v26 = vpop.f32.mrb[139].mxu0  ;;  %10553 = vmatmul.mubr.msk.f32.gmra.mrb[244].mxu0 %vm188_vm1, %v1693_v27  ;;  %10618 = vmatmul.mubr.msk.f32.gmra.mrb[244].mxu1 %vm188_vm1, %v2512_v29  ;;  %v10213_v5 = vpop.f32.mrb[139].mxu1  ;;  %v1694_v15 = vld [vmem:[%s18883_s0 + $0x242] sm:$0xff]  ;;  %v2513_v39 = vld [vmem:[%s18883_s0 + $0x72] sm:$0xff] }
 0x1ed   :  { %10555 = vmatprep.mubr.msk.f32.mxu0 %vm12191_vm2, %v18918_v23  ;;  %10620 = vmatprep.mubr.msk.f32.mxu1 %vm12191_vm2, %v18918_v23 }
 0x1ef   :  { %v1418_v31 = vpop.f32.mrb[140].mxu1  ;;  %v2111_v20 = vpop.f32.mrb[140].mxu0 }
 0x1f0   :  { %v14085_v27 = vadd.f32 %v1418_v31, %v13555_v62  ;;  %v14088_v29 = vadd.f32 %v2111_v20, %v13711_v47  ;;  %v10398_v26 = vpop.f32.mrb[141].mxu0  ;;  %10556 = vmatmul.mubr.msk.f32.gmra.mrb[246].mxu0 %vm188_vm1, %v1694_v15  ;;  %10621 = vmatmul.mubr.msk.f32.gmra.mrb[246].mxu1 %vm188_vm1, %v2513_v39  ;;  %v10216_v5 = vpop.f32.mrb[141].mxu1  ;;  %v1695_v62 = vld [vmem:[%s18883_s0 + $0x24a] sm:$0xff]  ;;  %v2514_v47 = vld [vmem:[%s18883_s0 + $0x7a] sm:$0xff] }
 0x1f1   :  { %10558 = vmatprep.mubr.msk.f32.mxu0 %vm12191_vm2, %v18918_v23  ;;  %10623 = vmatprep.mubr.msk.f32.mxu1 %vm12191_vm2, %v18918_v23 }
 0x1f3   :  { %v1423_v31 = vpop.f32.mrb[142].mxu1  ;;  %v2116_v20 = vpop.f32.mrb[142].mxu0 }
 0x1f4   :  { %v14103_v15 = vadd.f32 %v1423_v31, %v13572_v52  ;;  %v14106_v39 = vadd.f32 %v2116_v20, %v13728_v61  ;;  %v10401_v26 = vpop.f32.mrb[143].mxu0  ;;  %10559 = vmatmul.mubr.msk.f32.gmra.mrb[248].mxu0 %vm188_vm1, %v1695_v62  ;;  %10624 = vmatmul.mubr.msk.f32.gmra.mrb[248].mxu1 %vm188_vm1, %v2514_v47  ;;  %v10219_v5 = vpop.f32.mrb[143].mxu1  ;;  %v1696_v52 = vld [vmem:[%s18883_s0 + $0x252] sm:$0xff]  ;;  %v2515_v61 = vld [vmem:[%s18883_s0 + $0x82] sm:$0xff] }
 0x1f5   :  { %10561 = vmatprep.mubr.msk.f32.mxu0 %vm12191_vm2, %v18918_v23  ;;  %10626 = vmatprep.mubr.msk.f32.mxu1 %vm12191_vm2, %v18918_v23 }
 0x1f7   :  { %v1428_v31 = vpop.f32.mrb[144].mxu1  ;;  %v2121_v20 = vpop.f32.mrb[144].mxu0 }
 0x1f8   :  { %v14121_v62 = vadd.f32 %v1428_v31, %v13589_v40  ;;  %v14124_v47 = vadd.f32 %v2121_v20, %v13743_v25  ;;  %v10404_v26 = vpop.f32.mrb[145].mxu0  ;;  %10562 = vmatmul.mubr.msk.f32.gmra.mrb[250].mxu0 %vm188_vm1, %v1696_v52  ;;  %10627 = vmatmul.mubr.msk.f32.gmra.mrb[250].mxu1 %vm188_vm1, %v2515_v61  ;;  %v10222_v5 = vpop.f32.mrb[145].mxu1  ;;  %v1697_v40 = vld [vmem:[%s18883_s0 + $0x25a] sm:$0xff]  ;;  %v2516_v25 = vld [vmem:[%s18883_s0 + $0x8a] sm:$0xff] }
 0x1f9   :  { %10564 = vmatprep.mubr.msk.f32.mxu0 %vm12191_vm2, %v18918_v23  ;;  %10629 = vmatprep.mubr.msk.f32.mxu1 %vm12191_vm2, %v18918_v23 }
 0x1fb   :  { %v1433_v31 = vpop.f32.mrb[146].mxu1  ;;  %v2126_v20 = vpop.f32.mrb[146].mxu0 }
 0x1fc   :  { %v14139_v52 = vadd.f32 %v1433_v31, %v13606_v32  ;;  %v14142_v61 = vadd.f32 %v2126_v20, %v13761_v1  ;;  %v10407_v26 = vpop.f32.mrb[147].mxu0  ;;  %10565 = vmatmul.mubr.msk.f32.gmra.mrb[252].mxu0 %vm188_vm1, %v1697_v40  ;;  %10630 = vmatmul.mubr.msk.f32.gmra.mrb[252].mxu1 %vm188_vm1, %v2516_v25  ;;  %v10225_v5 = vpop.f32.mrb[147].mxu1  ;;  %v1698_v32 = vld [vmem:[%s18883_s0 + $0x262] sm:$0xff]  ;;  %v2517_v1 = vld [vmem:[%s18883_s0 + $0x92] sm:$0xff] }
 0x1fd   :  { %10567 = vmatprep.mubr.msk.f32.mxu0 %vm12191_vm2, %v18918_v23  ;;  %10632 = vmatprep.mubr.msk.f32.mxu1 %vm12191_vm2, %v18918_v23 }
 0x1ff   :  { %v1438_v31 = vpop.f32.mrb[148].mxu1  ;;  %v2131_v20 = vpop.f32.mrb[148].mxu0 }
 0x200   :  { %v14157_v40 = vadd.f32 %v1438_v31, %v13623_v22  ;;  %v14160_v25 = vadd.f32 %v2131_v20, %v13779_v19  ;;  %v10410_v26 = vpop.f32.mrb[149].mxu0  ;;  %10568 = vmatmul.mubr.msk.f32.gmra.mrb[254].mxu0 %vm188_vm1, %v1698_v32  ;;  %10633 = vmatmul.mubr.msk.f32.gmra.mrb[254].mxu1 %vm188_vm1, %v2517_v1  ;;  %v10228_v5 = vpop.f32.mrb[149].mxu1  ;;  %v1699_v22 = vld [vmem:[%s18883_s0 + $0x26a] sm:$0xff]  ;;  %v2518_v19 = vld [vmem:[%s18883_s0 + $0x9a] sm:$0xff] }
 0x201   :  { %10570 = vmatprep.mubr.msk.f32.mxu0 %vm12191_vm2, %v18918_v23  ;;  %10635 = vmatprep.mubr.msk.f32.mxu1 %vm12191_vm2, %v18918_v23 }
 0x203   :  { %v1443_v31 = vpop.f32.mrb[150].mxu1  ;;  %v2136_v20 = vpop.f32.mrb[150].mxu0 }
 0x204   :  { %v14175_v32 = vadd.f32 %v1443_v31, %v13640_v14  ;;  %v14178_v1 = vadd.f32 %v2136_v20, %v13797_v38  ;;  %v10413_v26 = vpop.f32.mrb[151].mxu0  ;;  %10571 = vmatmul.mubr.msk.f32.gmra.mrb[0].mxu0 %vm188_vm1, %v1699_v22  ;;  %10636 = vmatmul.mubr.msk.f32.gmra.mrb[0].mxu1 %vm188_vm1, %v2518_v19  ;;  %v10231_v5 = vpop.f32.mrb[151].mxu1  ;;  %v1700_v14 = vld [vmem:[%s18883_s0 + $0x272] sm:$0xff]  ;;  %v2519_v38 = vld [vmem:[%s18883_s0 + $0xa2] sm:$0xff] }
 0x205   :  { %10573 = vmatprep.mubr.msk.f32.mxu0 %vm12191_vm2, %v18918_v23  ;;  %10638 = vmatprep.mubr.msk.f32.mxu1 %vm12191_vm2, %v18918_v23 }
 0x207   :  { %v1448_v31 = vpop.f32.mrb[152].mxu1  ;;  %v2141_v20 = vpop.f32.mrb[152].mxu0 }
 0x208   :  { %v14193_v22 = vadd.f32 %v1448_v31, %v13657_v4  ;;  %v14196_v19 = vadd.f32 %v2141_v20, %v13815_v54  ;;  %v10416_v26 = vpop.f32.mrb[153].mxu0  ;;  %10574 = vmatmul.mubr.msk.f32.gmra.mrb[2].mxu0 %vm188_vm1, %v1700_v14  ;;  %10639 = vmatmul.mubr.msk.f32.gmra.mrb[2].mxu1 %vm188_vm1, %v2519_v38  ;;  %v10234_v5 = vpop.f32.mrb[153].mxu1  ;;  %v1701_v4 = vld [vmem:[%s18883_s0 + $0x27a] sm:$0xff]  ;;  %v2520_v54 = vld [vmem:[%s18883_s0 + $0xaa] sm:$0xff] }
 0x209   :  { %10576 = vmatprep.mubr.msk.f32.mxu0 %vm12191_vm2, %v18918_v23  ;;  %10641 = vmatprep.mubr.msk.f32.mxu1 %vm12191_vm2, %v18918_v23 }
 0x20b   :  { %v1453_v31 = vpop.f32.mrb[154].mxu1  ;;  %v2146_v20 = vpop.f32.mrb[154].mxu0 }
 0x20c   :  { %v14211_v14 = vadd.f32 %v1453_v31, %v13674_v59  ;;  %v14214_v38 = vadd.f32 %v2146_v20, %v13833_v9  ;;  %v10419_v26 = vpop.f32.mrb[155].mxu0  ;;  %10577 = vmatmul.mubr.msk.f32.gmra.mrb[4].mxu0 %vm188_vm1, %v1701_v4  ;;  %10642 = vmatmul.mubr.msk.f32.gmra.mrb[4].mxu1 %vm188_vm1, %v2520_v54  ;;  %v10237_v5 = vpop.f32.mrb[155].mxu1  ;;  %v1702_v59 = vld [vmem:[%s18883_s0 + $0x282] sm:$0xff]  ;;  %v2521_v9 = vld [vmem:[%s18883_s0 + $0xb2] sm:$0xff] }
 0x20d   :  { %10579 = vmatprep.mubr.msk.f32.mxu0 %vm12191_vm2, %v18918_v23  ;;  %10644 = vmatprep.mubr.msk.f32.mxu1 %vm12191_vm2, %v18918_v23 }
 0x20f   :  { %v1458_v31 = vpop.f32.mrb[156].mxu1  ;;  %v2151_v20 = vpop.f32.mrb[156].mxu0 }
 0x210   :  { %v14229_v4 = vadd.f32 %v1458_v31, %v13691_v51  ;;  %v14232_v54 = vadd.f32 %v2151_v20, %v13851_v33  ;;  %v10422_v26 = vpop.f32.mrb[157].mxu0  ;;  %10580 = vmatmul.mubr.msk.f32.gmra.mrb[6].mxu0 %vm188_vm1, %v1702_v59  ;;  %10645 = vmatmul.mubr.msk.f32.gmra.mrb[6].mxu1 %vm188_vm1, %v2521_v9  ;;  %v10240_v5 = vpop.f32.mrb[157].mxu1  ;;  %v2522_v51 = vld [vmem:[%s18883_s0 + $0xba] sm:$0xff] }
 0x211   :  { %10647 = vmatprep.mubr.msk.f32.mxu1 %vm12191_vm2, %v18918_v23  ;;  %10829 = vmatprep.mubr.msk.f32.mxu0 %vm12191_vm2, %v18918_v23  ;;  %v3380_v33 = vld [vmem:[%s18883_s0 + $0x13] sm:$0xff] }
 0x213   :  { %v1463_v31 = vpop.f32.mrb[158].mxu1  ;;  %v2156_v20 = vpop.f32.mrb[158].mxu0 }
 0x214   :  { %v14247_v59 = vadd.f32 %v1463_v31, %v13708_v43  ;;  %v14250_v9 = vadd.f32 %v2156_v20, %v13869_v53  ;;  %v10425_v26 = vpop.f32.mrb[159].mxu0  ;;  %10648 = vmatmul.mubr.msk.f32.gmra.mrb[8].mxu1 %vm188_vm1, %v2522_v51  ;;  %10830 = vmatmul.mubr.msk.f32.vlgmr.msra.gmra.mrb[8].mxu0 %vm188_vm1, %v3380_v33  ;;  %v10243_v5 = vpop.f32.mrb[159].mxu1  ;;  %v2523_v43 = vld [vmem:[%s18883_s0 + $0xc2] sm:$0xff] }
 0x215   :  { %10650 = vmatprep.mubr.msk.f32.mxu1 %vm12191_vm2, %v18918_v23  ;;  %10832 = vmatprep.mubr.msk.f32.mxu0 %vm12191_vm2, %v18918_v23  ;;  %v3381_v53 = vld [vmem:[%s18883_s0 + $0x1b] sm:$0xff] }
 0x216   :  { %18919 = vst [vmem:[#allocation31_spill] sm:$0xff] %v14250_v9  ;;  %v5219_v9 = vld [vmem:[%s18884_s1 + $0x18] sm:$0xf] }
 0x217   :  { %v1468_v31 = vpop.f32.mrb[160].mxu1  ;;  %v2161_v20 = vpop.f32.mrb[160].mxu0  ;;  %11318 = vmatpush3.msk.msra.mxu0 %vm432_vm0, %v5219_v9 }
 0x218   :  { %v14265_v51 = vadd.f32 %v1468_v31, %v13725_v37  ;;  %v14268_v33 = vadd.f32 %v2161_v20, %v13887_v46  ;;  %v10428_v26 = vpop.f32.mrb[161].mxu0  ;;  %10651 = vmatmul.mubr.msk.f32.gmra.mrb[10].mxu1 %vm188_vm1, %v2523_v43  ;;  %10833 = vmatmul.mubr.msk.f32.gmra.mrb[10].mxu0 %vm188_vm1, %v3381_v53  ;;  %v10246_v5 = vpop.f32.mrb[161].mxu1  ;;  %v2524_v37 = vld [vmem:[%s18883_s0 + $0xca] sm:$0xff] }
 0x219   :  { %10653 = vmatprep.mubr.msk.f32.mxu1 %vm12191_vm2, %v18918_v23  ;;  %10835 = vmatprep.mubr.msk.f32.mxu0 %vm12191_vm2, %v18918_v23  ;;  %v3382_v46 = vld [vmem:[%s18883_s0 + $0x23] sm:$0xff] }
 0x21a   :  { %18920 = vst [vmem:[#allocation32_spill] sm:$0xff] %v14268_v33  ;;  %v4340_v33 = vld [vmem:[%s18884_s1 + $0x14] sm:$0xf]  ;;  %11807 = vmatprep.subr.mxu0 %v18918_v23 }
 0x21b   :  { %v1473_v31 = vpop.f32.mrb[162].mxu1  ;;  %v2166_v20 = vpop.f32.mrb[162].mxu0  ;;  %11073 = vmatpush3.msk.msra.mxu1 %vm432_vm0, %v4340_v33 }
 0x21c   :  { %v14283_v43 = vadd.f32 %v1473_v31, %v12897_v50  ;;  %v14286_v53 = vadd.f32 %v2166_v20, %v13905_v35  ;;  %v10431_v26 = vpop.f32.mrb[163].mxu0  ;;  %10654 = vmatmul.mubr.msk.f32.gmra.mrb[12].mxu1 %vm188_vm1, %v2524_v37  ;;  %10836 = vmatmul.mubr.msk.f32.gmra.mrb[12].mxu0 %vm188_vm1, %v3382_v46  ;;  %v10249_v5 = vpop.f32.mrb[163].mxu1  ;;  %v2525_v50 = vld [vmem:[%s18883_s0 + $0xd2] sm:$0xff] }
 0x21d   :  { %10656 = vmatprep.mubr.msk.f32.mxu1 %vm12191_vm2, %v18918_v23  ;;  %10838 = vmatprep.mubr.msk.f32.mxu0 %vm12191_vm2, %v18918_v23  ;;  %v3383_v35 = vld [vmem:[%s18883_s0 + $0x2b] sm:$0xff] }
 0x21e   :  { %11562 = vmatprep.subr.mxu1 %v18918_v23 }
 0x21f   :  { %v1478_v37 = vpop.f32.mrb[164].mxu1  ;;  %v2171_v46 = vpop.f32.mrb[164].mxu0 }
 0x220   :  { %v14311_v31 = vadd.f32 %v1478_v37, %v12921_v58  ;;  %v14314_v20 = vadd.f32 %v2171_v46, %v13923_v45  ;;  %v10434_v26 = vpop.f32.mrb[165].mxu0  ;;  %10657 = vmatmul.mubr.msk.f32.gmra.mrb[14].mxu1 %vm188_vm1, %v2525_v50  ;;  %10839 = vmatmul.mubr.msk.f32.gmra.mrb[14].mxu0 %vm188_vm1, %v3383_v35  ;;  %v10252_v33 = vpop.f32.mrb[165].mxu1  ;;  %v2526_v58 = vld [vmem:[%s18883_s0 + $0xda] sm:$0xff] }
 0x221   :  { %10659 = vmatprep.mubr.msk.f32.mxu1 %vm12191_vm2, %v18918_v23  ;;  %10841 = vmatprep.mubr.msk.f32.mxu0 %vm12191_vm2, %v18918_v23  ;;  %v3384_v45 = vld [vmem:[%s18883_s0 + $0x33] sm:$0xff] }
 0x223   :  { %v1483_v9 = vpop.f32.mrb[166].mxu1  ;;  %v2176_v5 = vpop.f32.mrb[166].mxu0 }
 0x224   :  { %v14329_v50 = vadd.f32 %v1483_v9, %v12939_v0  ;;  %v14332_v35 = vadd.f32 %v2176_v5, %v13941_v28  ;;  %v10437_v37 = vpop.f32.mrb[167].mxu0  ;;  %10660 = vmatmul.mubr.msk.f32.gmra.mrb[16].mxu1 %vm188_vm1, %v2526_v58  ;;  %10842 = vmatmul.mubr.msk.f32.gmra.mrb[16].mxu0 %vm188_vm1, %v3384_v45  ;;  %v10255_v46 = vpop.f32.mrb[167].mxu1  ;;  %v2527_v0 = vld [vmem:[%s18883_s0 + $0xe2] sm:$0xff] }
 0x225   :  { %10662 = vmatprep.mubr.msk.f32.mxu1 %vm12191_vm2, %v18918_v23  ;;  %10844 = vmatprep.mubr.msk.f32.mxu0 %vm12191_vm2, %v18918_v23  ;;  %v3385_v28 = vld [vmem:[%s18883_s0 + $0x3b] sm:$0xff] }
 0x227   :  { %v1488_v26 = vpop.f32.mrb[168].mxu1  ;;  %v2181_v33 = vpop.f32.mrb[168].mxu0 }
 0x228   :  { %v14347_v58 = vadd.f32 %v1488_v26, %v12955_v7  ;;  %v14350_v45 = vadd.f32 %v2181_v33, %v13959_v8  ;;  %v10440_v9 = vpop.f32.mrb[169].mxu0  ;;  %10663 = vmatmul.mubr.msk.f32.gmra.mrb[18].mxu1 %vm188_vm1, %v2527_v0  ;;  %10845 = vmatmul.mubr.msk.f32.gmra.mrb[18].mxu0 %vm188_vm1, %v3385_v28  ;;  %v10258_v5 = vpop.f32.mrb[169].mxu1  ;;  %v2528_v7 = vld [vmem:[%s18883_s0 + $0xea] sm:$0xff]  ;;  %v18921_v0 = vld [vmem:[#allocation5_spill] sm:$0xff] }
 0x229   :  { %10665 = vmatprep.mubr.msk.f32.mxu1 %vm12191_vm2, %v18918_v23  ;;  %10847 = vmatprep.mubr.msk.f32.mxu0 %vm12191_vm2, %v18918_v23  ;;  %v3386_v8 = vld [vmem:[%s18883_s0 + $0x43] sm:$0xff]  ;;  %v2529_v5 = vld [vmem:[%s18883_s0 + $0xf2] sm:$0xff] }
 0x22b   :  { %v1493_v37 = vpop.f32.mrb[170].mxu1  ;;  %v2186_v46 = vpop.f32.mrb[170].mxu0 }
 0x22c   :  { %v14365_v26 = vadd.f32 %v1493_v37, %v18921_v0  ;;  %v14368_v28 = vadd.f32 %v2186_v46, %v13977_v2  ;;  %v10443_v33 = vpop.f32.mrb[171].mxu0  ;;  %10666 = vmatmul.mubr.msk.f32.gmra.mrb[20].mxu1 %vm188_vm1, %v2528_v7  ;;  %10848 = vmatmul.mubr.msk.f32.gmra.mrb[20].mxu0 %vm188_vm1, %v3386_v8  ;;  %v10261_v9 = vpop.f32.mrb[171].mxu1  ;;  %v3387_v2 = vld [vmem:[%s18883_s0 + $0x4b] sm:$0xff] }
 0x22d   :  { %10668 = vmatprep.mubr.msk.f32.mxu1 %vm12191_vm2, %v18918_v23  ;;  %10850 = vmatprep.mubr.msk.f32.mxu0 %vm12191_vm2, %v18918_v23  ;;  %v18922_v7 = vld [vmem:[#allocation6_spill] sm:$0xff] }
 0x22f   :  { %v1498_v37 = vpop.f32.mrb[172].mxu1  ;;  %v2191_v46 = vpop.f32.mrb[172].mxu0 }
 0x230   :  { %v14383_v0 = vadd.f32 %v1498_v37, %v18922_v7  ;;  %v14386_v8 = vadd.f32 %v2191_v46, %v13995_v60  ;;  %v10446_v33 = vpop.f32.mrb[173].mxu0  ;;  %10669 = vmatmul.mubr.msk.f32.gmra.mrb[22].mxu1 %vm188_vm1, %v2529_v5  ;;  %10851 = vmatmul.mubr.msk.f32.gmra.mrb[22].mxu0 %vm188_vm1, %v3387_v2  ;;  %v10264_v9 = vpop.f32.mrb[173].mxu1  ;;  %v2530_v37 = vld [vmem:[%s18883_s0 + $0xfa] sm:$0xff]  ;;  %v18924_v5 = vld [vmem:[#allocation7_spill] sm:$0xff] }
 0x231   :  { %10671 = vmatprep.mubr.msk.f32.mxu1 %vm12191_vm2, %v18918_v23  ;;  %10853 = vmatprep.mubr.msk.f32.mxu0 %vm12191_vm2, %v18918_v23  ;;  %v3388_v60 = vld [vmem:[%s18883_s0 + $0x53] sm:$0xff] }
 0x232   :  { %18923 = vst [vmem:[#allocation5_spill] sm:$0xff] %v14386_v8 }
 0x233   :  { %v1503_v46 = vpop.f32.mrb[174].mxu1  ;;  %v2196_v7 = vpop.f32.mrb[174].mxu0 }
 0x234   :  { %v14401_v33 = vadd.f32 %v1503_v46, %v18924_v5  ;;  %v14404_v2 = vadd.f32 %v2196_v7, %v14013_v34  ;;  %v10449_v9 = vpop.f32.mrb[175].mxu0  ;;  %10672 = vmatmul.mubr.msk.f32.gmra.mrb[24].mxu1 %vm188_vm1, %v2530_v37  ;;  %10854 = vmatmul.mubr.msk.f32.gmra.mrb[24].mxu0 %vm188_vm1, %v3388_v60  ;;  %v10267_v8 = vpop.f32.mrb[175].mxu1  ;;  %v2531_v46 = vld [vmem:[%s18883_s0 + $0x102] sm:$0xff]  ;;  %v18926_v37 = vld [vmem:[#allocation8_spill] sm:$0xff] }
 0x235   :  { %10674 = vmatprep.mubr.msk.f32.mxu1 %vm12191_vm2, %v18918_v23  ;;  %10856 = vmatprep.mubr.msk.f32.mxu0 %vm12191_vm2, %v18918_v23  ;;  %v3389_v34 = vld [vmem:[%s18883_s0 + $0x5b] sm:$0xff] }
 0x236   :  { %18925 = vst [vmem:[#allocation6_spill] sm:$0xff] %v14404_v2 }
 0x237   :  { %v1508_v7 = vpop.f32.mrb[176].mxu1  ;;  %v2201_v5 = vpop.f32.mrb[176].mxu0 }
 0x238   :  { %v14419_v9 = vadd.f32 %v1508_v7, %v18926_v37  ;;  %v14422_v8 = vadd.f32 %v2201_v5, %v14031_v16  ;;  %v10452_v60 = vpop.f32.mrb[177].mxu0  ;;  %10675 = vmatmul.mubr.msk.f32.gmra.mrb[26].mxu1 %vm188_vm1, %v2531_v46  ;;  %10857 = vmatmul.mubr.msk.f32.gmra.mrb[26].mxu0 %vm188_vm1, %v3389_v34  ;;  %v10270_v2 = vpop.f32.mrb[177].mxu1  ;;  %v2532_v7 = vld [vmem:[%s18883_s0 + $0x10a] sm:$0xff]  ;;  %v18928_v46 = vld [vmem:[#allocation9_spill] sm:$0xff] }
 0x239   :  { %10677 = vmatprep.mubr.msk.f32.mxu1 %vm12191_vm2, %v18918_v23  ;;  %10859 = vmatprep.mubr.msk.f32.mxu0 %vm12191_vm2, %v18918_v23  ;;  %v3390_v16 = vld [vmem:[%s18883_s0 + $0x63] sm:$0xff] }
 0x23a   :  { %18927 = vst [vmem:[#allocation7_spill] sm:$0xff] %v14422_v8 }
 0x23b   :  { %v1513_v5 = vpop.f32.mrb[178].mxu1  ;;  %v2206_v37 = vpop.f32.mrb[178].mxu0 }
 0x23c   :  { %v14437_v60 = vadd.f32 %v1513_v5, %v18928_v46  ;;  %v14440_v2 = vadd.f32 %v2206_v37, %v14049_v55  ;;  %v10455_v34 = vpop.f32.mrb[179].mxu0  ;;  %10678 = vmatmul.mubr.msk.f32.gmra.mrb[28].mxu1 %vm188_vm1, %v2532_v7  ;;  %10860 = vmatmul.mubr.msk.f32.gmra.mrb[28].mxu0 %vm188_vm1, %v3390_v16  ;;  %v10273_v8 = vpop.f32.mrb[179].mxu1  ;;  %v2533_v5 = vld [vmem:[%s18883_s0 + $0x112] sm:$0xff]  ;;  %v18930_v7 = vld [vmem:[#allocation10_spill] sm:$0xff] }
 0x23d   :  { %10680 = vmatprep.mubr.msk.f32.mxu1 %vm12191_vm2, %v18918_v23  ;;  %10862 = vmatprep.mubr.msk.f32.mxu0 %vm12191_vm2, %v18918_v23  ;;  %v3391_v55 = vld [vmem:[%s18883_s0 + $0x6b] sm:$0xff] }
 0x23e   :  { %18929 = vst [vmem:[#allocation8_spill] sm:$0xff] %v14440_v2 }
 0x23f   :  { %v1518_v37 = vpop.f32.mrb[180].mxu1  ;;  %v2211_v46 = vpop.f32.mrb[180].mxu0 }
 0x240   :  { %v14455_v34 = vadd.f32 %v1518_v37, %v18930_v7  ;;  %v14458_v8 = vadd.f32 %v2211_v46, %v14067_v41  ;;  %v10458_v16 = vpop.f32.mrb[181].mxu0  ;;  %10681 = vmatmul.mubr.msk.f32.gmra.mrb[30].mxu1 %vm188_vm1, %v2533_v5  ;;  %10863 = vmatmul.mubr.msk.f32.gmra.mrb[30].mxu0 %vm188_vm1, %v3391_v55  ;;  %v10276_v2 = vpop.f32.mrb[181].mxu1  ;;  %v2534_v37 = vld [vmem:[%s18883_s0 + $0x11a] sm:$0xff]  ;;  %v18932_v5 = vld [vmem:[#allocation11_spill] sm:$0xff] }
 0x241   :  { %10683 = vmatprep.mubr.msk.f32.mxu1 %vm12191_vm2, %v18918_v23  ;;  %10865 = vmatprep.mubr.msk.f32.mxu0 %vm12191_vm2, %v18918_v23  ;;  %v3392_v41 = vld [vmem:[%s18883_s0 + $0x73] sm:$0xff] }
 0x242   :  { %18931 = vst [vmem:[#allocation9_spill] sm:$0xff] %v14458_v8 }
 0x243   :  { %v1523_v46 = vpop.f32.mrb[182].mxu1  ;;  %v2216_v7 = vpop.f32.mrb[182].mxu0 }
 0x244   :  { %v14473_v16 = vadd.f32 %v1523_v46, %v18932_v5  ;;  %v14476_v2 = vadd.f32 %v2216_v7, %v14085_v27  ;;  %v10461_v55 = vpop.f32.mrb[183].mxu0  ;;  %10684 = vmatmul.mubr.msk.f32.gmra.mrb[32].mxu1 %vm188_vm1, %v2534_v37  ;;  %10866 = vmatmul.mubr.msk.f32.gmra.mrb[32].mxu0 %vm188_vm1, %v3392_v41  ;;  %v10279_v8 = vpop.f32.mrb[183].mxu1  ;;  %v2535_v46 = vld [vmem:[%s18883_s0 + $0x122] sm:$0xff]  ;;  %v18934_v37 = vld [vmem:[#allocation12_spill] sm:$0xff] }
 0x245   :  { %10686 = vmatprep.mubr.msk.f32.mxu1 %vm12191_vm2, %v18918_v23  ;;  %10868 = vmatprep.mubr.msk.f32.mxu0 %vm12191_vm2, %v18918_v23  ;;  %v3393_v27 = vld [vmem:[%s18883_s0 + $0x7b] sm:$0xff] }
 0x246   :  { %18933 = vst [vmem:[#allocation10_spill] sm:$0xff] %v14476_v2 }
 0x247   :  { %v1528_v7 = vpop.f32.mrb[184].mxu1  ;;  %v2221_v5 = vpop.f32.mrb[184].mxu0 }
 0x248   :  { %v14491_v55 = vadd.f32 %v1528_v7, %v18934_v37  ;;  %v14494_v8 = vadd.f32 %v2221_v5, %v14103_v15  ;;  %v10464_v41 = vpop.f32.mrb[185].mxu0  ;;  %10687 = vmatmul.mubr.msk.f32.gmra.mrb[34].mxu1 %vm188_vm1, %v2535_v46  ;;  %10869 = vmatmul.mubr.msk.f32.gmra.mrb[34].mxu0 %vm188_vm1, %v3393_v27  ;;  %v10282_v2 = vpop.f32.mrb[185].mxu1  ;;  %v2536_v7 = vld [vmem:[%s18883_s0 + $0x12a] sm:$0xff]  ;;  %v18936_v46 = vld [vmem:[#allocation13_spill] sm:$0xff] }
 0x249   :  { %10689 = vmatprep.mubr.msk.f32.mxu1 %vm12191_vm2, %v18918_v23  ;;  %10871 = vmatprep.mubr.msk.f32.mxu0 %vm12191_vm2, %v18918_v23  ;;  %v3394_v15 = vld [vmem:[%s18883_s0 + $0x83] sm:$0xff] }
 0x24a   :  { %18935 = vst [vmem:[#allocation11_spill] sm:$0xff] %v14494_v8 }
 0x24b   :  { %v1533_v5 = vpop.f32.mrb[186].mxu1  ;;  %v2226_v37 = vpop.f32.mrb[186].mxu0 }
 0x24c   :  { %v14509_v41 = vadd.f32 %v1533_v5, %v18936_v46  ;;  %v14512_v2 = vadd.f32 %v2226_v37, %v14121_v62  ;;  %v10467_v27 = vpop.f32.mrb[187].mxu0  ;;  %10690 = vmatmul.mubr.msk.f32.gmra.mrb[36].mxu1 %vm188_vm1, %v2536_v7  ;;  %10872 = vmatmul.mubr.msk.f32.gmra.mrb[36].mxu0 %vm188_vm1, %v3394_v15  ;;  %v10285_v8 = vpop.f32.mrb[187].mxu1  ;;  %v2537_v5 = vld [vmem:[%s18883_s0 + $0x132] sm:$0xff]  ;;  %v18938_v7 = vld [vmem:[#allocation14_spill] sm:$0xff] }
 0x24d   :  { %10692 = vmatprep.mubr.msk.f32.mxu1 %vm12191_vm2, %v18918_v23  ;;  %10874 = vmatprep.mubr.msk.f32.mxu0 %vm12191_vm2, %v18918_v23  ;;  %v3395_v62 = vld [vmem:[%s18883_s0 + $0x8b] sm:$0xff] }
 0x24e   :  { %18937 = vst [vmem:[#allocation12_spill] sm:$0xff] %v14512_v2 }
 0x24f   :  { %v1538_v37 = vpop.f32.mrb[188].mxu1  ;;  %v2231_v46 = vpop.f32.mrb[188].mxu0 }
 0x250   :  { %v14527_v27 = vadd.f32 %v1538_v37, %v18938_v7  ;;  %v14530_v8 = vadd.f32 %v2231_v46, %v14139_v52  ;;  %v10470_v15 = vpop.f32.mrb[189].mxu0  ;;  %10693 = vmatmul.mubr.msk.f32.gmra.mrb[38].mxu1 %vm188_vm1, %v2537_v5  ;;  %10875 = vmatmul.mubr.msk.f32.gmra.mrb[38].mxu0 %vm188_vm1, %v3395_v62  ;;  %v10288_v2 = vpop.f32.mrb[189].mxu1  ;;  %v2538_v37 = vld [vmem:[%s18883_s0 + $0x13a] sm:$0xff]  ;;  %v18940_v5 = vld [vmem:[#allocation15_spill] sm:$0xff] }
 0x251   :  { %10695 = vmatprep.mubr.msk.f32.mxu1 %vm12191_vm2, %v18918_v23  ;;  %10877 = vmatprep.mubr.msk.f32.mxu0 %vm12191_vm2, %v18918_v23  ;;  %v3396_v52 = vld [vmem:[%s18883_s0 + $0x93] sm:$0xff] }
 0x252   :  { %18939 = vst [vmem:[#allocation13_spill] sm:$0xff] %v14530_v8 }
 0x253   :  { %v1543_v46 = vpop.f32.mrb[190].mxu1  ;;  %v2236_v7 = vpop.f32.mrb[190].mxu0 }
 0x254   :  { %v14545_v15 = vadd.f32 %v1543_v46, %v18940_v5  ;;  %v14548_v2 = vadd.f32 %v2236_v7, %v14157_v40  ;;  %v10473_v62 = vpop.f32.mrb[191].mxu0  ;;  %10696 = vmatmul.mubr.msk.f32.gmra.mrb[40].mxu1 %vm188_vm1, %v2538_v37  ;;  %10878 = vmatmul.mubr.msk.f32.gmra.mrb[40].mxu0 %vm188_vm1, %v3396_v52  ;;  %v10291_v8 = vpop.f32.mrb[191].mxu1  ;;  %v2539_v46 = vld [vmem:[%s18883_s0 + $0x142] sm:$0xff]  ;;  %v18942_v37 = vld [vmem:[#allocation16_spill] sm:$0xff] }
 0x255   :  { %10698 = vmatprep.mubr.msk.f32.mxu1 %vm12191_vm2, %v18918_v23  ;;  %10880 = vmatprep.mubr.msk.f32.mxu0 %vm12191_vm2, %v18918_v23  ;;  %v3397_v40 = vld [vmem:[%s18883_s0 + $0x9b] sm:$0xff] }
 0x256   :  { %18941 = vst [vmem:[#allocation14_spill] sm:$0xff] %v14548_v2 }
 0x257   :  { %v1548_v7 = vpop.f32.mrb[192].mxu1  ;;  %v2241_v5 = vpop.f32.mrb[192].mxu0 }
 0x258   :  { %v14563_v62 = vadd.f32 %v1548_v7, %v18942_v37  ;;  %v14566_v8 = vadd.f32 %v2241_v5, %v14175_v32  ;;  %v10476_v52 = vpop.f32.mrb[193].mxu0  ;;  %10699 = vmatmul.mubr.msk.f32.gmra.mrb[42].mxu1 %vm188_vm1, %v2539_v46  ;;  %10881 = vmatmul.mubr.msk.f32.gmra.mrb[42].mxu0 %vm188_vm1, %v3397_v40  ;;  %v10294_v2 = vpop.f32.mrb[193].mxu1  ;;  %v2540_v7 = vld [vmem:[%s18883_s0 + $0x14a] sm:$0xff]  ;;  %v18944_v46 = vld [vmem:[#allocation17_spill] sm:$0xff] }
 0x259   :  { %10701 = vmatprep.mubr.msk.f32.mxu1 %vm12191_vm2, %v18918_v23  ;;  %10883 = vmatprep.mubr.msk.f32.mxu0 %vm12191_vm2, %v18918_v23  ;;  %v3398_v32 = vld [vmem:[%s18883_s0 + $0xa3] sm:$0xff] }
 0x25a   :  { %18943 = vst [vmem:[#allocation15_spill] sm:$0xff] %v14566_v8 }
 0x25b   :  { %v1553_v5 = vpop.f32.mrb[194].mxu1  ;;  %v2246_v37 = vpop.f32.mrb[194].mxu0 }
 0x25c   :  { %v14581_v52 = vadd.f32 %v1553_v5, %v18944_v46  ;;  %v14584_v2 = vadd.f32 %v2246_v37, %v14193_v22  ;;  %v10479_v40 = vpop.f32.mrb[195].mxu0  ;;  %10702 = vmatmul.mubr.msk.f32.gmra.mrb[44].mxu1 %vm188_vm1, %v2540_v7  ;;  %10884 = vmatmul.mubr.msk.f32.gmra.mrb[44].mxu0 %vm188_vm1, %v3398_v32  ;;  %v10297_v8 = vpop.f32.mrb[195].mxu1  ;;  %v2541_v5 = vld [vmem:[%s18883_s0 + $0x152] sm:$0xff]  ;;  %v18946_v7 = vld [vmem:[#allocation18_spill] sm:$0xff] }
 0x25d   :  { %10704 = vmatprep.mubr.msk.f32.mxu1 %vm12191_vm2, %v18918_v23  ;;  %10886 = vmatprep.mubr.msk.f32.mxu0 %vm12191_vm2, %v18918_v23  ;;  %v3399_v22 = vld [vmem:[%s18883_s0 + $0xab] sm:$0xff] }
 0x25e   :  { %18945 = vst [vmem:[#allocation16_spill] sm:$0xff] %v14584_v2 }
 0x25f   :  { %v1558_v37 = vpop.f32.mrb[196].mxu1  ;;  %v2251_v46 = vpop.f32.mrb[196].mxu0 }
 0x260   :  { %v14599_v40 = vadd.f32 %v1558_v37, %v18946_v7  ;;  %v14602_v8 = vadd.f32 %v2251_v46, %v14211_v14  ;;  %v10482_v32 = vpop.f32.mrb[197].mxu0  ;;  %10705 = vmatmul.mubr.msk.f32.gmra.mrb[46].mxu1 %vm188_vm1, %v2541_v5  ;;  %10887 = vmatmul.mubr.msk.f32.gmra.mrb[46].mxu0 %vm188_vm1, %v3399_v22  ;;  %v10300_v2 = vpop.f32.mrb[197].mxu1  ;;  %v2542_v37 = vld [vmem:[%s18883_s0 + $0x15a] sm:$0xff]  ;;  %v18948_v5 = vld [vmem:[#allocation19_spill] sm:$0xff] }
 0x261   :  { %10707 = vmatprep.mubr.msk.f32.mxu1 %vm12191_vm2, %v18918_v23  ;;  %10889 = vmatprep.mubr.msk.f32.mxu0 %vm12191_vm2, %v18918_v23  ;;  %v3400_v14 = vld [vmem:[%s18883_s0 + $0xb3] sm:$0xff] }
 0x262   :  { %18947 = vst [vmem:[#allocation17_spill] sm:$0xff] %v14602_v8 }
 0x263   :  { %v1563_v46 = vpop.f32.mrb[198].mxu1  ;;  %v2256_v7 = vpop.f32.mrb[198].mxu0 }
 0x264   :  { %v14617_v32 = vadd.f32 %v1563_v46, %v18948_v5  ;;  %v14620_v2 = vadd.f32 %v2256_v7, %v14229_v4  ;;  %v10485_v22 = vpop.f32.mrb[199].mxu0  ;;  %10708 = vmatmul.mubr.msk.f32.gmra.mrb[48].mxu1 %vm188_vm1, %v2542_v37  ;;  %10890 = vmatmul.mubr.msk.f32.gmra.mrb[48].mxu0 %vm188_vm1, %v3400_v14  ;;  %v10303_v8 = vpop.f32.mrb[199].mxu1  ;;  %v2543_v46 = vld [vmem:[%s18883_s0 + $0x162] sm:$0xff]  ;;  %v18950_v37 = vld [vmem:[#allocation20_spill] sm:$0xff] }
 0x265   :  { %10710 = vmatprep.mubr.msk.f32.mxu1 %vm12191_vm2, %v18918_v23  ;;  %10892 = vmatprep.mubr.msk.f32.mxu0 %vm12191_vm2, %v18918_v23  ;;  %v3401_v4 = vld [vmem:[%s18883_s0 + $0xbb] sm:$0xff] }
 0x266   :  { %18949 = vst [vmem:[#allocation18_spill] sm:$0xff] %v14620_v2 }
 0x267   :  { %v1568_v7 = vpop.f32.mrb[200].mxu1  ;;  %v2261_v5 = vpop.f32.mrb[200].mxu0 }
 0x268   :  { %v14635_v22 = vadd.f32 %v1568_v7, %v18950_v37  ;;  %v14638_v8 = vadd.f32 %v2261_v5, %v14247_v59  ;;  %v10488_v14 = vpop.f32.mrb[201].mxu0  ;;  %10711 = vmatmul.mubr.msk.f32.gmra.mrb[50].mxu1 %vm188_vm1, %v2543_v46  ;;  %10893 = vmatmul.mubr.msk.f32.gmra.mrb[50].mxu0 %vm188_vm1, %v3401_v4  ;;  %v10306_v2 = vpop.f32.mrb[201].mxu1  ;;  %v2544_v7 = vld [vmem:[%s18883_s0 + $0x16a] sm:$0xff]  ;;  %v18952_v46 = vld [vmem:[#allocation21_spill] sm:$0xff] }
 0x269   :  { %10713 = vmatprep.mubr.msk.f32.mxu1 %vm12191_vm2, %v18918_v23  ;;  %10895 = vmatprep.mubr.msk.f32.mxu0 %vm12191_vm2, %v18918_v23  ;;  %v3402_v59 = vld [vmem:[%s18883_s0 + $0xc3] sm:$0xff] }
 0x26a   :  { %18951 = vst [vmem:[#allocation19_spill] sm:$0xff] %v14638_v8 }
 0x26b   :  { %v1573_v5 = vpop.f32.mrb[202].mxu1  ;;  %v2266_v37 = vpop.f32.mrb[202].mxu0 }
 0x26c   :  { %v14653_v14 = vadd.f32 %v1573_v5, %v18952_v46  ;;  %v14656_v2 = vadd.f32 %v2266_v37, %v14265_v51  ;;  %v10491_v4 = vpop.f32.mrb[203].mxu0  ;;  %10714 = vmatmul.mubr.msk.f32.gmra.mrb[52].mxu1 %vm188_vm1, %v2544_v7  ;;  %10896 = vmatmul.mubr.msk.f32.gmra.mrb[52].mxu0 %vm188_vm1, %v3402_v59  ;;  %v10309_v8 = vpop.f32.mrb[203].mxu1  ;;  %v2545_v5 = vld [vmem:[%s18883_s0 + $0x172] sm:$0xff]  ;;  %v18954_v7 = vld [vmem:[#allocation22_spill] sm:$0xff] }
 0x26d   :  { %10716 = vmatprep.mubr.msk.f32.mxu1 %vm12191_vm2, %v18918_v23  ;;  %10898 = vmatprep.mubr.msk.f32.mxu0 %vm12191_vm2, %v18918_v23  ;;  %v3403_v51 = vld [vmem:[%s18883_s0 + $0xcb] sm:$0xff] }
 0x26e   :  { %18953 = vst [vmem:[#allocation20_spill] sm:$0xff] %v14656_v2 }
 0x26f   :  { %v1578_v37 = vpop.f32.mrb[204].mxu1  ;;  %v2271_v46 = vpop.f32.mrb[204].mxu0 }
 0x270   :  { %v14671_v4 = vadd.f32 %v1578_v37, %v18954_v7  ;;  %v14674_v8 = vadd.f32 %v2271_v46, %v14283_v43  ;;  %v10494_v59 = vpop.f32.mrb[205].mxu0  ;;  %10717 = vmatmul.mubr.msk.f32.gmra.mrb[54].mxu1 %vm188_vm1, %v2545_v5  ;;  %10899 = vmatmul.mubr.msk.f32.gmra.mrb[54].mxu0 %vm188_vm1, %v3403_v51  ;;  %v10312_v2 = vpop.f32.mrb[205].mxu1  ;;  %v2546_v37 = vld [vmem:[%s18883_s0 + $0x17a] sm:$0xff]  ;;  %v18956_v5 = vld [vmem:[#allocation23_spill] sm:$0xff] }
 0x271   :  { %10719 = vmatprep.mubr.msk.f32.mxu1 %vm12191_vm2, %v18918_v23  ;;  %10901 = vmatprep.mubr.msk.f32.mxu0 %vm12191_vm2, %v18918_v23  ;;  %v3404_v43 = vld [vmem:[%s18883_s0 + $0xd3] sm:$0xff] }
 0x272   :  { %18955 = vst [vmem:[#allocation21_spill] sm:$0xff] %v14674_v8 }
 0x273   :  { %v1583_v46 = vpop.f32.mrb[206].mxu1  ;;  %v2276_v7 = vpop.f32.mrb[206].mxu0 }
 0x274   :  { %v14689_v59 = vadd.f32 %v1583_v46, %v18956_v5  ;;  %v14692_v2 = vadd.f32 %v2276_v7, %v14311_v31  ;;  %v10497_v51 = vpop.f32.mrb[207].mxu0  ;;  %10720 = vmatmul.mubr.msk.f32.gmra.mrb[56].mxu1 %vm188_vm1, %v2546_v37  ;;  %10902 = vmatmul.mubr.msk.f32.gmra.mrb[56].mxu0 %vm188_vm1, %v3404_v43  ;;  %v10315_v8 = vpop.f32.mrb[207].mxu1  ;;  %v2547_v46 = vld [vmem:[%s18883_s0 + $0x182] sm:$0xff]  ;;  %v18958_v37 = vld [vmem:[#allocation24_spill] sm:$0xff] }
 0x275   :  { %10722 = vmatprep.mubr.msk.f32.mxu1 %vm12191_vm2, %v18918_v23  ;;  %10904 = vmatprep.mubr.msk.f32.mxu0 %vm12191_vm2, %v18918_v23  ;;  %v3405_v31 = vld [vmem:[%s18883_s0 + $0xdb] sm:$0xff] }
 0x276   :  { %18957 = vst [vmem:[#allocation22_spill] sm:$0xff] %v14692_v2 }
 0x277   :  { %v1588_v7 = vpop.f32.mrb[208].mxu1  ;;  %v2281_v5 = vpop.f32.mrb[208].mxu0 }
 0x278   :  { %v14707_v51 = vadd.f32 %v1588_v7, %v18958_v37  ;;  %v14710_v8 = vadd.f32 %v2281_v5, %v14329_v50  ;;  %v10500_v43 = vpop.f32.mrb[209].mxu0  ;;  %10723 = vmatmul.mubr.msk.f32.gmra.mrb[58].mxu1 %vm188_vm1, %v2547_v46  ;;  %10905 = vmatmul.mubr.msk.f32.gmra.mrb[58].mxu0 %vm188_vm1, %v3405_v31  ;;  %v10318_v2 = vpop.f32.mrb[209].mxu1  ;;  %v2548_v7 = vld [vmem:[%s18883_s0 + $0x18a] sm:$0xff]  ;;  %v18960_v46 = vld [vmem:[#allocation25_spill] sm:$0xff] }
 0x279   :  { %10725 = vmatprep.mubr.msk.f32.mxu1 %vm12191_vm2, %v18918_v23  ;;  %10907 = vmatprep.mubr.msk.f32.mxu0 %vm12191_vm2, %v18918_v23  ;;  %v3406_v50 = vld [vmem:[%s18883_s0 + $0xe3] sm:$0xff] }
 0x27a   :  { %18959 = vst [vmem:[#allocation23_spill] sm:$0xff] %v14710_v8 }
 0x27b   :  { %v1593_v5 = vpop.f32.mrb[210].mxu1  ;;  %v2286_v37 = vpop.f32.mrb[210].mxu0 }
 0x27c   :  { %v14725_v43 = vadd.f32 %v1593_v5, %v18960_v46  ;;  %v14728_v2 = vadd.f32 %v2286_v37, %v14347_v58  ;;  %v10503_v31 = vpop.f32.mrb[211].mxu0  ;;  %10726 = vmatmul.mubr.msk.f32.gmra.mrb[60].mxu1 %vm188_vm1, %v2548_v7  ;;  %10908 = vmatmul.mubr.msk.f32.gmra.mrb[60].mxu0 %vm188_vm1, %v3406_v50  ;;  %v10321_v8 = vpop.f32.mrb[211].mxu1  ;;  %v2549_v5 = vld [vmem:[%s18883_s0 + $0x192] sm:$0xff]  ;;  %v18962_v7 = vld [vmem:[#allocation26_spill] sm:$0xff] }
 0x27d   :  { %10728 = vmatprep.mubr.msk.f32.mxu1 %vm12191_vm2, %v18918_v23  ;;  %10910 = vmatprep.mubr.msk.f32.mxu0 %vm12191_vm2, %v18918_v23  ;;  %v3407_v58 = vld [vmem:[%s18883_s0 + $0xeb] sm:$0xff] }
 0x27e   :  { %18961 = vst [vmem:[#allocation24_spill] sm:$0xff] %v14728_v2 }
 0x27f   :  { %v1598_v37 = vpop.f32.mrb[212].mxu1  ;;  %v2291_v46 = vpop.f32.mrb[212].mxu0 }
 0x280   :  { %v14743_v31 = vadd.f32 %v1598_v37, %v18962_v7  ;;  %v14746_v8 = vadd.f32 %v2291_v46, %v14365_v26  ;;  %v10506_v50 = vpop.f32.mrb[213].mxu0  ;;  %10729 = vmatmul.mubr.msk.f32.gmra.mrb[62].mxu1 %vm188_vm1, %v2549_v5  ;;  %10911 = vmatmul.mubr.msk.f32.gmra.mrb[62].mxu0 %vm188_vm1, %v3407_v58  ;;  %v10324_v2 = vpop.f32.mrb[213].mxu1  ;;  %v2550_v37 = vld [vmem:[%s18883_s0 + $0x19a] sm:$0xff]  ;;  %v18964_v5 = vld [vmem:[#allocation27_spill] sm:$0xff] }
 0x281   :  { %10731 = vmatprep.mubr.msk.f32.mxu1 %vm12191_vm2, %v18918_v23  ;;  %10913 = vmatprep.mubr.msk.f32.mxu0 %vm12191_vm2, %v18918_v23  ;;  %v3408_v26 = vld [vmem:[%s18883_s0 + $0xf3] sm:$0xff] }
 0x282   :  { %18963 = vst [vmem:[#allocation25_spill] sm:$0xff] %v14746_v8 }
 0x283   :  { %v1603_v46 = vpop.f32.mrb[214].mxu1  ;;  %v2296_v7 = vpop.f32.mrb[214].mxu0 }
 0x284   :  { %v14761_v50 = vadd.f32 %v1603_v46, %v18964_v5  ;;  %v14764_v2 = vadd.f32 %v2296_v7, %v14383_v0  ;;  %v10509_v58 = vpop.f32.mrb[215].mxu0  ;;  %10732 = vmatmul.mubr.msk.f32.gmra.mrb[64].mxu1 %vm188_vm1, %v2550_v37  ;;  %10914 = vmatmul.mubr.msk.f32.gmra.mrb[64].mxu0 %vm188_vm1, %v3408_v26  ;;  %v10327_v8 = vpop.f32.mrb[215].mxu1  ;;  %v2551_v46 = vld [vmem:[%s18883_s0 + $0x1a2] sm:$0xff]  ;;  %v18966_v37 = vld [vmem:[#allocation28_spill] sm:$0xff] }
 0x285   :  { %10734 = vmatprep.mubr.msk.f32.mxu1 %vm12191_vm2, %v18918_v23  ;;  %10916 = vmatprep.mubr.msk.f32.mxu0 %vm12191_vm2, %v18918_v23  ;;  %v3409_v0 = vld [vmem:[%s18883_s0 + $0xfb] sm:$0xff] }
 0x286   :  { %18965 = vst [vmem:[#allocation26_spill] sm:$0xff] %v14764_v2 }
 0x287   :  { %v1608_v7 = vpop.f32.mrb[216].mxu1  ;;  %v2301_v5 = vpop.f32.mrb[216].mxu0 }
 0x288   :  { %v14779_v58 = vadd.f32 %v1608_v7, %v18966_v37  ;;  %v14782_v8 = vadd.f32 %v2301_v5, %v14401_v33  ;;  %v10512_v26 = vpop.f32.mrb[217].mxu0  ;;  %10735 = vmatmul.mubr.msk.f32.gmra.mrb[66].mxu1 %vm188_vm1, %v2551_v46  ;;  %10917 = vmatmul.mubr.msk.f32.gmra.mrb[66].mxu0 %vm188_vm1, %v3409_v0  ;;  %v10330_v2 = vpop.f32.mrb[217].mxu1  ;;  %v2552_v7 = vld [vmem:[%s18883_s0 + $0x1aa] sm:$0xff]  ;;  %v18968_v46 = vld [vmem:[#allocation29_spill] sm:$0xff] }
 0x289   :  { %10737 = vmatprep.mubr.msk.f32.mxu1 %vm12191_vm2, %v18918_v23  ;;  %10919 = vmatprep.mubr.msk.f32.mxu0 %vm12191_vm2, %v18918_v23  ;;  %v3410_v33 = vld [vmem:[%s18883_s0 + $0x103] sm:$0xff] }
 0x28a   :  { %18967 = vst [vmem:[#allocation27_spill] sm:$0xff] %v14782_v8 }
 0x28b   :  { %v1613_v5 = vpop.f32.mrb[218].mxu1  ;;  %v2306_v37 = vpop.f32.mrb[218].mxu0 }
 0x28c   :  { %v14797_v26 = vadd.f32 %v1613_v5, %v18968_v46  ;;  %v14800_v2 = vadd.f32 %v2306_v37, %v14419_v9  ;;  %v10515_v0 = vpop.f32.mrb[219].mxu0  ;;  %10738 = vmatmul.mubr.msk.f32.gmra.mrb[68].mxu1 %vm188_vm1, %v2552_v7  ;;  %10920 = vmatmul.mubr.msk.f32.gmra.mrb[68].mxu0 %vm188_vm1, %v3410_v33  ;;  %v10333_v8 = vpop.f32.mrb[219].mxu1  ;;  %v2553_v5 = vld [vmem:[%s18883_s0 + $0x1b2] sm:$0xff]  ;;  %v18970_v7 = vld [vmem:[#allocation30_spill] sm:$0xff] }
 0x28d   :  { %10740 = vmatprep.mubr.msk.f32.mxu1 %vm12191_vm2, %v18918_v23  ;;  %10922 = vmatprep.mubr.msk.f32.mxu0 %vm12191_vm2, %v18918_v23  ;;  %v3411_v9 = vld [vmem:[%s18883_s0 + $0x10b] sm:$0xff] }
 0x28e   :  { %18969 = vst [vmem:[#allocation28_spill] sm:$0xff] %v14800_v2 }
 0x28f   :  { %v1618_v37 = vpop.f32.mrb[220].mxu1  ;;  %v2311_v46 = vpop.f32.mrb[220].mxu0 }
 0x290   :  { %v14815_v0 = vadd.f32 %v1618_v37, %v18970_v7  ;;  %v14818_v8 = vadd.f32 %v2311_v46, %v14437_v60  ;;  %v10518_v33 = vpop.f32.mrb[221].mxu0  ;;  %10741 = vmatmul.mubr.msk.f32.gmra.mrb[70].mxu1 %vm188_vm1, %v2553_v5  ;;  %10923 = vmatmul.mubr.msk.f32.gmra.mrb[70].mxu0 %vm188_vm1, %v3411_v9  ;;  %v10336_v2 = vpop.f32.mrb[221].mxu1  ;;  %v2554_v37 = vld [vmem:[%s18883_s0 + $0x1ba] sm:$0xff] }
 0x291   :  { %10743 = vmatprep.mubr.msk.f32.mxu1 %vm12191_vm2, %v18918_v23  ;;  %10925 = vmatprep.mubr.msk.f32.mxu0 %vm12191_vm2, %v18918_v23  ;;  %v3412_v60 = vld [vmem:[%s18883_s0 + $0x113] sm:$0xff] }
 0x293   :  { %v2316_v46 = vpop.f32.mrb[222].mxu0  ;;  %v2895_v7 = vpop.f32.mrb[222].mxu1 }
 0x294   :  { %v14833_v5 = vadd.f32 %v2316_v46, %v14455_v34  ;;  %v14836_v2 = vadd.f32 %v2895_v7, %v13746_v10  ;;  %v10521_v9 = vpop.f32.mrb[223].mxu0  ;;  %10744 = vmatmul.mubr.msk.f32.gmra.mrb[72].mxu1 %vm188_vm1, %v2554_v37  ;;  %10926 = vmatmul.mubr.msk.f32.gmra.mrb[72].mxu0 %vm188_vm1, %v3412_v60  ;;  %v10586_v33 = vpop.f32.mrb[223].mxu1  ;;  %v2555_v34 = vld [vmem:[%s18883_s0 + $0x1c2] sm:$0xff] }
 0x295   :  { %10746 = vmatprep.mubr.msk.f32.mxu1 %vm12191_vm2, %v18918_v23  ;;  %10928 = vmatprep.mubr.msk.f32.mxu0 %vm12191_vm2, %v18918_v23  ;;  %v3413_v10 = vld [vmem:[%s18883_s0 + $0x11b] sm:$0xff] }
 0x297   :  { %v2321_v46 = vpop.f32.mrb[224].mxu0  ;;  %v2900_v7 = vpop.f32.mrb[224].mxu1 }
 0x298   :  { %v14851_v37 = vadd.f32 %v2321_v46, %v14473_v16  ;;  %v14854_v60 = vadd.f32 %v2900_v7, %v13764_v13  ;;  %v10524_v9 = vpop.f32.mrb[225].mxu0  ;;  %10747 = vmatmul.mubr.msk.f32.gmra.mrb[74].mxu1 %vm188_vm1, %v2555_v34  ;;  %10929 = vmatmul.mubr.msk.f32.gmra.mrb[74].mxu0 %vm188_vm1, %v3413_v10  ;;  %v10589_v33 = vpop.f32.mrb[225].mxu1  ;;  %v2556_v16 = vld [vmem:[%s18883_s0 + $0x1ca] sm:$0xff] }
 0x299   :  { %10749 = vmatprep.mubr.msk.f32.mxu1 %vm12191_vm2, %v18918_v23  ;;  %10931 = vmatprep.mubr.msk.f32.mxu0 %vm12191_vm2, %v18918_v23  ;;  %v3414_v13 = vld [vmem:[%s18883_s0 + $0x123] sm:$0xff] }
 0x29b   :  { %v2326_v46 = vpop.f32.mrb[226].mxu0  ;;  %v2905_v7 = vpop.f32.mrb[226].mxu1 }
 0x29c   :  { %v14869_v34 = vadd.f32 %v2326_v46, %v14491_v55  ;;  %v14872_v10 = vadd.f32 %v2905_v7, %v13782_v44  ;;  %v10527_v9 = vpop.f32.mrb[227].mxu0  ;;  %10750 = vmatmul.mubr.msk.f32.gmra.mrb[76].mxu1 %vm188_vm1, %v2556_v16  ;;  %10932 = vmatmul.mubr.msk.f32.gmra.mrb[76].mxu0 %vm188_vm1, %v3414_v13  ;;  %v10592_v33 = vpop.f32.mrb[227].mxu1  ;;  %v2557_v55 = vld [vmem:[%s18883_s0 + $0x1d2] sm:$0xff] }
 0x29d   :  { %10752 = vmatprep.mubr.msk.f32.mxu1 %vm12191_vm2, %v18918_v23  ;;  %10934 = vmatprep.mubr.msk.f32.mxu0 %vm12191_vm2, %v18918_v23  ;;  %v3415_v44 = vld [vmem:[%s18883_s0 + $0x12b] sm:$0xff] }
 0x29f   :  { %v2331_v46 = vpop.f32.mrb[228].mxu0  ;;  %v2910_v7 = vpop.f32.mrb[228].mxu1 }
 0x2a0   :  { %v14887_v16 = vadd.f32 %v2331_v46, %v14509_v41  ;;  %v14890_v13 = vadd.f32 %v2910_v7, %v13800_v17  ;;  %v10530_v9 = vpop.f32.mrb[229].mxu0  ;;  %10753 = vmatmul.mubr.msk.f32.gmra.mrb[78].mxu1 %vm188_vm1, %v2557_v55  ;;  %10935 = vmatmul.mubr.msk.f32.gmra.mrb[78].mxu0 %vm188_vm1, %v3415_v44  ;;  %v10595_v33 = vpop.f32.mrb[229].mxu1  ;;  %v2558_v41 = vld [vmem:[%s18883_s0 + $0x1da] sm:$0xff] }
 0x2a1   :  { %10755 = vmatprep.mubr.msk.f32.mxu1 %vm12191_vm2, %v18918_v23  ;;  %10937 = vmatprep.mubr.msk.f32.mxu0 %vm12191_vm2, %v18918_v23  ;;  %v3416_v17 = vld [vmem:[%s18883_s0 + $0x133] sm:$0xff] }
 0x2a3   :  { %v2336_v46 = vpop.f32.mrb[230].mxu0  ;;  %v2915_v7 = vpop.f32.mrb[230].mxu1 }
 0x2a4   :  { %v14905_v55 = vadd.f32 %v2336_v46, %v14527_v27  ;;  %v14908_v44 = vadd.f32 %v2915_v7, %v13818_v49  ;;  %v10533_v9 = vpop.f32.mrb[231].mxu0  ;;  %10756 = vmatmul.mubr.msk.f32.gmra.mrb[80].mxu1 %vm188_vm1, %v2558_v41  ;;  %10938 = vmatmul.mubr.msk.f32.gmra.mrb[80].mxu0 %vm188_vm1, %v3416_v17  ;;  %v10598_v33 = vpop.f32.mrb[231].mxu1  ;;  %v2559_v27 = vld [vmem:[%s18883_s0 + $0x1e2] sm:$0xff] }
 0x2a5   :  { %10758 = vmatprep.mubr.msk.f32.mxu1 %vm12191_vm2, %v18918_v23  ;;  %10940 = vmatprep.mubr.msk.f32.mxu0 %vm12191_vm2, %v18918_v23  ;;  %v3417_v49 = vld [vmem:[%s18883_s0 + $0x13b] sm:$0xff] }
 0x2a7   :  { %v2341_v46 = vpop.f32.mrb[232].mxu0  ;;  %v2920_v7 = vpop.f32.mrb[232].mxu1 }
 0x2a8   :  { %v14923_v41 = vadd.f32 %v2341_v46, %v14545_v15  ;;  %v14926_v17 = vadd.f32 %v2920_v7, %v13836_v57  ;;  %v10536_v9 = vpop.f32.mrb[233].mxu0  ;;  %10759 = vmatmul.mubr.msk.f32.gmra.mrb[82].mxu1 %vm188_vm1, %v2559_v27  ;;  %10941 = vmatmul.mubr.msk.f32.gmra.mrb[82].mxu0 %vm188_vm1, %v3417_v49  ;;  %v10601_v33 = vpop.f32.mrb[233].mxu1  ;;  %v2560_v15 = vld [vmem:[%s18883_s0 + $0x1ea] sm:$0xff] }
 0x2a9   :  { %10761 = vmatprep.mubr.msk.f32.mxu1 %vm12191_vm2, %v18918_v23  ;;  %10943 = vmatprep.mubr.msk.f32.mxu0 %vm12191_vm2, %v18918_v23  ;;  %v3418_v57 = vld [vmem:[%s18883_s0 + $0x143] sm:$0xff] }
 0x2ab   :  { %v2346_v46 = vpop.f32.mrb[234].mxu0  ;;  %v2925_v7 = vpop.f32.mrb[234].mxu1 }
 0x2ac   :  { %v14941_v27 = vadd.f32 %v2346_v46, %v14563_v62  ;;  %v14944_v49 = vadd.f32 %v2925_v7, %v13854_v63  ;;  %v10539_v9 = vpop.f32.mrb[235].mxu0  ;;  %10762 = vmatmul.mubr.msk.f32.gmra.mrb[84].mxu1 %vm188_vm1, %v2560_v15  ;;  %10944 = vmatmul.mubr.msk.f32.gmra.mrb[84].mxu0 %vm188_vm1, %v3418_v57  ;;  %v10604_v33 = vpop.f32.mrb[235].mxu1  ;;  %v2561_v62 = vld [vmem:[%s18883_s0 + $0x1f2] sm:$0xff] }
 0x2ad   :  { %10764 = vmatprep.mubr.msk.f32.mxu1 %vm12191_vm2, %v18918_v23  ;;  %10946 = vmatprep.mubr.msk.f32.mxu0 %vm12191_vm2, %v18918_v23  ;;  %v3419_v63 = vld [vmem:[%s18883_s0 + $0x14b] sm:$0xff] }
 0x2af   :  { %v2351_v46 = vpop.f32.mrb[236].mxu0  ;;  %v2930_v7 = vpop.f32.mrb[236].mxu1 }
 0x2b0   :  { %v14959_v15 = vadd.f32 %v2351_v46, %v14581_v52  ;;  %v14962_v57 = vadd.f32 %v2930_v7, %v13872_v6  ;;  %v10542_v9 = vpop.f32.mrb[237].mxu0  ;;  %10765 = vmatmul.mubr.msk.f32.gmra.mrb[86].mxu1 %vm188_vm1, %v2561_v62  ;;  %10947 = vmatmul.mubr.msk.f32.gmra.mrb[86].mxu0 %vm188_vm1, %v3419_v63  ;;  %v10607_v33 = vpop.f32.mrb[237].mxu1  ;;  %v2562_v52 = vld [vmem:[%s18883_s0 + $0x1fa] sm:$0xff] }
 0x2b1   :  { %10767 = vmatprep.mubr.msk.f32.mxu1 %vm12191_vm2, %v18918_v23  ;;  %10949 = vmatprep.mubr.msk.f32.mxu0 %vm12191_vm2, %v18918_v23  ;;  %v3420_v6 = vld [vmem:[%s18883_s0 + $0x153] sm:$0xff] }
 0x2b3   :  { %v2356_v46 = vpop.f32.mrb[238].mxu0  ;;  %v2935_v7 = vpop.f32.mrb[238].mxu1 }
 0x2b4   :  { %v14977_v62 = vadd.f32 %v2356_v46, %v14599_v40  ;;  %v14980_v63 = vadd.f32 %v2935_v7, %v13890_v12  ;;  %v10545_v9 = vpop.f32.mrb[239].mxu0  ;;  %10768 = vmatmul.mubr.msk.f32.gmra.mrb[88].mxu1 %vm188_vm1, %v2562_v52  ;;  %10950 = vmatmul.mubr.msk.f32.gmra.mrb[88].mxu0 %vm188_vm1, %v3420_v6  ;;  %v10610_v33 = vpop.f32.mrb[239].mxu1  ;;  %v2563_v40 = vld [vmem:[%s18883_s0 + $0x202] sm:$0xff] }
 0x2b5   :  { %10770 = vmatprep.mubr.msk.f32.mxu1 %vm12191_vm2, %v18918_v23  ;;  %10952 = vmatprep.mubr.msk.f32.mxu0 %vm12191_vm2, %v18918_v23  ;;  %v3421_v12 = vld [vmem:[%s18883_s0 + $0x15b] sm:$0xff] }
 0x2b7   :  { %v2361_v46 = vpop.f32.mrb[240].mxu0  ;;  %v2940_v7 = vpop.f32.mrb[240].mxu1 }
 0x2b8   :  { %v14995_v52 = vadd.f32 %v2361_v46, %v14617_v32  ;;  %v14998_v6 = vadd.f32 %v2940_v7, %v13908_v18  ;;  %v10548_v9 = vpop.f32.mrb[241].mxu0  ;;  %10771 = vmatmul.mubr.msk.f32.gmra.mrb[90].mxu1 %vm188_vm1, %v2563_v40  ;;  %10953 = vmatmul.mubr.msk.f32.gmra.mrb[90].mxu0 %vm188_vm1, %v3421_v12  ;;  %v10613_v33 = vpop.f32.mrb[241].mxu1  ;;  %v2564_v32 = vld [vmem:[%s18883_s0 + $0x20a] sm:$0xff] }
 0x2b9   :  { %10773 = vmatprep.mubr.msk.f32.mxu1 %vm12191_vm2, %v18918_v23  ;;  %10955 = vmatprep.mubr.msk.f32.mxu0 %vm12191_vm2, %v18918_v23  ;;  %v3422_v18 = vld [vmem:[%s18883_s0 + $0x163] sm:$0xff] }
 0x2bb   :  { %v2366_v46 = vpop.f32.mrb[242].mxu0  ;;  %v2945_v7 = vpop.f32.mrb[242].mxu1 }
 0x2bc   :  { %v15013_v40 = vadd.f32 %v2366_v46, %v14635_v22  ;;  %v15016_v12 = vadd.f32 %v2945_v7, %v13926_v24  ;;  %v10551_v9 = vpop.f32.mrb[243].mxu0  ;;  %10774 = vmatmul.mubr.msk.f32.gmra.mrb[92].mxu1 %vm188_vm1, %v2564_v32  ;;  %10956 = vmatmul.mubr.msk.f32.gmra.mrb[92].mxu0 %vm188_vm1, %v3422_v18  ;;  %v10616_v33 = vpop.f32.mrb[243].mxu1  ;;  %v2565_v22 = vld [vmem:[%s18883_s0 + $0x212] sm:$0xff] }
 0x2bd   :  { %10776 = vmatprep.mubr.msk.f32.mxu1 %vm12191_vm2, %v18918_v23  ;;  %10958 = vmatprep.mubr.msk.f32.mxu0 %vm12191_vm2, %v18918_v23  ;;  %v3423_v24 = vld [vmem:[%s18883_s0 + $0x16b] sm:$0xff] }
 0x2bf   :  { %v2371_v46 = vpop.f32.mrb[244].mxu0  ;;  %v2950_v7 = vpop.f32.mrb[244].mxu1 }
 0x2c0   :  { %v15031_v32 = vadd.f32 %v2371_v46, %v14653_v14  ;;  %v15034_v18 = vadd.f32 %v2950_v7, %v13944_v30  ;;  %v10554_v9 = vpop.f32.mrb[245].mxu0  ;;  %10777 = vmatmul.mubr.msk.f32.gmra.mrb[94].mxu1 %vm188_vm1, %v2565_v22  ;;  %10959 = vmatmul.mubr.msk.f32.gmra.mrb[94].mxu0 %vm188_vm1, %v3423_v24  ;;  %v10619_v33 = vpop.f32.mrb[245].mxu1  ;;  %v2566_v14 = vld [vmem:[%s18883_s0 + $0x21a] sm:$0xff] }
 0x2c1   :  { %10779 = vmatprep.mubr.msk.f32.mxu1 %vm12191_vm2, %v18918_v23  ;;  %10961 = vmatprep.mubr.msk.f32.mxu0 %vm12191_vm2, %v18918_v23  ;;  %v3424_v30 = vld [vmem:[%s18883_s0 + $0x173] sm:$0xff] }
 0x2c3   :  { %v2376_v46 = vpop.f32.mrb[246].mxu0  ;;  %v2955_v7 = vpop.f32.mrb[246].mxu1 }
 0x2c4   :  { %v15049_v22 = vadd.f32 %v2376_v46, %v14671_v4  ;;  %v15052_v24 = vadd.f32 %v2955_v7, %v13962_v36  ;;  %v10557_v9 = vpop.f32.mrb[247].mxu0  ;;  %10780 = vmatmul.mubr.msk.f32.gmra.mrb[96].mxu1 %vm188_vm1, %v2566_v14  ;;  %10962 = vmatmul.mubr.msk.f32.gmra.mrb[96].mxu0 %vm188_vm1, %v3424_v30  ;;  %v10622_v33 = vpop.f32.mrb[247].mxu1  ;;  %v2567_v4 = vld [vmem:[%s18883_s0 + $0x222] sm:$0xff] }
 0x2c5   :  { %10782 = vmatprep.mubr.msk.f32.mxu1 %vm12191_vm2, %v18918_v23  ;;  %10964 = vmatprep.mubr.msk.f32.mxu0 %vm12191_vm2, %v18918_v23  ;;  %v3425_v36 = vld [vmem:[%s18883_s0 + $0x17b] sm:$0xff] }
 0x2c7   :  { %v2381_v46 = vpop.f32.mrb[248].mxu0  ;;  %v2960_v7 = vpop.f32.mrb[248].mxu1 }
 0x2c8   :  { %v15067_v14 = vadd.f32 %v2381_v46, %v14689_v59  ;;  %v15070_v30 = vadd.f32 %v2960_v7, %v13980_v42  ;;  %v10560_v9 = vpop.f32.mrb[249].mxu0  ;;  %10783 = vmatmul.mubr.msk.f32.gmra.mrb[98].mxu1 %vm188_vm1, %v2567_v4  ;;  %10965 = vmatmul.mubr.msk.f32.gmra.mrb[98].mxu0 %vm188_vm1, %v3425_v36  ;;  %v10625_v33 = vpop.f32.mrb[249].mxu1  ;;  %v2568_v59 = vld [vmem:[%s18883_s0 + $0x22a] sm:$0xff] }
 0x2c9   :  { %10785 = vmatprep.mubr.msk.f32.mxu1 %vm12191_vm2, %v18918_v23  ;;  %10967 = vmatprep.mubr.msk.f32.mxu0 %vm12191_vm2, %v18918_v23  ;;  %v3426_v42 = vld [vmem:[%s18883_s0 + $0x183] sm:$0xff] }
 0x2ca   :  { %18971 = vst [vmem:[#allocation29_spill] sm:$0xff] %v15067_v14  ;;  %v6098_v14 = vld [vmem:[%s18884_s1 + $0x1c] sm:$0xf] }
 0x2cb   :  { %v2386_v46 = vpop.f32.mrb[250].mxu0  ;;  %v2965_v7 = vpop.f32.mrb[250].mxu1 }
 0x2cc   :  { %v15085_v4 = vadd.f32 %v2386_v46, %v14707_v51  ;;  %v15088_v36 = vadd.f32 %v2965_v7, %v13998_v48  ;;  %v10563_v9 = vpop.f32.mrb[251].mxu0  ;;  %10786 = vmatmul.mubr.msk.f32.gmra.mrb[100].mxu1 %vm188_vm1, %v2568_v59  ;;  %10968 = vmatmul.mubr.msk.f32.gmra.mrb[100].mxu0 %vm188_vm1, %v3426_v42  ;;  %v10628_v33 = vpop.f32.mrb[251].mxu1  ;;  %v2569_v51 = vld [vmem:[%s18883_s0 + $0x232] sm:$0xff] }
 0x2cd   :  { %10788 = vmatprep.mubr.msk.f32.mxu1 %vm12191_vm2, %v18918_v23  ;;  %10970 = vmatprep.mubr.msk.f32.mxu0 %vm12191_vm2, %v18918_v23  ;;  %v3427_v48 = vld [vmem:[%s18883_s0 + $0x18b] sm:$0xff] }
 0x2ce   :  { %18972 = vst [vmem:[#allocation30_spill] sm:$0xff] %v15085_v4 }
 0x2cf   :  { %v2391_v46 = vpop.f32.mrb[252].mxu0  ;;  %v2970_v7 = vpop.f32.mrb[252].mxu1 }
 0x2d0   :  { %v15103_v59 = vadd.f32 %v2391_v46, %v14725_v43  ;;  %v15106_v42 = vadd.f32 %v2970_v7, %v14016_v56  ;;  %v10566_v9 = vpop.f32.mrb[253].mxu0  ;;  %10789 = vmatmul.mubr.msk.f32.gmra.mrb[102].mxu1 %vm188_vm1, %v2569_v51  ;;  %10971 = vmatmul.mubr.msk.f32.gmra.mrb[102].mxu0 %vm188_vm1, %v3427_v48  ;;  %v10631_v33 = vpop.f32.mrb[253].mxu1  ;;  %v2570_v43 = vld [vmem:[%s18883_s0 + $0x23a] sm:$0xff] }
 0x2d1   :  { %10791 = vmatprep.mubr.msk.f32.mxu1 %vm12191_vm2, %v18918_v23  ;;  %10973 = vmatprep.mubr.msk.f32.mxu0 %vm12191_vm2, %v18918_v23  ;;  %v3428_v56 = vld [vmem:[%s18883_s0 + $0x193] sm:$0xff] }
 0x2d2   :  { %18973 = vst [vmem:[#allocation33_spill] sm:$0xff] %v15103_v59 }
 0x2d3   :  { %v2396_v46 = vpop.f32.mrb[254].mxu0  ;;  %v2975_v7 = vpop.f32.mrb[254].mxu1 }
 0x2d4   :  { %v15121_v51 = vadd.f32 %v2396_v46, %v14743_v31  ;;  %v15124_v48 = vadd.f32 %v2975_v7, %v14034_v3  ;;  %v10569_v9 = vpop.f32.mrb[255].mxu0  ;;  %10792 = vmatmul.mubr.msk.f32.gmra.mrb[104].mxu1 %vm188_vm1, %v2570_v43  ;;  %10974 = vmatmul.mubr.msk.f32.gmra.mrb[104].mxu0 %vm188_vm1, %v3428_v56  ;;  %v10634_v33 = vpop.f32.mrb[255].mxu1  ;;  %v2571_v31 = vld [vmem:[%s18883_s0 + $0x242] sm:$0xff] }
 0x2d5   :  { %10794 = vmatprep.mubr.msk.f32.mxu1 %vm12191_vm2, %v18918_v23  ;;  %10976 = vmatprep.mubr.msk.f32.mxu0 %vm12191_vm2, %v18918_v23  ;;  %v3429_v3 = vld [vmem:[%s18883_s0 + $0x19b] sm:$0xff] }
 0x2d6   :  { %18974 = vst [vmem:[#allocation34_spill] sm:$0xff] %v15121_v51 }
 0x2d7   :  { %v2401_v46 = vpop.f32.mrb[0].mxu0  ;;  %v2980_v7 = vpop.f32.mrb[0].mxu1 }
 0x2d8   :  { %v15139_v43 = vadd.f32 %v2401_v46, %v14761_v50  ;;  %v15142_v56 = vadd.f32 %v2980_v7, %v14052_v11  ;;  %v10572_v9 = vpop.f32.mrb[1].mxu0  ;;  %10795 = vmatmul.mubr.msk.f32.gmra.mrb[106].mxu1 %vm188_vm1, %v2571_v31  ;;  %10977 = vmatmul.mubr.msk.f32.gmra.mrb[106].mxu0 %vm188_vm1, %v3429_v3  ;;  %v10637_v33 = vpop.f32.mrb[1].mxu1  ;;  %v2572_v50 = vld [vmem:[%s18883_s0 + $0x24a] sm:$0xff] }
 0x2d9   :  { %10797 = vmatprep.mubr.msk.f32.mxu1 %vm12191_vm2, %v18918_v23  ;;  %10979 = vmatprep.mubr.msk.f32.mxu0 %vm12191_vm2, %v18918_v23  ;;  %v3430_v11 = vld [vmem:[%s18883_s0 + $0x1a3] sm:$0xff] }
 0x2da   :  { %18975 = vst [vmem:[#allocation35_spill] sm:$0xff] %v15139_v43 }
 0x2db   :  { %v2406_v46 = vpop.f32.mrb[2].mxu0  ;;  %v2985_v7 = vpop.f32.mrb[2].mxu1 }
 0x2dc   :  { %v15157_v31 = vadd.f32 %v2406_v46, %v14779_v58  ;;  %v15160_v3 = vadd.f32 %v2985_v7, %v14070_v21  ;;  %v10575_v9 = vpop.f32.mrb[3].mxu0  ;;  %10798 = vmatmul.mubr.msk.f32.gmra.mrb[108].mxu1 %vm188_vm1, %v2572_v50  ;;  %10980 = vmatmul.mubr.msk.f32.gmra.mrb[108].mxu0 %vm188_vm1, %v3430_v11  ;;  %v10640_v33 = vpop.f32.mrb[3].mxu1  ;;  %v2573_v58 = vld [vmem:[%s18883_s0 + $0x252] sm:$0xff] }
 0x2dd   :  { %10800 = vmatprep.mubr.msk.f32.mxu1 %vm12191_vm2, %v18918_v23  ;;  %10982 = vmatprep.mubr.msk.f32.mxu0 %vm12191_vm2, %v18918_v23  ;;  %v3431_v21 = vld [vmem:[%s18883_s0 + $0x1ab] sm:$0xff] }
 0x2de   :  { %18976 = vst [vmem:[#allocation36_spill] sm:$0xff] %v15157_v31 }
 0x2df   :  { %v2411_v46 = vpop.f32.mrb[4].mxu0  ;;  %v2990_v7 = vpop.f32.mrb[4].mxu1 }
 0x2e0   :  { %v15175_v50 = vadd.f32 %v2411_v46, %v14797_v26  ;;  %v15178_v11 = vadd.f32 %v2990_v7, %v14088_v29  ;;  %v10578_v9 = vpop.f32.mrb[5].mxu0  ;;  %10801 = vmatmul.mubr.msk.f32.gmra.mrb[110].mxu1 %vm188_vm1, %v2573_v58  ;;  %10983 = vmatmul.mubr.msk.f32.gmra.mrb[110].mxu0 %vm188_vm1, %v3431_v21  ;;  %v10643_v33 = vpop.f32.mrb[5].mxu1  ;;  %v2574_v26 = vld [vmem:[%s18883_s0 + $0x25a] sm:$0xff] }
 0x2e1   :  { %10803 = vmatprep.mubr.msk.f32.mxu1 %vm12191_vm2, %v18918_v23  ;;  %10985 = vmatprep.mubr.msk.f32.mxu0 %vm12191_vm2, %v18918_v23  ;;  %v3432_v29 = vld [vmem:[%s18883_s0 + $0x1b3] sm:$0xff] }
 0x2e2   :  { %18977 = vst [vmem:[#allocation37_spill] sm:$0xff] %v15175_v50 }
 0x2e3   :  { %v2416_v46 = vpop.f32.mrb[6].mxu0  ;;  %v2995_v7 = vpop.f32.mrb[6].mxu1 }
 0x2e4   :  { %v15193_v58 = vadd.f32 %v2416_v46, %v14815_v0  ;;  %v15196_v21 = vadd.f32 %v2995_v7, %v14106_v39  ;;  %v10581_v9 = vpop.f32.mrb[7].mxu0  ;;  %10804 = vmatmul.mubr.msk.f32.gmra.mrb[112].mxu1 %vm188_vm1, %v2574_v26  ;;  %10986 = vmatmul.mubr.msk.f32.gmra.mrb[112].mxu0 %vm188_vm1, %v3432_v29  ;;  %v10646_v33 = vpop.f32.mrb[7].mxu1  ;;  %v2575_v0 = vld [vmem:[%s18883_s0 + $0x262] sm:$0xff] }
 0x2e5   :  { %10806 = vmatprep.mubr.msk.f32.mxu1 %vm12191_vm2, %v18918_v23  ;;  %10988 = vmatprep.mubr.msk.f32.mxu0 %vm12191_vm2, %v18918_v23  ;;  %v3433_v39 = vld [vmem:[%s18883_s0 + $0x1bb] sm:$0xff] }
 0x2e6   :  { %18978 = vst [vmem:[#allocation38_spill] sm:$0xff] %v15193_v58 }
 0x2e7   :  { %v3000_v46 = vpop.f32.mrb[8].mxu1  ;;  %v3774_v7 = vpop.f32.mrb[8].mxu0 }
 0x2e8   :  { %v15211_v26 = vadd.f32 %v3000_v46, %v14124_v47  ;;  %v15214_v29 = vadd.f32 %v3774_v7, %v14836_v2  ;;  %10807 = vmatmul.mubr.msk.f32.gmra.mrb[114].mxu1 %vm188_vm1, %v2575_v0  ;;  %v10831_v9 = vpop.f32.mrb[9].mxu0  ;;  %10989 = vmatmul.mubr.msk.f32.gmra.mrb[114].mxu0 %vm188_vm1, %v3433_v39  ;;  %v10649_v33 = vpop.f32.mrb[9].mxu1  ;;  %v2576_v47 = vld [vmem:[%s18883_s0 + $0x26a] sm:$0xff] }
 0x2e9   :  { %10809 = vmatprep.mubr.msk.f32.mxu1 %vm12191_vm2, %v18918_v23  ;;  %10991 = vmatprep.mubr.msk.f32.mxu0 %vm12191_vm2, %v18918_v23  ;;  %v3434_v2 = vld [vmem:[%s18883_s0 + $0x1c3] sm:$0xff] }
 0x2ea   :  { %18979 = vst [vmem:[#allocation39_spill] sm:$0xff] %v15214_v29 }
 0x2eb   :  { %v3005_v46 = vpop.f32.mrb[10].mxu1  ;;  %v3779_v0 = vpop.f32.mrb[10].mxu0 }
 0x2ec   :  { %v15229_v7 = vadd.f32 %v3005_v46, %v14142_v61  ;;  %v15232_v39 = vadd.f32 %v3779_v0, %v14854_v60  ;;  %10810 = vmatmul.mubr.msk.f32.gmra.mrb[116].mxu1 %vm188_vm1, %v2576_v47  ;;  %v10834_v9 = vpop.f32.mrb[11].mxu0  ;;  %10992 = vmatmul.mubr.msk.f32.gmra.mrb[116].mxu0 %vm188_vm1, %v3434_v2  ;;  %v10652_v33 = vpop.f32.mrb[11].mxu1  ;;  %v2577_v61 = vld [vmem:[%s18883_s0 + $0x272] sm:$0xff] }
 0x2ed   :  { %10812 = vmatprep.mubr.msk.f32.mxu1 %vm12191_vm2, %v18918_v23  ;;  %10994 = vmatprep.mubr.msk.f32.mxu0 %vm12191_vm2, %v18918_v23  ;;  %v3435_v60 = vld [vmem:[%s18883_s0 + $0x1cb] sm:$0xff] }
 0x2ee   :  { %18980 = vst [vmem:[#allocation40_spill] sm:$0xff] %v15232_v39 }
 0x2ef   :  { %v3010_v46 = vpop.f32.mrb[12].mxu1  ;;  %v3784_v47 = vpop.f32.mrb[12].mxu0 }
 0x2f0   :  { %v15247_v0 = vadd.f32 %v3010_v46, %v14160_v25  ;;  %v15250_v2 = vadd.f32 %v3784_v47, %v14872_v10  ;;  %10813 = vmatmul.mubr.msk.f32.gmra.mrb[118].mxu1 %vm188_vm1, %v2577_v61  ;;  %v10837_v9 = vpop.f32.mrb[13].mxu0  ;;  %10995 = vmatmul.mubr.msk.f32.gmra.mrb[118].mxu0 %vm188_vm1, %v3435_v60  ;;  %v10655_v33 = vpop.f32.mrb[13].mxu1  ;;  %v2578_v25 = vld [vmem:[%s18883_s0 + $0x27a] sm:$0xff] }
 0x2f1   :  { %10815 = vmatprep.mubr.msk.f32.mxu1 %vm12191_vm2, %v18918_v23  ;;  %10997 = vmatprep.mubr.msk.f32.mxu0 %vm12191_vm2, %v18918_v23  ;;  %v3436_v10 = vld [vmem:[%s18883_s0 + $0x1d3] sm:$0xff] }
 0x2f2   :  { %18981 = vst [vmem:[#allocation41_spill] sm:$0xff] %v15250_v2 }
 0x2f3   :  { %v3015_v46 = vpop.f32.mrb[14].mxu1  ;;  %v3789_v61 = vpop.f32.mrb[14].mxu0 }
 0x2f4   :  { %v15265_v47 = vadd.f32 %v3015_v46, %v14178_v1  ;;  %v15268_v60 = vadd.f32 %v3789_v61, %v14890_v13  ;;  %10816 = vmatmul.mubr.msk.f32.gmra.mrb[120].mxu1 %vm188_vm1, %v2578_v25  ;;  %v10840_v9 = vpop.f32.mrb[15].mxu0  ;;  %10998 = vmatmul.mubr.msk.f32.gmra.mrb[120].mxu0 %vm188_vm1, %v3436_v10  ;;  %v10658_v33 = vpop.f32.mrb[15].mxu1  ;;  %v2579_v1 = vld [vmem:[%s18883_s0 + $0x282] sm:$0xff] }
 0x2f5   :  { %10818 = vmatprep.mubr.msk.f32.mxu1 %vm12191_vm2, %v18918_v23  ;;  %11000 = vmatprep.mubr.msk.f32.mxu0 %vm12191_vm2, %v18918_v23  ;;  %v3437_v13 = vld [vmem:[%s18883_s0 + $0x1db] sm:$0xff] }
 0x2f6   :  { %18982 = vst [vmem:[#allocation42_spill] sm:$0xff] %v15268_v60 }
 0x2f7   :  { %v3020_v46 = vpop.f32.mrb[16].mxu1  ;;  %v3794_v25 = vpop.f32.mrb[16].mxu0 }
 0x2f8   :  { %v15283_v61 = vadd.f32 %v3020_v46, %v14196_v19  ;;  %v15286_v10 = vadd.f32 %v3794_v25, %v14908_v44  ;;  %10819 = vmatmul.mubr.msk.f32.gmra.mrb[122].mxu1 %vm188_vm1, %v2579_v1  ;;  %v10843_v9 = vpop.f32.mrb[17].mxu0  ;;  %11001 = vmatmul.mubr.msk.f32.gmra.mrb[122].mxu0 %vm188_vm1, %v3437_v13  ;;  %v10661_v33 = vpop.f32.mrb[17].mxu1  ;;  %v2580_v19 = vld [vmem:[%s18883_s0 + $0x28a] sm:$0xff] }
 0x2f9   :  { %10821 = vmatprep.mubr.msk.f32.mxu1 %vm12191_vm2, %v18918_v23  ;;  %11003 = vmatprep.mubr.msk.f32.mxu0 %vm12191_vm2, %v18918_v23  ;;  %v3438_v44 = vld [vmem:[%s18883_s0 + $0x1e3] sm:$0xff] }
 0x2fa   :  { %18983 = vst [vmem:[#allocation43_spill] sm:$0xff] %v15286_v10 }
 0x2fb   :  { %v3025_v46 = vpop.f32.mrb[18].mxu1  ;;  %v3799_v1 = vpop.f32.mrb[18].mxu0 }
 0x2fc   :  { %v15301_v25 = vadd.f32 %v3025_v46, %v14214_v38  ;;  %v15304_v13 = vadd.f32 %v3799_v1, %v14926_v17  ;;  %10822 = vmatmul.mubr.msk.f32.gmra.mrb[124].mxu1 %vm188_vm1, %v2580_v19  ;;  %v10846_v9 = vpop.f32.mrb[19].mxu0  ;;  %11004 = vmatmul.mubr.msk.f32.gmra.mrb[124].mxu0 %vm188_vm1, %v3438_v44  ;;  %v10664_v33 = vpop.f32.mrb[19].mxu1  ;;  %v2581_v38 = vld [vmem:[%s18883_s0 + $0x292] sm:$0xff] }
 0x2fd   :  { %10824 = vmatprep.mubr.msk.f32.mxu1 %vm12191_vm2, %v18918_v23  ;;  %11006 = vmatprep.mubr.msk.f32.mxu0 %vm12191_vm2, %v18918_v23  ;;  %v3439_v17 = vld [vmem:[%s18883_s0 + $0x1eb] sm:$0xff] }
 0x2fe   :  { %18984 = vst [vmem:[#allocation44_spill] sm:$0xff] %v15304_v13 }
 0x2ff   :  { %v3030_v46 = vpop.f32.mrb[20].mxu1  ;;  %v3804_v19 = vpop.f32.mrb[20].mxu0 }
 0x300   :  { %v15319_v1 = vadd.f32 %v3030_v46, %v14232_v54  ;;  %v15322_v44 = vadd.f32 %v3804_v19, %v14944_v49  ;;  %10825 = vmatmul.mubr.msk.f32.gmra.mrb[126].mxu1 %vm188_vm1, %v2581_v38  ;;  %v10849_v9 = vpop.f32.mrb[21].mxu0  ;;  %11007 = vmatmul.mubr.msk.f32.gmra.mrb[126].mxu0 %vm188_vm1, %v3439_v17  ;;  %v10667_v33 = vpop.f32.mrb[21].mxu1  ;;  %v3440_v54 = vld [vmem:[%s18883_s0 + $0x1f3] sm:$0xff] }
 0x301   :  { %11009 = vmatprep.mubr.msk.f32.mxu0 %vm12191_vm2, %v18918_v23  ;;  %11074 = vmatprep.mubr.msk.f32.mxu1 %vm12191_vm2, %v18918_v23  ;;  %v4259_v49 = vld [vmem:[%s18883_s0 + $0x14] sm:$0xff] }
 0x302   :  { %18985 = vst [vmem:[#allocation45_spill] sm:$0xff] %v15322_v44  ;;  %v18986_v19 = vld [vmem:[#allocation31_spill] sm:$0xff] }
 0x303   :  { %v3035_v46 = vpop.f32.mrb[22].mxu1  ;;  %v3809_v38 = vpop.f32.mrb[22].mxu0 }
 0x304   :  { %v15337_v9 = vadd.f32 %v3035_v46, %v18986_v19  ;;  %v15340_v17 = vadd.f32 %v3809_v38, %v14962_v57  ;;  %v10852_v33 = vpop.f32.mrb[23].mxu0  ;;  %11010 = vmatmul.mubr.msk.f32.gmra.mrb[128].mxu0 %vm188_vm1, %v3440_v54  ;;  %11075 = vmatmul.mubr.msk.f32.vlgmr.msra.gmra.mrb[128].mxu1 %vm188_vm1, %v4259_v49  ;;  %v10670_v44 = vpop.f32.mrb[23].mxu1  ;;  %v3441_v46 = vld [vmem:[%s18883_s0 + $0x1fb] sm:$0xff] }
 0x305   :  { %11012 = vmatprep.mubr.msk.f32.mxu0 %vm12191_vm2, %v18918_v23  ;;  %11077 = vmatprep.mubr.msk.f32.mxu1 %vm12191_vm2, %v18918_v23  ;;  %v4260_v57 = vld [vmem:[%s18883_s0 + $0x1c] sm:$0xff] }
 0x306   :  { %18987 = vst [vmem:[#allocation31_spill] sm:$0xff] %v15340_v17  ;;  %v18988_v54 = vld [vmem:[#allocation32_spill] sm:$0xff]  ;;  %11563 = vmatpush3.msk.msra.mxu1 %vm432_vm0, %v6098_v14 }
 0x307   :  { %v3040_v38 = vpop.f32.mrb[24].mxu1  ;;  %v3814_v19 = vpop.f32.mrb[24].mxu0  ;;  %v15852_v14 = vld [vmem:[%s18883_s0 + $0xdc] sm:$0xff] }
 0x308   :  { %v15355_v33 = vadd.f32 %v3040_v38, %v18988_v54  ;;  %v15358_v44 = vadd.f32 %v3814_v19, %v14980_v63  ;;  %v10855_v49 = vpop.f32.mrb[25].mxu0  ;;  %11013 = vmatmul.mubr.msk.f32.gmra.mrb[130].mxu0 %vm188_vm1, %v3441_v46  ;;  %11078 = vmatmul.mubr.msk.f32.gmra.mrb[130].mxu1 %vm188_vm1, %v4260_v57  ;;  %v10673_v17 = vpop.f32.mrb[25].mxu1  ;;  %v3442_v38 = vld [vmem:[%s18883_s0 + $0x203] sm:$0xff] }
 0x309   :  { %11015 = vmatprep.mubr.msk.f32.mxu0 %vm12191_vm2, %v18918_v23  ;;  %11080 = vmatprep.mubr.msk.f32.mxu1 %vm12191_vm2, %v18918_v23  ;;  %v15372_v63 = vld [vmem:[%s18883_s0 + $0x24] sm:$0xff] }
 0x30a   :  { %18989 = vst [vmem:[#allocation32_spill] sm:$0xff] %v15358_v44 }
 0x30b   :  { %v3045_v19 = vpop.f32.mrb[26].mxu1  ;;  %v3819_v46 = vpop.f32.mrb[26].mxu0 }
 0x30c   :  { %v15375_v57 = vadd.f32 %v3045_v19, %v14286_v53  ;;  %v15378_v17 = vadd.f32 %v3819_v46, %v14998_v6  ;;  %v10858_v54 = vpop.f32.mrb[27].mxu0  ;;  %11016 = vmatmul.mubr.msk.f32.gmra.mrb[132].mxu0 %vm188_vm1, %v3442_v38  ;;  %11081 = vmatmul.mubr.msk.f32.gmra.mrb[132].mxu1 %vm188_vm1, %v15372_v63  ;;  %v10676_v49 = vpop.f32.mrb[27].mxu1  ;;  %v3443_v53 = vld [vmem:[%s18883_s0 + $0x20b] sm:$0xff] }
 0x30d   :  { %11018 = vmatprep.mubr.msk.f32.mxu0 %vm12191_vm2, %v18918_v23  ;;  %11083 = vmatprep.mubr.msk.f32.mxu1 %vm12191_vm2, %v18918_v23  ;;  %v15393_v6 = vld [vmem:[%s18883_s0 + $0x2c] sm:$0xff] }
 0x30e   :  { %18990 = vst [vmem:[#allocation46_spill] sm:$0xff] %v15378_v17 }
 0x30f   :  { %v3050_v38 = vpop.f32.mrb[28].mxu1  ;;  %v3824_v19 = vpop.f32.mrb[28].mxu0 }
 0x310   :  { %v15396_v46 = vadd.f32 %v3050_v38, %v14314_v20  ;;  %v15399_v54 = vadd.f32 %v3824_v19, %v15016_v12  ;;  %v10861_v49 = vpop.f32.mrb[29].mxu0  ;;  %11019 = vmatmul.mubr.msk.f32.gmra.mrb[134].mxu0 %vm188_vm1, %v3443_v53  ;;  %11084 = vmatmul.mubr.msk.f32.gmra.mrb[134].mxu1 %vm188_vm1, %v15393_v6  ;;  %v10679_v17 = vpop.f32.mrb[29].mxu1  ;;  %v3444_v20 = vld [vmem:[%s18883_s0 + $0x213] sm:$0xff] }
 0x311   :  { %11021 = vmatprep.mubr.msk.f32.mxu0 %vm12191_vm2, %v18918_v23  ;;  %11086 = vmatprep.mubr.msk.f32.mxu1 %vm12191_vm2, %v18918_v23  ;;  %v15414_v12 = vld [vmem:[%s18883_s0 + $0x34] sm:$0xff] }
 0x312   :  { %18991 = vst [vmem:[#allocation47_spill] sm:$0xff] %v15399_v54 }
 0x313   :  { %v3055_v53 = vpop.f32.mrb[30].mxu1  ;;  %v3829_v38 = vpop.f32.mrb[30].mxu0 }
 0x314   :  { %v15417_v19 = vadd.f32 %v3055_v53, %v14332_v35  ;;  %v15420_v17 = vadd.f32 %v3829_v38, %v15034_v18  ;;  %v10864_v49 = vpop.f32.mrb[31].mxu0  ;;  %11022 = vmatmul.mubr.msk.f32.gmra.mrb[136].mxu0 %vm188_vm1, %v3444_v20  ;;  %11087 = vmatmul.mubr.msk.f32.gmra.mrb[136].mxu1 %vm188_vm1, %v15414_v12  ;;  %v10682_v54 = vpop.f32.mrb[31].mxu1  ;;  %v3445_v35 = vld [vmem:[%s18883_s0 + $0x21b] sm:$0xff] }
 0x315   :  { %11024 = vmatprep.mubr.msk.f32.mxu0 %vm12191_vm2, %v18918_v23  ;;  %11089 = vmatprep.mubr.msk.f32.mxu1 %vm12191_vm2, %v18918_v23  ;;  %v15435_v18 = vld [vmem:[%s18883_s0 + $0x3c] sm:$0xff] }
 0x316   :  { %18992 = vst [vmem:[#allocation48_spill] sm:$0xff] %v15420_v17 }
 0x317   :  { %v3060_v20 = vpop.f32.mrb[32].mxu1  ;;  %v3834_v53 = vpop.f32.mrb[32].mxu0 }
 0x318   :  { %v15438_v38 = vadd.f32 %v3060_v20, %v14350_v45  ;;  %v15441_v54 = vadd.f32 %v3834_v53, %v15052_v24  ;;  %v10867_v49 = vpop.f32.mrb[33].mxu0  ;;  %11025 = vmatmul.mubr.msk.f32.gmra.mrb[138].mxu0 %vm188_vm1, %v3445_v35  ;;  %11090 = vmatmul.mubr.msk.f32.gmra.mrb[138].mxu1 %vm188_vm1, %v15435_v18  ;;  %v10685_v17 = vpop.f32.mrb[33].mxu1  ;;  %v3446_v45 = vld [vmem:[%s18883_s0 + $0x223] sm:$0xff] }
 0x319   :  { %11027 = vmatprep.mubr.msk.f32.mxu0 %vm12191_vm2, %v18918_v23  ;;  %11092 = vmatprep.mubr.msk.f32.mxu1 %vm12191_vm2, %v18918_v23  ;;  %v15456_v24 = vld [vmem:[%s18883_s0 + $0x44] sm:$0xff] }
 0x31a   :  { %18993 = vst [vmem:[#allocation49_spill] sm:$0xff] %v15441_v54 }
 0x31b   :  { %v3065_v35 = vpop.f32.mrb[34].mxu1  ;;  %v3839_v20 = vpop.f32.mrb[34].mxu0 }
 0x31c   :  { %v15459_v53 = vadd.f32 %v3065_v35, %v14368_v28  ;;  %v15462_v17 = vadd.f32 %v3839_v20, %v15070_v30  ;;  %v10870_v49 = vpop.f32.mrb[35].mxu0  ;;  %11028 = vmatmul.mubr.msk.f32.gmra.mrb[140].mxu0 %vm188_vm1, %v3446_v45  ;;  %11093 = vmatmul.mubr.msk.f32.gmra.mrb[140].mxu1 %vm188_vm1, %v15456_v24  ;;  %v10688_v54 = vpop.f32.mrb[35].mxu1  ;;  %v3447_v28 = vld [vmem:[%s18883_s0 + $0x22b] sm:$0xff]  ;;  %v18995_v20 = vld [vmem:[#allocation5_spill] sm:$0xff] }
 0x31d   :  { %11030 = vmatprep.mubr.msk.f32.mxu0 %vm12191_vm2, %v18918_v23  ;;  %11095 = vmatprep.mubr.msk.f32.mxu1 %vm12191_vm2, %v18918_v23  ;;  %v15477_v30 = vld [vmem:[%s18883_s0 + $0x4c] sm:$0xff] }
 0x31e   :  { %18994 = vst [vmem:[#allocation50_spill] sm:$0xff] %v15462_v17 }
 0x31f   :  { %v3070_v45 = vpop.f32.mrb[36].mxu1  ;;  %v3844_v35 = vpop.f32.mrb[36].mxu0 }
 0x320   :  { %v15480_v49 = vadd.f32 %v3070_v45, %v18995_v20  ;;  %v15483_v54 = vadd.f32 %v3844_v35, %v15088_v36  ;;  %v10873_v17 = vpop.f32.mrb[37].mxu0  ;;  %11031 = vmatmul.mubr.msk.f32.gmra.mrb[142].mxu0 %vm188_vm1, %v3447_v28  ;;  %11096 = vmatmul.mubr.msk.f32.gmra.mrb[142].mxu1 %vm188_vm1, %v15477_v30  ;;  %v10691_v44 = vpop.f32.mrb[37].mxu1  ;;  %v3448_v45 = vld [vmem:[%s18883_s0 + $0x233] sm:$0xff]  ;;  %v18997_v35 = vld [vmem:[#allocation6_spill] sm:$0xff] }
 0x321   :  { %11033 = vmatprep.mubr.msk.f32.mxu0 %vm12191_vm2, %v18918_v23  ;;  %11098 = vmatprep.mubr.msk.f32.mxu1 %vm12191_vm2, %v18918_v23  ;;  %v15498_v36 = vld [vmem:[%s18883_s0 + $0x54] sm:$0xff] }
 0x322   :  { %18996 = vst [vmem:[#allocation5_spill] sm:$0xff] %v15483_v54 }
 0x323   :  { %v3075_v17 = vpop.f32.mrb[38].mxu1  ;;  %v3849_v28 = vpop.f32.mrb[38].mxu0 }
 0x324   :  { %v15501_v20 = vadd.f32 %v3075_v17, %v18997_v35  ;;  %v15504_v44 = vadd.f32 %v3849_v28, %v15106_v42  ;;  %v10876_v54 = vpop.f32.mrb[39].mxu0  ;;  %11034 = vmatmul.mubr.msk.f32.gmra.mrb[144].mxu0 %vm188_vm1, %v3448_v45  ;;  %11099 = vmatmul.mubr.msk.f32.gmra.mrb[144].mxu1 %vm188_vm1, %v15498_v36  ;;  %v10694_v13 = vpop.f32.mrb[39].mxu1  ;;  %v3449_v17 = vld [vmem:[%s18883_s0 + $0x23b] sm:$0xff]  ;;  %v18999_v28 = vld [vmem:[#allocation7_spill] sm:$0xff] }
 0x325   :  { %11036 = vmatprep.mubr.msk.f32.mxu0 %vm12191_vm2, %v18918_v23  ;;  %11101 = vmatprep.mubr.msk.f32.mxu1 %vm12191_vm2, %v18918_v23  ;;  %v15519_v42 = vld [vmem:[%s18883_s0 + $0x5c] sm:$0xff] }
 0x326   :  { %18998 = vst [vmem:[#allocation6_spill] sm:$0xff] %v15504_v44 }
 0x327   :  { %v3080_v54 = vpop.f32.mrb[40].mxu1  ;;  %v3854_v45 = vpop.f32.mrb[40].mxu0 }
 0x328   :  { %v15522_v35 = vadd.f32 %v3080_v54, %v18999_v28  ;;  %v15525_v13 = vadd.f32 %v3854_v45, %v15124_v48  ;;  %v10879_v44 = vpop.f32.mrb[41].mxu0  ;;  %11037 = vmatmul.mubr.msk.f32.gmra.mrb[146].mxu0 %vm188_vm1, %v3449_v17  ;;  %11102 = vmatmul.mubr.msk.f32.gmra.mrb[146].mxu1 %vm188_vm1, %v15519_v42  ;;  %v10697_v10 = vpop.f32.mrb[41].mxu1  ;;  %v3450_v54 = vld [vmem:[%s18883_s0 + $0x243] sm:$0xff]  ;;  %v19001_v45 = vld [vmem:[#allocation8_spill] sm:$0xff] }
 0x329   :  { %11039 = vmatprep.mubr.msk.f32.mxu0 %vm12191_vm2, %v18918_v23  ;;  %11104 = vmatprep.mubr.msk.f32.mxu1 %vm12191_vm2, %v18918_v23  ;;  %v15540_v48 = vld [vmem:[%s18883_s0 + $0x64] sm:$0xff] }
 0x32a   :  { %19000 = vst [vmem:[#allocation7_spill] sm:$0xff] %v15525_v13 }
 0x32b   :  { %v3085_v44 = vpop.f32.mrb[42].mxu1  ;;  %v3859_v17 = vpop.f32.mrb[42].mxu0 }
 0x32c   :  { %v15543_v28 = vadd.f32 %v3085_v44, %v19001_v45  ;;  %v15546_v10 = vadd.f32 %v3859_v17, %v15142_v56  ;;  %v10882_v13 = vpop.f32.mrb[43].mxu0  ;;  %11040 = vmatmul.mubr.msk.f32.gmra.mrb[148].mxu0 %vm188_vm1, %v3450_v54  ;;  %11105 = vmatmul.mubr.msk.f32.gmra.mrb[148].mxu1 %vm188_vm1, %v15540_v48  ;;  %v10700_v60 = vpop.f32.mrb[43].mxu1  ;;  %v3451_v44 = vld [vmem:[%s18883_s0 + $0x24b] sm:$0xff]  ;;  %v19003_v17 = vld [vmem:[#allocation9_spill] sm:$0xff] }
 0x32d   :  { %11042 = vmatprep.mubr.msk.f32.mxu0 %vm12191_vm2, %v18918_v23  ;;  %11107 = vmatprep.mubr.msk.f32.mxu1 %vm12191_vm2, %v18918_v23  ;;  %v15561_v56 = vld [vmem:[%s18883_s0 + $0x6c] sm:$0xff] }
 0x32e   :  { %19002 = vst [vmem:[#allocation8_spill] sm:$0xff] %v15546_v10 }
 0x32f   :  { %v3090_v13 = vpop.f32.mrb[44].mxu1  ;;  %v3864_v54 = vpop.f32.mrb[44].mxu0 }
 0x330   :  { %v15564_v45 = vadd.f32 %v3090_v13, %v19003_v17  ;;  %v15567_v60 = vadd.f32 %v3864_v54, %v15160_v3  ;;  %v10885_v10 = vpop.f32.mrb[45].mxu0  ;;  %11043 = vmatmul.mubr.msk.f32.gmra.mrb[150].mxu0 %vm188_vm1, %v3451_v44  ;;  %11108 = vmatmul.mubr.msk.f32.gmra.mrb[150].mxu1 %vm188_vm1, %v15561_v56  ;;  %v10703_v2 = vpop.f32.mrb[45].mxu1  ;;  %v3452_v13 = vld [vmem:[%s18883_s0 + $0x253] sm:$0xff]  ;;  %v19005_v54 = vld [vmem:[#allocation10_spill] sm:$0xff] }
 0x331   :  { %11045 = vmatprep.mubr.msk.f32.mxu0 %vm12191_vm2, %v18918_v23  ;;  %11110 = vmatprep.mubr.msk.f32.mxu1 %vm12191_vm2, %v18918_v23  ;;  %v15582_v3 = vld [vmem:[%s18883_s0 + $0x74] sm:$0xff] }
 0x332   :  { %19004 = vst [vmem:[#allocation9_spill] sm:$0xff] %v15567_v60 }
 0x333   :  { %v3095_v10 = vpop.f32.mrb[46].mxu1  ;;  %v3869_v44 = vpop.f32.mrb[46].mxu0 }
 0x334   :  { %v15585_v17 = vadd.f32 %v3095_v10, %v19005_v54  ;;  %v15588_v2 = vadd.f32 %v3869_v44, %v15178_v11  ;;  %v10888_v60 = vpop.f32.mrb[47].mxu0  ;;  %11046 = vmatmul.mubr.msk.f32.gmra.mrb[152].mxu0 %vm188_vm1, %v3452_v13  ;;  %11111 = vmatmul.mubr.msk.f32.gmra.mrb[152].mxu1 %vm188_vm1, %v15582_v3  ;;  %v10706_v39 = vpop.f32.mrb[47].mxu1  ;;  %v3453_v10 = vld [vmem:[%s18883_s0 + $0x25b] sm:$0xff]  ;;  %v19007_v44 = vld [vmem:[#allocation11_spill] sm:$0xff] }
 0x335   :  { %11048 = vmatprep.mubr.msk.f32.mxu0 %vm12191_vm2, %v18918_v23  ;;  %11113 = vmatprep.mubr.msk.f32.mxu1 %vm12191_vm2, %v18918_v23  ;;  %v15603_v11 = vld [vmem:[%s18883_s0 + $0x7c] sm:$0xff] }
 0x336   :  { %19006 = vst [vmem:[#allocation10_spill] sm:$0xff] %v15588_v2 }
 0x337   :  { %v3100_v60 = vpop.f32.mrb[48].mxu1  ;;  %v3874_v13 = vpop.f32.mrb[48].mxu0 }
 0x338   :  { %v15606_v54 = vadd.f32 %v3100_v60, %v19007_v44  ;;  %v15609_v39 = vadd.f32 %v3874_v13, %v15196_v21  ;;  %v10891_v2 = vpop.f32.mrb[49].mxu0  ;;  %11049 = vmatmul.mubr.msk.f32.gmra.mrb[154].mxu0 %vm188_vm1, %v3453_v10  ;;  %11114 = vmatmul.mubr.msk.f32.gmra.mrb[154].mxu1 %vm188_vm1, %v15603_v11  ;;  %v10709_v29 = vpop.f32.mrb[49].mxu1  ;;  %v3454_v60 = vld [vmem:[%s18883_s0 + $0x263] sm:$0xff]  ;;  %v19009_v13 = vld [vmem:[#allocation12_spill] sm:$0xff] }
 0x339   :  { %11051 = vmatprep.mubr.msk.f32.mxu0 %vm12191_vm2, %v18918_v23  ;;  %11116 = vmatprep.mubr.msk.f32.mxu1 %vm12191_vm2, %v18918_v23  ;;  %v15624_v21 = vld [vmem:[%s18883_s0 + $0x84] sm:$0xff] }
 0x33a   :  { %19008 = vst [vmem:[#allocation11_spill] sm:$0xff] %v15609_v39 }
 0x33b   :  { %v3105_v2 = vpop.f32.mrb[50].mxu1  ;;  %v3879_v10 = vpop.f32.mrb[50].mxu0 }
 0x33c   :  { %v15627_v44 = vadd.f32 %v3105_v2, %v19009_v13  ;;  %v15630_v29 = vadd.f32 %v3879_v10, %v15211_v26  ;;  %v10894_v39 = vpop.f32.mrb[51].mxu0  ;;  %11052 = vmatmul.mubr.msk.f32.gmra.mrb[156].mxu0 %vm188_vm1, %v3454_v60  ;;  %11117 = vmatmul.mubr.msk.f32.gmra.mrb[156].mxu1 %vm188_vm1, %v15624_v21  ;;  %v10712_v58 = vpop.f32.mrb[51].mxu1  ;;  %v3455_v2 = vld [vmem:[%s18883_s0 + $0x26b] sm:$0xff]  ;;  %v19011_v10 = vld [vmem:[#allocation13_spill] sm:$0xff] }
 0x33d   :  { %11054 = vmatprep.mubr.msk.f32.mxu0 %vm12191_vm2, %v18918_v23  ;;  %11119 = vmatprep.mubr.msk.f32.mxu1 %vm12191_vm2, %v18918_v23  ;;  %v15645_v26 = vld [vmem:[%s18883_s0 + $0x8c] sm:$0xff] }
 0x33e   :  { %19010 = vst [vmem:[#allocation12_spill] sm:$0xff] %v15630_v29 }
 0x33f   :  { %v3110_v39 = vpop.f32.mrb[52].mxu1  ;;  %v3884_v60 = vpop.f32.mrb[52].mxu0 }
 0x340   :  { %v15648_v13 = vadd.f32 %v3110_v39, %v19011_v10  ;;  %v15651_v58 = vadd.f32 %v3884_v60, %v15229_v7  ;;  %v10897_v29 = vpop.f32.mrb[53].mxu0  ;;  %11055 = vmatmul.mubr.msk.f32.gmra.mrb[158].mxu0 %vm188_vm1, %v3455_v2  ;;  %11120 = vmatmul.mubr.msk.f32.gmra.mrb[158].mxu1 %vm188_vm1, %v15645_v26  ;;  %v10715_v50 = vpop.f32.mrb[53].mxu1  ;;  %v3456_v39 = vld [vmem:[%s18883_s0 + $0x273] sm:$0xff]  ;;  %v19013_v60 = vld [vmem:[#allocation14_spill] sm:$0xff] }
 0x341   :  { %11057 = vmatprep.mubr.msk.f32.mxu0 %vm12191_vm2, %v18918_v23  ;;  %11122 = vmatprep.mubr.msk.f32.mxu1 %vm12191_vm2, %v18918_v23  ;;  %v15666_v7 = vld [vmem:[%s18883_s0 + $0x94] sm:$0xff] }
 0x342   :  { %19012 = vst [vmem:[#allocation13_spill] sm:$0xff] %v15651_v58 }
 0x343   :  { %v3115_v29 = vpop.f32.mrb[54].mxu1  ;;  %v3889_v2 = vpop.f32.mrb[54].mxu0 }
 0x344   :  { %v15669_v10 = vadd.f32 %v3115_v29, %v19013_v60  ;;  %v15672_v50 = vadd.f32 %v3889_v2, %v15247_v0  ;;  %v10900_v58 = vpop.f32.mrb[55].mxu0  ;;  %11058 = vmatmul.mubr.msk.f32.gmra.mrb[160].mxu0 %vm188_vm1, %v3456_v39  ;;  %11123 = vmatmul.mubr.msk.f32.gmra.mrb[160].mxu1 %vm188_vm1, %v15666_v7  ;;  %v10718_v31 = vpop.f32.mrb[55].mxu1  ;;  %v3457_v29 = vld [vmem:[%s18883_s0 + $0x27b] sm:$0xff]  ;;  %v19015_v2 = vld [vmem:[#allocation15_spill] sm:$0xff] }
 0x345   :  { %11060 = vmatprep.mubr.msk.f32.mxu0 %vm12191_vm2, %v18918_v23  ;;  %11125 = vmatprep.mubr.msk.f32.mxu1 %vm12191_vm2, %v18918_v23  ;;  %v15687_v0 = vld [vmem:[%s18883_s0 + $0x9c] sm:$0xff] }
 0x346   :  { %19014 = vst [vmem:[#allocation14_spill] sm:$0xff] %v15672_v50 }
 0x347   :  { %v3120_v58 = vpop.f32.mrb[56].mxu1  ;;  %v3894_v39 = vpop.f32.mrb[56].mxu0 }
 0x348   :  { %v15690_v60 = vadd.f32 %v3120_v58, %v19015_v2  ;;  %v15693_v31 = vadd.f32 %v3894_v39, %v15265_v47  ;;  %v10903_v50 = vpop.f32.mrb[57].mxu0  ;;  %11061 = vmatmul.mubr.msk.f32.gmra.mrb[162].mxu0 %vm188_vm1, %v3457_v29  ;;  %11126 = vmatmul.mubr.msk.f32.gmra.mrb[162].mxu1 %vm188_vm1, %v15687_v0  ;;  %v10721_v43 = vpop.f32.mrb[57].mxu1  ;;  %v3458_v58 = vld [vmem:[%s18883_s0 + $0x283] sm:$0xff]  ;;  %v19017_v39 = vld [vmem:[#allocation16_spill] sm:$0xff] }
 0x349   :  { %11063 = vmatprep.mubr.msk.f32.mxu0 %vm12191_vm2, %v18918_v23  ;;  %11128 = vmatprep.mubr.msk.f32.mxu1 %vm12191_vm2, %v18918_v23  ;;  %v15708_v47 = vld [vmem:[%s18883_s0 + $0xa4] sm:$0xff] }
 0x34a   :  { %19016 = vst [vmem:[#allocation15_spill] sm:$0xff] %v15693_v31 }
 0x34b   :  { %v3125_v50 = vpop.f32.mrb[58].mxu1  ;;  %v3899_v29 = vpop.f32.mrb[58].mxu0 }
 0x34c   :  { %v15711_v2 = vadd.f32 %v3125_v50, %v19017_v39  ;;  %v15714_v43 = vadd.f32 %v3899_v29, %v15283_v61  ;;  %v10906_v31 = vpop.f32.mrb[59].mxu0  ;;  %11064 = vmatmul.mubr.msk.f32.gmra.mrb[164].mxu0 %vm188_vm1, %v3458_v58  ;;  %11129 = vmatmul.mubr.msk.f32.gmra.mrb[164].mxu1 %vm188_vm1, %v15708_v47  ;;  %v10724_v51 = vpop.f32.mrb[59].mxu1  ;;  %v3459_v50 = vld [vmem:[%s18883_s0 + $0x28b] sm:$0xff]  ;;  %v19019_v29 = vld [vmem:[#allocation17_spill] sm:$0xff] }
 0x34d   :  { %11066 = vmatprep.mubr.msk.f32.mxu0 %vm12191_vm2, %v18918_v23  ;;  %11131 = vmatprep.mubr.msk.f32.mxu1 %vm12191_vm2, %v18918_v23  ;;  %v15729_v61 = vld [vmem:[%s18883_s0 + $0xac] sm:$0xff] }
 0x34e   :  { %19018 = vst [vmem:[#allocation16_spill] sm:$0xff] %v15714_v43 }
 0x34f   :  { %v3130_v31 = vpop.f32.mrb[60].mxu1  ;;  %v3904_v58 = vpop.f32.mrb[60].mxu0 }
 0x350   :  { %v15732_v39 = vadd.f32 %v3130_v31, %v19019_v29  ;;  %v15735_v51 = vadd.f32 %v3904_v58, %v15301_v25  ;;  %v10909_v43 = vpop.f32.mrb[61].mxu0  ;;  %11067 = vmatmul.mubr.msk.f32.gmra.mrb[166].mxu0 %vm188_vm1, %v3459_v50  ;;  %11132 = vmatmul.mubr.msk.f32.gmra.mrb[166].mxu1 %vm188_vm1, %v15729_v61  ;;  %v10727_v59 = vpop.f32.mrb[61].mxu1  ;;  %v3460_v31 = vld [vmem:[%s18883_s0 + $0x293] sm:$0xff]  ;;  %v19021_v58 = vld [vmem:[#allocation18_spill] sm:$0xff] }
 0x351   :  { %11069 = vmatprep.mubr.msk.f32.mxu0 %vm12191_vm2, %v18918_v23  ;;  %11134 = vmatprep.mubr.msk.f32.mxu1 %vm12191_vm2, %v18918_v23  ;;  %v15750_v25 = vld [vmem:[%s18883_s0 + $0xb4] sm:$0xff] }
 0x352   :  { %19020 = vst [vmem:[#allocation17_spill] sm:$0xff] %v15735_v51 }
 0x353   :  { %v3135_v43 = vpop.f32.mrb[62].mxu1  ;;  %v3909_v50 = vpop.f32.mrb[62].mxu0 }
 0x354   :  { %v15753_v29 = vadd.f32 %v3135_v43, %v19021_v58  ;;  %v15756_v59 = vadd.f32 %v3909_v50, %v15319_v1  ;;  %v10912_v51 = vpop.f32.mrb[63].mxu0  ;;  %11070 = vmatmul.mubr.msk.f32.gmra.mrb[168].mxu0 %vm188_vm1, %v3460_v31  ;;  %11135 = vmatmul.mubr.msk.f32.gmra.mrb[168].mxu1 %vm188_vm1, %v15750_v25  ;;  %v10730_v4 = vpop.f32.mrb[63].mxu1  ;;  %v15768_v43 = vld [vmem:[%s18883_s0 + $0xbc] sm:$0xff] }
 0x355   :  { %11137 = vmatprep.mubr.msk.f32.mxu1 %vm12191_vm2, %v18918_v23  ;;  %11319 = vmatprep.mubr.msk.f32.mxu0 %vm12191_vm2, %v18918_v23  ;;  %v19023_v51 = vld [vmem:[#allocation19_spill] sm:$0xff] }
 0x356   :  { %19022 = vst [vmem:[#allocation18_spill] sm:$0xff] %v15756_v59 }
 0x357   :  { %v3140_v1 = vpop.f32.mrb[64].mxu1  ;;  %v3914_v50 = vpop.f32.mrb[64].mxu0 }
 0x358   :  { %v15771_v58 = vadd.f32 %v3140_v1, %v19023_v51  ;;  %v15774_v31 = vadd.f32 %v3914_v50, %v15337_v9  ;;  %v10915_v4 = vpop.f32.mrb[65].mxu0  ;;  %11138 = vmatmul.mubr.msk.f32.gmra.mrb[170].mxu1 %vm188_vm1, %v15768_v43  ;;  %11320 = vmatmul.mubr.msk.f32.vlgmr.msra.gmra.mrb[170].mxu0 %vm188_vm1, %v15372_v63  ;;  %v10733_v59 = vpop.f32.mrb[65].mxu1  ;;  %v15787_v1 = vld [vmem:[%s18883_s0 + $0xc4] sm:$0xff]  ;;  %v19025_v51 = vld [vmem:[#allocation20_spill] sm:$0xff] }
 0x359   :  { %11140 = vmatprep.mubr.msk.f32.mxu1 %vm12191_vm2, %v18918_v23  ;;  %11322 = vmatprep.mubr.msk.f32.mxu0 %vm12191_vm2, %v18918_v23 }
 0x35a   :  { %19024 = vst [vmem:[#allocation19_spill] sm:$0xff] %v15774_v31 }
 0x35b   :  { %v3145_v9 = vpop.f32.mrb[66].mxu1  ;;  %v3919_v50 = vpop.f32.mrb[66].mxu0 }
 0x35c   :  { %v15790_v4 = vadd.f32 %v3145_v9, %v19025_v51  ;;  %v15793_v31 = vadd.f32 %v3919_v50, %v15355_v33  ;;  %v10918_v63 = vpop.f32.mrb[67].mxu0  ;;  %11141 = vmatmul.mubr.msk.f32.gmra.mrb[172].mxu1 %vm188_vm1, %v15787_v1  ;;  %11323 = vmatmul.mubr.msk.f32.gmra.mrb[172].mxu0 %vm188_vm1, %v15393_v6  ;;  %v10736_v59 = vpop.f32.mrb[67].mxu1  ;;  %v15806_v9 = vld [vmem:[%s18883_s0 + $0xcc] sm:$0xff]  ;;  %v19027_v51 = vld [vmem:[#allocation21_spill] sm:$0xff] }
 0x35d   :  { %11143 = vmatprep.mubr.msk.f32.mxu1 %vm12191_vm2, %v18918_v23  ;;  %11325 = vmatprep.mubr.msk.f32.mxu0 %vm12191_vm2, %v18918_v23 }
 0x35e   :  { %19026 = vst [vmem:[#allocation20_spill] sm:$0xff] %v15793_v31 }
 0x35f   :  { %v3150_v33 = vpop.f32.mrb[68].mxu1  ;;  %v3924_v50 = vpop.f32.mrb[68].mxu0 }
 0x360   :  { %v15809_v63 = vadd.f32 %v3150_v33, %v19027_v51  ;;  %v15812_v31 = vadd.f32 %v3924_v50, %v15375_v57  ;;  %v10921_v6 = vpop.f32.mrb[69].mxu0  ;;  %11144 = vmatmul.mubr.msk.f32.gmra.mrb[174].mxu1 %vm188_vm1, %v15806_v9  ;;  %11326 = vmatmul.mubr.msk.f32.gmra.mrb[174].mxu0 %vm188_vm1, %v15414_v12  ;;  %v10739_v59 = vpop.f32.mrb[69].mxu1  ;;  %v6977_v33 = vld [vmem:[%s18884_s1 + $0x20] sm:$0xf]  ;;  %v15831_v57 = vld [vmem:[%s18883_s0 + $0xd4] sm:$0xff]  ;;  %v19030_v51 = vld [vmem:[#allocation22_spill] sm:$0xff] }
 0x361   :  { %11146 = vmatprep.mubr.msk.f32.mxu1 %vm12191_vm2, %v18918_v23  ;;  %11328 = vmatprep.mubr.msk.f32.mxu0 %vm12191_vm2, %v18918_v23 }
 0x362   :  { %19028 = vst [vmem:[#allocation21_spill] sm:$0xff] %v15809_v63  ;;  %19029 = vst [vmem:[#allocation51_spill] sm:$0xff] %v15812_v31  ;;  %11808 = vmatpush3.msk.msra.mxu0 %vm432_vm0, %v6977_v33  ;;  %v19031_v33 = vld [vmem:[#allocation23_spill] sm:$0xff] }
 0x363   :  { %v3155_v12 = vpop.f32.mrb[70].mxu1  ;;  %v3929_v50 = vpop.f32.mrb[70].mxu0 }
 0x364   :  { %v15836_v6 = vadd.f32 %v3155_v12, %v19030_v51  ;;  %v15839_v59 = vadd.f32 %v3929_v50, %v15396_v46  ;;  %v10924_v31 = vpop.f32.mrb[71].mxu0  ;;  %11147 = vmatmul.mubr.msk.f32.gmra.mrb[176].mxu1 %vm188_vm1, %v15831_v57  ;;  %11329 = vmatmul.mubr.msk.f32.gmra.mrb[176].mxu0 %vm188_vm1, %v15435_v18  ;;  %v10742_v63 = vpop.f32.mrb[71].mxu1  ;;  %v15871_v51 = vld [vmem:[%s18883_s0 + $0xe4] sm:$0xff] }
 0x365   :  { %11149 = vmatprep.mubr.msk.f32.mxu1 %vm12191_vm2, %v18918_v23  ;;  %11331 = vmatprep.mubr.msk.f32.mxu0 %vm12191_vm2, %v18918_v23 }
 0x367   :  { %v3160_v46 = vpop.f32.mrb[72].mxu1  ;;  %v3934_v31 = vpop.f32.mrb[72].mxu0 }
 0x368   :  { %v15855_v12 = vadd.f32 %v3160_v46, %v19031_v33  ;;  %v15858_v50 = vadd.f32 %v3934_v31, %v15417_v19  ;;  %v10927_v18 = vpop.f32.mrb[73].mxu0  ;;  %11150 = vmatmul.mubr.msk.f32.gmra.mrb[178].mxu1 %vm188_vm1, %v15852_v14  ;;  %11332 = vmatmul.mubr.msk.f32.gmra.mrb[178].mxu0 %vm188_vm1, %v15456_v24  ;;  %v10745_v63 = vpop.f32.mrb[73].mxu1  ;;  %v19032_v31 = vld [vmem:[#allocation24_spill] sm:$0xff] }
 0x369   :  { %11152 = vmatprep.mubr.msk.f32.mxu1 %vm12191_vm2, %v18918_v23  ;;  %11334 = vmatprep.mubr.msk.f32.mxu0 %vm12191_vm2, %v18918_v23 }
 0x36b   :  { %v3165_v19 = vpop.f32.mrb[74].mxu1  ;;  %v3939_v46 = vpop.f32.mrb[74].mxu0 }
 0x36c   :  { %v15874_v33 = vadd.f32 %v3165_v19, %v19032_v31  ;;  %v15877_v18 = vadd.f32 %v3939_v46, %v15438_v38  ;;  %v10930_v24 = vpop.f32.mrb[75].mxu0  ;;  %11153 = vmatmul.mubr.msk.f32.gmra.mrb[180].mxu1 %vm188_vm1, %v15871_v51  ;;  %11335 = vmatmul.mubr.msk.f32.gmra.mrb[180].mxu0 %vm188_vm1, %v15477_v30  ;;  %v10748_v63 = vpop.f32.mrb[75].mxu1  ;;  %v15890_v19 = vld [vmem:[%s18883_s0 + $0xec] sm:$0xff]  ;;  %v19034_v31 = vld [vmem:[#allocation25_spill] sm:$0xff] }
 0x36d   :  { %11155 = vmatprep.mubr.msk.f32.mxu1 %vm12191_vm2, %v18918_v23  ;;  %11337 = vmatprep.mubr.msk.f32.mxu0 %vm12191_vm2, %v18918_v23 }
 0x36e   :  { %19033 = vst [vmem:[#allocation22_spill] sm:$0xff] %v15877_v18 }
 0x36f   :  { %v3170_v38 = vpop.f32.mrb[76].mxu1  ;;  %v3944_v46 = vpop.f32.mrb[76].mxu0 }
 0x370   :  { %v15893_v24 = vadd.f32 %v3170_v38, %v19034_v31  ;;  %v15896_v18 = vadd.f32 %v3944_v46, %v15459_v53  ;;  %v10933_v30 = vpop.f32.mrb[77].mxu0  ;;  %11156 = vmatmul.mubr.msk.f32.gmra.mrb[182].mxu1 %vm188_vm1, %v15890_v19  ;;  %11338 = vmatmul.mubr.msk.f32.gmra.mrb[182].mxu0 %vm188_vm1, %v15498_v36  ;;  %v10751_v63 = vpop.f32.mrb[77].mxu1  ;;  %v15909_v38 = vld [vmem:[%s18883_s0 + $0xf4] sm:$0xff]  ;;  %v19036_v31 = vld [vmem:[#allocation26_spill] sm:$0xff] }
 0x371   :  { %11158 = vmatprep.mubr.msk.f32.mxu1 %vm12191_vm2, %v18918_v23  ;;  %11340 = vmatprep.mubr.msk.f32.mxu0 %vm12191_vm2, %v18918_v23 }
 0x372   :  { %19035 = vst [vmem:[#allocation23_spill] sm:$0xff] %v15896_v18 }
 0x373   :  { %v3175_v53 = vpop.f32.mrb[78].mxu1  ;;  %v3949_v46 = vpop.f32.mrb[78].mxu0 }
 0x374   :  { %v15912_v30 = vadd.f32 %v3175_v53, %v19036_v31  ;;  %v15915_v18 = vadd.f32 %v3949_v46, %v15480_v49  ;;  %v10936_v36 = vpop.f32.mrb[79].mxu0  ;;  %11159 = vmatmul.mubr.msk.f32.gmra.mrb[184].mxu1 %vm188_vm1, %v15909_v38  ;;  %11341 = vmatmul.mubr.msk.f32.gmra.mrb[184].mxu0 %vm188_vm1, %v15519_v42  ;;  %v10754_v63 = vpop.f32.mrb[79].mxu1  ;;  %v15928_v53 = vld [vmem:[%s18883_s0 + $0xfc] sm:$0xff]  ;;  %v19038_v31 = vld [vmem:[#allocation27_spill] sm:$0xff] }
 0x375   :  { %11161 = vmatprep.mubr.msk.f32.mxu1 %vm12191_vm2, %v18918_v23  ;;  %11343 = vmatprep.mubr.msk.f32.mxu0 %vm12191_vm2, %v18918_v23 }
 0x376   :  { %19037 = vst [vmem:[#allocation24_spill] sm:$0xff] %v15915_v18 }
 0x377   :  { %v3180_v49 = vpop.f32.mrb[80].mxu1  ;;  %v3954_v46 = vpop.f32.mrb[80].mxu0 }
 0x378   :  { %v15931_v36 = vadd.f32 %v3180_v49, %v19038_v31  ;;  %v15934_v18 = vadd.f32 %v3954_v46, %v15501_v20  ;;  %v10939_v42 = vpop.f32.mrb[81].mxu0  ;;  %11162 = vmatmul.mubr.msk.f32.gmra.mrb[186].mxu1 %vm188_vm1, %v15928_v53  ;;  %11344 = vmatmul.mubr.msk.f32.gmra.mrb[186].mxu0 %vm188_vm1, %v15540_v48  ;;  %v10757_v63 = vpop.f32.mrb[81].mxu1  ;;  %v15947_v49 = vld [vmem:[%s18883_s0 + $0x104] sm:$0xff]  ;;  %v19040_v31 = vld [vmem:[#allocation28_spill] sm:$0xff] }
 0x379   :  { %11164 = vmatprep.mubr.msk.f32.mxu1 %vm12191_vm2, %v18918_v23  ;;  %11346 = vmatprep.mubr.msk.f32.mxu0 %vm12191_vm2, %v18918_v23 }
 0x37a   :  { %19039 = vst [vmem:[#allocation25_spill] sm:$0xff] %v15934_v18 }
 0x37b   :  { %v3185_v20 = vpop.f32.mrb[82].mxu1  ;;  %v3959_v46 = vpop.f32.mrb[82].mxu0 }
 0x37c   :  { %v15950_v42 = vadd.f32 %v3185_v20, %v19040_v31  ;;  %v15953_v18 = vadd.f32 %v3959_v46, %v15522_v35  ;;  %v10942_v48 = vpop.f32.mrb[83].mxu0  ;;  %11165 = vmatmul.mubr.msk.f32.gmra.mrb[188].mxu1 %vm188_vm1, %v15947_v49  ;;  %11347 = vmatmul.mubr.msk.f32.gmra.mrb[188].mxu0 %vm188_vm1, %v15561_v56  ;;  %v10760_v63 = vpop.f32.mrb[83].mxu1  ;;  %v15966_v20 = vld [vmem:[%s18883_s0 + $0x10c] sm:$0xff] }
 0x37d   :  { %11167 = vmatprep.mubr.msk.f32.mxu1 %vm12191_vm2, %v18918_v23  ;;  %11349 = vmatprep.mubr.msk.f32.mxu0 %vm12191_vm2, %v18918_v23 }
 0x37e   :  { %19041 = vst [vmem:[#allocation26_spill] sm:$0xff] %v15953_v18 }
 0x37f   :  { %v3190_v35 = vpop.f32.mrb[84].mxu1  ;;  %v3964_v46 = vpop.f32.mrb[84].mxu0 }
 0x380   :  { %v15969_v31 = vadd.f32 %v3190_v35, %v14818_v8  ;;  %v10945_v48 = vpop.f32.mrb[85].mxu0  ;;  %11168 = vmatmul.mubr.msk.f32.gmra.mrb[190].mxu1 %vm188_vm1, %v15966_v20  ;;  %11350 = vmatmul.mubr.msk.f32.gmra.mrb[190].mxu0 %vm188_vm1, %v15582_v3  ;;  %v10763_v56 = vpop.f32.mrb[85].mxu1  ;;  %v15976_v63 = vadd.f32 %v3964_v46, %v15543_v28  ;;  %v15985_v8 = vld [vmem:[%s18883_s0 + $0x114] sm:$0xff] }
 0x381   :  { %11170 = vmatprep.mubr.msk.f32.mxu1 %vm12191_vm2, %v18918_v23  ;;  %11352 = vmatprep.mubr.msk.f32.mxu0 %vm12191_vm2, %v18918_v23 }
 0x383   :  { %v3195_v35 = vpop.f32.mrb[86].mxu1  ;;  %v3969_v48 = vpop.f32.mrb[86].mxu0 }
 0x384   :  { %v15988_v18 = vadd.f32 %v3195_v35, %v14833_v5  ;;  %v10948_v3 = vpop.f32.mrb[87].mxu0  ;;  %11171 = vmatmul.mubr.msk.f32.gmra.mrb[192].mxu1 %vm188_vm1, %v15985_v8  ;;  %11353 = vmatmul.mubr.msk.f32.gmra.mrb[192].mxu0 %vm188_vm1, %v15603_v11  ;;  %v10766_v28 = vpop.f32.mrb[87].mxu1  ;;  %v15995_v46 = vadd.f32 %v3969_v48, %v15564_v45  ;;  %v16004_v5 = vld [vmem:[%s18883_s0 + $0x11c] sm:$0xff] }
 0x385   :  { %11173 = vmatprep.mubr.msk.f32.mxu1 %vm12191_vm2, %v18918_v23  ;;  %11355 = vmatprep.mubr.msk.f32.mxu0 %vm12191_vm2, %v18918_v23 }
 0x387   :  { %v3200_v56 = vpop.f32.mrb[88].mxu1  ;;  %v3974_v35 = vpop.f32.mrb[88].mxu0 }
 0x388   :  { %v16007_v3 = vadd.f32 %v3200_v56, %v14851_v37  ;;  %v10951_v11 = vpop.f32.mrb[89].mxu0  ;;  %11174 = vmatmul.mubr.msk.f32.gmra.mrb[194].mxu1 %vm188_vm1, %v16004_v5  ;;  %11356 = vmatmul.mubr.msk.f32.gmra.mrb[194].mxu0 %vm188_vm1, %v15624_v21  ;;  %v10769_v45 = vpop.f32.mrb[89].mxu1  ;;  %v16014_v48 = vadd.f32 %v3974_v35, %v15585_v17  ;;  %v16023_v37 = vld [vmem:[%s18883_s0 + $0x124] sm:$0xff] }
 0x389   :  { %11176 = vmatprep.mubr.msk.f32.mxu1 %vm12191_vm2, %v18918_v23  ;;  %11358 = vmatprep.mubr.msk.f32.mxu0 %vm12191_vm2, %v18918_v23 }
 0x38b   :  { %v3205_v28 = vpop.f32.mrb[90].mxu1  ;;  %v3979_v56 = vpop.f32.mrb[90].mxu0 }
 0x38c   :  { %v16026_v11 = vadd.f32 %v3205_v28, %v14869_v34  ;;  %v10954_v21 = vpop.f32.mrb[91].mxu0  ;;  %11177 = vmatmul.mubr.msk.f32.gmra.mrb[196].mxu1 %vm188_vm1, %v16023_v37  ;;  %11359 = vmatmul.mubr.msk.f32.gmra.mrb[196].mxu0 %vm188_vm1, %v15645_v26  ;;  %v10772_v17 = vpop.f32.mrb[91].mxu1  ;;  %v16033_v35 = vadd.f32 %v3979_v56, %v15606_v54  ;;  %v16042_v34 = vld [vmem:[%s18883_s0 + $0x12c] sm:$0xff] }
 0x38d   :  { %11179 = vmatprep.mubr.msk.f32.mxu1 %vm12191_vm2, %v18918_v23  ;;  %11361 = vmatprep.mubr.msk.f32.mxu0 %vm12191_vm2, %v18918_v23 }
 0x38f   :  { %v3210_v45 = vpop.f32.mrb[92].mxu1  ;;  %v3984_v28 = vpop.f32.mrb[92].mxu0 }
 0x390   :  { %v16045_v21 = vadd.f32 %v3210_v45, %v14887_v16  ;;  %v10957_v26 = vpop.f32.mrb[93].mxu0  ;;  %11180 = vmatmul.mubr.msk.f32.gmra.mrb[198].mxu1 %vm188_vm1, %v16042_v34  ;;  %11362 = vmatmul.mubr.msk.f32.gmra.mrb[198].mxu0 %vm188_vm1, %v15666_v7  ;;  %v10775_v54 = vpop.f32.mrb[93].mxu1  ;;  %v16052_v56 = vadd.f32 %v3984_v28, %v15627_v44  ;;  %v16061_v16 = vld [vmem:[%s18883_s0 + $0x134] sm:$0xff] }
 0x391   :  { %11182 = vmatprep.mubr.msk.f32.mxu1 %vm12191_vm2, %v18918_v23  ;;  %11364 = vmatprep.mubr.msk.f32.mxu0 %vm12191_vm2, %v18918_v23 }
 0x393   :  { %v3215_v17 = vpop.f32.mrb[94].mxu1  ;;  %v3989_v45 = vpop.f32.mrb[94].mxu0 }
 0x394   :  { %v16064_v26 = vadd.f32 %v3215_v17, %v14905_v55  ;;  %v10960_v7 = vpop.f32.mrb[95].mxu0  ;;  %11183 = vmatmul.mubr.msk.f32.gmra.mrb[200].mxu1 %vm188_vm1, %v16061_v16  ;;  %11365 = vmatmul.mubr.msk.f32.gmra.mrb[200].mxu0 %vm188_vm1, %v15687_v0  ;;  %v10778_v44 = vpop.f32.mrb[95].mxu1  ;;  %v16071_v28 = vadd.f32 %v3989_v45, %v15648_v13  ;;  %v16080_v55 = vld [vmem:[%s18883_s0 + $0x13c] sm:$0xff] }
 0x395   :  { %11185 = vmatprep.mubr.msk.f32.mxu1 %vm12191_vm2, %v18918_v23  ;;  %11367 = vmatprep.mubr.msk.f32.mxu0 %vm12191_vm2, %v18918_v23 }
 0x397   :  { %v3220_v54 = vpop.f32.mrb[96].mxu1  ;;  %v3994_v17 = vpop.f32.mrb[96].mxu0 }
 0x398   :  { %v16083_v7 = vadd.f32 %v3220_v54, %v14923_v41  ;;  %v10963_v0 = vpop.f32.mrb[97].mxu0  ;;  %11186 = vmatmul.mubr.msk.f32.gmra.mrb[202].mxu1 %vm188_vm1, %v16080_v55  ;;  %11368 = vmatmul.mubr.msk.f32.gmra.mrb[202].mxu0 %vm188_vm1, %v15708_v47  ;;  %v10781_v13 = vpop.f32.mrb[97].mxu1  ;;  %v16090_v45 = vadd.f32 %v3994_v17, %v15669_v10  ;;  %v16099_v41 = vld [vmem:[%s18883_s0 + $0x144] sm:$0xff] }
 0x399   :  { %11188 = vmatprep.mubr.msk.f32.mxu1 %vm12191_vm2, %v18918_v23  ;;  %11370 = vmatprep.mubr.msk.f32.mxu0 %vm12191_vm2, %v18918_v23 }
 0x39b   :  { %v3225_v44 = vpop.f32.mrb[98].mxu1  ;;  %v3999_v54 = vpop.f32.mrb[98].mxu0 }
 0x39c   :  { %v16102_v0 = vadd.f32 %v3225_v44, %v14941_v27  ;;  %v10966_v47 = vpop.f32.mrb[99].mxu0  ;;  %11189 = vmatmul.mubr.msk.f32.gmra.mrb[204].mxu1 %vm188_vm1, %v16099_v41  ;;  %11371 = vmatmul.mubr.msk.f32.gmra.mrb[204].mxu0 %vm188_vm1, %v15729_v61  ;;  %v10784_v10 = vpop.f32.mrb[99].mxu1  ;;  %v16109_v17 = vadd.f32 %v3999_v54, %v15690_v60  ;;  %v16118_v27 = vld [vmem:[%s18883_s0 + $0x14c] sm:$0xff] }
 0x39d   :  { %11191 = vmatprep.mubr.msk.f32.mxu1 %vm12191_vm2, %v18918_v23  ;;  %11373 = vmatprep.mubr.msk.f32.mxu0 %vm12191_vm2, %v18918_v23 }
 0x39f   :  { %v3230_v13 = vpop.f32.mrb[100].mxu1  ;;  %v4004_v44 = vpop.f32.mrb[100].mxu0 }
 0x3a0   :  { %v16121_v47 = vadd.f32 %v3230_v13, %v14959_v15  ;;  %v10969_v61 = vpop.f32.mrb[101].mxu0  ;;  %11192 = vmatmul.mubr.msk.f32.gmra.mrb[206].mxu1 %vm188_vm1, %v16118_v27  ;;  %11374 = vmatmul.mubr.msk.f32.gmra.mrb[206].mxu0 %vm188_vm1, %v15750_v25  ;;  %v10787_v60 = vpop.f32.mrb[101].mxu1  ;;  %v16128_v54 = vadd.f32 %v4004_v44, %v15711_v2  ;;  %v16137_v15 = vld [vmem:[%s18883_s0 + $0x154] sm:$0xff] }
 0x3a1   :  { %11194 = vmatprep.mubr.msk.f32.mxu1 %vm12191_vm2, %v18918_v23  ;;  %11376 = vmatprep.mubr.msk.f32.mxu0 %vm12191_vm2, %v18918_v23 }
 0x3a3   :  { %v3235_v10 = vpop.f32.mrb[102].mxu1  ;;  %v4009_v13 = vpop.f32.mrb[102].mxu0 }
 0x3a4   :  { %v16140_v61 = vadd.f32 %v3235_v10, %v14977_v62  ;;  %v10972_v25 = vpop.f32.mrb[103].mxu0  ;;  %11195 = vmatmul.mubr.msk.f32.gmra.mrb[208].mxu1 %vm188_vm1, %v16137_v15  ;;  %11377 = vmatmul.mubr.msk.f32.gmra.mrb[208].mxu0 %vm188_vm1, %v15768_v43  ;;  %v10790_v2 = vpop.f32.mrb[103].mxu1  ;;  %v16147_v44 = vadd.f32 %v4009_v13, %v15732_v39  ;;  %v16156_v62 = vld [vmem:[%s18883_s0 + $0x15c] sm:$0xff] }
 0x3a5   :  { %11197 = vmatprep.mubr.msk.f32.mxu1 %vm12191_vm2, %v18918_v23  ;;  %11379 = vmatprep.mubr.msk.f32.mxu0 %vm12191_vm2, %v18918_v23 }
 0x3a7   :  { %v3240_v60 = vpop.f32.mrb[104].mxu1  ;;  %v4014_v10 = vpop.f32.mrb[104].mxu0 }
 0x3a8   :  { %v16159_v25 = vadd.f32 %v3240_v60, %v14995_v52  ;;  %v10975_v43 = vpop.f32.mrb[105].mxu0  ;;  %11198 = vmatmul.mubr.msk.f32.gmra.mrb[210].mxu1 %vm188_vm1, %v16156_v62  ;;  %11380 = vmatmul.mubr.msk.f32.gmra.mrb[210].mxu0 %vm188_vm1, %v15787_v1  ;;  %v10793_v39 = vpop.f32.mrb[105].mxu1  ;;  %v16166_v13 = vadd.f32 %v4014_v10, %v15753_v29  ;;  %v16175_v52 = vld [vmem:[%s18883_s0 + $0x164] sm:$0xff] }
 0x3a9   :  { %11200 = vmatprep.mubr.msk.f32.mxu1 %vm12191_vm2, %v18918_v23  ;;  %11382 = vmatprep.mubr.msk.f32.mxu0 %vm12191_vm2, %v18918_v23 }
 0x3ab   :  { %v3245_v2 = vpop.f32.mrb[106].mxu1  ;;  %v4019_v60 = vpop.f32.mrb[106].mxu0 }
 0x3ac   :  { %v16178_v43 = vadd.f32 %v3245_v2, %v15013_v40  ;;  %v10978_v1 = vpop.f32.mrb[107].mxu0  ;;  %11201 = vmatmul.mubr.msk.f32.gmra.mrb[212].mxu1 %vm188_vm1, %v16175_v52  ;;  %11383 = vmatmul.mubr.msk.f32.gmra.mrb[212].mxu0 %vm188_vm1, %v15806_v9  ;;  %v10796_v29 = vpop.f32.mrb[107].mxu1  ;;  %v16185_v10 = vadd.f32 %v4019_v60, %v15771_v58  ;;  %v16194_v40 = vld [vmem:[%s18883_s0 + $0x16c] sm:$0xff] }
 0x3ad   :  { %11203 = vmatprep.mubr.msk.f32.mxu1 %vm12191_vm2, %v18918_v23  ;;  %11385 = vmatprep.mubr.msk.f32.mxu0 %vm12191_vm2, %v18918_v23 }
 0x3ae   :  { %19042 = vst [vmem:[#allocation27_spill] sm:$0xff] %v16185_v10 }
 0x3af   :  { %v3250_v39 = vpop.f32.mrb[108].mxu1  ;;  %v4024_v2 = vpop.f32.mrb[108].mxu0 }
 0x3b0   :  { %v16197_v1 = vadd.f32 %v3250_v39, %v15031_v32  ;;  %v10981_v9 = vpop.f32.mrb[109].mxu0  ;;  %11204 = vmatmul.mubr.msk.f32.gmra.mrb[214].mxu1 %vm188_vm1, %v16194_v40  ;;  %11386 = vmatmul.mubr.msk.f32.gmra.mrb[214].mxu0 %vm188_vm1, %v15831_v57  ;;  %v10799_v58 = vpop.f32.mrb[109].mxu1  ;;  %v16204_v60 = vadd.f32 %v4024_v2, %v15790_v4  ;;  %v16213_v32 = vld [vmem:[%s18883_s0 + $0x174] sm:$0xff]  ;;  %v19044_v2 = vld [vmem:[#allocation21_spill] sm:$0xff] }
 0x3b1   :  { %11206 = vmatprep.mubr.msk.f32.mxu1 %vm12191_vm2, %v18918_v23  ;;  %11388 = vmatprep.mubr.msk.f32.mxu0 %vm12191_vm2, %v18918_v23 }
 0x3b2   :  { %19043 = vst [vmem:[#allocation28_spill] sm:$0xff] %v16204_v60  ;;  %v19046_v60 = vld [vmem:[#allocation29_spill] sm:$0xff] }
 0x3b3   :  { %v3255_v29 = vpop.f32.mrb[110].mxu1  ;;  %v4029_v39 = vpop.f32.mrb[110].mxu0 }
 0x3b4   :  { %v16216_v9 = vadd.f32 %v3255_v29, %v15049_v22  ;;  %v10984_v57 = vpop.f32.mrb[111].mxu0  ;;  %11207 = vmatmul.mubr.msk.f32.gmra.mrb[216].mxu1 %vm188_vm1, %v16213_v32  ;;  %11389 = vmatmul.mubr.msk.f32.gmra.mrb[216].mxu0 %vm188_vm1, %v15852_v14  ;;  %v10802_v4 = vpop.f32.mrb[111].mxu1  ;;  %v16223_v58 = vadd.f32 %v4029_v39, %v19044_v2  ;;  %v16232_v22 = vld [vmem:[%s18883_s0 + $0x17c] sm:$0xff] }
 0x3b5   :  { %11209 = vmatprep.mubr.msk.f32.mxu1 %vm12191_vm2, %v18918_v23  ;;  %11391 = vmatprep.mubr.msk.f32.mxu0 %vm12191_vm2, %v18918_v23 }
 0x3b6   :  { %19045 = vst [vmem:[#allocation21_spill] sm:$0xff] %v16223_v58 }
 0x3b7   :  { %v3260_v29 = vpop.f32.mrb[112].mxu1  ;;  %v4034_v57 = vpop.f32.mrb[112].mxu0 }
 0x3b8   :  { %v16235_v10 = vadd.f32 %v3260_v29, %v19046_v60  ;;  %v10987_v14 = vpop.f32.mrb[113].mxu0  ;;  %11210 = vmatmul.mubr.msk.f32.gmra.mrb[218].mxu1 %vm188_vm1, %v16232_v22  ;;  %11392 = vmatmul.mubr.msk.f32.gmra.mrb[218].mxu0 %vm188_vm1, %v15871_v51  ;;  %v10805_v39 = vpop.f32.mrb[113].mxu1  ;;  %v16242_v4 = vadd.f32 %v4034_v57, %v15836_v6  ;;  %v16251_v60 = vld [vmem:[%s18883_s0 + $0x184] sm:$0xff] }
 0x3b9   :  { %11212 = vmatprep.mubr.msk.f32.mxu1 %vm12191_vm2, %v18918_v23  ;;  %11394 = vmatprep.mubr.msk.f32.mxu0 %vm12191_vm2, %v18918_v23  ;;  %v19048_v14 = vld [vmem:[#allocation30_spill] sm:$0xff] }
 0x3ba   :  { %19047 = vst [vmem:[#allocation29_spill] sm:$0xff] %v16242_v4  ;;  %v16270_v39 = vld [vmem:[%s18883_s0 + $0x18c] sm:$0xff] }
 0x3bb   :  { %v3265_v2 = vpop.f32.mrb[114].mxu1  ;;  %v4039_v29 = vpop.f32.mrb[114].mxu0 }
 0x3bc   :  { %v16254_v58 = vadd.f32 %v3265_v2, %v19048_v14  ;;  %v10990_v51 = vpop.f32.mrb[115].mxu0  ;;  %11213 = vmatmul.mubr.msk.f32.gmra.mrb[220].mxu1 %vm188_vm1, %v16251_v60  ;;  %11395 = vmatmul.mubr.msk.f32.gmra.mrb[220].mxu0 %vm188_vm1, %v15890_v19  ;;  %v10808_v6 = vpop.f32.mrb[115].mxu1  ;;  %v16261_v57 = vadd.f32 %v4039_v29, %v15855_v12 }
 0x3bd   :  { %11215 = vmatprep.mubr.msk.f32.mxu1 %vm12191_vm2, %v18918_v23  ;;  %11397 = vmatprep.mubr.msk.f32.mxu0 %vm12191_vm2, %v18918_v23  ;;  %v19050_v51 = vld [vmem:[#allocation33_spill] sm:$0xff]  ;;  %v16289_v6 = vld [vmem:[%s18883_s0 + $0x194] sm:$0xff] }
 0x3be   :  { %19049 = vst [vmem:[#allocation30_spill] sm:$0xff] %v16261_v57 }
 0x3bf   :  { %v3270_v2 = vpop.f32.mrb[116].mxu1  ;;  %v4044_v14 = vpop.f32.mrb[116].mxu0 }
 0x3c0   :  { %v16273_v4 = vadd.f32 %v3270_v2, %v19050_v51  ;;  %v10993_v19 = vpop.f32.mrb[117].mxu0  ;;  %11216 = vmatmul.mubr.msk.f32.gmra.mrb[222].mxu1 %vm188_vm1, %v16270_v39  ;;  %11398 = vmatmul.mubr.msk.f32.gmra.mrb[222].mxu0 %vm188_vm1, %v15909_v38  ;;  %v10811_v12 = vpop.f32.mrb[117].mxu1  ;;  %v16280_v29 = vadd.f32 %v4044_v14, %v15874_v33 }
 0x3c1   :  { %11218 = vmatprep.mubr.msk.f32.mxu1 %vm12191_vm2, %v18918_v23  ;;  %11400 = vmatprep.mubr.msk.f32.mxu0 %vm12191_vm2, %v18918_v23  ;;  %v19052_v19 = vld [vmem:[#allocation34_spill] sm:$0xff]  ;;  %v16308_v12 = vld [vmem:[%s18883_s0 + $0x19c] sm:$0xff] }
 0x3c2   :  { %19051 = vst [vmem:[#allocation33_spill] sm:$0xff] %v16280_v29 }
 0x3c3   :  { %v3275_v2 = vpop.f32.mrb[118].mxu1  ;;  %v4049_v51 = vpop.f32.mrb[118].mxu0 }
 0x3c4   :  { %v16292_v57 = vadd.f32 %v3275_v2, %v19052_v19  ;;  %v10996_v38 = vpop.f32.mrb[119].mxu0  ;;  %11219 = vmatmul.mubr.msk.f32.gmra.mrb[224].mxu1 %vm188_vm1, %v16289_v6  ;;  %11401 = vmatmul.mubr.msk.f32.gmra.mrb[224].mxu0 %vm188_vm1, %v15928_v53  ;;  %v10814_v33 = vpop.f32.mrb[119].mxu1  ;;  %v16299_v14 = vadd.f32 %v4049_v51, %v15893_v24 }
 0x3c5   :  { %11221 = vmatprep.mubr.msk.f32.mxu1 %vm12191_vm2, %v18918_v23  ;;  %11403 = vmatprep.mubr.msk.f32.mxu0 %vm12191_vm2, %v18918_v23  ;;  %v19054_v38 = vld [vmem:[#allocation35_spill] sm:$0xff]  ;;  %v16327_v33 = vld [vmem:[%s18883_s0 + $0x1a4] sm:$0xff] }
 0x3c6   :  { %19053 = vst [vmem:[#allocation34_spill] sm:$0xff] %v16299_v14 }
 0x3c7   :  { %v3280_v2 = vpop.f32.mrb[120].mxu1  ;;  %v4054_v19 = vpop.f32.mrb[120].mxu0 }
 0x3c8   :  { %v16311_v29 = vadd.f32 %v3280_v2, %v19054_v38  ;;  %v10999_v53 = vpop.f32.mrb[121].mxu0  ;;  %11222 = vmatmul.mubr.msk.f32.gmra.mrb[226].mxu1 %vm188_vm1, %v16308_v12  ;;  %11404 = vmatmul.mubr.msk.f32.gmra.mrb[226].mxu0 %vm188_vm1, %v15947_v49  ;;  %v10817_v24 = vpop.f32.mrb[121].mxu1  ;;  %v16318_v51 = vadd.f32 %v4054_v19, %v15912_v30 }
 0x3c9   :  { %11224 = vmatprep.mubr.msk.f32.mxu1 %vm12191_vm2, %v18918_v23  ;;  %11406 = vmatprep.mubr.msk.f32.mxu0 %vm12191_vm2, %v18918_v23  ;;  %v19056_v53 = vld [vmem:[#allocation36_spill] sm:$0xff]  ;;  %v16346_v24 = vld [vmem:[%s18883_s0 + $0x1ac] sm:$0xff] }
 0x3ca   :  { %19055 = vst [vmem:[#allocation35_spill] sm:$0xff] %v16318_v51 }
 0x3cb   :  { %v3285_v2 = vpop.f32.mrb[122].mxu1  ;;  %v4059_v38 = vpop.f32.mrb[122].mxu0 }
 0x3cc   :  { %v16330_v14 = vadd.f32 %v3285_v2, %v19056_v53  ;;  %v11002_v49 = vpop.f32.mrb[123].mxu0  ;;  %11225 = vmatmul.mubr.msk.f32.gmra.mrb[228].mxu1 %vm188_vm1, %v16327_v33  ;;  %11407 = vmatmul.mubr.msk.f32.gmra.mrb[228].mxu0 %vm188_vm1, %v15966_v20  ;;  %v10820_v30 = vpop.f32.mrb[123].mxu1  ;;  %v16337_v19 = vadd.f32 %v4059_v38, %v15931_v36 }
 0x3cd   :  { %11227 = vmatprep.mubr.msk.f32.mxu1 %vm12191_vm2, %v18918_v23  ;;  %11409 = vmatprep.mubr.msk.f32.mxu0 %vm12191_vm2, %v18918_v23  ;;  %v19058_v49 = vld [vmem:[#allocation37_spill] sm:$0xff]  ;;  %v16365_v30 = vld [vmem:[%s18883_s0 + $0x1b4] sm:$0xff] }
 0x3ce   :  { %19057 = vst [vmem:[#allocation36_spill] sm:$0xff] %v16337_v19 }
 0x3cf   :  { %v3290_v2 = vpop.f32.mrb[124].mxu1  ;;  %v4064_v53 = vpop.f32.mrb[124].mxu0 }
 0x3d0   :  { %v16349_v51 = vadd.f32 %v3290_v2, %v19058_v49  ;;  %v11005_v20 = vpop.f32.mrb[125].mxu0  ;;  %11228 = vmatmul.mubr.msk.f32.gmra.mrb[230].mxu1 %vm188_vm1, %v16346_v24  ;;  %11410 = vmatmul.mubr.msk.f32.gmra.mrb[230].mxu0 %vm188_vm1, %v15985_v8  ;;  %v10823_v36 = vpop.f32.mrb[125].mxu1  ;;  %v16356_v38 = vadd.f32 %v4064_v53, %v15950_v42 }
 0x3d1   :  { %11230 = vmatprep.mubr.msk.f32.mxu1 %vm12191_vm2, %v18918_v23  ;;  %11412 = vmatprep.mubr.msk.f32.mxu0 %vm12191_vm2, %v18918_v23  ;;  %v19060_v20 = vld [vmem:[#allocation38_spill] sm:$0xff]  ;;  %v16384_v36 = vld [vmem:[%s18883_s0 + $0x1bc] sm:$0xff] }
 0x3d2   :  { %19059 = vst [vmem:[#allocation37_spill] sm:$0xff] %v16356_v38 }
 0x3d3   :  { %v3295_v2 = vpop.f32.mrb[126].mxu1  ;;  %v4069_v49 = vpop.f32.mrb[126].mxu0 }
 0x3d4   :  { %v16368_v19 = vadd.f32 %v3295_v2, %v19060_v20  ;;  %v11008_v8 = vpop.f32.mrb[127].mxu0  ;;  %11231 = vmatmul.mubr.msk.f32.gmra.mrb[232].mxu1 %vm188_vm1, %v16365_v30  ;;  %11413 = vmatmul.mubr.msk.f32.gmra.mrb[232].mxu0 %vm188_vm1, %v16004_v5  ;;  %v10826_v42 = vpop.f32.mrb[127].mxu1  ;;  %v16375_v53 = vadd.f32 %v4069_v49, %v15969_v31 }
 0x3d5   :  { %11233 = vmatprep.mubr.msk.f32.mxu1 %vm12191_vm2, %v18918_v23  ;;  %11415 = vmatprep.mubr.msk.f32.mxu0 %vm12191_vm2, %v18918_v23  ;;  %v19062_v8 = vld [vmem:[#allocation39_spill] sm:$0xff]  ;;  %v16403_v42 = vld [vmem:[%s18883_s0 + $0x1c4] sm:$0xff] }
 0x3d6   :  { %19061 = vst [vmem:[#allocation38_spill] sm:$0xff] %v16375_v53 }
 0x3d7   :  { %v4074_v2 = vpop.f32.mrb[128].mxu0  ;;  %v4653_v20 = vpop.f32.mrb[128].mxu1 }
 0x3d8   :  { %v16387_v38 = vadd.f32 %v4653_v20, %v19062_v8  ;;  %v11011_v5 = vpop.f32.mrb[129].mxu0  ;;  %11234 = vmatmul.mubr.msk.f32.gmra.mrb[234].mxu1 %vm188_vm1, %v16384_v36  ;;  %11416 = vmatmul.mubr.msk.f32.gmra.mrb[234].mxu0 %vm188_vm1, %v16023_v37  ;;  %v11076_v31 = vpop.f32.mrb[129].mxu1  ;;  %v16394_v49 = vadd.f32 %v4074_v2, %v15988_v18 }
 0x3d9   :  { %11236 = vmatprep.mubr.msk.f32.mxu1 %vm12191_vm2, %v18918_v23  ;;  %11418 = vmatprep.mubr.msk.f32.mxu0 %vm12191_vm2, %v18918_v23  ;;  %v19064_v5 = vld [vmem:[#allocation40_spill] sm:$0xff]  ;;  %v16422_v31 = vld [vmem:[%s18883_s0 + $0x1cc] sm:$0xff] }
 0x3da   :  { %19063 = vst [vmem:[#allocation39_spill] sm:$0xff] %v16394_v49 }
 0x3db   :  { %v4079_v20 = vpop.f32.mrb[130].mxu0  ;;  %v4658_v8 = vpop.f32.mrb[130].mxu1 }
 0x3dc   :  { %v16406_v53 = vadd.f32 %v4658_v8, %v19064_v5  ;;  %v11014_v37 = vpop.f32.mrb[131].mxu0  ;;  %11237 = vmatmul.mubr.msk.f32.gmra.mrb[236].mxu1 %vm188_vm1, %v16403_v42  ;;  %11419 = vmatmul.mubr.msk.f32.gmra.mrb[236].mxu0 %vm188_vm1, %v16042_v34  ;;  %v11079_v18 = vpop.f32.mrb[131].mxu1  ;;  %v16413_v2 = vadd.f32 %v4079_v20, %v16007_v3 }
 0x3dd   :  { %11239 = vmatprep.mubr.msk.f32.mxu1 %vm12191_vm2, %v18918_v23  ;;  %11421 = vmatprep.mubr.msk.f32.mxu0 %vm12191_vm2, %v18918_v23  ;;  %v19066_v37 = vld [vmem:[#allocation41_spill] sm:$0xff]  ;;  %v16441_v18 = vld [vmem:[%s18883_s0 + $0x1d4] sm:$0xff] }
 0x3de   :  { %19065 = vst [vmem:[#allocation40_spill] sm:$0xff] %v16413_v2 }
 0x3df   :  { %v4084_v8 = vpop.f32.mrb[132].mxu0  ;;  %v4663_v5 = vpop.f32.mrb[132].mxu1 }
 0x3e0   :  { %v16425_v49 = vadd.f32 %v4663_v5, %v19066_v37  ;;  %v11017_v34 = vpop.f32.mrb[133].mxu0  ;;  %11240 = vmatmul.mubr.msk.f32.gmra.mrb[238].mxu1 %vm188_vm1, %v16422_v31  ;;  %11422 = vmatmul.mubr.msk.f32.gmra.mrb[238].mxu0 %vm188_vm1, %v16061_v16  ;;  %v11082_v3 = vpop.f32.mrb[133].mxu1  ;;  %v16432_v20 = vadd.f32 %v4084_v8, %v16026_v11 }
 0x3e1   :  { %11242 = vmatprep.mubr.msk.f32.mxu1 %vm12191_vm2, %v18918_v23  ;;  %11424 = vmatprep.mubr.msk.f32.mxu0 %vm12191_vm2, %v18918_v23  ;;  %v19068_v34 = vld [vmem:[#allocation42_spill] sm:$0xff]  ;;  %v16460_v3 = vld [vmem:[%s18883_s0 + $0x1dc] sm:$0xff] }
 0x3e2   :  { %19067 = vst [vmem:[#allocation41_spill] sm:$0xff] %v16432_v20 }
 0x3e3   :  { %v4089_v5 = vpop.f32.mrb[134].mxu0  ;;  %v4668_v37 = vpop.f32.mrb[134].mxu1 }
 0x3e4   :  { %v16444_v2 = vadd.f32 %v4668_v37, %v19068_v34  ;;  %v11020_v16 = vpop.f32.mrb[135].mxu0  ;;  %11243 = vmatmul.mubr.msk.f32.gmra.mrb[240].mxu1 %vm188_vm1, %v16441_v18  ;;  %11425 = vmatmul.mubr.msk.f32.gmra.mrb[240].mxu0 %vm188_vm1, %v16080_v55  ;;  %v11085_v11 = vpop.f32.mrb[135].mxu1  ;;  %v16451_v8 = vadd.f32 %v4089_v5, %v16045_v21 }
 0x3e5   :  { %11245 = vmatprep.mubr.msk.f32.mxu1 %vm12191_vm2, %v18918_v23  ;;  %11427 = vmatprep.mubr.msk.f32.mxu0 %vm12191_vm2, %v18918_v23  ;;  %v19070_v16 = vld [vmem:[#allocation43_spill] sm:$0xff]  ;;  %v16479_v11 = vld [vmem:[%s18883_s0 + $0x1e4] sm:$0xff] }
 0x3e6   :  { %19069 = vst [vmem:[#allocation42_spill] sm:$0xff] %v16451_v8 }
 0x3e7   :  { %v4094_v37 = vpop.f32.mrb[136].mxu0  ;;  %v4673_v34 = vpop.f32.mrb[136].mxu1 }
 0x3e8   :  { %v16463_v20 = vadd.f32 %v4673_v34, %v19070_v16  ;;  %v11023_v55 = vpop.f32.mrb[137].mxu0  ;;  %11246 = vmatmul.mubr.msk.f32.gmra.mrb[242].mxu1 %vm188_vm1, %v16460_v3  ;;  %11428 = vmatmul.mubr.msk.f32.gmra.mrb[242].mxu0 %vm188_vm1, %v16099_v41  ;;  %v11088_v21 = vpop.f32.mrb[137].mxu1  ;;  %v16470_v5 = vadd.f32 %v4094_v37, %v16064_v26 }
 0x3e9   :  { %11248 = vmatprep.mubr.msk.f32.mxu1 %vm12191_vm2, %v18918_v23  ;;  %11430 = vmatprep.mubr.msk.f32.mxu0 %vm12191_vm2, %v18918_v23  ;;  %v19072_v55 = vld [vmem:[#allocation44_spill] sm:$0xff]  ;;  %v16498_v21 = vld [vmem:[%s18883_s0 + $0x1ec] sm:$0xff] }
 0x3ea   :  { %19071 = vst [vmem:[#allocation43_spill] sm:$0xff] %v16470_v5 }
 0x3eb   :  { %v4099_v34 = vpop.f32.mrb[138].mxu0  ;;  %v4678_v16 = vpop.f32.mrb[138].mxu1 }
 0x3ec   :  { %v16482_v8 = vadd.f32 %v4678_v16, %v19072_v55  ;;  %v11026_v41 = vpop.f32.mrb[139].mxu0  ;;  %11249 = vmatmul.mubr.msk.f32.gmra.mrb[244].mxu1 %vm188_vm1, %v16479_v11  ;;  %11431 = vmatmul.mubr.msk.f32.gmra.mrb[244].mxu0 %vm188_vm1, %v16118_v27  ;;  %v11091_v26 = vpop.f32.mrb[139].mxu1  ;;  %v16489_v37 = vadd.f32 %v4099_v34, %v16083_v7 }
 0x3ed   :  { %11251 = vmatprep.mubr.msk.f32.mxu1 %vm12191_vm2, %v18918_v23  ;;  %11433 = vmatprep.mubr.msk.f32.mxu0 %vm12191_vm2, %v18918_v23  ;;  %v19074_v41 = vld [vmem:[#allocation45_spill] sm:$0xff]  ;;  %v16517_v26 = vld [vmem:[%s18883_s0 + $0x1f4] sm:$0xff] }
 0x3ee   :  { %19073 = vst [vmem:[#allocation44_spill] sm:$0xff] %v16489_v37 }
 0x3ef   :  { %v4104_v16 = vpop.f32.mrb[140].mxu0  ;;  %v4683_v55 = vpop.f32.mrb[140].mxu1 }
 0x3f0   :  { %v16501_v5 = vadd.f32 %v4683_v55, %v19074_v41  ;;  %v11029_v27 = vpop.f32.mrb[141].mxu0  ;;  %11252 = vmatmul.mubr.msk.f32.gmra.mrb[246].mxu1 %vm188_vm1, %v16498_v21  ;;  %11434 = vmatmul.mubr.msk.f32.gmra.mrb[246].mxu0 %vm188_vm1, %v16137_v15  ;;  %v11094_v7 = vpop.f32.mrb[141].mxu1  ;;  %v16508_v34 = vadd.f32 %v4104_v16, %v16102_v0 }
 0x3f1   :  { %11254 = vmatprep.mubr.msk.f32.mxu1 %vm12191_vm2, %v18918_v23  ;;  %11436 = vmatprep.mubr.msk.f32.mxu0 %vm12191_vm2, %v18918_v23  ;;  %v19076_v27 = vld [vmem:[#allocation31_spill] sm:$0xff]  ;;  %v16536_v7 = vld [vmem:[%s18883_s0 + $0x1fc] sm:$0xff] }
 0x3f2   :  { %19075 = vst [vmem:[#allocation45_spill] sm:$0xff] %v16508_v34 }
 0x3f3   :  { %v4109_v55 = vpop.f32.mrb[142].mxu0  ;;  %v4688_v41 = vpop.f32.mrb[142].mxu1 }
 0x3f4   :  { %v16520_v37 = vadd.f32 %v4688_v41, %v19076_v27  ;;  %v11032_v15 = vpop.f32.mrb[143].mxu0  ;;  %11255 = vmatmul.mubr.msk.f32.gmra.mrb[248].mxu1 %vm188_vm1, %v16517_v26  ;;  %11437 = vmatmul.mubr.msk.f32.gmra.mrb[248].mxu0 %vm188_vm1, %v16156_v62  ;;  %v11097_v0 = vpop.f32.mrb[143].mxu1  ;;  %v16527_v16 = vadd.f32 %v4109_v55, %v16121_v47 }
 0x3f5   :  { %11257 = vmatprep.mubr.msk.f32.mxu1 %vm12191_vm2, %v18918_v23  ;;  %11439 = vmatprep.mubr.msk.f32.mxu0 %vm12191_vm2, %v18918_v23  ;;  %v19078_v15 = vld [vmem:[#allocation32_spill] sm:$0xff]  ;;  %v16555_v0 = vld [vmem:[%s18883_s0 + $0x204] sm:$0xff] }
 0x3f6   :  { %19077 = vst [vmem:[#allocation31_spill] sm:$0xff] %v16527_v16 }
 0x3f7   :  { %v4114_v41 = vpop.f32.mrb[144].mxu0  ;;  %v4693_v27 = vpop.f32.mrb[144].mxu1 }
 0x3f8   :  { %v16539_v34 = vadd.f32 %v4693_v27, %v19078_v15  ;;  %v11035_v62 = vpop.f32.mrb[145].mxu0  ;;  %11258 = vmatmul.mubr.msk.f32.gmra.mrb[250].mxu1 %vm188_vm1, %v16536_v7  ;;  %11440 = vmatmul.mubr.msk.f32.gmra.mrb[250].mxu0 %vm188_vm1, %v16175_v52  ;;  %v11100_v47 = vpop.f32.mrb[145].mxu1  ;;  %v16546_v55 = vadd.f32 %v4114_v41, %v16140_v61 }
 0x3f9   :  { %11260 = vmatprep.mubr.msk.f32.mxu1 %vm12191_vm2, %v18918_v23  ;;  %11442 = vmatprep.mubr.msk.f32.mxu0 %vm12191_vm2, %v18918_v23  ;;  %v19080_v62 = vld [vmem:[#allocation46_spill] sm:$0xff] }
 0x3fa   :  { %19079 = vst [vmem:[#allocation32_spill] sm:$0xff] %v16546_v55  ;;  %v16574_v47 = vld [vmem:[%s18883_s0 + $0x20c] sm:$0xff] }
 0x3fb   :  { %v4119_v27 = vpop.f32.mrb[146].mxu0  ;;  %v4698_v15 = vpop.f32.mrb[146].mxu1 }
 0x3fc   :  { %v16558_v16 = vadd.f32 %v4698_v15, %v19080_v62  ;;  %v11038_v52 = vpop.f32.mrb[147].mxu0  ;;  %11261 = vmatmul.mubr.msk.f32.gmra.mrb[252].mxu1 %vm188_vm1, %v16555_v0  ;;  %11443 = vmatmul.mubr.msk.f32.gmra.mrb[252].mxu0 %vm188_vm1, %v16194_v40  ;;  %v11103_v61 = vpop.f32.mrb[147].mxu1  ;;  %v16565_v41 = vadd.f32 %v4119_v27, %v16159_v25 }
 0x3fd   :  { %11263 = vmatprep.mubr.msk.f32.mxu1 %vm12191_vm2, %v18918_v23  ;;  %11445 = vmatprep.mubr.msk.f32.mxu0 %vm12191_vm2, %v18918_v23  ;;  %v19082_v52 = vld [vmem:[#allocation47_spill] sm:$0xff] }
 0x3fe   :  { %19081 = vst [vmem:[#allocation46_spill] sm:$0xff] %v16565_v41  ;;  %v16593_v61 = vld [vmem:[%s18883_s0 + $0x214] sm:$0xff] }
 0x3ff   :  { %v4124_v15 = vpop.f32.mrb[148].mxu0  ;;  %v4703_v62 = vpop.f32.mrb[148].mxu1 }
 0x400   :  { %v16577_v55 = vadd.f32 %v4703_v62, %v19082_v52  ;;  %v11041_v40 = vpop.f32.mrb[149].mxu0  ;;  %11264 = vmatmul.mubr.msk.f32.gmra.mrb[254].mxu1 %vm188_vm1, %v16574_v47  ;;  %11446 = vmatmul.mubr.msk.f32.gmra.mrb[254].mxu0 %vm188_vm1, %v16213_v32  ;;  %v11106_v25 = vpop.f32.mrb[149].mxu1  ;;  %v16584_v27 = vadd.f32 %v4124_v15, %v16178_v43 }
 0x401   :  { %11266 = vmatprep.mubr.msk.f32.mxu1 %vm12191_vm2, %v18918_v23  ;;  %11448 = vmatprep.mubr.msk.f32.mxu0 %vm12191_vm2, %v18918_v23  ;;  %v19084_v40 = vld [vmem:[#allocation48_spill] sm:$0xff] }
 0x402   :  { %19083 = vst [vmem:[#allocation47_spill] sm:$0xff] %v16584_v27  ;;  %v16612_v25 = vld [vmem:[%s18883_s0 + $0x21c] sm:$0xff] }
 0x403   :  { %v4129_v62 = vpop.f32.mrb[150].mxu0  ;;  %v4708_v52 = vpop.f32.mrb[150].mxu1 }
 0x404   :  { %v16596_v41 = vadd.f32 %v4708_v52, %v19084_v40  ;;  %v11044_v32 = vpop.f32.mrb[151].mxu0  ;;  %11267 = vmatmul.mubr.msk.f32.gmra.mrb[0].mxu1 %vm188_vm1, %v16593_v61  ;;  %11449 = vmatmul.mubr.msk.f32.gmra.mrb[0].mxu0 %vm188_vm1, %v16232_v22  ;;  %v11109_v43 = vpop.f32.mrb[151].mxu1  ;;  %v16603_v15 = vadd.f32 %v4129_v62, %v16197_v1 }
 0x405   :  { %11269 = vmatprep.mubr.msk.f32.mxu1 %vm12191_vm2, %v18918_v23  ;;  %11451 = vmatprep.mubr.msk.f32.mxu0 %vm12191_vm2, %v18918_v23  ;;  %v19086_v32 = vld [vmem:[#allocation49_spill] sm:$0xff] }
 0x406   :  { %19085 = vst [vmem:[#allocation48_spill] sm:$0xff] %v16603_v15  ;;  %v16631_v43 = vld [vmem:[%s18883_s0 + $0x224] sm:$0xff] }
 0x407   :  { %v4134_v52 = vpop.f32.mrb[152].mxu0  ;;  %v4713_v40 = vpop.f32.mrb[152].mxu1 }
 0x408   :  { %v16615_v27 = vadd.f32 %v4713_v40, %v19086_v32  ;;  %v11047_v22 = vpop.f32.mrb[153].mxu0  ;;  %11270 = vmatmul.mubr.msk.f32.gmra.mrb[2].mxu1 %vm188_vm1, %v16612_v25  ;;  %11452 = vmatmul.mubr.msk.f32.gmra.mrb[2].mxu0 %vm188_vm1, %v16251_v60  ;;  %v11112_v1 = vpop.f32.mrb[153].mxu1  ;;  %v16622_v62 = vadd.f32 %v4134_v52, %v16216_v9 }
 0x409   :  { %11272 = vmatprep.mubr.msk.f32.mxu1 %vm12191_vm2, %v18918_v23  ;;  %11454 = vmatprep.mubr.msk.f32.mxu0 %vm12191_vm2, %v18918_v23  ;;  %v19088_v22 = vld [vmem:[#allocation50_spill] sm:$0xff] }
 0x40a   :  { %19087 = vst [vmem:[#allocation49_spill] sm:$0xff] %v16622_v62  ;;  %v16650_v1 = vld [vmem:[%s18883_s0 + $0x22c] sm:$0xff] }
 0x40b   :  { %v4139_v40 = vpop.f32.mrb[154].mxu0  ;;  %v4718_v32 = vpop.f32.mrb[154].mxu1 }
 0x40c   :  { %v16634_v15 = vadd.f32 %v4718_v32, %v19088_v22  ;;  %v11050_v60 = vpop.f32.mrb[155].mxu0  ;;  %11273 = vmatmul.mubr.msk.f32.gmra.mrb[4].mxu1 %vm188_vm1, %v16631_v43  ;;  %11455 = vmatmul.mubr.msk.f32.gmra.mrb[4].mxu0 %vm188_vm1, %v16270_v39  ;;  %v11115_v9 = vpop.f32.mrb[155].mxu1  ;;  %v16641_v52 = vadd.f32 %v4139_v40, %v16235_v10 }
 0x40d   :  { %11275 = vmatprep.mubr.msk.f32.mxu1 %vm12191_vm2, %v18918_v23  ;;  %11457 = vmatprep.mubr.msk.f32.mxu0 %vm12191_vm2, %v18918_v23  ;;  %v19090_v60 = vld [vmem:[#allocation5_spill] sm:$0xff]  ;;  %v16669_v9 = vld [vmem:[%s18883_s0 + $0x234] sm:$0xff] }
 0x40e   :  { %19089 = vst [vmem:[#allocation50_spill] sm:$0xff] %v16641_v52 }
 0x40f   :  { %v4144_v32 = vpop.f32.mrb[156].mxu0  ;;  %v4723_v22 = vpop.f32.mrb[156].mxu1 }
 0x410   :  { %v16653_v62 = vadd.f32 %v4723_v22, %v19090_v60  ;;  %v11053_v39 = vpop.f32.mrb[157].mxu0  ;;  %11276 = vmatmul.mubr.msk.f32.gmra.mrb[6].mxu1 %vm188_vm1, %v16650_v1  ;;  %11458 = vmatmul.mubr.msk.f32.gmra.mrb[6].mxu0 %vm188_vm1, %v16289_v6  ;;  %v11118_v10 = vpop.f32.mrb[157].mxu1  ;;  %v16660_v40 = vadd.f32 %v4144_v32, %v16254_v58 }
 0x411   :  { %11278 = vmatprep.mubr.msk.f32.mxu1 %vm12191_vm2, %v18918_v23  ;;  %11460 = vmatprep.mubr.msk.f32.mxu0 %vm12191_vm2, %v18918_v23  ;;  %v19092_v39 = vld [vmem:[#allocation6_spill] sm:$0xff]  ;;  %v16688_v10 = vld [vmem:[%s18883_s0 + $0x23c] sm:$0xff] }
 0x412   :  { %19091 = vst [vmem:[#allocation5_spill] sm:$0xff] %v16660_v40 }
 0x413   :  { %v4149_v22 = vpop.f32.mrb[158].mxu0  ;;  %v4728_v60 = vpop.f32.mrb[158].mxu1 }
 0x414   :  { %v16672_v52 = vadd.f32 %v4728_v60, %v19092_v39  ;;  %v11056_v6 = vpop.f32.mrb[159].mxu0  ;;  %11279 = vmatmul.mubr.msk.f32.gmra.mrb[8].mxu1 %vm188_vm1, %v16669_v9  ;;  %11461 = vmatmul.mubr.msk.f32.gmra.mrb[8].mxu0 %vm188_vm1, %v16308_v12  ;;  %v11121_v58 = vpop.f32.mrb[159].mxu1  ;;  %v16679_v32 = vadd.f32 %v4149_v22, %v16273_v4 }
 0x415   :  { %11281 = vmatprep.mubr.msk.f32.mxu1 %vm12191_vm2, %v18918_v23  ;;  %11463 = vmatprep.mubr.msk.f32.mxu0 %vm12191_vm2, %v18918_v23  ;;  %v19094_v6 = vld [vmem:[#allocation7_spill] sm:$0xff]  ;;  %v16707_v58 = vld [vmem:[%s18883_s0 + $0x244] sm:$0xff] }
 0x416   :  { %19093 = vst [vmem:[#allocation6_spill] sm:$0xff] %v16679_v32 }
 0x417   :  { %v4154_v60 = vpop.f32.mrb[160].mxu0  ;;  %v4733_v39 = vpop.f32.mrb[160].mxu1 }
 0x418   :  { %v16691_v40 = vadd.f32 %v4733_v39, %v19094_v6  ;;  %v11059_v12 = vpop.f32.mrb[161].mxu0  ;;  %11282 = vmatmul.mubr.msk.f32.gmra.mrb[10].mxu1 %vm188_vm1, %v16688_v10  ;;  %11464 = vmatmul.mubr.msk.f32.gmra.mrb[10].mxu0 %vm188_vm1, %v16327_v33  ;;  %v11124_v4 = vpop.f32.mrb[161].mxu1  ;;  %v16698_v22 = vadd.f32 %v4154_v60, %v16292_v57 }
 0x419   :  { %11284 = vmatprep.mubr.msk.f32.mxu1 %vm12191_vm2, %v18918_v23  ;;  %11466 = vmatprep.mubr.msk.f32.mxu0 %vm12191_vm2, %v18918_v23  ;;  %v19096_v12 = vld [vmem:[#allocation8_spill] sm:$0xff]  ;;  %v16726_v4 = vld [vmem:[%s18883_s0 + $0x24c] sm:$0xff] }
 0x41a   :  { %19095 = vst [vmem:[#allocation7_spill] sm:$0xff] %v16698_v22 }
 0x41b   :  { %v4159_v39 = vpop.f32.mrb[162].mxu0  ;;  %v4738_v6 = vpop.f32.mrb[162].mxu1 }
 0x41c   :  { %v16710_v32 = vadd.f32 %v4738_v6, %v19096_v12  ;;  %v11062_v33 = vpop.f32.mrb[163].mxu0  ;;  %11285 = vmatmul.mubr.msk.f32.gmra.mrb[12].mxu1 %vm188_vm1, %v16707_v58  ;;  %11467 = vmatmul.mubr.msk.f32.gmra.mrb[12].mxu0 %vm188_vm1, %v16346_v24  ;;  %v11127_v57 = vpop.f32.mrb[163].mxu1  ;;  %v16717_v60 = vadd.f32 %v4159_v39, %v16311_v29 }
 0x41d   :  { %11287 = vmatprep.mubr.msk.f32.mxu1 %vm12191_vm2, %v18918_v23  ;;  %11469 = vmatprep.mubr.msk.f32.mxu0 %vm12191_vm2, %v18918_v23  ;;  %v19098_v33 = vld [vmem:[#allocation9_spill] sm:$0xff]  ;;  %v16745_v57 = vld [vmem:[%s18883_s0 + $0x254] sm:$0xff] }
 0x41e   :  { %19097 = vst [vmem:[#allocation8_spill] sm:$0xff] %v16717_v60 }
 0x41f   :  { %v4164_v6 = vpop.f32.mrb[164].mxu0  ;;  %v4743_v12 = vpop.f32.mrb[164].mxu1 }
 0x420   :  { %v16729_v22 = vadd.f32 %v4743_v12, %v19098_v33  ;;  %v11065_v24 = vpop.f32.mrb[165].mxu0  ;;  %11288 = vmatmul.mubr.msk.f32.gmra.mrb[14].mxu1 %vm188_vm1, %v16726_v4  ;;  %11470 = vmatmul.mubr.msk.f32.gmra.mrb[14].mxu0 %vm188_vm1, %v16365_v30  ;;  %v11130_v29 = vpop.f32.mrb[165].mxu1  ;;  %v16736_v39 = vadd.f32 %v4164_v6, %v16330_v14 }
 0x421   :  { %11290 = vmatprep.mubr.msk.f32.mxu1 %vm12191_vm2, %v18918_v23  ;;  %11472 = vmatprep.mubr.msk.f32.mxu0 %vm12191_vm2, %v18918_v23  ;;  %v19100_v24 = vld [vmem:[#allocation10_spill] sm:$0xff]  ;;  %v16764_v29 = vld [vmem:[%s18883_s0 + $0x25c] sm:$0xff] }
 0x422   :  { %19099 = vst [vmem:[#allocation9_spill] sm:$0xff] %v16736_v39 }
 0x423   :  { %v4169_v12 = vpop.f32.mrb[166].mxu0  ;;  %v4748_v33 = vpop.f32.mrb[166].mxu1 }
 0x424   :  { %v16748_v60 = vadd.f32 %v4748_v33, %v19100_v24  ;;  %v11068_v30 = vpop.f32.mrb[167].mxu0  ;;  %11291 = vmatmul.mubr.msk.f32.gmra.mrb[16].mxu1 %vm188_vm1, %v16745_v57  ;;  %11473 = vmatmul.mubr.msk.f32.gmra.mrb[16].mxu0 %vm188_vm1, %v16384_v36  ;;  %v11133_v14 = vpop.f32.mrb[167].mxu1  ;;  %v16755_v6 = vadd.f32 %v4169_v12, %v16349_v51 }
 0x425   :  { %11293 = vmatprep.mubr.msk.f32.mxu1 %vm12191_vm2, %v18918_v23  ;;  %11475 = vmatprep.mubr.msk.f32.mxu0 %vm12191_vm2, %v18918_v23  ;;  %v19102_v30 = vld [vmem:[#allocation11_spill] sm:$0xff]  ;;  %v16783_v14 = vld [vmem:[%s18883_s0 + $0x264] sm:$0xff] }
 0x426   :  { %19101 = vst [vmem:[#allocation10_spill] sm:$0xff] %v16755_v6 }
 0x427   :  { %v4174_v33 = vpop.f32.mrb[168].mxu0  ;;  %v4753_v24 = vpop.f32.mrb[168].mxu1 }
 0x428   :  { %v16767_v39 = vadd.f32 %v4753_v24, %v19102_v30  ;;  %v11071_v36 = vpop.f32.mrb[169].mxu0  ;;  %11294 = vmatmul.mubr.msk.f32.gmra.mrb[18].mxu1 %vm188_vm1, %v16764_v29  ;;  %11476 = vmatmul.mubr.msk.f32.gmra.mrb[18].mxu0 %vm188_vm1, %v16403_v42  ;;  %v11136_v51 = vpop.f32.mrb[169].mxu1  ;;  %v16774_v12 = vadd.f32 %v4174_v33, %v16368_v19 }
 0x429   :  { %11296 = vmatprep.mubr.msk.f32.mxu1 %vm12191_vm2, %v18918_v23  ;;  %11478 = vmatprep.mubr.msk.f32.mxu0 %vm12191_vm2, %v18918_v23  ;;  %v19104_v36 = vld [vmem:[#allocation12_spill] sm:$0xff]  ;;  %v16802_v51 = vld [vmem:[%s18883_s0 + $0x26c] sm:$0xff] }
 0x42a   :  { %19103 = vst [vmem:[#allocation11_spill] sm:$0xff] %v16774_v12 }
 0x42b   :  { %v4758_v24 = vpop.f32.mrb[170].mxu1  ;;  %v5532_v30 = vpop.f32.mrb[170].mxu0 }
 0x42c   :  { %v16786_v6 = vadd.f32 %v4758_v24, %v19104_v36  ;;  %11297 = vmatmul.mubr.msk.f32.gmra.mrb[20].mxu1 %vm188_vm1, %v16783_v14  ;;  %v11321_v19 = vpop.f32.mrb[171].mxu0  ;;  %11479 = vmatmul.mubr.msk.f32.gmra.mrb[20].mxu0 %vm188_vm1, %v16422_v31  ;;  %v11139_v42 = vpop.f32.mrb[171].mxu1  ;;  %v16793_v33 = vadd.f32 %v5532_v30, %v16387_v38 }
 0x42d   :  { %11299 = vmatprep.mubr.msk.f32.mxu1 %vm12191_vm2, %v18918_v23  ;;  %11481 = vmatprep.mubr.msk.f32.mxu0 %vm12191_vm2, %v18918_v23  ;;  %v19106_v19 = vld [vmem:[#allocation13_spill] sm:$0xff]  ;;  %v16821_v42 = vld [vmem:[%s18883_s0 + $0x274] sm:$0xff] }
 0x42e   :  { %19105 = vst [vmem:[#allocation12_spill] sm:$0xff] %v16793_v33 }
 0x42f   :  { %v4763_v24 = vpop.f32.mrb[172].mxu1  ;;  %v5537_v36 = vpop.f32.mrb[172].mxu0 }
 0x430   :  { %v16805_v12 = vadd.f32 %v4763_v24, %v19106_v19  ;;  %11300 = vmatmul.mubr.msk.f32.gmra.mrb[22].mxu1 %vm188_vm1, %v16802_v51  ;;  %v11324_v38 = vpop.f32.mrb[173].mxu0  ;;  %11482 = vmatmul.mubr.msk.f32.gmra.mrb[22].mxu0 %vm188_vm1, %v16441_v18  ;;  %v11142_v31 = vpop.f32.mrb[173].mxu1  ;;  %v16812_v30 = vadd.f32 %v5537_v36, %v16406_v53 }
 0x431   :  { %11302 = vmatprep.mubr.msk.f32.mxu1 %vm12191_vm2, %v18918_v23  ;;  %11484 = vmatprep.mubr.msk.f32.mxu0 %vm12191_vm2, %v18918_v23  ;;  %v19108_v38 = vld [vmem:[#allocation14_spill] sm:$0xff]  ;;  %v16840_v31 = vld [vmem:[%s18883_s0 + $0x27c] sm:$0xff] }
 0x432   :  { %19107 = vst [vmem:[#allocation13_spill] sm:$0xff] %v16812_v30 }
 0x433   :  { %v4768_v24 = vpop.f32.mrb[174].mxu1  ;;  %v5542_v19 = vpop.f32.mrb[174].mxu0 }
 0x434   :  { %v16824_v33 = vadd.f32 %v4768_v24, %v19108_v38  ;;  %11303 = vmatmul.mubr.msk.f32.gmra.mrb[24].mxu1 %vm188_vm1, %v16821_v42  ;;  %v11327_v53 = vpop.f32.mrb[175].mxu0  ;;  %11485 = vmatmul.mubr.msk.f32.gmra.mrb[24].mxu0 %vm188_vm1, %v16460_v3  ;;  %v11145_v18 = vpop.f32.mrb[175].mxu1  ;;  %v16831_v36 = vadd.f32 %v5542_v19, %v16425_v49 }
 0x435   :  { %11305 = vmatprep.mubr.msk.f32.mxu1 %vm12191_vm2, %v18918_v23  ;;  %11487 = vmatprep.mubr.msk.f32.mxu0 %vm12191_vm2, %v18918_v23  ;;  %v19110_v53 = vld [vmem:[#allocation15_spill] sm:$0xff]  ;;  %v16859_v18 = vld [vmem:[%s18883_s0 + $0x284] sm:$0xff] }
 0x436   :  { %19109 = vst [vmem:[#allocation14_spill] sm:$0xff] %v16831_v36 }
 0x437   :  { %v4773_v24 = vpop.f32.mrb[176].mxu1  ;;  %v5547_v38 = vpop.f32.mrb[176].mxu0 }
 0x438   :  { %v16843_v30 = vadd.f32 %v4773_v24, %v19110_v53  ;;  %11306 = vmatmul.mubr.msk.f32.gmra.mrb[26].mxu1 %vm188_vm1, %v16840_v31  ;;  %v11330_v49 = vpop.f32.mrb[177].mxu0  ;;  %11488 = vmatmul.mubr.msk.f32.gmra.mrb[26].mxu0 %vm188_vm1, %v16479_v11  ;;  %v11148_v3 = vpop.f32.mrb[177].mxu1  ;;  %v16850_v19 = vadd.f32 %v5547_v38, %v16444_v2 }
 0x439   :  { %11308 = vmatprep.mubr.msk.f32.mxu1 %vm12191_vm2, %v18918_v23  ;;  %11490 = vmatprep.mubr.msk.f32.mxu0 %vm12191_vm2, %v18918_v23  ;;  %v19112_v49 = vld [vmem:[#allocation16_spill] sm:$0xff]  ;;  %v16878_v3 = vld [vmem:[%s18883_s0 + $0x28c] sm:$0xff] }
 0x43a   :  { %19111 = vst [vmem:[#allocation15_spill] sm:$0xff] %v16850_v19 }
 0x43b   :  { %v4778_v24 = vpop.f32.mrb[178].mxu1  ;;  %v5552_v53 = vpop.f32.mrb[178].mxu0 }
 0x43c   :  { %v16862_v36 = vadd.f32 %v4778_v24, %v19112_v49  ;;  %11309 = vmatmul.mubr.msk.f32.gmra.mrb[28].mxu1 %vm188_vm1, %v16859_v18  ;;  %v11333_v2 = vpop.f32.mrb[179].mxu0  ;;  %11491 = vmatmul.mubr.msk.f32.gmra.mrb[28].mxu0 %vm188_vm1, %v16498_v21  ;;  %v11151_v11 = vpop.f32.mrb[179].mxu1  ;;  %v16869_v38 = vadd.f32 %v5552_v53, %v16463_v20 }
 0x43d   :  { %11311 = vmatprep.mubr.msk.f32.mxu1 %vm12191_vm2, %v18918_v23  ;;  %11493 = vmatprep.mubr.msk.f32.mxu0 %vm12191_vm2, %v18918_v23  ;;  %v19114_v2 = vld [vmem:[#allocation17_spill] sm:$0xff]  ;;  %v16897_v11 = vld [vmem:[%s18883_s0 + $0x294] sm:$0xff] }
 0x43e   :  { %19113 = vst [vmem:[#allocation16_spill] sm:$0xff] %v16869_v38 }
 0x43f   :  { %v4783_v24 = vpop.f32.mrb[180].mxu1  ;;  %v5557_v49 = vpop.f32.mrb[180].mxu0 }
 0x440   :  { %v16881_v19 = vadd.f32 %v4783_v24, %v19114_v2  ;;  %11312 = vmatmul.mubr.msk.f32.gmra.mrb[30].mxu1 %vm188_vm1, %v16878_v3  ;;  %v11336_v20 = vpop.f32.mrb[181].mxu0  ;;  %11494 = vmatmul.mubr.msk.f32.gmra.mrb[30].mxu0 %vm188_vm1, %v16517_v26  ;;  %v11154_v21 = vpop.f32.mrb[181].mxu1  ;;  %v16888_v53 = vadd.f32 %v5557_v49, %v16482_v8 }
 0x441   :  { %11314 = vmatprep.mubr.msk.f32.mxu1 %vm12191_vm2, %v18918_v23  ;;  %11496 = vmatprep.mubr.msk.f32.mxu0 %vm12191_vm2, %v18918_v23  ;;  %v19116_v20 = vld [vmem:[#allocation18_spill] sm:$0xff] }
 0x442   :  { %19115 = vst [vmem:[#allocation17_spill] sm:$0xff] %v16888_v53  ;;  %v6017_v21 = vld [vmem:[%s18883_s0 + $0x25] sm:$0xff] }
 0x443   :  { %v4788_v24 = vpop.f32.mrb[182].mxu1  ;;  %v5562_v2 = vpop.f32.mrb[182].mxu0 }
 0x444   :  { %v16900_v38 = vadd.f32 %v4788_v24, %v19116_v20  ;;  %11315 = vmatmul.mubr.msk.f32.gmra.mrb[32].mxu1 %vm188_vm1, %v16897_v11  ;;  %v11339_v8 = vpop.f32.mrb[183].mxu0  ;;  %11497 = vmatmul.mubr.msk.f32.gmra.mrb[32].mxu0 %vm188_vm1, %v16536_v7  ;;  %v11157_v26 = vpop.f32.mrb[183].mxu1  ;;  %v16907_v49 = vadd.f32 %v5562_v2, %v16501_v5 }
 0x445   :  { %11499 = vmatprep.mubr.msk.f32.mxu0 %vm12191_vm2, %v18918_v23  ;;  %11564 = vmatprep.mubr.msk.f32.mxu1 %vm12191_vm2, %v18918_v23  ;;  %v19117_v8 = vld [vmem:[#allocation19_spill] sm:$0xff] }
 0x446   :  { %v6018_v26 = vld [vmem:[%s18883_s0 + $0x2d] sm:$0xff] }
 0x447   :  { %v4793_v24 = vpop.f32.mrb[184].mxu1  ;;  %v5567_v20 = vpop.f32.mrb[184].mxu0 }
 0x448   :  { %v16917_v53 = vadd.f32 %v4793_v24, %v19117_v8  ;;  %v11342_v7 = vpop.f32.mrb[185].mxu0  ;;  %11500 = vmatmul.mubr.msk.f32.gmra.mrb[34].mxu0 %vm188_vm1, %v16555_v0  ;;  %11565 = vmatmul.mubr.msk.f32.vlgmr.msra.gmra.mrb[34].mxu1 %vm188_vm1, %v6017_v21  ;;  %v11160_v5 = vpop.f32.mrb[185].mxu1  ;;  %v16923_v2 = vadd.f32 %v5567_v20, %v16520_v37 }
 0x449   :  { %11502 = vmatprep.mubr.msk.f32.mxu0 %vm12191_vm2, %v18918_v23  ;;  %11567 = vmatprep.mubr.msk.f32.mxu1 %vm12191_vm2, %v18918_v23  ;;  %v19118_v7 = vld [vmem:[#allocation20_spill] sm:$0xff] }
 0x44a   :  { %v6019_v5 = vld [vmem:[%s18883_s0 + $0x35] sm:$0xff] }
 0x44b   :  { %v4798_v24 = vpop.f32.mrb[186].mxu1  ;;  %v5572_v8 = vpop.f32.mrb[186].mxu0 }
 0x44c   :  { %v16933_v0 = vadd.f32 %v4798_v24, %v19118_v7  ;;  %v11345_v21 = vpop.f32.mrb[187].mxu0  ;;  %11503 = vmatmul.mubr.msk.f32.gmra.mrb[36].mxu0 %vm188_vm1, %v16574_v47  ;;  %11568 = vmatmul.mubr.msk.f32.gmra.mrb[36].mxu1 %vm188_vm1, %v6018_v26  ;;  %v11163_v37 = vpop.f32.mrb[187].mxu1  ;;  %v16939_v20 = vadd.f32 %v5572_v8, %v16539_v34 }
 0x44d   :  { %11505 = vmatprep.mubr.msk.f32.mxu0 %vm12191_vm2, %v18918_v23  ;;  %11570 = vmatprep.mubr.msk.f32.mxu1 %vm12191_vm2, %v18918_v23  ;;  %v19119_v21 = vld [vmem:[#allocation51_spill] sm:$0xff]  ;;  %v6020_v37 = vld [vmem:[%s18883_s0 + $0x3d] sm:$0xff] }
 0x44f   :  { %v4803_v24 = vpop.f32.mrb[188].mxu1  ;;  %v5577_v7 = vpop.f32.mrb[188].mxu0 }
 0x450   :  { %v16949_v47 = vadd.f32 %v4803_v24, %v19119_v21  ;;  %v11348_v26 = vpop.f32.mrb[189].mxu0  ;;  %11506 = vmatmul.mubr.msk.f32.gmra.mrb[38].mxu0 %vm188_vm1, %v16593_v61  ;;  %11571 = vmatmul.mubr.msk.f32.gmra.mrb[38].mxu1 %vm188_vm1, %v6019_v5  ;;  %v11166_v34 = vpop.f32.mrb[189].mxu1  ;;  %v16955_v8 = vadd.f32 %v5577_v7, %v16558_v16 }
 0x451   :  { %11508 = vmatprep.mubr.msk.f32.mxu0 %vm12191_vm2, %v18918_v23  ;;  %11573 = vmatprep.mubr.msk.f32.mxu1 %vm12191_vm2, %v18918_v23 }
 0x453   :  { %v4808_v24 = vpop.f32.mrb[190].mxu1  ;;  %v5582_v21 = vpop.f32.mrb[190].mxu0 }
 0x454   :  { %v16965_v61 = vadd.f32 %v4808_v24, %v15839_v59  ;;  %v11351_v5 = vpop.f32.mrb[191].mxu0  ;;  %11509 = vmatmul.mubr.msk.f32.gmra.mrb[40].mxu0 %vm188_vm1, %v16612_v25  ;;  %11574 = vmatmul.mubr.msk.f32.gmra.mrb[40].mxu1 %vm188_vm1, %v6020_v37  ;;  %v11169_v16 = vpop.f32.mrb[191].mxu1  ;;  %v16971_v7 = vadd.f32 %v5582_v21, %v16577_v55  ;;  %v6021_v59 = vld [vmem:[%s18883_s0 + $0x45] sm:$0xff] }
 0x455   :  { %11511 = vmatprep.mubr.msk.f32.mxu0 %vm12191_vm2, %v18918_v23  ;;  %11576 = vmatprep.mubr.msk.f32.mxu1 %vm12191_vm2, %v18918_v23  ;;  %v19120_v16 = vld [vmem:[#allocation22_spill] sm:$0xff] }
 0x457   :  { %v4813_v26 = vpop.f32.mrb[192].mxu1  ;;  %v5587_v34 = vpop.f32.mrb[192].mxu0 }
 0x458   :  { %v16981_v25 = vadd.f32 %v4813_v26, %v15858_v50  ;;  %v11354_v37 = vpop.f32.mrb[193].mxu0  ;;  %11512 = vmatmul.mubr.msk.f32.gmra.mrb[42].mxu0 %vm188_vm1, %v16631_v43  ;;  %11577 = vmatmul.mubr.msk.f32.gmra.mrb[42].mxu1 %vm188_vm1, %v6021_v59  ;;  %v11172_v55 = vpop.f32.mrb[193].mxu1  ;;  %v16987_v24 = vadd.f32 %v5587_v34, %v16596_v41  ;;  %v6022_v50 = vld [vmem:[%s18883_s0 + $0x4d] sm:$0xff]  ;;  %v6023_v34 = vld [vmem:[%s18883_s0 + $0x55] sm:$0xff] }
 0x459   :  { %11514 = vmatprep.mubr.msk.f32.mxu0 %vm12191_vm2, %v18918_v23  ;;  %11579 = vmatprep.mubr.msk.f32.mxu1 %vm12191_vm2, %v18918_v23 }
 0x45b   :  { %v4818_v21 = vpop.f32.mrb[194].mxu1  ;;  %v5592_v5 = vpop.f32.mrb[194].mxu0 }
 0x45c   :  { %v16997_v43 = vadd.f32 %v4818_v21, %v19120_v16  ;;  %v11357_v59 = vpop.f32.mrb[195].mxu0  ;;  %11515 = vmatmul.mubr.msk.f32.gmra.mrb[44].mxu0 %vm188_vm1, %v16650_v1  ;;  %11580 = vmatmul.mubr.msk.f32.gmra.mrb[44].mxu1 %vm188_vm1, %v6022_v50  ;;  %v11175_v41 = vpop.f32.mrb[195].mxu1  ;;  %v17003_v26 = vadd.f32 %v5592_v5, %v16615_v27  ;;  %v19121_v1 = vld [vmem:[#allocation23_spill] sm:$0xff]  ;;  %v6024_v16 = vld [vmem:[%s18883_s0 + $0x5d] sm:$0xff] }
 0x45d   :  { %11517 = vmatprep.mubr.msk.f32.mxu0 %vm12191_vm2, %v18918_v23  ;;  %11582 = vmatprep.mubr.msk.f32.mxu1 %vm12191_vm2, %v18918_v23 }
 0x45f   :  { %v4823_v37 = vpop.f32.mrb[196].mxu1  ;;  %v5597_v55 = vpop.f32.mrb[196].mxu0 }
 0x460   :  { %v11360_v21 = vpop.f32.mrb[197].mxu0  ;;  %11518 = vmatmul.mubr.msk.f32.gmra.mrb[46].mxu0 %vm188_vm1, %v16669_v9  ;;  %11583 = vmatmul.mubr.msk.f32.gmra.mrb[46].mxu1 %vm188_vm1, %v6023_v34  ;;  %v11178_v27 = vpop.f32.mrb[197].mxu1  ;;  %v17016_v50 = vadd.f32 %v4823_v37, %v19121_v1  ;;  %v17019_v5 = vadd.f32 %v5597_v55, %v16634_v15  ;;  %v19122_v34 = vld [vmem:[#allocation24_spill] sm:$0xff] }
 0x461   :  { %11520 = vmatprep.mubr.msk.f32.mxu0 %vm12191_vm2, %v18918_v23  ;;  %11585 = vmatprep.mubr.msk.f32.mxu1 %vm12191_vm2, %v18918_v23  ;;  %v6025_v21 = vld [vmem:[%s18883_s0 + $0x65] sm:$0xff] }
 0x463   :  { %v4828_v9 = vpop.f32.mrb[198].mxu1  ;;  %v5602_v59 = vpop.f32.mrb[198].mxu0 }
 0x464   :  { %v11363_v41 = vpop.f32.mrb[199].mxu0  ;;  %11521 = vmatmul.mubr.msk.f32.gmra.mrb[48].mxu0 %vm188_vm1, %v16688_v10  ;;  %11586 = vmatmul.mubr.msk.f32.gmra.mrb[48].mxu1 %vm188_vm1, %v6024_v16  ;;  %v11181_v15 = vpop.f32.mrb[199].mxu1  ;;  %v17032_v37 = vadd.f32 %v4828_v9, %v19122_v34  ;;  %v17035_v55 = vadd.f32 %v5602_v59, %v16653_v62  ;;  %v19123_v16 = vld [vmem:[#allocation25_spill] sm:$0xff] }
 0x465   :  { %11523 = vmatprep.mubr.msk.f32.mxu0 %vm12191_vm2, %v18918_v23  ;;  %11588 = vmatprep.mubr.msk.f32.mxu1 %vm12191_vm2, %v18918_v23  ;;  %v6026_v41 = vld [vmem:[%s18883_s0 + $0x6d] sm:$0xff] }
 0x467   :  { %v4833_v10 = vpop.f32.mrb[200].mxu1  ;;  %v5607_v27 = vpop.f32.mrb[200].mxu0 }
 0x468   :  { %v11366_v1 = vpop.f32.mrb[201].mxu0  ;;  %11524 = vmatmul.mubr.msk.f32.gmra.mrb[50].mxu0 %vm188_vm1, %v16707_v58  ;;  %11589 = vmatmul.mubr.msk.f32.gmra.mrb[50].mxu1 %vm188_vm1, %v6025_v21  ;;  %v11184_v62 = vpop.f32.mrb[201].mxu1  ;;  %v17048_v9 = vadd.f32 %v4833_v10, %v19123_v16  ;;  %v17051_v59 = vadd.f32 %v5607_v27, %v16672_v52  ;;  %v19124_v21 = vld [vmem:[#allocation26_spill] sm:$0xff] }
 0x469   :  { %11526 = vmatprep.mubr.msk.f32.mxu0 %vm12191_vm2, %v18918_v23  ;;  %11591 = vmatprep.mubr.msk.f32.mxu1 %vm12191_vm2, %v18918_v23  ;;  %v6027_v1 = vld [vmem:[%s18883_s0 + $0x75] sm:$0xff] }
 0x46b   :  { %v4838_v58 = vpop.f32.mrb[202].mxu1  ;;  %v5612_v15 = vpop.f32.mrb[202].mxu0 }
 0x46c   :  { %v11369_v34 = vpop.f32.mrb[203].mxu0  ;;  %11527 = vmatmul.mubr.msk.f32.gmra.mrb[52].mxu0 %vm188_vm1, %v16726_v4  ;;  %11592 = vmatmul.mubr.msk.f32.gmra.mrb[52].mxu1 %vm188_vm1, %v6026_v41  ;;  %v11187_v52 = vpop.f32.mrb[203].mxu1  ;;  %v17064_v10 = vadd.f32 %v4838_v58, %v19124_v21  ;;  %v17067_v27 = vadd.f32 %v5612_v15, %v16691_v40 }
 0x46d   :  { %11529 = vmatprep.mubr.msk.f32.mxu0 %vm12191_vm2, %v18918_v23  ;;  %11594 = vmatprep.mubr.msk.f32.mxu1 %vm12191_vm2, %v18918_v23 }
 0x46f   :  { %v4843_v4 = vpop.f32.mrb[204].mxu1  ;;  %v5617_v62 = vpop.f32.mrb[204].mxu0 }
 0x470   :  { %v17077_v16 = vadd.f32 %v4843_v4, %v15976_v63  ;;  %v11372_v41 = vpop.f32.mrb[205].mxu0  ;;  %11530 = vmatmul.mubr.msk.f32.gmra.mrb[54].mxu0 %vm188_vm1, %v16745_v57  ;;  %11595 = vmatmul.mubr.msk.f32.gmra.mrb[54].mxu1 %vm188_vm1, %v6027_v1  ;;  %v11190_v40 = vpop.f32.mrb[205].mxu1  ;;  %v17083_v58 = vadd.f32 %v5617_v62, %v16710_v32  ;;  %v6028_v63 = vld [vmem:[%s18883_s0 + $0x7d] sm:$0xff] }
 0x471   :  { %11532 = vmatprep.mubr.msk.f32.mxu0 %vm12191_vm2, %v18918_v23  ;;  %11597 = vmatprep.mubr.msk.f32.mxu1 %vm12191_vm2, %v18918_v23 }
 0x473   :  { %v4848_v15 = vpop.f32.mrb[206].mxu1  ;;  %v5622_v34 = vpop.f32.mrb[206].mxu0 }
 0x474   :  { %v17093_v57 = vadd.f32 %v4848_v15, %v15995_v46  ;;  %v11375_v52 = vpop.f32.mrb[207].mxu0  ;;  %11533 = vmatmul.mubr.msk.f32.gmra.mrb[56].mxu0 %vm188_vm1, %v16764_v29  ;;  %11598 = vmatmul.mubr.msk.f32.gmra.mrb[56].mxu1 %vm188_vm1, %v6028_v63  ;;  %v11193_v32 = vpop.f32.mrb[207].mxu1  ;;  %v17099_v21 = vadd.f32 %v5622_v34, %v16729_v22  ;;  %v6029_v46 = vld [vmem:[%s18883_s0 + $0x85] sm:$0xff] }
 0x475   :  { %11535 = vmatprep.mubr.msk.f32.mxu0 %vm12191_vm2, %v18918_v23  ;;  %11600 = vmatprep.mubr.msk.f32.mxu1 %vm12191_vm2, %v18918_v23 }
 0x477   :  { %v4853_v1 = vpop.f32.mrb[208].mxu1  ;;  %v5627_v4 = vpop.f32.mrb[208].mxu0 }
 0x478   :  { %v17109_v29 = vadd.f32 %v4853_v1, %v16014_v48  ;;  %v11378_v62 = vpop.f32.mrb[209].mxu0  ;;  %11536 = vmatmul.mubr.msk.f32.gmra.mrb[58].mxu0 %vm188_vm1, %v16783_v14  ;;  %11601 = vmatmul.mubr.msk.f32.gmra.mrb[58].mxu1 %vm188_vm1, %v6029_v46  ;;  %v11196_v22 = vpop.f32.mrb[209].mxu1  ;;  %v17115_v41 = vadd.f32 %v5627_v4, %v16748_v60  ;;  %v6030_v48 = vld [vmem:[%s18883_s0 + $0x8d] sm:$0xff] }
 0x479   :  { %11538 = vmatprep.mubr.msk.f32.mxu0 %vm12191_vm2, %v18918_v23  ;;  %11603 = vmatprep.mubr.msk.f32.mxu1 %vm12191_vm2, %v18918_v23 }
 0x47b   :  { %v4858_v40 = vpop.f32.mrb[210].mxu1  ;;  %v5632_v63 = vpop.f32.mrb[210].mxu0 }
 0x47c   :  { %v17125_v14 = vadd.f32 %v4858_v40, %v16033_v35  ;;  %v11381_v15 = vpop.f32.mrb[211].mxu0  ;;  %11539 = vmatmul.mubr.msk.f32.gmra.mrb[60].mxu0 %vm188_vm1, %v16802_v51  ;;  %11604 = vmatmul.mubr.msk.f32.gmra.mrb[60].mxu1 %vm188_vm1, %v6030_v48  ;;  %v11199_v60 = vpop.f32.mrb[211].mxu1  ;;  %v17131_v34 = vadd.f32 %v5632_v63, %v16767_v39  ;;  %v6031_v35 = vld [vmem:[%s18883_s0 + $0x95] sm:$0xff] }
 0x47d   :  { %11541 = vmatprep.mubr.msk.f32.mxu0 %vm12191_vm2, %v18918_v23  ;;  %11606 = vmatprep.mubr.msk.f32.mxu1 %vm12191_vm2, %v18918_v23 }
 0x47f   :  { %v4863_v52 = vpop.f32.mrb[212].mxu1  ;;  %v5637_v32 = vpop.f32.mrb[212].mxu0 }
 0x480   :  { %v17141_v51 = vadd.f32 %v4863_v52, %v16052_v56  ;;  %v11384_v46 = vpop.f32.mrb[213].mxu0  ;;  %11542 = vmatmul.mubr.msk.f32.gmra.mrb[62].mxu0 %vm188_vm1, %v16821_v42  ;;  %11607 = vmatmul.mubr.msk.f32.gmra.mrb[62].mxu1 %vm188_vm1, %v6031_v35  ;;  %v11202_v39 = vpop.f32.mrb[213].mxu1  ;;  %v17147_v1 = vadd.f32 %v5637_v32, %v16786_v6  ;;  %v6032_v56 = vld [vmem:[%s18883_s0 + $0x9d] sm:$0xff] }
 0x481   :  { %11544 = vmatprep.mubr.msk.f32.mxu0 %vm12191_vm2, %v18918_v23  ;;  %11609 = vmatprep.mubr.msk.f32.mxu1 %vm12191_vm2, %v18918_v23 }
 0x483   :  { %v4868_v4 = vpop.f32.mrb[214].mxu1  ;;  %v5642_v62 = vpop.f32.mrb[214].mxu0 }
 0x484   :  { %v17157_v42 = vadd.f32 %v4868_v4, %v16071_v28  ;;  %v11387_v22 = vpop.f32.mrb[215].mxu0  ;;  %11545 = vmatmul.mubr.msk.f32.gmra.mrb[64].mxu0 %vm188_vm1, %v16840_v31  ;;  %11610 = vmatmul.mubr.msk.f32.gmra.mrb[64].mxu1 %vm188_vm1, %v6032_v56  ;;  %v11205_v6 = vpop.f32.mrb[215].mxu1  ;;  %v17163_v48 = vadd.f32 %v5642_v62, %v16805_v12  ;;  %v6033_v28 = vld [vmem:[%s18883_s0 + $0xa5] sm:$0xff] }
 0x485   :  { %11547 = vmatprep.mubr.msk.f32.mxu0 %vm12191_vm2, %v18918_v23  ;;  %11612 = vmatprep.mubr.msk.f32.mxu1 %vm12191_vm2, %v18918_v23 }
 0x487   :  { %v4873_v40 = vpop.f32.mrb[216].mxu1  ;;  %v5647_v63 = vpop.f32.mrb[216].mxu0 }
 0x488   :  { %v17173_v31 = vadd.f32 %v4873_v40, %v16090_v45  ;;  %v11390_v15 = vpop.f32.mrb[217].mxu0  ;;  %11548 = vmatmul.mubr.msk.f32.gmra.mrb[66].mxu0 %vm188_vm1, %v16859_v18  ;;  %11613 = vmatmul.mubr.msk.f32.gmra.mrb[66].mxu1 %vm188_vm1, %v6033_v28  ;;  %v11208_v12 = vpop.f32.mrb[217].mxu1  ;;  %v17179_v60 = vadd.f32 %v5647_v63, %v16824_v33  ;;  %v6034_v45 = vld [vmem:[%s18883_s0 + $0xad] sm:$0xff] }
 0x489   :  { %11550 = vmatprep.mubr.msk.f32.mxu0 %vm12191_vm2, %v18918_v23  ;;  %11615 = vmatprep.mubr.msk.f32.mxu1 %vm12191_vm2, %v18918_v23  ;;  %v6037_v15 = vld [vmem:[%s18883_s0 + $0xc5] sm:$0xff] }
 0x48b   :  { %v4878_v35 = vpop.f32.mrb[218].mxu1  ;;  %v5652_v52 = vpop.f32.mrb[218].mxu0 }
 0x48c   :  { %v17189_v18 = vadd.f32 %v4878_v35, %v16109_v17  ;;  %v11393_v32 = vpop.f32.mrb[219].mxu0  ;;  %11551 = vmatmul.mubr.msk.f32.gmra.mrb[68].mxu0 %vm188_vm1, %v16878_v3  ;;  %11616 = vmatmul.mubr.msk.f32.gmra.mrb[68].mxu1 %vm188_vm1, %v6034_v45  ;;  %v11211_v33 = vpop.f32.mrb[219].mxu1  ;;  %v17195_v46 = vadd.f32 %v5652_v52, %v16843_v30  ;;  %v6035_v17 = vld [vmem:[%s18883_s0 + $0xb5] sm:$0xff] }
 0x48d   :  { %11553 = vmatprep.mubr.msk.f32.mxu0 %vm12191_vm2, %v18918_v23  ;;  %11618 = vmatprep.mubr.msk.f32.mxu1 %vm12191_vm2, %v18918_v23  ;;  %v6896_v33 = vld [vmem:[%s18883_s0 + $0x26] sm:$0xff] }
 0x48f   :  { %v4883_v39 = vpop.f32.mrb[220].mxu1  ;;  %v5657_v56 = vpop.f32.mrb[220].mxu0 }
 0x490   :  { %v17205_v3 = vadd.f32 %v4883_v39, %v16128_v54  ;;  %v11396_v4 = vpop.f32.mrb[221].mxu0  ;;  %11554 = vmatmul.mubr.msk.f32.gmra.mrb[70].mxu0 %vm188_vm1, %v16897_v11  ;;  %11619 = vmatmul.mubr.msk.f32.gmra.mrb[70].mxu1 %vm188_vm1, %v6035_v17  ;;  %v11214_v30 = vpop.f32.mrb[221].mxu1  ;;  %v17211_v62 = vadd.f32 %v5657_v56, %v16862_v36  ;;  %v5217_v54 = vld [vmem:[%s18883_s0 + $0x29c] sm:$0xff]  ;;  %v19125_v56 = vld [vmem:[#allocation27_spill] sm:$0xff] }
 0x491   :  { %11556 = vmatprep.mubr.msk.f32.mxu0 %vm12191_vm2, %v18918_v23  ;;  %11621 = vmatprep.mubr.msk.f32.mxu1 %vm12191_vm2, %v18918_v23  ;;  %v6036_v11 = vld [vmem:[%s18883_s0 + $0xbd] sm:$0xff] }
 0x493   :  { %v4888_v22 = vpop.f32.mrb[222].mxu1  ;;  %v5662_v6 = vpop.f32.mrb[222].mxu0 }
 0x494   :  { %v17224_v28 = vadd.f32 %v4888_v22, %v16147_v44  ;;  %v11399_v36 = vpop.f32.mrb[223].mxu0  ;;  %11557 = vmatmul.mubr.msk.f32.gmra.mrb[72].mxu0 %vm188_vm1, %v5217_v54  ;;  %11622 = vmatmul.mubr.msk.f32.gmra.mrb[72].mxu1 %vm188_vm1, %v6036_v11  ;;  %v11217_v40 = vpop.f32.mrb[223].mxu1  ;;  %v17229_v63 = vadd.f32 %v5662_v6, %v16881_v19  ;;  %v5218_v44 = vld [vmem:[%s18883_s0 + $0x2a4] sm:$0xff]  ;;  %v6039_v11 = vld [vmem:[%s18883_s0 + $0xd5] sm:$0xff] }
 0x495   :  { %11559 = vmatprep.mubr.msk.f32.mxu0 %vm12191_vm2, %v18918_v23  ;;  %11624 = vmatprep.mubr.msk.f32.mxu1 %vm12191_vm2, %v18918_v23  ;;  %v6897_v22 = vld [vmem:[%s18883_s0 + $0x2e] sm:$0xff]  ;;  %v19126_v40 = vld [vmem:[#allocation28_spill] sm:$0xff] }
 0x497   :  { %v4893_v12 = vpop.f32.mrb[224].mxu1  ;;  %v5667_v45 = vpop.f32.mrb[224].mxu0 }
 0x498   :  { %v17242_v35 = vadd.f32 %v4893_v12, %v16166_v13  ;;  %v11402_v19 = vpop.f32.mrb[225].mxu0  ;;  %11560 = vmatmul.mubr.msk.f32.gmra.mrb[74].mxu0 %vm188_vm1, %v5218_v44  ;;  %11625 = vmatmul.mubr.msk.f32.gmra.mrb[74].mxu1 %vm188_vm1, %v6037_v15  ;;  %v11220_v52 = vpop.f32.mrb[225].mxu1  ;;  %v17247_v32 = vadd.f32 %v5667_v45, %v16900_v38  ;;  %v6038_v13 = vld [vmem:[%s18883_s0 + $0xcd] sm:$0xff]  ;;  %v6040_v45 = vld [vmem:[%s18883_s0 + $0xdd] sm:$0xff] }
 0x499   :  { %11627 = vmatprep.mubr.msk.f32.mxu1 %vm12191_vm2, %v18918_v23  ;;  %11809 = vmatprep.mubr.msk.f32.mxu0 %vm12191_vm2, %v18918_v23  ;;  %v6898_v19 = vld [vmem:[%s18883_s0 + $0x36] sm:$0xff] }
 0x49b   :  { %v4898_v17 = vpop.f32.mrb[226].mxu1  ;;  %v5672_v39 = vpop.f32.mrb[226].mxu0 }
 0x49c   :  { %v17260_v4 = vadd.f32 %v4898_v17, %v19125_v56  ;;  %v11405_v38 = vpop.f32.mrb[227].mxu0  ;;  %11628 = vmatmul.mubr.msk.f32.gmra.mrb[76].mxu1 %vm188_vm1, %v6038_v13  ;;  %11810 = vmatmul.mubr.msk.f32.vlgmr.msra.gmra.mrb[76].mxu0 %vm188_vm1, %v6896_v33  ;;  %v11223_v30 = vpop.f32.mrb[227].mxu1  ;;  %v17265_v54 = vadd.f32 %v5672_v39, %v16917_v53  ;;  %v19127_v33 = vld [vmem:[#allocation21_spill] sm:$0xff] }
 0x49d   :  { %11630 = vmatprep.mubr.msk.f32.mxu1 %vm12191_vm2, %v18918_v23  ;;  %11812 = vmatprep.mubr.msk.f32.mxu0 %vm12191_vm2, %v18918_v23  ;;  %v6041_v38 = vld [vmem:[%s18883_s0 + $0xe5] sm:$0xff] }
 0x49e   :  { %v6899_v30 = vld [vmem:[%s18883_s0 + $0x3e] sm:$0xff] }
 0x49f   :  { %v4903_v6 = vpop.f32.mrb[228].mxu1  ;;  %v5677_v36 = vpop.f32.mrb[228].mxu0 }
 0x4a0   :  { %v17278_v44 = vadd.f32 %v4903_v6, %v19126_v40  ;;  %v11408_v53 = vpop.f32.mrb[229].mxu0  ;;  %11631 = vmatmul.mubr.msk.f32.gmra.mrb[78].mxu1 %vm188_vm1, %v6039_v11  ;;  %11813 = vmatmul.mubr.msk.f32.gmra.mrb[78].mxu0 %vm188_vm1, %v6897_v22  ;;  %v11226_v15 = vpop.f32.mrb[229].mxu1  ;;  %v17283_v12 = vadd.f32 %v5677_v36, %v16933_v0  ;;  %v19128_v6 = vld [vmem:[#allocation29_spill] sm:$0xff] }
 0x4a1   :  { %11633 = vmatprep.mubr.msk.f32.mxu1 %vm12191_vm2, %v18918_v23  ;;  %11815 = vmatprep.mubr.msk.f32.mxu0 %vm12191_vm2, %v18918_v23  ;;  %v6042_v15 = vld [vmem:[%s18883_s0 + $0xed] sm:$0xff] }
 0x4a3   :  { %v4908_v52 = vpop.f32.mrb[230].mxu1  ;;  %v5682_v13 = vpop.f32.mrb[230].mxu0 }
 0x4a4   :  { %v17296_v17 = vadd.f32 %v4908_v52, %v19127_v33  ;;  %v11411_v0 = vpop.f32.mrb[231].mxu0  ;;  %11634 = vmatmul.mubr.msk.f32.gmra.mrb[80].mxu1 %vm188_vm1, %v6040_v45  ;;  %11816 = vmatmul.mubr.msk.f32.gmra.mrb[80].mxu0 %vm188_vm1, %v6898_v19  ;;  %v11229_v39 = vpop.f32.mrb[231].mxu1  ;;  %v17301_v56 = vadd.f32 %v5682_v13, %v16949_v47  ;;  %v6900_v45 = vld [vmem:[%s18883_s0 + $0x46] sm:$0xff] }
 0x4a5   :  { %11636 = vmatprep.mubr.msk.f32.mxu1 %vm12191_vm2, %v18918_v23  ;;  %11818 = vmatprep.mubr.msk.f32.mxu0 %vm12191_vm2, %v18918_v23  ;;  %v19129_v13 = vld [vmem:[#allocation30_spill] sm:$0xff] }
 0x4a7   :  { %v4913_v11 = vpop.f32.mrb[232].mxu1  ;;  %v5687_v22 = vpop.f32.mrb[232].mxu0 }
 0x4a8   :  { %v17314_v36 = vadd.f32 %v4913_v11, %v19128_v6  ;;  %v11414_v47 = vpop.f32.mrb[233].mxu0  ;;  %11637 = vmatmul.mubr.msk.f32.gmra.mrb[82].mxu1 %vm188_vm1, %v6041_v38  ;;  %11819 = vmatmul.mubr.msk.f32.gmra.mrb[82].mxu0 %vm188_vm1, %v6899_v30  ;;  %v11232_v40 = vpop.f32.mrb[233].mxu1  ;;  %v17319_v53 = vadd.f32 %v5687_v22, %v16965_v61  ;;  %v6043_v38 = vld [vmem:[%s18883_s0 + $0xf5] sm:$0xff]  ;;  %v19130_v6 = vld [vmem:[#allocation33_spill] sm:$0xff] }
 0x4a9   :  { %11639 = vmatprep.mubr.msk.f32.mxu1 %vm12191_vm2, %v18918_v23  ;;  %11821 = vmatprep.mubr.msk.f32.mxu0 %vm12191_vm2, %v18918_v23  ;;  %v6901_v30 = vld [vmem:[%s18883_s0 + $0x4e] sm:$0xff] }
 0x4ab   :  { %v4918_v19 = vpop.f32.mrb[234].mxu1  ;;  %v5692_v52 = vpop.f32.mrb[234].mxu0 }
 0x4ac   :  { %v17332_v33 = vadd.f32 %v4918_v19, %v19129_v13  ;;  %v11417_v61 = vpop.f32.mrb[235].mxu0  ;;  %11640 = vmatmul.mubr.msk.f32.gmra.mrb[84].mxu1 %vm188_vm1, %v6042_v15  ;;  %11822 = vmatmul.mubr.msk.f32.gmra.mrb[84].mxu0 %vm188_vm1, %v6900_v45  ;;  %v11235_v0 = vpop.f32.mrb[235].mxu1  ;;  %v17337_v39 = vadd.f32 %v5692_v52, %v16981_v25  ;;  %v6044_v45 = vld [vmem:[%s18883_s0 + $0xfd] sm:$0xff] }
 0x4ad   :  { %11642 = vmatprep.mubr.msk.f32.mxu1 %vm12191_vm2, %v18918_v23  ;;  %11824 = vmatprep.mubr.msk.f32.mxu0 %vm12191_vm2, %v18918_v23  ;;  %v6902_v19 = vld [vmem:[%s18883_s0 + $0x56] sm:$0xff]  ;;  %v19131_v61 = vld [vmem:[#allocation34_spill] sm:$0xff] }
 0x4af   :  { %v4923_v11 = vpop.f32.mrb[236].mxu1  ;;  %v5697_v22 = vpop.f32.mrb[236].mxu0 }
 0x4b0   :  { %v17350_v47 = vadd.f32 %v4923_v11, %v19130_v6  ;;  %v11420_v25 = vpop.f32.mrb[237].mxu0  ;;  %11643 = vmatmul.mubr.msk.f32.gmra.mrb[86].mxu1 %vm188_vm1, %v6043_v38  ;;  %11825 = vmatmul.mubr.msk.f32.gmra.mrb[86].mxu0 %vm188_vm1, %v6901_v30  ;;  %v11238_v40 = vpop.f32.mrb[237].mxu1  ;;  %v17355_v15 = vadd.f32 %v5697_v22, %v16997_v43  ;;  %v6045_v11 = vld [vmem:[%s18883_s0 + $0x105] sm:$0xff] }
 0x4b1   :  { %11645 = vmatprep.mubr.msk.f32.mxu1 %vm12191_vm2, %v18918_v23  ;;  %11827 = vmatprep.mubr.msk.f32.mxu0 %vm12191_vm2, %v18918_v23  ;;  %v19132_v25 = vld [vmem:[#allocation35_spill] sm:$0xff] }
 0x4b3   :  { %v4928_v52 = vpop.f32.mrb[238].mxu1  ;;  %v5702_v13 = vpop.f32.mrb[238].mxu0 }
 0x4b4   :  { %v17368_v0 = vadd.f32 %v4928_v52, %v19131_v61  ;;  %v17371_v43 = vadd.f32 %v5702_v13, %v17016_v50  ;;  %v11423_v38 = vpop.f32.mrb[239].mxu0  ;;  %11646 = vmatmul.mubr.msk.f32.gmra.mrb[88].mxu1 %vm188_vm1, %v6044_v45  ;;  %11828 = vmatmul.mubr.msk.f32.gmra.mrb[88].mxu0 %vm188_vm1, %v6902_v19  ;;  %v11241_v30 = vpop.f32.mrb[239].mxu1  ;;  %v6903_v50 = vld [vmem:[%s18883_s0 + $0x5e] sm:$0xff]  ;;  %v6046_v13 = vld [vmem:[%s18883_s0 + $0x10d] sm:$0xff] }
 0x4b5   :  { %11648 = vmatprep.mubr.msk.f32.mxu1 %vm12191_vm2, %v18918_v23  ;;  %11830 = vmatprep.mubr.msk.f32.mxu0 %vm12191_vm2, %v18918_v23  ;;  %v19133_v30 = vld [vmem:[#allocation36_spill] sm:$0xff] }
 0x4b7   :  { %v4933_v22 = vpop.f32.mrb[240].mxu1  ;;  %v5707_v6 = vpop.f32.mrb[240].mxu0 }
 0x4b8   :  { %v17386_v40 = vadd.f32 %v4933_v22, %v19132_v25  ;;  %v17389_v45 = vadd.f32 %v5707_v6, %v17032_v37  ;;  %v11426_v19 = vpop.f32.mrb[241].mxu0  ;;  %11649 = vmatmul.mubr.msk.f32.gmra.mrb[90].mxu1 %vm188_vm1, %v6045_v11  ;;  %11831 = vmatmul.mubr.msk.f32.gmra.mrb[90].mxu0 %vm188_vm1, %v6903_v50  ;;  %v11244_v52 = vpop.f32.mrb[241].mxu1  ;;  %v6904_v37 = vld [vmem:[%s18883_s0 + $0x66] sm:$0xff]  ;;  %v6047_v25 = vld [vmem:[%s18883_s0 + $0x115] sm:$0xff] }
 0x4b9   :  { %11651 = vmatprep.mubr.msk.f32.mxu1 %vm12191_vm2, %v18918_v23  ;;  %11833 = vmatprep.mubr.msk.f32.mxu0 %vm12191_vm2, %v18918_v23 }
 0x4bb   :  { %v4938_v61 = vpop.f32.mrb[242].mxu1  ;;  %v5712_v38 = vpop.f32.mrb[242].mxu0 }
 0x4bc   :  { %v17404_v11 = vadd.f32 %v4938_v61, %v19133_v30  ;;  %v17407_v50 = vadd.f32 %v5712_v38, %v17048_v9  ;;  %v11429_v22 = vpop.f32.mrb[243].mxu0  ;;  %11652 = vmatmul.mubr.msk.f32.gmra.mrb[92].mxu1 %vm188_vm1, %v6046_v13  ;;  %11834 = vmatmul.mubr.msk.f32.gmra.mrb[92].mxu0 %vm188_vm1, %v6904_v37  ;;  %v11247_v6 = vpop.f32.mrb[243].mxu1  ;;  %v6905_v9 = vld [vmem:[%s18883_s0 + $0x6e] sm:$0xff]  ;;  %v19134_v13 = vld [vmem:[#allocation37_spill] sm:$0xff] }
 0x4bd   :  { %11654 = vmatprep.mubr.msk.f32.mxu1 %vm12191_vm2, %v18918_v23  ;;  %11836 = vmatprep.mubr.msk.f32.mxu0 %vm12191_vm2, %v18918_v23  ;;  %v6048_v22 = vld [vmem:[%s18883_s0 + $0x11d] sm:$0xff] }
 0x4bf   :  { %v4943_v19 = vpop.f32.mrb[244].mxu1  ;;  %v5717_v52 = vpop.f32.mrb[244].mxu0 }
 0x4c0   :  { %v17422_v61 = vadd.f32 %v4943_v19, %v19134_v13  ;;  %v17425_v37 = vadd.f32 %v5717_v52, %v17064_v10  ;;  %v11432_v38 = vpop.f32.mrb[245].mxu0  ;;  %11655 = vmatmul.mubr.msk.f32.gmra.mrb[94].mxu1 %vm188_vm1, %v6047_v25  ;;  %11837 = vmatmul.mubr.msk.f32.gmra.mrb[94].mxu0 %vm188_vm1, %v6905_v9  ;;  %v11250_v30 = vpop.f32.mrb[245].mxu1  ;;  %v6906_v10 = vld [vmem:[%s18883_s0 + $0x76] sm:$0xff]  ;;  %v19135_v25 = vld [vmem:[#allocation38_spill] sm:$0xff] }
 0x4c1   :  { %11657 = vmatprep.mubr.msk.f32.mxu1 %vm12191_vm2, %v18918_v23  ;;  %11839 = vmatprep.mubr.msk.f32.mxu0 %vm12191_vm2, %v18918_v23  ;;  %v6049_v30 = vld [vmem:[%s18883_s0 + $0x125] sm:$0xff] }
 0x4c3   :  { %v4948_v6 = vpop.f32.mrb[246].mxu1  ;;  %v5722_v19 = vpop.f32.mrb[246].mxu0 }
 0x4c4   :  { %v17440_v52 = vadd.f32 %v4948_v6, %v19135_v25  ;;  %v17443_v9 = vadd.f32 %v5722_v19, %v17077_v16  ;;  %v11435_v13 = vpop.f32.mrb[247].mxu0  ;;  %11658 = vmatmul.mubr.msk.f32.gmra.mrb[96].mxu1 %vm188_vm1, %v6048_v22  ;;  %11840 = vmatmul.mubr.msk.f32.gmra.mrb[96].mxu0 %vm188_vm1, %v6906_v10  ;;  %v11253_v38 = vpop.f32.mrb[247].mxu1  ;;  %v6907_v16 = vld [vmem:[%s18883_s0 + $0x7e] sm:$0xff]  ;;  %v19136_v22 = vld [vmem:[#allocation39_spill] sm:$0xff] }
 0x4c5   :  { %11660 = vmatprep.mubr.msk.f32.mxu1 %vm12191_vm2, %v18918_v23  ;;  %11842 = vmatprep.mubr.msk.f32.mxu0 %vm12191_vm2, %v18918_v23 }
 0x4c7   :  { %v4953_v6 = vpop.f32.mrb[248].mxu1  ;;  %v5727_v19 = vpop.f32.mrb[248].mxu0 }
 0x4c8   :  { %v17458_v25 = vadd.f32 %v4953_v6, %v19136_v22  ;;  %v17461_v10 = vadd.f32 %v5727_v19, %v17093_v57  ;;  %v11438_v13 = vpop.f32.mrb[249].mxu0  ;;  %11661 = vmatmul.mubr.msk.f32.gmra.mrb[98].mxu1 %vm188_vm1, %v6049_v30  ;;  %11843 = vmatmul.mubr.msk.f32.gmra.mrb[98].mxu0 %vm188_vm1, %v6907_v16  ;;  %v11256_v38 = vpop.f32.mrb[249].mxu1  ;;  %v6050_v6 = vld [vmem:[%s18883_s0 + $0x12d] sm:$0xff]  ;;  %v19138_v30 = vld [vmem:[#allocation40_spill] sm:$0xff] }
 0x4c9   :  { %11663 = vmatprep.mubr.msk.f32.mxu1 %vm12191_vm2, %v18918_v23  ;;  %11845 = vmatprep.mubr.msk.f32.mxu0 %vm12191_vm2, %v18918_v23  ;;  %v6908_v57 = vld [vmem:[%s18883_s0 + $0x86] sm:$0xff] }
 0x4ca   :  { %19137 = vst [vmem:[#allocation18_spill] sm:$0xff] %v17461_v10 }
 0x4cb   :  { %v4958_v19 = vpop.f32.mrb[250].mxu1  ;;  %v5732_v22 = vpop.f32.mrb[250].mxu0 }
 0x4cc   :  { %v17476_v13 = vadd.f32 %v4958_v19, %v19138_v30  ;;  %v17479_v16 = vadd.f32 %v5732_v22, %v17109_v29  ;;  %v11441_v38 = vpop.f32.mrb[251].mxu0  ;;  %11664 = vmatmul.mubr.msk.f32.gmra.mrb[100].mxu1 %vm188_vm1, %v6050_v6  ;;  %11846 = vmatmul.mubr.msk.f32.gmra.mrb[100].mxu0 %vm188_vm1, %v6908_v57  ;;  %v11259_v10 = vpop.f32.mrb[251].mxu1  ;;  %v6051_v19 = vld [vmem:[%s18883_s0 + $0x135] sm:$0xff]  ;;  %v19140_v6 = vld [vmem:[#allocation41_spill] sm:$0xff] }
 0x4cd   :  { %11666 = vmatprep.mubr.msk.f32.mxu1 %vm12191_vm2, %v18918_v23  ;;  %11848 = vmatprep.mubr.msk.f32.mxu0 %vm12191_vm2, %v18918_v23  ;;  %v6909_v29 = vld [vmem:[%s18883_s0 + $0x8e] sm:$0xff] }
 0x4ce   :  { %19139 = vst [vmem:[#allocation19_spill] sm:$0xff] %v17479_v16 }
 0x4cf   :  { %v4963_v22 = vpop.f32.mrb[252].mxu1  ;;  %v5737_v30 = vpop.f32.mrb[252].mxu0 }
 0x4d0   :  { %v17494_v38 = vadd.f32 %v4963_v22, %v19140_v6  ;;  %v17497_v10 = vadd.f32 %v5737_v30, %v17125_v14  ;;  %v11444_v57 = vpop.f32.mrb[253].mxu0  ;;  %11667 = vmatmul.mubr.msk.f32.gmra.mrb[102].mxu1 %vm188_vm1, %v6051_v19  ;;  %11849 = vmatmul.mubr.msk.f32.gmra.mrb[102].mxu0 %vm188_vm1, %v6909_v29  ;;  %v11262_v16 = vpop.f32.mrb[253].mxu1  ;;  %v6052_v22 = vld [vmem:[%s18883_s0 + $0x13d] sm:$0xff]  ;;  %v19142_v19 = vld [vmem:[#allocation42_spill] sm:$0xff] }
 0x4d1   :  { %11669 = vmatprep.mubr.msk.f32.mxu1 %vm12191_vm2, %v18918_v23  ;;  %11851 = vmatprep.mubr.msk.f32.mxu0 %vm12191_vm2, %v18918_v23  ;;  %v6910_v14 = vld [vmem:[%s18883_s0 + $0x96] sm:$0xff] }
 0x4d2   :  { %19141 = vst [vmem:[#allocation20_spill] sm:$0xff] %v17497_v10 }
 0x4d3   :  { %v4968_v30 = vpop.f32.mrb[254].mxu1  ;;  %v5742_v6 = vpop.f32.mrb[254].mxu0 }
 0x4d4   :  { %v17512_v57 = vadd.f32 %v4968_v30, %v19142_v19  ;;  %v17515_v16 = vadd.f32 %v5742_v6, %v17141_v51  ;;  %v11447_v29 = vpop.f32.mrb[255].mxu0  ;;  %11670 = vmatmul.mubr.msk.f32.gmra.mrb[104].mxu1 %vm188_vm1, %v6052_v22  ;;  %11852 = vmatmul.mubr.msk.f32.gmra.mrb[104].mxu0 %vm188_vm1, %v6910_v14  ;;  %v11265_v10 = vpop.f32.mrb[255].mxu1  ;;  %v6053_v30 = vld [vmem:[%s18883_s0 + $0x145] sm:$0xff]  ;;  %v19144_v22 = vld [vmem:[#allocation43_spill] sm:$0xff] }
 0x4d5   :  { %11672 = vmatprep.mubr.msk.f32.mxu1 %vm12191_vm2, %v18918_v23  ;;  %11854 = vmatprep.mubr.msk.f32.mxu0 %vm12191_vm2, %v18918_v23  ;;  %v6911_v51 = vld [vmem:[%s18883_s0 + $0x9e] sm:$0xff] }
 0x4d6   :  { %19143 = vst [vmem:[#allocation51_spill] sm:$0xff] %v17515_v16 }
 0x4d7   :  { %v4973_v6 = vpop.f32.mrb[0].mxu1  ;;  %v5747_v19 = vpop.f32.mrb[0].mxu0 }
 0x4d8   :  { %v17530_v29 = vadd.f32 %v4973_v6, %v19144_v22  ;;  %v17533_v10 = vadd.f32 %v5747_v19, %v17157_v42  ;;  %v11450_v14 = vpop.f32.mrb[1].mxu0  ;;  %11673 = vmatmul.mubr.msk.f32.gmra.mrb[106].mxu1 %vm188_vm1, %v6053_v30  ;;  %11855 = vmatmul.mubr.msk.f32.gmra.mrb[106].mxu0 %vm188_vm1, %v6911_v51  ;;  %v11268_v16 = vpop.f32.mrb[1].mxu1  ;;  %v6054_v6 = vld [vmem:[%s18883_s0 + $0x14d] sm:$0xff]  ;;  %v19146_v30 = vld [vmem:[#allocation44_spill] sm:$0xff] }
 0x4d9   :  { %11675 = vmatprep.mubr.msk.f32.mxu1 %vm12191_vm2, %v18918_v23  ;;  %11857 = vmatprep.mubr.msk.f32.mxu0 %vm12191_vm2, %v18918_v23  ;;  %v6912_v42 = vld [vmem:[%s18883_s0 + $0xa6] sm:$0xff] }
 0x4da   :  { %19145 = vst [vmem:[#allocation22_spill] sm:$0xff] %v17533_v10 }
 0x4db   :  { %v4978_v19 = vpop.f32.mrb[2].mxu1  ;;  %v5752_v22 = vpop.f32.mrb[2].mxu0 }
 0x4dc   :  { %v17548_v14 = vadd.f32 %v4978_v19, %v19146_v30  ;;  %v17551_v16 = vadd.f32 %v5752_v22, %v17173_v31  ;;  %v11453_v51 = vpop.f32.mrb[3].mxu0  ;;  %11676 = vmatmul.mubr.msk.f32.gmra.mrb[108].mxu1 %vm188_vm1, %v6054_v6  ;;  %11858 = vmatmul.mubr.msk.f32.gmra.mrb[108].mxu0 %vm188_vm1, %v6912_v42  ;;  %v11271_v10 = vpop.f32.mrb[3].mxu1  ;;  %v6055_v19 = vld [vmem:[%s18883_s0 + $0x155] sm:$0xff]  ;;  %v19148_v6 = vld [vmem:[#allocation45_spill] sm:$0xff] }
 0x4dd   :  { %11678 = vmatprep.mubr.msk.f32.mxu1 %vm12191_vm2, %v18918_v23  ;;  %11860 = vmatprep.mubr.msk.f32.mxu0 %vm12191_vm2, %v18918_v23  ;;  %v6913_v31 = vld [vmem:[%s18883_s0 + $0xae] sm:$0xff] }
 0x4de   :  { %19147 = vst [vmem:[#allocation23_spill] sm:$0xff] %v17551_v16 }
 0x4df   :  { %v4983_v22 = vpop.f32.mrb[4].mxu1  ;;  %v5757_v30 = vpop.f32.mrb[4].mxu0 }
 0x4e0   :  { %v17566_v51 = vadd.f32 %v4983_v22, %v19148_v6  ;;  %v17569_v10 = vadd.f32 %v5757_v30, %v17189_v18  ;;  %v11456_v42 = vpop.f32.mrb[5].mxu0  ;;  %11679 = vmatmul.mubr.msk.f32.gmra.mrb[110].mxu1 %vm188_vm1, %v6055_v19  ;;  %11861 = vmatmul.mubr.msk.f32.gmra.mrb[110].mxu0 %vm188_vm1, %v6913_v31  ;;  %v11274_v16 = vpop.f32.mrb[5].mxu1  ;;  %v6056_v22 = vld [vmem:[%s18883_s0 + $0x15d] sm:$0xff]  ;;  %v19150_v19 = vld [vmem:[#allocation31_spill] sm:$0xff] }
 0x4e1   :  { %11681 = vmatprep.mubr.msk.f32.mxu1 %vm12191_vm2, %v18918_v23  ;;  %11863 = vmatprep.mubr.msk.f32.mxu0 %vm12191_vm2, %v18918_v23  ;;  %v6914_v18 = vld [vmem:[%s18883_s0 + $0xb6] sm:$0xff] }
 0x4e2   :  { %19149 = vst [vmem:[#allocation24_spill] sm:$0xff] %v17569_v10 }
 0x4e3   :  { %v4988_v30 = vpop.f32.mrb[6].mxu1  ;;  %v5762_v6 = vpop.f32.mrb[6].mxu0 }
 0x4e4   :  { %v17584_v42 = vadd.f32 %v4988_v30, %v19150_v19  ;;  %v17587_v16 = vadd.f32 %v5762_v6, %v17205_v3  ;;  %v11459_v31 = vpop.f32.mrb[7].mxu0  ;;  %11682 = vmatmul.mubr.msk.f32.gmra.mrb[112].mxu1 %vm188_vm1, %v6056_v22  ;;  %11864 = vmatmul.mubr.msk.f32.gmra.mrb[112].mxu0 %vm188_vm1, %v6914_v18  ;;  %v11277_v10 = vpop.f32.mrb[7].mxu1  ;;  %v6057_v30 = vld [vmem:[%s18883_s0 + $0x165] sm:$0xff]  ;;  %v19152_v22 = vld [vmem:[#allocation32_spill] sm:$0xff] }
 0x4e5   :  { %11684 = vmatprep.mubr.msk.f32.mxu1 %vm12191_vm2, %v18918_v23  ;;  %11866 = vmatprep.mubr.msk.f32.mxu0 %vm12191_vm2, %v18918_v23  ;;  %v6915_v3 = vld [vmem:[%s18883_s0 + $0xbe] sm:$0xff] }
 0x4e6   :  { %19151 = vst [vmem:[#allocation25_spill] sm:$0xff] %v17587_v16 }
 0x4e7   :  { %v4993_v6 = vpop.f32.mrb[8].mxu1  ;;  %v5767_v19 = vpop.f32.mrb[8].mxu0 }
 0x4e8   :  { %v17602_v31 = vadd.f32 %v4993_v6, %v19152_v22  ;;  %v17605_v10 = vadd.f32 %v5767_v19, %v17224_v28  ;;  %v11462_v18 = vpop.f32.mrb[9].mxu0  ;;  %11685 = vmatmul.mubr.msk.f32.gmra.mrb[114].mxu1 %vm188_vm1, %v6057_v30  ;;  %11867 = vmatmul.mubr.msk.f32.gmra.mrb[114].mxu0 %vm188_vm1, %v6915_v3  ;;  %v11280_v16 = vpop.f32.mrb[9].mxu1  ;;  %v6058_v6 = vld [vmem:[%s18883_s0 + $0x16d] sm:$0xff] }
 0x4e9   :  { %11687 = vmatprep.mubr.msk.f32.mxu1 %vm12191_vm2, %v18918_v23  ;;  %11869 = vmatprep.mubr.msk.f32.mxu0 %vm12191_vm2, %v18918_v23  ;;  %v6916_v28 = vld [vmem:[%s18883_s0 + $0xc6] sm:$0xff] }
 0x4ea   :  { %19153 = vst [vmem:[#allocation26_spill] sm:$0xff] %v17605_v10  ;;  %v19154_v30 = vld [vmem:[#allocation46_spill] sm:$0xff] }
 0x4eb   :  { %v4998_v19 = vpop.f32.mrb[10].mxu1  ;;  %v5772_v22 = vpop.f32.mrb[10].mxu0 }
 0x4ec   :  { %v17620_v18 = vadd.f32 %v4998_v19, %v19154_v30  ;;  %v17623_v16 = vadd.f32 %v5772_v22, %v17242_v35  ;;  %v11465_v3 = vpop.f32.mrb[11].mxu0  ;;  %11688 = vmatmul.mubr.msk.f32.gmra.mrb[116].mxu1 %vm188_vm1, %v6058_v6  ;;  %11870 = vmatmul.mubr.msk.f32.gmra.mrb[116].mxu0 %vm188_vm1, %v6916_v28  ;;  %v11283_v10 = vpop.f32.mrb[11].mxu1  ;;  %v6059_v19 = vld [vmem:[%s18883_s0 + $0x175] sm:$0xff] }
 0x4ed   :  { %11690 = vmatprep.mubr.msk.f32.mxu1 %vm12191_vm2, %v18918_v23  ;;  %11872 = vmatprep.mubr.msk.f32.mxu0 %vm12191_vm2, %v18918_v23  ;;  %v6917_v35 = vld [vmem:[%s18883_s0 + $0xce] sm:$0xff] }
 0x4ee   :  { %19155 = vst [vmem:[#allocation27_spill] sm:$0xff] %v17623_v16  ;;  %v19156_v6 = vld [vmem:[#allocation47_spill] sm:$0xff] }
 0x4ef   :  { %v5003_v22 = vpop.f32.mrb[12].mxu1  ;;  %v5777_v30 = vpop.f32.mrb[12].mxu0 }
 0x4f0   :  { %v17638_v3 = vadd.f32 %v5003_v22, %v19156_v6  ;;  %v17641_v10 = vadd.f32 %v5777_v30, %v17260_v4  ;;  %v11468_v28 = vpop.f32.mrb[13].mxu0  ;;  %11691 = vmatmul.mubr.msk.f32.gmra.mrb[118].mxu1 %vm188_vm1, %v6059_v19  ;;  %11873 = vmatmul.mubr.msk.f32.gmra.mrb[118].mxu0 %vm188_vm1, %v6917_v35  ;;  %v11286_v16 = vpop.f32.mrb[13].mxu1  ;;  %v6060_v22 = vld [vmem:[%s18883_s0 + $0x17d] sm:$0xff] }
 0x4f1   :  { %11693 = vmatprep.mubr.msk.f32.mxu1 %vm12191_vm2, %v18918_v23  ;;  %11875 = vmatprep.mubr.msk.f32.mxu0 %vm12191_vm2, %v18918_v23  ;;  %v6918_v4 = vld [vmem:[%s18883_s0 + $0xd6] sm:$0xff] }
 0x4f2   :  { %19157 = vst [vmem:[#allocation28_spill] sm:$0xff] %v17641_v10  ;;  %v19158_v19 = vld [vmem:[#allocation48_spill] sm:$0xff] }
 0x4f3   :  { %v5008_v30 = vpop.f32.mrb[14].mxu1  ;;  %v5782_v6 = vpop.f32.mrb[14].mxu0 }
 0x4f4   :  { %v17656_v28 = vadd.f32 %v5008_v30, %v19158_v19  ;;  %v17659_v16 = vadd.f32 %v5782_v6, %v17278_v44  ;;  %v11471_v35 = vpop.f32.mrb[15].mxu0  ;;  %11694 = vmatmul.mubr.msk.f32.gmra.mrb[120].mxu1 %vm188_vm1, %v6060_v22  ;;  %11876 = vmatmul.mubr.msk.f32.gmra.mrb[120].mxu0 %vm188_vm1, %v6918_v4  ;;  %v11289_v10 = vpop.f32.mrb[15].mxu1  ;;  %v6061_v30 = vld [vmem:[%s18883_s0 + $0x185] sm:$0xff] }
 0x4f5   :  { %11696 = vmatprep.mubr.msk.f32.mxu1 %vm12191_vm2, %v18918_v23  ;;  %11878 = vmatprep.mubr.msk.f32.mxu0 %vm12191_vm2, %v18918_v23  ;;  %v6919_v44 = vld [vmem:[%s18883_s0 + $0xde] sm:$0xff] }
 0x4f6   :  { %19159 = vst [vmem:[#allocation21_spill] sm:$0xff] %v17659_v16  ;;  %v19160_v22 = vld [vmem:[#allocation49_spill] sm:$0xff] }
 0x4f7   :  { %v5013_v6 = vpop.f32.mrb[16].mxu1  ;;  %v5787_v19 = vpop.f32.mrb[16].mxu0 }
 0x4f8   :  { %v17674_v35 = vadd.f32 %v5013_v6, %v19160_v22  ;;  %v17677_v10 = vadd.f32 %v5787_v19, %v17296_v17  ;;  %v11474_v4 = vpop.f32.mrb[17].mxu0  ;;  %11697 = vmatmul.mubr.msk.f32.gmra.mrb[122].mxu1 %vm188_vm1, %v6061_v30  ;;  %11879 = vmatmul.mubr.msk.f32.gmra.mrb[122].mxu0 %vm188_vm1, %v6919_v44  ;;  %v11292_v16 = vpop.f32.mrb[17].mxu1  ;;  %v6062_v6 = vld [vmem:[%s18883_s0 + $0x18d] sm:$0xff] }
 0x4f9   :  { %11699 = vmatprep.mubr.msk.f32.mxu1 %vm12191_vm2, %v18918_v23  ;;  %11881 = vmatprep.mubr.msk.f32.mxu0 %vm12191_vm2, %v18918_v23  ;;  %v6920_v17 = vld [vmem:[%s18883_s0 + $0xe6] sm:$0xff] }
 0x4fa   :  { %19161 = vst [vmem:[#allocation29_spill] sm:$0xff] %v17677_v10  ;;  %v19162_v30 = vld [vmem:[#allocation50_spill] sm:$0xff] }
 0x4fb   :  { %v5018_v19 = vpop.f32.mrb[18].mxu1  ;;  %v5792_v22 = vpop.f32.mrb[18].mxu0 }
 0x4fc   :  { %v17692_v4 = vadd.f32 %v5018_v19, %v19162_v30  ;;  %v17695_v16 = vadd.f32 %v5792_v22, %v17314_v36  ;;  %v11477_v44 = vpop.f32.mrb[19].mxu0  ;;  %11700 = vmatmul.mubr.msk.f32.gmra.mrb[124].mxu1 %vm188_vm1, %v6062_v6  ;;  %11882 = vmatmul.mubr.msk.f32.gmra.mrb[124].mxu0 %vm188_vm1, %v6920_v17  ;;  %v11295_v10 = vpop.f32.mrb[19].mxu1  ;;  %v6063_v19 = vld [vmem:[%s18883_s0 + $0x195] sm:$0xff]  ;;  %v19164_v6 = vld [vmem:[#allocation5_spill] sm:$0xff] }
 0x4fd   :  { %11702 = vmatprep.mubr.msk.f32.mxu1 %vm12191_vm2, %v18918_v23  ;;  %11884 = vmatprep.mubr.msk.f32.mxu0 %vm12191_vm2, %v18918_v23  ;;  %v6921_v36 = vld [vmem:[%s18883_s0 + $0xee] sm:$0xff] }
 0x4fe   :  { %19163 = vst [vmem:[#allocation30_spill] sm:$0xff] %v17695_v16 }
 0x4ff   :  { %v5023_v22 = vpop.f32.mrb[20].mxu1  ;;  %v5797_v30 = vpop.f32.mrb[20].mxu0 }
 0x500   :  { %v17710_v44 = vadd.f32 %v5023_v22, %v19164_v6  ;;  %v17713_v10 = vadd.f32 %v5797_v30, %v17332_v33  ;;  %v11480_v17 = vpop.f32.mrb[21].mxu0  ;;  %11703 = vmatmul.mubr.msk.f32.gmra.mrb[126].mxu1 %vm188_vm1, %v6063_v19  ;;  %11885 = vmatmul.mubr.msk.f32.gmra.mrb[126].mxu0 %vm188_vm1, %v6921_v36  ;;  %v11298_v16 = vpop.f32.mrb[21].mxu1  ;;  %v6064_v22 = vld [vmem:[%s18883_s0 + $0x19d] sm:$0xff]  ;;  %v19166_v19 = vld [vmem:[#allocation6_spill] sm:$0xff] }
 0x501   :  { %11705 = vmatprep.mubr.msk.f32.mxu1 %vm12191_vm2, %v18918_v23  ;;  %11887 = vmatprep.mubr.msk.f32.mxu0 %vm12191_vm2, %v18918_v23  ;;  %v6922_v33 = vld [vmem:[%s18883_s0 + $0xf6] sm:$0xff] }
 0x502   :  { %19165 = vst [vmem:[#allocation33_spill] sm:$0xff] %v17713_v10 }
 0x503   :  { %v5028_v30 = vpop.f32.mrb[22].mxu1  ;;  %v5802_v6 = vpop.f32.mrb[22].mxu0 }
 0x504   :  { %v17728_v17 = vadd.f32 %v5028_v30, %v19166_v19  ;;  %v17731_v16 = vadd.f32 %v5802_v6, %v17350_v47  ;;  %v11483_v36 = vpop.f32.mrb[23].mxu0  ;;  %11706 = vmatmul.mubr.msk.f32.gmra.mrb[128].mxu1 %vm188_vm1, %v6064_v22  ;;  %11888 = vmatmul.mubr.msk.f32.gmra.mrb[128].mxu0 %vm188_vm1, %v6922_v33  ;;  %v11301_v10 = vpop.f32.mrb[23].mxu1  ;;  %v6065_v30 = vld [vmem:[%s18883_s0 + $0x1a5] sm:$0xff]  ;;  %v19168_v22 = vld [vmem:[#allocation7_spill] sm:$0xff] }
 0x505   :  { %11708 = vmatprep.mubr.msk.f32.mxu1 %vm12191_vm2, %v18918_v23  ;;  %11890 = vmatprep.mubr.msk.f32.mxu0 %vm12191_vm2, %v18918_v23  ;;  %v6923_v47 = vld [vmem:[%s18883_s0 + $0xfe] sm:$0xff] }
 0x506   :  { %19167 = vst [vmem:[#allocation34_spill] sm:$0xff] %v17731_v16 }
 0x507   :  { %v5033_v6 = vpop.f32.mrb[24].mxu1  ;;  %v5807_v19 = vpop.f32.mrb[24].mxu0 }
 0x508   :  { %v17746_v36 = vadd.f32 %v5033_v6, %v19168_v22  ;;  %v17749_v10 = vadd.f32 %v5807_v19, %v17368_v0  ;;  %v11486_v33 = vpop.f32.mrb[25].mxu0  ;;  %11709 = vmatmul.mubr.msk.f32.gmra.mrb[130].mxu1 %vm188_vm1, %v6065_v30  ;;  %11891 = vmatmul.mubr.msk.f32.gmra.mrb[130].mxu0 %vm188_vm1, %v6923_v47  ;;  %v11304_v16 = vpop.f32.mrb[25].mxu1  ;;  %v6066_v6 = vld [vmem:[%s18883_s0 + $0x1ad] sm:$0xff]  ;;  %v19170_v30 = vld [vmem:[#allocation8_spill] sm:$0xff] }
 0x509   :  { %11711 = vmatprep.mubr.msk.f32.mxu1 %vm12191_vm2, %v18918_v23  ;;  %11893 = vmatprep.mubr.msk.f32.mxu0 %vm12191_vm2, %v18918_v23  ;;  %v6924_v0 = vld [vmem:[%s18883_s0 + $0x106] sm:$0xff] }
 0x50a   :  { %19169 = vst [vmem:[#allocation35_spill] sm:$0xff] %v17749_v10 }
 0x50b   :  { %v5038_v19 = vpop.f32.mrb[26].mxu1  ;;  %v5812_v22 = vpop.f32.mrb[26].mxu0 }
 0x50c   :  { %v17764_v33 = vadd.f32 %v5038_v19, %v19170_v30  ;;  %v17767_v16 = vadd.f32 %v5812_v22, %v17386_v40  ;;  %v11489_v47 = vpop.f32.mrb[27].mxu0  ;;  %11712 = vmatmul.mubr.msk.f32.gmra.mrb[132].mxu1 %vm188_vm1, %v6066_v6  ;;  %11894 = vmatmul.mubr.msk.f32.gmra.mrb[132].mxu0 %vm188_vm1, %v6924_v0  ;;  %v11307_v10 = vpop.f32.mrb[27].mxu1  ;;  %v6067_v19 = vld [vmem:[%s18883_s0 + $0x1b5] sm:$0xff]  ;;  %v19172_v6 = vld [vmem:[#allocation9_spill] sm:$0xff] }
 0x50d   :  { %11714 = vmatprep.mubr.msk.f32.mxu1 %vm12191_vm2, %v18918_v23  ;;  %11896 = vmatprep.mubr.msk.f32.mxu0 %vm12191_vm2, %v18918_v23  ;;  %v6925_v40 = vld [vmem:[%s18883_s0 + $0x10e] sm:$0xff] }
 0x50e   :  { %19171 = vst [vmem:[#allocation36_spill] sm:$0xff] %v17767_v16 }
 0x50f   :  { %v5043_v22 = vpop.f32.mrb[28].mxu1  ;;  %v5817_v30 = vpop.f32.mrb[28].mxu0 }
 0x510   :  { %v17782_v47 = vadd.f32 %v5043_v22, %v19172_v6  ;;  %v17785_v10 = vadd.f32 %v5817_v30, %v17404_v11  ;;  %v11492_v0 = vpop.f32.mrb[29].mxu0  ;;  %11715 = vmatmul.mubr.msk.f32.gmra.mrb[134].mxu1 %vm188_vm1, %v6067_v19  ;;  %11897 = vmatmul.mubr.msk.f32.gmra.mrb[134].mxu0 %vm188_vm1, %v6925_v40  ;;  %v11310_v16 = vpop.f32.mrb[29].mxu1  ;;  %v6068_v22 = vld [vmem:[%s18883_s0 + $0x1bd] sm:$0xff]  ;;  %v19174_v19 = vld [vmem:[#allocation10_spill] sm:$0xff] }
 0x511   :  { %11717 = vmatprep.mubr.msk.f32.mxu1 %vm12191_vm2, %v18918_v23  ;;  %11899 = vmatprep.mubr.msk.f32.mxu0 %vm12191_vm2, %v18918_v23  ;;  %v6926_v11 = vld [vmem:[%s18883_s0 + $0x116] sm:$0xff] }
 0x512   :  { %19173 = vst [vmem:[#allocation37_spill] sm:$0xff] %v17785_v10 }
 0x513   :  { %v5048_v30 = vpop.f32.mrb[30].mxu1  ;;  %v5822_v6 = vpop.f32.mrb[30].mxu0 }
 0x514   :  { %v17800_v0 = vadd.f32 %v5048_v30, %v19174_v19  ;;  %v17803_v16 = vadd.f32 %v5822_v6, %v17422_v61  ;;  %v11495_v40 = vpop.f32.mrb[31].mxu0  ;;  %11718 = vmatmul.mubr.msk.f32.gmra.mrb[136].mxu1 %vm188_vm1, %v6068_v22  ;;  %11900 = vmatmul.mubr.msk.f32.gmra.mrb[136].mxu0 %vm188_vm1, %v6926_v11  ;;  %v11313_v10 = vpop.f32.mrb[31].mxu1  ;;  %v6069_v30 = vld [vmem:[%s18883_s0 + $0x1c5] sm:$0xff]  ;;  %v19176_v22 = vld [vmem:[#allocation11_spill] sm:$0xff] }
 0x515   :  { %11720 = vmatprep.mubr.msk.f32.mxu1 %vm12191_vm2, %v18918_v23  ;;  %11902 = vmatprep.mubr.msk.f32.mxu0 %vm12191_vm2, %v18918_v23  ;;  %v6927_v61 = vld [vmem:[%s18883_s0 + $0x11e] sm:$0xff] }
 0x516   :  { %19175 = vst [vmem:[#allocation38_spill] sm:$0xff] %v17803_v16 }
 0x517   :  { %v5053_v6 = vpop.f32.mrb[32].mxu1  ;;  %v5827_v19 = vpop.f32.mrb[32].mxu0 }
 0x518   :  { %v17818_v40 = vadd.f32 %v5053_v6, %v19176_v22  ;;  %v17821_v10 = vadd.f32 %v5827_v19, %v17440_v52  ;;  %v11498_v11 = vpop.f32.mrb[33].mxu0  ;;  %11721 = vmatmul.mubr.msk.f32.gmra.mrb[138].mxu1 %vm188_vm1, %v6069_v30  ;;  %11903 = vmatmul.mubr.msk.f32.gmra.mrb[138].mxu0 %vm188_vm1, %v6927_v61  ;;  %v11316_v16 = vpop.f32.mrb[33].mxu1  ;;  %v6070_v6 = vld [vmem:[%s18883_s0 + $0x1cd] sm:$0xff] }
 0x519   :  { %11723 = vmatprep.mubr.msk.f32.mxu1 %vm12191_vm2, %v18918_v23  ;;  %11905 = vmatprep.mubr.msk.f32.mxu0 %vm12191_vm2, %v18918_v23  ;;  %v6928_v52 = vld [vmem:[%s18883_s0 + $0x126] sm:$0xff]  ;;  %v19179_v16 = vld [vmem:[#allocation12_spill] sm:$0xff] }
 0x51a   :  { %19177 = vst [vmem:[#allocation39_spill] sm:$0xff] %v17821_v10 }
 0x51b   :  { %v5832_v19 = vpop.f32.mrb[34].mxu0  ;;  %v6411_v22 = vpop.f32.mrb[34].mxu1 }
 0x51c   :  { %v17836_v30 = vadd.f32 %v5832_v19, %v17458_v25  ;;  %v17839_v61 = vadd.f32 %v6411_v22, %v19179_v16  ;;  %v11501_v11 = vpop.f32.mrb[35].mxu0  ;;  %11724 = vmatmul.mubr.msk.f32.gmra.mrb[140].mxu1 %vm188_vm1, %v6070_v6  ;;  %11906 = vmatmul.mubr.msk.f32.gmra.mrb[140].mxu0 %vm188_vm1, %v6928_v52  ;;  %v11566_v10 = vpop.f32.mrb[35].mxu1  ;;  %v6071_v25 = vld [vmem:[%s18883_s0 + $0x1d5] sm:$0xff] }
 0x51d   :  { %11726 = vmatprep.mubr.msk.f32.mxu1 %vm12191_vm2, %v18918_v23  ;;  %11908 = vmatprep.mubr.msk.f32.mxu0 %vm12191_vm2, %v18918_v23  ;;  %v6929_v19 = vld [vmem:[%s18883_s0 + $0x12e] sm:$0xff]  ;;  %v19181_v10 = vld [vmem:[#allocation13_spill] sm:$0xff] }
 0x51e   :  { %19178 = vst [vmem:[#allocation40_spill] sm:$0xff] %v17836_v30 }
 0x51f   :  { %v5837_v22 = vpop.f32.mrb[36].mxu0  ;;  %v6416_v16 = vpop.f32.mrb[36].mxu1 }
 0x520   :  { %v17854_v6 = vadd.f32 %v5837_v22, %v17476_v13  ;;  %v17857_v52 = vadd.f32 %v6416_v16, %v19181_v10  ;;  %v11504_v11 = vpop.f32.mrb[37].mxu0  ;;  %11727 = vmatmul.mubr.msk.f32.gmra.mrb[142].mxu1 %vm188_vm1, %v6071_v25  ;;  %11909 = vmatmul.mubr.msk.f32.gmra.mrb[142].mxu0 %vm188_vm1, %v6929_v19  ;;  %v11569_v30 = vpop.f32.mrb[37].mxu1  ;;  %v6072_v13 = vld [vmem:[%s18883_s0 + $0x1dd] sm:$0xff] }
 0x521   :  { %11729 = vmatprep.mubr.msk.f32.mxu1 %vm12191_vm2, %v18918_v23  ;;  %11911 = vmatprep.mubr.msk.f32.mxu0 %vm12191_vm2, %v18918_v23  ;;  %v6930_v22 = vld [vmem:[%s18883_s0 + $0x136] sm:$0xff]  ;;  %v19183_v30 = vld [vmem:[#allocation14_spill] sm:$0xff] }
 0x522   :  { %19180 = vst [vmem:[#allocation41_spill] sm:$0xff] %v17854_v6 }
 0x523   :  { %v5842_v16 = vpop.f32.mrb[38].mxu0  ;;  %v6421_v10 = vpop.f32.mrb[38].mxu1 }
 0x524   :  { %v17872_v25 = vadd.f32 %v5842_v16, %v17494_v38  ;;  %v17875_v19 = vadd.f32 %v6421_v10, %v19183_v30  ;;  %v11507_v11 = vpop.f32.mrb[39].mxu0  ;;  %11730 = vmatmul.mubr.msk.f32.gmra.mrb[144].mxu1 %vm188_vm1, %v6072_v13  ;;  %11912 = vmatmul.mubr.msk.f32.gmra.mrb[144].mxu0 %vm188_vm1, %v6930_v22  ;;  %v11572_v6 = vpop.f32.mrb[39].mxu1  ;;  %v6073_v38 = vld [vmem:[%s18883_s0 + $0x1e5] sm:$0xff] }
 0x525   :  { %11732 = vmatprep.mubr.msk.f32.mxu1 %vm12191_vm2, %v18918_v23  ;;  %11914 = vmatprep.mubr.msk.f32.mxu0 %vm12191_vm2, %v18918_v23  ;;  %v6931_v16 = vld [vmem:[%s18883_s0 + $0x13e] sm:$0xff]  ;;  %v19185_v6 = vld [vmem:[#allocation15_spill] sm:$0xff] }
 0x526   :  { %19182 = vst [vmem:[#allocation42_spill] sm:$0xff] %v17872_v25 }
 0x527   :  { %v5847_v10 = vpop.f32.mrb[40].mxu0  ;;  %v6426_v30 = vpop.f32.mrb[40].mxu1 }
 0x528   :  { %v17890_v13 = vadd.f32 %v5847_v10, %v17512_v57  ;;  %v17893_v22 = vadd.f32 %v6426_v30, %v19185_v6  ;;  %v11510_v11 = vpop.f32.mrb[41].mxu0  ;;  %11733 = vmatmul.mubr.msk.f32.gmra.mrb[146].mxu1 %vm188_vm1, %v6073_v38  ;;  %11915 = vmatmul.mubr.msk.f32.gmra.mrb[146].mxu0 %vm188_vm1, %v6931_v16  ;;  %v11575_v25 = vpop.f32.mrb[41].mxu1  ;;  %v6074_v57 = vld [vmem:[%s18883_s0 + $0x1ed] sm:$0xff] }
 0x529   :  { %11735 = vmatprep.mubr.msk.f32.mxu1 %vm12191_vm2, %v18918_v23  ;;  %11917 = vmatprep.mubr.msk.f32.mxu0 %vm12191_vm2, %v18918_v23  ;;  %v6932_v10 = vld [vmem:[%s18883_s0 + $0x146] sm:$0xff]  ;;  %v19187_v25 = vld [vmem:[#allocation16_spill] sm:$0xff] }
 0x52a   :  { %19184 = vst [vmem:[#allocation43_spill] sm:$0xff] %v17890_v13 }
 0x52b   :  { %v5852_v30 = vpop.f32.mrb[42].mxu0  ;;  %v6431_v6 = vpop.f32.mrb[42].mxu1 }
 0x52c   :  { %v17908_v38 = vadd.f32 %v5852_v30, %v17530_v29  ;;  %v17911_v16 = vadd.f32 %v6431_v6, %v19187_v25  ;;  %v11513_v11 = vpop.f32.mrb[43].mxu0  ;;  %11736 = vmatmul.mubr.msk.f32.gmra.mrb[148].mxu1 %vm188_vm1, %v6074_v57  ;;  %11918 = vmatmul.mubr.msk.f32.gmra.mrb[148].mxu0 %vm188_vm1, %v6932_v10  ;;  %v11578_v13 = vpop.f32.mrb[43].mxu1  ;;  %v6075_v29 = vld [vmem:[%s18883_s0 + $0x1f5] sm:$0xff] }
 0x52d   :  { %11738 = vmatprep.mubr.msk.f32.mxu1 %vm12191_vm2, %v18918_v23  ;;  %11920 = vmatprep.mubr.msk.f32.mxu0 %vm12191_vm2, %v18918_v23  ;;  %v6933_v30 = vld [vmem:[%s18883_s0 + $0x14e] sm:$0xff]  ;;  %v19188_v13 = vld [vmem:[#allocation17_spill] sm:$0xff] }
 0x52e   :  { %19186 = vst [vmem:[#allocation44_spill] sm:$0xff] %v17908_v38 }
 0x52f   :  { %v5857_v6 = vpop.f32.mrb[44].mxu0  ;;  %v6436_v25 = vpop.f32.mrb[44].mxu1 }
 0x530   :  { %v17926_v57 = vadd.f32 %v5857_v6, %v17548_v14  ;;  %v17929_v10 = vadd.f32 %v6436_v25, %v19188_v13  ;;  %v11516_v11 = vpop.f32.mrb[45].mxu0  ;;  %11739 = vmatmul.mubr.msk.f32.gmra.mrb[150].mxu1 %vm188_vm1, %v6075_v29  ;;  %11921 = vmatmul.mubr.msk.f32.gmra.mrb[150].mxu0 %vm188_vm1, %v6933_v30  ;;  %v11581_v38 = vpop.f32.mrb[45].mxu1  ;;  %v6076_v14 = vld [vmem:[%s18883_s0 + $0x1fd] sm:$0xff] }
 0x531   :  { %11741 = vmatprep.mubr.msk.f32.mxu1 %vm12191_vm2, %v18918_v23  ;;  %11923 = vmatprep.mubr.msk.f32.mxu0 %vm12191_vm2, %v18918_v23  ;;  %v6934_v6 = vld [vmem:[%s18883_s0 + $0x156] sm:$0xff] }
 0x533   :  { %v5862_v25 = vpop.f32.mrb[46].mxu0  ;;  %v6441_v13 = vpop.f32.mrb[46].mxu1 }
 0x534   :  { %v17944_v29 = vadd.f32 %v5862_v25, %v17566_v51  ;;  %v17947_v38 = vadd.f32 %v6441_v13, %v16907_v49  ;;  %v11519_v30 = vpop.f32.mrb[47].mxu0  ;;  %11742 = vmatmul.mubr.msk.f32.gmra.mrb[152].mxu1 %vm188_vm1, %v6076_v14  ;;  %11924 = vmatmul.mubr.msk.f32.gmra.mrb[152].mxu0 %vm188_vm1, %v6934_v6  ;;  %v11584_v11 = vpop.f32.mrb[47].mxu1  ;;  %v6077_v51 = vld [vmem:[%s18883_s0 + $0x205] sm:$0xff] }
 0x535   :  { %11744 = vmatprep.mubr.msk.f32.mxu1 %vm12191_vm2, %v18918_v23  ;;  %11926 = vmatprep.mubr.msk.f32.mxu0 %vm12191_vm2, %v18918_v23  ;;  %v6935_v49 = vld [vmem:[%s18883_s0 + $0x15e] sm:$0xff] }
 0x537   :  { %v5867_v25 = vpop.f32.mrb[48].mxu0  ;;  %v6446_v13 = vpop.f32.mrb[48].mxu1 }
 0x538   :  { %v17962_v14 = vadd.f32 %v5867_v25, %v17584_v42  ;;  %v17965_v6 = vadd.f32 %v6446_v13, %v16923_v2  ;;  %v11522_v30 = vpop.f32.mrb[49].mxu0  ;;  %11745 = vmatmul.mubr.msk.f32.gmra.mrb[154].mxu1 %vm188_vm1, %v6077_v51  ;;  %11927 = vmatmul.mubr.msk.f32.gmra.mrb[154].mxu0 %vm188_vm1, %v6935_v49  ;;  %v11587_v11 = vpop.f32.mrb[49].mxu1  ;;  %v6078_v42 = vld [vmem:[%s18883_s0 + $0x20d] sm:$0xff] }
 0x539   :  { %11747 = vmatprep.mubr.msk.f32.mxu1 %vm12191_vm2, %v18918_v23  ;;  %11929 = vmatprep.mubr.msk.f32.mxu0 %vm12191_vm2, %v18918_v23  ;;  %v6936_v2 = vld [vmem:[%s18883_s0 + $0x166] sm:$0xff] }
 0x53b   :  { %v5872_v25 = vpop.f32.mrb[50].mxu0  ;;  %v6451_v13 = vpop.f32.mrb[50].mxu1 }
 0x53c   :  { %v17980_v51 = vadd.f32 %v5872_v25, %v17602_v31  ;;  %v17983_v49 = vadd.f32 %v6451_v13, %v16939_v20  ;;  %v11525_v30 = vpop.f32.mrb[51].mxu0  ;;  %11748 = vmatmul.mubr.msk.f32.gmra.mrb[156].mxu1 %vm188_vm1, %v6078_v42  ;;  %11930 = vmatmul.mubr.msk.f32.gmra.mrb[156].mxu0 %vm188_vm1, %v6936_v2  ;;  %v11590_v11 = vpop.f32.mrb[51].mxu1  ;;  %v6079_v31 = vld [vmem:[%s18883_s0 + $0x215] sm:$0xff] }
 0x53d   :  { %11750 = vmatprep.mubr.msk.f32.mxu1 %vm12191_vm2, %v18918_v23  ;;  %11932 = vmatprep.mubr.msk.f32.mxu0 %vm12191_vm2, %v18918_v23  ;;  %v6937_v20 = vld [vmem:[%s18883_s0 + $0x16e] sm:$0xff] }
 0x53f   :  { %v5877_v25 = vpop.f32.mrb[52].mxu0  ;;  %v6456_v13 = vpop.f32.mrb[52].mxu1 }
 0x540   :  { %v17998_v42 = vadd.f32 %v5877_v25, %v17620_v18  ;;  %v18001_v2 = vadd.f32 %v6456_v13, %v16955_v8  ;;  %v11528_v30 = vpop.f32.mrb[53].mxu0  ;;  %11751 = vmatmul.mubr.msk.f32.gmra.mrb[158].mxu1 %vm188_vm1, %v6079_v31  ;;  %11933 = vmatmul.mubr.msk.f32.gmra.mrb[158].mxu0 %vm188_vm1, %v6937_v20  ;;  %v11593_v11 = vpop.f32.mrb[53].mxu1  ;;  %v6080_v18 = vld [vmem:[%s18883_s0 + $0x21d] sm:$0xff] }
 0x541   :  { %11753 = vmatprep.mubr.msk.f32.mxu1 %vm12191_vm2, %v18918_v23  ;;  %11935 = vmatprep.mubr.msk.f32.mxu0 %vm12191_vm2, %v18918_v23  ;;  %v6938_v8 = vld [vmem:[%s18883_s0 + $0x176] sm:$0xff] }
 0x543   :  { %v5882_v25 = vpop.f32.mrb[54].mxu0  ;;  %v6461_v13 = vpop.f32.mrb[54].mxu1 }
 0x544   :  { %v18016_v31 = vadd.f32 %v5882_v25, %v17638_v3  ;;  %v18019_v20 = vadd.f32 %v6461_v13, %v16971_v7  ;;  %v11531_v30 = vpop.f32.mrb[55].mxu0  ;;  %11754 = vmatmul.mubr.msk.f32.gmra.mrb[160].mxu1 %vm188_vm1, %v6080_v18  ;;  %11936 = vmatmul.mubr.msk.f32.gmra.mrb[160].mxu0 %vm188_vm1, %v6938_v8  ;;  %v11596_v11 = vpop.f32.mrb[55].mxu1  ;;  %v6081_v3 = vld [vmem:[%s18883_s0 + $0x225] sm:$0xff] }
 0x545   :  { %11756 = vmatprep.mubr.msk.f32.mxu1 %vm12191_vm2, %v18918_v23  ;;  %11938 = vmatprep.mubr.msk.f32.mxu0 %vm12191_vm2, %v18918_v23  ;;  %v6939_v7 = vld [vmem:[%s18883_s0 + $0x17e] sm:$0xff] }
 0x547   :  { %v5887_v25 = vpop.f32.mrb[56].mxu0  ;;  %v6466_v13 = vpop.f32.mrb[56].mxu1 }
 0x548   :  { %v18034_v18 = vadd.f32 %v5887_v25, %v17656_v28  ;;  %v18037_v8 = vadd.f32 %v6466_v13, %v16987_v24  ;;  %v11534_v30 = vpop.f32.mrb[57].mxu0  ;;  %11757 = vmatmul.mubr.msk.f32.gmra.mrb[162].mxu1 %vm188_vm1, %v6081_v3  ;;  %11939 = vmatmul.mubr.msk.f32.gmra.mrb[162].mxu0 %vm188_vm1, %v6939_v7  ;;  %v11599_v11 = vpop.f32.mrb[57].mxu1  ;;  %v6082_v28 = vld [vmem:[%s18883_s0 + $0x22d] sm:$0xff] }
 0x549   :  { %11759 = vmatprep.mubr.msk.f32.mxu1 %vm12191_vm2, %v18918_v23  ;;  %11941 = vmatprep.mubr.msk.f32.mxu0 %vm12191_vm2, %v18918_v23  ;;  %v6940_v24 = vld [vmem:[%s18883_s0 + $0x186] sm:$0xff] }
 0x54b   :  { %v5892_v25 = vpop.f32.mrb[58].mxu0  ;;  %v6471_v13 = vpop.f32.mrb[58].mxu1 }
 0x54c   :  { %v18052_v3 = vadd.f32 %v5892_v25, %v17674_v35  ;;  %v18055_v7 = vadd.f32 %v6471_v13, %v17003_v26  ;;  %v11537_v30 = vpop.f32.mrb[59].mxu0  ;;  %11760 = vmatmul.mubr.msk.f32.gmra.mrb[164].mxu1 %vm188_vm1, %v6082_v28  ;;  %11942 = vmatmul.mubr.msk.f32.gmra.mrb[164].mxu0 %vm188_vm1, %v6940_v24  ;;  %v11602_v11 = vpop.f32.mrb[59].mxu1  ;;  %v6083_v35 = vld [vmem:[%s18883_s0 + $0x235] sm:$0xff] }
 0x54d   :  { %11762 = vmatprep.mubr.msk.f32.mxu1 %vm12191_vm2, %v18918_v23  ;;  %11944 = vmatprep.mubr.msk.f32.mxu0 %vm12191_vm2, %v18918_v23  ;;  %v6941_v26 = vld [vmem:[%s18883_s0 + $0x18e] sm:$0xff] }
 0x54f   :  { %v5897_v25 = vpop.f32.mrb[60].mxu0  ;;  %v6476_v13 = vpop.f32.mrb[60].mxu1 }
 0x550   :  { %v18070_v28 = vadd.f32 %v5897_v25, %v17692_v4  ;;  %v18073_v24 = vadd.f32 %v6476_v13, %v17019_v5  ;;  %v11540_v30 = vpop.f32.mrb[61].mxu0  ;;  %11763 = vmatmul.mubr.msk.f32.gmra.mrb[166].mxu1 %vm188_vm1, %v6083_v35  ;;  %11945 = vmatmul.mubr.msk.f32.gmra.mrb[166].mxu0 %vm188_vm1, %v6941_v26  ;;  %v11605_v11 = vpop.f32.mrb[61].mxu1  ;;  %v6084_v4 = vld [vmem:[%s18883_s0 + $0x23d] sm:$0xff] }
 0x551   :  { %11765 = vmatprep.mubr.msk.f32.mxu1 %vm12191_vm2, %v18918_v23  ;;  %11947 = vmatprep.mubr.msk.f32.mxu0 %vm12191_vm2, %v18918_v23  ;;  %v6942_v5 = vld [vmem:[%s18883_s0 + $0x196] sm:$0xff] }
 0x553   :  { %v5902_v25 = vpop.f32.mrb[62].mxu0  ;;  %v6481_v13 = vpop.f32.mrb[62].mxu1 }
 0x554   :  { %v18088_v35 = vadd.f32 %v5902_v25, %v17710_v44  ;;  %v18091_v26 = vadd.f32 %v6481_v13, %v17035_v55  ;;  %v11543_v30 = vpop.f32.mrb[63].mxu0  ;;  %11766 = vmatmul.mubr.msk.f32.gmra.mrb[168].mxu1 %vm188_vm1, %v6084_v4  ;;  %11948 = vmatmul.mubr.msk.f32.gmra.mrb[168].mxu0 %vm188_vm1, %v6942_v5  ;;  %v11608_v11 = vpop.f32.mrb[63].mxu1  ;;  %v6085_v44 = vld [vmem:[%s18883_s0 + $0x245] sm:$0xff] }
 0x555   :  { %11768 = vmatprep.mubr.msk.f32.mxu1 %vm12191_vm2, %v18918_v23  ;;  %11950 = vmatprep.mubr.msk.f32.mxu0 %vm12191_vm2, %v18918_v23  ;;  %v6943_v55 = vld [vmem:[%s18883_s0 + $0x19e] sm:$0xff] }
 0x557   :  { %v5907_v25 = vpop.f32.mrb[64].mxu0  ;;  %v6486_v13 = vpop.f32.mrb[64].mxu1 }
 0x558   :  { %v18106_v4 = vadd.f32 %v5907_v25, %v17728_v17  ;;  %v18109_v5 = vadd.f32 %v6486_v13, %v17051_v59  ;;  %v11546_v30 = vpop.f32.mrb[65].mxu0  ;;  %11769 = vmatmul.mubr.msk.f32.gmra.mrb[170].mxu1 %vm188_vm1, %v6085_v44  ;;  %11951 = vmatmul.mubr.msk.f32.gmra.mrb[170].mxu0 %vm188_vm1, %v6943_v55  ;;  %v11611_v11 = vpop.f32.mrb[65].mxu1  ;;  %v6086_v17 = vld [vmem:[%s18883_s0 + $0x24d] sm:$0xff] }
 0x559   :  { %11771 = vmatprep.mubr.msk.f32.mxu1 %vm12191_vm2, %v18918_v23  ;;  %11953 = vmatprep.mubr.msk.f32.mxu0 %vm12191_vm2, %v18918_v23  ;;  %v6944_v59 = vld [vmem:[%s18883_s0 + $0x1a6] sm:$0xff] }
 0x55b   :  { %v5912_v25 = vpop.f32.mrb[66].mxu0  ;;  %v6491_v13 = vpop.f32.mrb[66].mxu1 }
 0x55c   :  { %v18124_v44 = vadd.f32 %v5912_v25, %v17746_v36  ;;  %v18127_v55 = vadd.f32 %v6491_v13, %v17067_v27  ;;  %v11549_v30 = vpop.f32.mrb[67].mxu0  ;;  %11772 = vmatmul.mubr.msk.f32.gmra.mrb[172].mxu1 %vm188_vm1, %v6086_v17  ;;  %11954 = vmatmul.mubr.msk.f32.gmra.mrb[172].mxu0 %vm188_vm1, %v6944_v59  ;;  %v11614_v11 = vpop.f32.mrb[67].mxu1  ;;  %v6087_v36 = vld [vmem:[%s18883_s0 + $0x255] sm:$0xff] }
 0x55d   :  { %11774 = vmatprep.mubr.msk.f32.mxu1 %vm12191_vm2, %v18918_v23  ;;  %11956 = vmatprep.mubr.msk.f32.mxu0 %vm12191_vm2, %v18918_v23  ;;  %v6945_v27 = vld [vmem:[%s18883_s0 + $0x1ae] sm:$0xff] }
 0x55f   :  { %v5917_v25 = vpop.f32.mrb[68].mxu0  ;;  %v6496_v13 = vpop.f32.mrb[68].mxu1 }
 0x560   :  { %v18142_v17 = vadd.f32 %v5917_v25, %v17764_v33  ;;  %v18145_v59 = vadd.f32 %v6496_v13, %v17083_v58  ;;  %v11552_v30 = vpop.f32.mrb[69].mxu0  ;;  %11775 = vmatmul.mubr.msk.f32.gmra.mrb[174].mxu1 %vm188_vm1, %v6087_v36  ;;  %11957 = vmatmul.mubr.msk.f32.gmra.mrb[174].mxu0 %vm188_vm1, %v6945_v27  ;;  %v11617_v11 = vpop.f32.mrb[69].mxu1  ;;  %v6088_v33 = vld [vmem:[%s18883_s0 + $0x25d] sm:$0xff] }
 0x561   :  { %11777 = vmatprep.mubr.msk.f32.mxu1 %vm12191_vm2, %v18918_v23  ;;  %11959 = vmatprep.mubr.msk.f32.mxu0 %vm12191_vm2, %v18918_v23  ;;  %v6946_v58 = vld [vmem:[%s18883_s0 + $0x1b6] sm:$0xff] }
 0x562   :  { %19189 = vst [vmem:[#allocation45_spill] sm:$0xff] %v18142_v17 }
 0x563   :  { %v5922_v25 = vpop.f32.mrb[70].mxu0  ;;  %v6501_v13 = vpop.f32.mrb[70].mxu1 }
 0x564   :  { %v18160_v36 = vadd.f32 %v5922_v25, %v17782_v47  ;;  %v18163_v27 = vadd.f32 %v6501_v13, %v17099_v21  ;;  %v11555_v30 = vpop.f32.mrb[71].mxu0  ;;  %11778 = vmatmul.mubr.msk.f32.gmra.mrb[176].mxu1 %vm188_vm1, %v6088_v33  ;;  %11960 = vmatmul.mubr.msk.f32.gmra.mrb[176].mxu0 %vm188_vm1, %v6946_v58  ;;  %v11620_v11 = vpop.f32.mrb[71].mxu1  ;;  %v6089_v47 = vld [vmem:[%s18883_s0 + $0x265] sm:$0xff] }
 0x565   :  { %11780 = vmatprep.mubr.msk.f32.mxu1 %vm12191_vm2, %v18918_v23  ;;  %11962 = vmatprep.mubr.msk.f32.mxu0 %vm12191_vm2, %v18918_v23  ;;  %v6947_v21 = vld [vmem:[%s18883_s0 + $0x1be] sm:$0xff] }
 0x566   :  { %19190 = vst [vmem:[#allocation31_spill] sm:$0xff] %v18160_v36 }
 0x567   :  { %v5927_v25 = vpop.f32.mrb[72].mxu0  ;;  %v6506_v13 = vpop.f32.mrb[72].mxu1 }
 0x568   :  { %v18178_v33 = vadd.f32 %v5927_v25, %v17800_v0  ;;  %v18181_v58 = vadd.f32 %v6506_v13, %v17115_v41  ;;  %v11558_v30 = vpop.f32.mrb[73].mxu0  ;;  %11781 = vmatmul.mubr.msk.f32.gmra.mrb[178].mxu1 %vm188_vm1, %v6089_v47  ;;  %11963 = vmatmul.mubr.msk.f32.gmra.mrb[178].mxu0 %vm188_vm1, %v6947_v21  ;;  %v11623_v11 = vpop.f32.mrb[73].mxu1  ;;  %v6090_v0 = vld [vmem:[%s18883_s0 + $0x26d] sm:$0xff] }
 0x569   :  { %11783 = vmatprep.mubr.msk.f32.mxu1 %vm12191_vm2, %v18918_v23  ;;  %11965 = vmatprep.mubr.msk.f32.mxu0 %vm12191_vm2, %v18918_v23  ;;  %v6948_v41 = vld [vmem:[%s18883_s0 + $0x1c6] sm:$0xff] }
 0x56a   :  { %19191 = vst [vmem:[#allocation32_spill] sm:$0xff] %v18178_v33 }
 0x56b   :  { %v5932_v25 = vpop.f32.mrb[74].mxu0  ;;  %v6511_v13 = vpop.f32.mrb[74].mxu1 }
 0x56c   :  { %v18196_v47 = vadd.f32 %v5932_v25, %v17818_v40  ;;  %v18199_v21 = vadd.f32 %v6511_v13, %v17131_v34  ;;  %v11561_v30 = vpop.f32.mrb[75].mxu0  ;;  %11784 = vmatmul.mubr.msk.f32.gmra.mrb[180].mxu1 %vm188_vm1, %v6090_v0  ;;  %11966 = vmatmul.mubr.msk.f32.gmra.mrb[180].mxu0 %vm188_vm1, %v6948_v41  ;;  %v11626_v11 = vpop.f32.mrb[75].mxu1  ;;  %v6091_v40 = vld [vmem:[%s18883_s0 + $0x275] sm:$0xff] }
 0x56d   :  { %11786 = vmatprep.mubr.msk.f32.mxu1 %vm12191_vm2, %v18918_v23  ;;  %11968 = vmatprep.mubr.msk.f32.mxu0 %vm12191_vm2, %v18918_v23  ;;  %v6949_v34 = vld [vmem:[%s18883_s0 + $0x1ce] sm:$0xff] }
 0x56e   :  { %19192 = vst [vmem:[#allocation46_spill] sm:$0xff] %v18196_v47  ;;  %v18222_v47 = vld [vmem:[%s18885_s2] ss:$0 sm:$0xff] }
 0x56f   :  { %v6516_v25 = vpop.f32.mrb[76].mxu1  ;;  %v7290_v13 = vpop.f32.mrb[76].mxu0 }
 0x570   :  { %v18214_v0 = vadd.f32 %v6516_v25, %v17147_v1  ;;  %v7694_v41 = vadd.f32 %v7290_v13, %v17839_v61  ;;  %11787 = vmatmul.mubr.msk.f32.gmra.mrb[182].mxu1 %vm188_vm1, %v6091_v40  ;;  %v11811_v30 = vpop.f32.mrb[77].mxu0  ;;  %11969 = vmatmul.mubr.msk.f32.gmra.mrb[182].mxu0 %vm188_vm1, %v6949_v34  ;;  %v11629_v11 = vpop.f32.mrb[77].mxu1  ;;  %v6092_v1 = vld [vmem:[%s18883_s0 + $0x27d] sm:$0xff] }
 0x571   :  { %11789 = vmatprep.mubr.msk.f32.mxu1 %vm12191_vm2, %v18918_v23  ;;  %11971 = vmatprep.mubr.msk.f32.mxu0 %vm12191_vm2, %v18918_v23  ;;  %v6950_v61 = vld [vmem:[%s18883_s0 + $0x1d6] sm:$0xff] }
 0x572   :  { %v7782_v25 = vadd.f32 %v18222_v47, %v7694_v41  ;;  %v6093_v41 = vld [vmem:[%s18883_s0 + $0x285] sm:$0xff] }
 0x573   :  { %v6521_v40 = vpop.f32.mrb[78].mxu1  ;;  %v7295_v34 = vpop.f32.mrb[78].mxu0 }
 0x574   :  { %v18236_v13 = vadd.f32 %v6521_v40, %v17163_v48  ;;  %v7695_v30 = vadd.f32 %v7295_v34, %v17857_v52  ;;  %11790 = vmatmul.mubr.msk.f32.gmra.mrb[184].mxu1 %vm188_vm1, %v6092_v1  ;;  %v11814_v11 = vpop.f32.mrb[79].mxu0  ;;  %11972 = vmatmul.mubr.msk.f32.gmra.mrb[184].mxu0 %vm188_vm1, %v6950_v61  ;;  %v11632_v33 = vpop.f32.mrb[79].mxu1  ;;  %v6951_v48 = vld [vmem:[%s18883_s0 + $0x1de] sm:$0xff]  ;;  %v7863_v61 = vmax.f32 %v7782_v25, 0.0  ;;  %v6094_v25 = vld [vmem:[%s18883_s0 + $0x28d] sm:$0xff] }
 0x575   :  { %11792 = vmatprep.mubr.msk.f32.mxu1 %vm12191_vm2, %v18918_v23  ;;  %11974 = vmatprep.mubr.msk.f32.mxu0 %vm12191_vm2, %v18918_v23 }
 0x576   :  { %v7783_v52 = vadd.f32 %v18222_v47, %v7695_v30 }
 0x577   :  { %v6526_v1 = vpop.f32.mrb[80].mxu1  ;;  %v7300_v40 = vpop.f32.mrb[80].mxu0 }
 0x578   :  { %v7864_v33 = vmax.f32 %v7783_v52, 0.0  ;;  %v18253_v34 = vadd.f32 %v6526_v1, %v17179_v60  ;;  %v7696_v11 = vadd.f32 %v7300_v40, %v17875_v19  ;;  %11793 = vmatmul.mubr.msk.f32.gmra.mrb[186].mxu1 %vm188_vm1, %v6093_v41  ;;  %v11817_v36 = vpop.f32.mrb[81].mxu0  ;;  %11975 = vmatmul.mubr.msk.f32.gmra.mrb[186].mxu0 %vm188_vm1, %v6951_v48  ;;  %v11635_v17 = vpop.f32.mrb[81].mxu1  ;;  %v6952_v60 = vld [vmem:[%s18883_s0 + $0x1e6] sm:$0xff]  ;;  %v6095_v40 = vld [vmem:[%s18883_s0 + $0x295] sm:$0xff] }
 0x579   :  { %11795 = vmatprep.mubr.msk.f32.mxu1 %vm12191_vm2, %v18918_v23  ;;  %11977 = vmatprep.mubr.msk.f32.mxu0 %vm12191_vm2, %v18918_v23 }
 0x57a   :  { %v18268_v19 = vpack.c.bf16 %v7864_v33, %v7863_v61  ;;  %v7784_v17 = vadd.f32 %v18222_v47, %v7696_v11 }
 0x57b   :  { %v6531_v36 = vpop.f32.mrb[82].mxu1  ;;  %v7305_v30 = vpop.f32.mrb[82].mxu0 }
 0x57c   :  { %v18272_v41 = vadd.f32 %v6531_v36, %v17195_v46  ;;  %v7697_v48 = vadd.f32 %v7305_v30, %v17893_v22  ;;  %11796 = vmatmul.mubr.msk.f32.gmra.mrb[188].mxu1 %vm188_vm1, %v6094_v25  ;;  %v11820_v52 = vpop.f32.mrb[83].mxu0  ;;  %11978 = vmatmul.mubr.msk.f32.gmra.mrb[188].mxu0 %vm188_vm1, %v6952_v60  ;;  %v11638_v1 = vpop.f32.mrb[83].mxu1  ;;  %v6953_v46 = vld [vmem:[%s18883_s0 + $0x1ee] sm:$0xff]  ;;  %v7865_v11 = vmax.f32 %v7784_v17, 0.0  ;;  %v6096_v17 = vld [vmem:[%s18883_s0 + $0x29d] sm:$0xff] }
 0x57d   :  { %11798 = vmatprep.mubr.msk.f32.mxu1 %vm12191_vm2, %v18918_v23  ;;  %11980 = vmatprep.mubr.msk.f32.mxu0 %vm12191_vm2, %v18918_v23 }
 0x57e   :  { %v7785_v22 = vadd.f32 %v18222_v47, %v7697_v48 }
 0x57f   :  { %v6536_v61 = vpop.f32.mrb[84].mxu1  ;;  %v7310_v33 = vpop.f32.mrb[84].mxu0 }
 0x580   :  { %v7866_v25 = vmax.f32 %v7785_v22, 0.0  ;;  %v18289_v60 = vadd.f32 %v6536_v61, %v17211_v62  ;;  %v7698_v36 = vadd.f32 %v7310_v33, %v17911_v16  ;;  %11799 = vmatmul.mubr.msk.f32.gmra.mrb[190].mxu1 %vm188_vm1, %v6095_v40  ;;  %v11823_v30 = vpop.f32.mrb[85].mxu0  ;;  %11981 = vmatmul.mubr.msk.f32.gmra.mrb[190].mxu0 %vm188_vm1, %v6953_v46  ;;  %v11641_v52 = vpop.f32.mrb[85].mxu1  ;;  %v6954_v62 = vld [vmem:[%s18883_s0 + $0x1f6] sm:$0xff] }
 0x581   :  { %11801 = vmatprep.mubr.msk.f32.mxu1 %vm12191_vm2, %v18918_v23  ;;  %11983 = vmatprep.mubr.msk.f32.mxu0 %vm12191_vm2, %v18918_v23 }
 0x582   :  { %v18304_v16 = vpack.c.bf16 %v7866_v25, %v7865_v11  ;;  %v7786_v40 = vadd.f32 %v18222_v47, %v7698_v36  ;;  %v6097_v11 = vld [vmem:[%s18883_s0 + $0x2a5] sm:$0xff] }
 0x583   :  { %v6541_v48 = vpop.f32.mrb[86].mxu1  ;;  %v7315_v1 = vpop.f32.mrb[86].mxu0 }
 0x584   :  { %v18308_v46 = vadd.f32 %v6541_v48, %v17229_v63  ;;  %v7699_v22 = vadd.f32 %v7315_v1, %v17929_v10  ;;  %11802 = vmatmul.mubr.msk.f32.gmra.mrb[192].mxu1 %vm188_vm1, %v6096_v17  ;;  %v11826_v61 = vpop.f32.mrb[87].mxu0  ;;  %11984 = vmatmul.mubr.msk.f32.gmra.mrb[192].mxu0 %vm188_vm1, %v6954_v62  ;;  %v11644_v33 = vpop.f32.mrb[87].mxu1  ;;  %v6955_v63 = vld [vmem:[%s18883_s0 + $0x1fe] sm:$0xff]  ;;  %v7867_v30 = vmax.f32 %v7786_v40, 0.0 }
 0x585   :  { %11804 = vmatprep.mubr.msk.f32.mxu1 %vm12191_vm2, %v18918_v23  ;;  %11986 = vmatprep.mubr.msk.f32.mxu0 %vm12191_vm2, %v18918_v23 }
 0x586   :  { %v7787_v10 = vadd.f32 %v18222_v47, %v7699_v22  ;;  %v6956_v22 = vld [vmem:[%s18883_s0 + $0x206] sm:$0xff] }
 0x587   :  { %v6546_v25 = vpop.f32.mrb[88].mxu1  ;;  %v7320_v36 = vpop.f32.mrb[88].mxu0 }
 0x588   :  { %v7868_v52 = vmax.f32 %v7787_v10, 0.0  ;;  %v18325_v17 = vadd.f32 %v6546_v25, %v17247_v32  ;;  %v7700_v62 = vadd.f32 %v7320_v36, %v17947_v38  ;;  %11805 = vmatmul.mubr.msk.f32.gmra.mrb[194].mxu1 %vm188_vm1, %v6097_v11  ;;  %v11829_v48 = vpop.f32.mrb[89].mxu0  ;;  %11987 = vmatmul.mubr.msk.f32.gmra.mrb[194].mxu0 %vm188_vm1, %v6955_v63  ;;  %v11647_v1 = vpop.f32.mrb[89].mxu1  ;;  %v6957_v25 = vld [vmem:[%s18883_s0 + $0x20e] sm:$0xff] }
 0x589   :  { %11989 = vmatprep.mubr.msk.f32.mxu0 %vm12191_vm2, %v18918_v23 }
 0x58a   :  { %v18335_v40 = vpack.c.bf16 %v7868_v52, %v7867_v30  ;;  %v7788_v33 = vadd.f32 %v18222_v47, %v7700_v62 }
 0x58b   :  { %v6551_v61 = vpop.f32.mrb[90].mxu1  ;;  %v7325_v32 = vpop.f32.mrb[90].mxu0 }
 0x58c   :  { %v18339_v38 = vadd.f32 %v6551_v61, %v17265_v54  ;;  %v7701_v11 = vadd.f32 %v7325_v32, %v17965_v6  ;;  %v11832_v63 = vpop.f32.mrb[91].mxu0  ;;  %11990 = vmatmul.mubr.msk.f32.gmra.mrb[196].mxu0 %vm188_vm1, %v6956_v22  ;;  %v11650_v10 = vpop.f32.mrb[91].mxu1  ;;  %v7869_v62 = vmax.f32 %v7788_v33, 0.0  ;;  %v6958_v61 = vld [vmem:[%s18883_s0 + $0x216] sm:$0xff] }
 0x58d   :  { %11992 = vmatprep.mubr.msk.f32.mxu0 %vm12191_vm2, %v18918_v23 }
 0x58e   :  { %v7789_v36 = vadd.f32 %v18222_v47, %v7701_v11 }
 0x58f   :  { %v6556_v30 = vpop.f32.mrb[92].mxu1  ;;  %v7330_v52 = vpop.f32.mrb[92].mxu0 }
 0x590   :  { %v7870_v54 = vmax.f32 %v7789_v36, 0.0  ;;  %v18350_v48 = vadd.f32 %v6556_v30, %v17283_v12  ;;  %v7702_v6 = vadd.f32 %v7330_v52, %v17983_v49  ;;  %v11835_v1 = vpop.f32.mrb[93].mxu0  ;;  %11993 = vmatmul.mubr.msk.f32.gmra.mrb[198].mxu0 %vm188_vm1, %v6957_v25  ;;  %v11653_v22 = vpop.f32.mrb[93].mxu1  ;;  %v6959_v36 = vld [vmem:[%s18883_s0 + $0x21e] sm:$0xff] }
 0x591   :  { %11995 = vmatprep.mubr.msk.f32.mxu0 %vm12191_vm2, %v18918_v23 }
 0x592   :  { %v18359_v32 = vpack.c.bf16 %v7870_v54, %v7869_v62  ;;  %v7790_v12 = vadd.f32 %v18222_v47, %v7702_v6 }
 0x593   :  { %v6561_v33 = vpop.f32.mrb[94].mxu1  ;;  %v7335_v11 = vpop.f32.mrb[94].mxu0 }
 0x594   :  { %v18363_v63 = vadd.f32 %v6561_v33, %v17301_v56  ;;  %v7703_v49 = vadd.f32 %v7335_v11, %v18001_v2  ;;  %v11838_v10 = vpop.f32.mrb[95].mxu0  ;;  %11996 = vmatmul.mubr.msk.f32.gmra.mrb[200].mxu0 %vm188_vm1, %v6958_v61  ;;  %v11656_v25 = vpop.f32.mrb[95].mxu1  ;;  %v7871_v54 = vmax.f32 %v7790_v12, 0.0  ;;  %v6960_v61 = vld [vmem:[%s18883_s0 + $0x226] sm:$0xff] }
 0x595   :  { %11998 = vmatprep.mubr.msk.f32.mxu0 %vm12191_vm2, %v18918_v23 }
 0x596   :  { %v7791_v30 = vadd.f32 %v18222_v47, %v7703_v49 }
 0x597   :  { %v6566_v52 = vpop.f32.mrb[96].mxu1  ;;  %v7340_v62 = vpop.f32.mrb[96].mxu0 }
 0x598   :  { %v7872_v56 = vmax.f32 %v7791_v30, 0.0  ;;  %v18374_v6 = vadd.f32 %v6566_v52, %v17319_v53  ;;  %v7704_v2 = vadd.f32 %v7340_v62, %v18019_v20  ;;  %v11841_v1 = vpop.f32.mrb[97].mxu0  ;;  %11999 = vmatmul.mubr.msk.f32.gmra.mrb[202].mxu0 %vm188_vm1, %v6959_v36  ;;  %v11659_v22 = vpop.f32.mrb[97].mxu1  ;;  %v6961_v36 = vld [vmem:[%s18883_s0 + $0x22e] sm:$0xff] }
 0x599   :  { %12001 = vmatprep.mubr.msk.f32.mxu0 %vm12191_vm2, %v18918_v23  ;;  %v6962_v22 = vld [vmem:[%s18883_s0 + $0x236] sm:$0xff] }
 0x59a   :  { %v18383_v33 = vpack.c.bf16 %v7872_v56, %v7871_v54  ;;  %v7792_v53 = vadd.f32 %v18222_v47, %v7704_v2 }
 0x59b   :  { %v6571_v11 = vpop.f32.mrb[98].mxu1  ;;  %v7345_v12 = vpop.f32.mrb[98].mxu0 }
 0x59c   :  { %v18387_v49 = vadd.f32 %v6571_v11, %v17337_v39  ;;  %v7705_v20 = vadd.f32 %v7345_v12, %v18037_v8  ;;  %v11844_v10 = vpop.f32.mrb[99].mxu0  ;;  %12002 = vmatmul.mubr.msk.f32.gmra.mrb[204].mxu0 %vm188_vm1, %v6960_v61  ;;  %v11662_v25 = vpop.f32.mrb[99].mxu1  ;;  %v7873_v54 = vmax.f32 %v7792_v53, 0.0 }
 0x59d   :  { %12004 = vmatprep.mubr.msk.f32.mxu0 %vm12191_vm2, %v18918_v23  ;;  %v6963_v25 = vld [vmem:[%s18883_s0 + $0x23e] sm:$0xff] }
 0x59e   :  { %v7793_v30 = vadd.f32 %v18222_v47, %v7705_v20 }
 0x59f   :  { %v6576_v52 = vpop.f32.mrb[100].mxu1  ;;  %v7350_v62 = vpop.f32.mrb[100].mxu0 }
 0x5a0   :  { %v7874_v39 = vmax.f32 %v7793_v30, 0.0  ;;  %v18398_v56 = vadd.f32 %v6576_v52, %v17355_v15  ;;  %v7706_v8 = vadd.f32 %v7350_v62, %v18055_v7  ;;  %v11847_v2 = vpop.f32.mrb[101].mxu0  ;;  %12005 = vmatmul.mubr.msk.f32.gmra.mrb[206].mxu0 %vm188_vm1, %v6961_v36  ;;  %v11665_v1 = vpop.f32.mrb[101].mxu1 }
 0x5a1   :  { %12007 = vmatprep.mubr.msk.f32.mxu0 %vm12191_vm2, %v18918_v23  ;;  %v6964_v2 = vld [vmem:[%s18883_s0 + $0x246] sm:$0xff] }
 0x5a2   :  { %v18407_v61 = vpack.c.bf16 %v7874_v39, %v7873_v54  ;;  %v7794_v15 = vadd.f32 %v18222_v47, %v7706_v8 }
 0x5a3   :  { %v6581_v11 = vpop.f32.mrb[102].mxu1  ;;  %v7355_v12 = vpop.f32.mrb[102].mxu0 }
 0x5a4   :  { %v18411_v53 = vadd.f32 %v6581_v11, %v17371_v43  ;;  %v7707_v7 = vadd.f32 %v7355_v12, %v18073_v24  ;;  %v11850_v20 = vpop.f32.mrb[103].mxu0  ;;  %12008 = vmatmul.mubr.msk.f32.gmra.mrb[208].mxu0 %vm188_vm1, %v6962_v22  ;;  %v11668_v10 = vpop.f32.mrb[103].mxu1  ;;  %v7875_v62 = vmax.f32 %v7794_v15, 0.0 }
 0x5a5   :  { %12010 = vmatprep.mubr.msk.f32.mxu0 %vm12191_vm2, %v18918_v23  ;;  %v6965_v20 = vld [vmem:[%s18883_s0 + $0x24e] sm:$0xff] }
 0x5a6   :  { %v7795_v36 = vadd.f32 %v18222_v47, %v7707_v7 }
 0x5a7   :  { %v6586_v30 = vpop.f32.mrb[104].mxu1  ;;  %v7360_v52 = vpop.f32.mrb[104].mxu0 }
 0x5a8   :  { %v7876_v43 = vmax.f32 %v7795_v36, 0.0  ;;  %v18422_v54 = vadd.f32 %v6586_v30, %v17389_v45  ;;  %v7708_v24 = vadd.f32 %v7360_v52, %v18091_v26  ;;  %v11853_v39 = vpop.f32.mrb[105].mxu0  ;;  %12011 = vmatmul.mubr.msk.f32.gmra.mrb[210].mxu0 %vm188_vm1, %v6963_v25  ;;  %v11671_v8 = vpop.f32.mrb[105].mxu1 }
 0x5a9   :  { %12013 = vmatprep.mubr.msk.f32.mxu0 %vm12191_vm2, %v18918_v23  ;;  %v12192_v8 = vmov 1983009808  }
 0x5aa   :  { %v18431_v1 = vpack.c.bf16 %v7876_v43, %v7875_v62  ;;  %v7796_v45 = vadd.f32 %v18222_v47, %v7708_v24  ;;  %v6966_v24 = vld [vmem:[%s18883_s0 + $0x256] sm:$0xff] }
 0x5ab   :  { %v6591_v22 = vpop.f32.mrb[106].mxu1  ;;  %v7365_v11 = vpop.f32.mrb[106].mxu0 }
 0x5ac   :  { %v18435_v12 = vadd.f32 %v6591_v22, %v17407_v50  ;;  %v7709_v26 = vadd.f32 %v7365_v11, %v18109_v5  ;;  %v11856_v15 = vpop.f32.mrb[107].mxu0  ;;  %12014 = vmatmul.mubr.msk.f32.gmra.mrb[212].mxu0 %vm188_vm1, %v6964_v2  ;;  %v11674_v7 = vpop.f32.mrb[107].mxu1  ;;  %v7877_v30 = vmax.f32 %v7796_v45, 0.0  ;;  %v7950_v2 = vunpack.c.l.s4 %v12192_v8 }
 0x5ad   :  { %12016 = vmatprep.mubr.msk.f32.mxu0 %vm12191_vm2, %v18918_v23  ;;  %v7952_v22 = vlaneseq }
 0x5ae   :  { %v7797_v10 = vadd.f32 %v18222_v47, %v7709_v26 }
 0x5af   :  { %v6596_v25 = vpop.f32.mrb[108].mxu1  ;;  %v7370_v36 = vpop.f32.mrb[108].mxu0 }
 0x5b0   :  { %v7878_v50 = vmax.f32 %v7797_v10, 0.0  ;;  %v18446_v52 = vadd.f32 %v6596_v25, %v17425_v37  ;;  %v7710_v5 = vadd.f32 %v7370_v36, %v18127_v55  ;;  %v11859_v62 = vpop.f32.mrb[109].mxu0  ;;  %12017 = vmatmul.mubr.msk.f32.gmra.mrb[214].mxu0 %vm188_vm1, %v6965_v20  ;;  %v11677_v43 = vpop.f32.mrb[109].mxu1  ;;  %v7951_v20 = vunpack.c.0.s8 %v7950_v2  ;;  %v6967_v10 = vld [vmem:[%s18883_s0 + $0x25e] sm:$0xff] }
 0x5b1   :  { %12019 = vmatprep.mubr.msk.f32.mxu0 %vm12191_vm2, %v18918_v23  ;;  %v7953_v25 = vshrl.u32 %v7952_v22, 7  ;;  %v19193_v43 = vld [vmem:[#allocation18_spill] sm:$0xff] }
 0x5b2   :  { %v18455_v39 = vpack.c.bf16 %v7878_v50, %v7877_v30  ;;  %v7798_v55 = vadd.f32 %v18222_v47, %v7710_v5 }
 0x5b3   :  { %v6601_v37 = vpop.f32.mrb[110].mxu1  ;;  %v7375_v11 = vpop.f32.mrb[110].mxu0  ;;  %v18474_v50 = vsub.s32 %v7951_v20, %v7953_v25  ;;  %v19194_v20 = vld [vmem:[#allocation19_spill] sm:$0xff] }
 0x5b4   :  { %v18459_v45 = vadd.f32 %v6601_v37, %v17443_v9  ;;  %v7711_v26 = vadd.f32 %v7375_v11, %v18145_v59  ;;  %v11862_v15 = vpop.f32.mrb[111].mxu0  ;;  %12020 = vmatmul.mubr.msk.f32.gmra.mrb[216].mxu0 %vm188_vm1, %v6966_v24  ;;  %v11680_v7 = vpop.f32.mrb[111].mxu1  ;;  %v18472_v59 = vld [vmem:[%s18886_s3] sm:$0xff]  ;;  %v7879_v5 = vmax.f32 %v7798_v55, 0.0 }
 0x5b5   :  { %12022 = vmatprep.mubr.msk.f32.mxu0 %vm12191_vm2, %v18918_v23  ;;  %v6968_v37 = vld [vmem:[%s18883_s0 + $0x266] sm:$0xff]  ;;  %v18488_v11 = vrot.slane %v18472_v59, %v18474_v50 }
 0x5b6   :  { %v7799_v36 = vadd.f32 %v18222_v47, %v7711_v26 }
 0x5b7   :  { %v6606_v30 = vpop.f32.mrb[112].mxu1  ;;  %v7380_v9 = vpop.f32.mrb[112].mxu0 }
 0x5b8   :  { %v7880_v62 = vmax.f32 %v7799_v36, 0.0  ;;  %v18477_v24 = vadd.f32 %v6606_v30, %v19193_v43  ;;  %v7712_v8 = vadd.f32 %v7380_v9, %v18163_v27  ;;  %12023 = vmatmul.mubr.msk.f32.gmra.mrb[218].mxu0 %vm188_vm1, %v6967_v10  ;;  %v11683_v2 = vpop.f32.mrb[113].mxu1  ;;  %v11865_v22 = vpop.f32.mrb[113].mxu0  ;;  %v7963_v27 = vcombine.high %v18488_v11, %v18488_v11  ;;  %v6969_v9 = vld [vmem:[%s18883_s0 + $0x26e] sm:$0xff] }
 0x5b9   :  { %12025 = vmatprep.mubr.msk.f32.mxu0 %vm12191_vm2, %v18918_v23  ;;  %v19195_v2 = vld [vmem:[#allocation20_spill] sm:$0xff] }
 0x5ba   :  { %v12063_v55 = vpack.c.bf16 %v7880_v62, %v7879_v5  ;;  %v7800_v7 = vadd.f32 %v18222_v47, %v7712_v8  ;;  %8045 = vmatprep.mubr.f32.mxu1 %v7963_v27 }
 0x5bb   :  { %v6611_v26 = vpop.f32.mrb[114].mxu1  ;;  %v7385_v15 = vpop.f32.mrb[114].mxu0 }
 0x5bc   :  { %v18494_v10 = vadd.f32 %v6611_v26, %v19194_v20  ;;  %v7713_v25 = vadd.f32 %v7385_v15, %v18181_v58  ;;  %12026 = vmatmul.mubr.msk.f32.gmra.mrb[220].mxu0 %vm188_vm1, %v6968_v37  ;;  %12064 = vmatprep.subr.bf16.mxu1 %v12063_v55  ;;  %v11686_v36 = vpop.f32.mrb[115].mxu1  ;;  %v11868_v30 = vpop.f32.mrb[115].mxu0  ;;  %v7881_v58 = vmax.f32 %v7800_v7, 0.0  ;;  %v6970_v26 = vld [vmem:[%s18883_s0 + $0x276] sm:$0xff] }
 0x5bd   :  { %12066 = vmatpush3.bf16.msra.mxu1 %v18268_v19  ;;  %12028 = vmatprep.mubr.msk.f32.mxu0 %vm12191_vm2, %v18918_v23 }
 0x5be   :  { %v7801_v5 = vadd.f32 %v18222_v47, %v7713_v25  ;;  %v19196_v25 = vld [vmem:[#allocation51_spill] sm:$0xff] }
 0x5bf   :  { %v6616_v62 = vpop.f32.mrb[116].mxu1  ;;  %v7390_v43 = vpop.f32.mrb[116].mxu0 }
 0x5c0   :  { %v7882_v8 = vmax.f32 %v7801_v5, 0.0  ;;  %v18506_v22 = vadd.f32 %v6616_v62, %v19195_v2  ;;  %v7714_v37 = vadd.f32 %v7390_v43, %v18199_v21  ;;  %12029 = vmatmul.mubr.msk.f32.gmra.mrb[222].mxu0 %vm188_vm1, %v6969_v9  ;;  %v11689_v19 = vpop.f32.mrb[117].mxu1  ;;  %v11871_v55 = vpop.f32.mrb[117].mxu0  ;;  %v6971_v5 = vld [vmem:[%s18883_s0 + $0x27e] sm:$0xff]  ;;  %v19197_v2 = vld [vmem:[#allocation22_spill] sm:$0xff] }
 0x5c1   :  { %12031 = vmatprep.mubr.msk.f32.mxu0 %vm12191_vm2, %v18918_v23 }
 0x5c2   :  { %v12067_v15 = vpack.c.bf16 %v7882_v8, %v7881_v58  ;;  %v7802_v20 = vadd.f32 %v18222_v47, %v7714_v37 }
 0x5c3   :  { %v6621_v27 = vpop.f32.mrb[118].mxu1  ;;  %v7395_v7 = vpop.f32.mrb[118].mxu0 }
 0x5c4   :  { %v18517_v36 = vadd.f32 %v6621_v27, %v19196_v25  ;;  %v7715_v21 = vadd.f32 %v7395_v7, %v18214_v0  ;;  %12032 = vmatmul.mubr.msk.f32.gmra.mrb[224].mxu0 %vm188_vm1, %v6970_v26  ;;  %12068 = vmatprep.subr.bf16.mxu1 %v12067_v15  ;;  %v11692_v30 = vpop.f32.mrb[119].mxu1  ;;  %v11874_v9 = vpop.f32.mrb[119].mxu0  ;;  %v7883_v8 = vmax.f32 %v7802_v20, 0.0  ;;  %v6972_v26 = vld [vmem:[%s18883_s0 + $0x286] sm:$0xff]  ;;  %v19198_v25 = vld [vmem:[#allocation23_spill] sm:$0xff] }
 0x5c5   :  { %12070 = vmatpush3.bf16.msra.mxu1 %v18304_v16  ;;  %12034 = vmatprep.mubr.msk.f32.mxu0 %vm12191_vm2, %v18918_v23 }
 0x5c6   :  { %v7803_v62 = vadd.f32 %v18222_v47, %v7715_v21 }
 0x5c7   :  { %v6626_v43 = vpop.f32.mrb[120].mxu1  ;;  %v7400_v58 = vpop.f32.mrb[120].mxu0 }
 0x5c8   :  { %v7884_v0 = vmax.f32 %v7803_v62, 0.0  ;;  %v18529_v37 = vadd.f32 %v6626_v43, %v19197_v2  ;;  %v7716_v19 = vadd.f32 %v7400_v58, %v18236_v13  ;;  %12035 = vmatmul.mubr.msk.f32.gmra.mrb[226].mxu0 %vm188_vm1, %v6971_v5  ;;  %v11695_v16 = vpop.f32.mrb[121].mxu1  ;;  %v11877_v55 = vpop.f32.mrb[121].mxu0  ;;  %v6973_v5 = vld [vmem:[%s18883_s0 + $0x28e] sm:$0xff] }
 0x5c9   :  { %12037 = vmatprep.mubr.msk.f32.mxu0 %vm12191_vm2, %v18918_v23  ;;  %v6974_v55 = vld [vmem:[%s18883_s0 + $0x296] sm:$0xff] }
 0x5ca   :  { %v12071_v15 = vpack.c.bf16 %v7884_v0, %v7883_v8  ;;  %v7804_v20 = vadd.f32 %v18222_v47, %v7716_v19  ;;  %v19199_v0 = vld [vmem:[#allocation24_spill] sm:$0xff] }
 0x5cb   :  { %v6631_v27 = vpop.f32.mrb[122].mxu1  ;;  %v7405_v7 = vpop.f32.mrb[122].mxu0 }
 0x5cc   :  { %v18540_v21 = vadd.f32 %v6631_v27, %v19198_v25  ;;  %v7717_v13 = vadd.f32 %v7405_v7, %v18253_v34  ;;  %12038 = vmatmul.mubr.msk.f32.gmra.mrb[228].mxu0 %vm188_vm1, %v6972_v26  ;;  %12072 = vmatprep.subr.bf16.mxu1 %v12071_v15  ;;  %v11698_v30 = vpop.f32.mrb[123].mxu1  ;;  %v11880_v9 = vpop.f32.mrb[123].mxu0  ;;  %v7885_v8 = vmax.f32 %v7804_v20, 0.0  ;;  %v19200_v20 = vld [vmem:[#allocation25_spill] sm:$0xff] }
 0x5cd   :  { %12074 = vmatpush3.bf16.msra.mxu1 %v18335_v40  ;;  %12040 = vmatprep.mubr.msk.f32.mxu0 %vm12191_vm2, %v18918_v23  ;;  %v6975_v9 = vld [vmem:[%s18883_s0 + $0x29e] sm:$0xff] }
 0x5ce   :  { %v7805_v62 = vadd.f32 %v18222_v47, %v7717_v13 }
 0x5cf   :  { %v6636_v43 = vpop.f32.mrb[124].mxu1  ;;  %v7410_v58 = vpop.f32.mrb[124].mxu0 }
 0x5d0   :  { %v7886_v34 = vmax.f32 %v7805_v62, 0.0  ;;  %v18552_v2 = vadd.f32 %v6636_v43, %v19199_v0  ;;  %v7718_v19 = vadd.f32 %v7410_v58, %v18272_v41  ;;  %12041 = vmatmul.mubr.msk.f32.gmra.mrb[230].mxu0 %vm188_vm1, %v6973_v5  ;;  %v11701_v40 = vpop.f32.mrb[125].mxu1  ;;  %v11883_v16 = vpop.f32.mrb[125].mxu0 }
 0x5d1   :  { %12043 = vmatprep.mubr.msk.f32.mxu0 %vm12191_vm2, %v18918_v23  ;;  %v6976_v40 = vld [vmem:[%s18883_s0 + $0x2a6] sm:$0xff] }
 0x5d2   :  { %v12075_v26 = vpack.c.bf16 %v7886_v34, %v7885_v8  ;;  %v7806_v7 = vadd.f32 %v18222_v47, %v7718_v19  ;;  %v19201_v8 = vld [vmem:[#allocation26_spill] sm:$0xff] }
 0x5d3   :  { %v6641_v15 = vpop.f32.mrb[126].mxu1  ;;  %v7415_v27 = vpop.f32.mrb[126].mxu0 }
 0x5d4   :  { %v18563_v25 = vadd.f32 %v6641_v15, %v19200_v20  ;;  %v7719_v41 = vadd.f32 %v7415_v27, %v18289_v60  ;;  %12044 = vmatmul.mubr.msk.f32.gmra.mrb[232].mxu0 %vm188_vm1, %v6974_v55  ;;  %12076 = vmatprep.subr.bf16.mxu1 %v12075_v26  ;;  %v11704_v13 = vpop.f32.mrb[127].mxu1  ;;  %v11886_v30 = vpop.f32.mrb[127].mxu0  ;;  %v7887_v58 = vmax.f32 %v7806_v7, 0.0  ;;  %v19202_v27 = vld [vmem:[#allocation27_spill] sm:$0xff] }
 0x5d5   :  { %12078 = vmatpush3.bf16.msra.mxu1 %v18359_v32  ;;  %12046 = vmatprep.mubr.msk.f32.mxu0 %vm12191_vm2, %v18918_v23 }
 0x5d6   :  { %v7807_v5 = vadd.f32 %v18222_v47, %v7719_v41 }
 0x5d7   :  { %v6646_v62 = vpop.f32.mrb[128].mxu1  ;;  %v7420_v43 = vpop.f32.mrb[128].mxu0 }
 0x5d8   :  { %v7888_v60 = vmax.f32 %v7807_v5, 0.0  ;;  %v18575_v34 = vadd.f32 %v6646_v62, %v19201_v8  ;;  %v7720_v0 = vadd.f32 %v7420_v43, %v18308_v46  ;;  %12047 = vmatmul.mubr.msk.f32.gmra.mrb[234].mxu0 %vm188_vm1, %v6975_v9  ;;  %v11707_v32 = vpop.f32.mrb[129].mxu1  ;;  %v11889_v19 = vpop.f32.mrb[129].mxu0  ;;  %v19203_v43 = vld [vmem:[#allocation28_spill] sm:$0xff] }
 0x5d9   :  { %12049 = vmatprep.mubr.msk.f32.mxu0 %vm12191_vm2, %v18918_v23 }
 0x5da   :  { %v12079_v16 = vpack.c.bf16 %v7888_v60, %v7887_v58  ;;  %v7808_v15 = vadd.f32 %v18222_v47, %v7720_v0 }
 0x5db   :  { %v6651_v55 = vpop.f32.mrb[130].mxu1  ;;  %v7425_v26 = vpop.f32.mrb[130].mxu0 }
 0x5dc   :  { %v18586_v7 = vadd.f32 %v6651_v55, %v19202_v27  ;;  %v7721_v46 = vadd.f32 %v7425_v26, %v18325_v17  ;;  %12050 = vmatmul.mubr.msk.f32.gmra.mrb[236].mxu0 %vm188_vm1, %v6976_v40  ;;  %12080 = vmatprep.subr.bf16.mxu1 %v12079_v16  ;;  %v11710_v20 = vpop.f32.mrb[131].mxu1  ;;  %v11892_v41 = vpop.f32.mrb[131].mxu0  ;;  %v7889_v5 = vmax.f32 %v7808_v15, 0.0  ;;  %v19204_v16 = vld [vmem:[#allocation21_spill] sm:$0xff] }
 0x5dd   :  { %12082 = vmatpush3.bf16.msra.mxu1 %v18383_v33 }
 0x5de   :  { %v7809_v13 = vadd.f32 %v18222_v47, %v7721_v46 }
 0x5df   :  { %v6656_v30 = vpop.f32.mrb[132].mxu1  ;;  %v7430_v9 = vpop.f32.mrb[132].mxu0 }
 0x5e0   :  { %v7890_v62 = vmax.f32 %v7809_v13, 0.0  ;;  %v18593_v58 = vadd.f32 %v6656_v30, %v19203_v43  ;;  %v7722_v60 = vadd.f32 %v7430_v9, %v18339_v38  ;;  %v11713_v8 = vpop.f32.mrb[133].mxu1  ;;  %v11895_v17 = vpop.f32.mrb[133].mxu0  ;;  %v19205_v13 = vld [vmem:[#allocation29_spill] sm:$0xff] }
 0x5e1   :  { %v19206_v17 = vld [vmem:[#allocation30_spill] sm:$0xff] }
 0x5e2   :  { %v12083_v0 = vpack.c.bf16 %v7890_v62, %v7889_v5  ;;  %v7810_v40 = vadd.f32 %v18222_v47, %v7722_v60 }
 0x5e3   :  { %v6661_v32 = vpop.f32.mrb[134].mxu1  ;;  %v7435_v19 = vpop.f32.mrb[134].mxu0 }
 0x5e4   :  { %v18598_v33 = vadd.f32 %v6661_v32, %v19204_v16  ;;  %v7723_v55 = vadd.f32 %v7435_v19, %v18350_v48  ;;  %12084 = vmatprep.subr.bf16.mxu1 %v12083_v0  ;;  %v11716_v26 = vpop.f32.mrb[135].mxu1  ;;  %v11898_v15 = vpop.f32.mrb[135].mxu0  ;;  %v7891_v20 = vmax.f32 %v7810_v40, 0.0 }
 0x5e5   :  { %12086 = vmatpush3.bf16.msra.mxu1 %v18407_v61  ;;  %v19207_v15 = vld [vmem:[#allocation33_spill] sm:$0xff] }
 0x5e6   :  { %v7811_v27 = vadd.f32 %v18222_v47, %v7723_v55 }
 0x5e7   :  { %v6666_v38 = vpop.f32.mrb[136].mxu1  ;;  %v7440_v46 = vpop.f32.mrb[136].mxu0 }
 0x5e8   :  { %v7892_v41 = vmax.f32 %v7811_v27, 0.0  ;;  %v18604_v30 = vadd.f32 %v6666_v38, %v19205_v13  ;;  %v7724_v9 = vadd.f32 %v7440_v46, %v18363_v63  ;;  %v11719_v5 = vpop.f32.mrb[137].mxu1  ;;  %v11901_v62 = vpop.f32.mrb[137].mxu0 }
 0x5e9   :  { %v19208_v62 = vld [vmem:[#allocation34_spill] sm:$0xff] }
 0x5ea   :  { %v12087_v43 = vpack.c.bf16 %v7892_v41, %v7891_v20  ;;  %v7812_v8 = vadd.f32 %v18222_v47, %v7724_v9 }
 0x5eb   :  { %v6671_v48 = vpop.f32.mrb[138].mxu1  ;;  %v7445_v60 = vpop.f32.mrb[138].mxu0 }
 0x5ec   :  { %v18609_v61 = vadd.f32 %v6671_v48, %v19206_v17  ;;  %v7725_v0 = vadd.f32 %v7445_v60, %v18374_v6  ;;  %12088 = vmatprep.subr.bf16.mxu1 %v12087_v43  ;;  %v11722_v32 = vpop.f32.mrb[139].mxu1  ;;  %v11904_v19 = vpop.f32.mrb[139].mxu0  ;;  %v7893_v55 = vmax.f32 %v7812_v8, 0.0  ;;  %v7948_v6 = vcombine.high %v18472_v59, %v18472_v59 }
 0x5ed   :  { %12090 = vmatpush3.bf16.msra.mxu1 %v18431_v1  ;;  %v19209_v19 = vld [vmem:[#allocation35_spill] sm:$0xff] }
 0x5ee   :  { %v7813_v40 = vadd.f32 %v18222_v47, %v7725_v0  ;;  %v18621_v1 = vrot.slane %v7948_v6, %v18474_v50 }
 0x5ef   :  { %v6676_v63 = vpop.f32.mrb[140].mxu1  ;;  %v7450_v16 = vpop.f32.mrb[140].mxu0 }
 0x5f0   :  { %v7894_v26 = vmax.f32 %v7813_v40, 0.0  ;;  %v18615_v27 = vadd.f32 %v6676_v63, %v19207_v15  ;;  %v7726_v38 = vadd.f32 %v7450_v16, %v18387_v49  ;;  %v11725_v46 = vpop.f32.mrb[141].mxu1  ;;  %v11907_v20 = vpop.f32.mrb[141].mxu0  ;;  %v7964_v59 = vcombine.high %v18621_v1, %v18621_v1 }
 0x5f2   :  { %v12091_v41 = vpack.c.bf16 %v7894_v26, %v7893_v55  ;;  %v7814_v5 = vadd.f32 %v18222_v47, %v7726_v38  ;;  %v19210_v38 = vld [vmem:[#allocation36_spill] sm:$0xff] }
 0x5f3   :  { %v6681_v13 = vpop.f32.mrb[142].mxu1  ;;  %v7455_v9 = vpop.f32.mrb[142].mxu0 }
 0x5f4   :  { %v18625_v43 = vadd.f32 %v6681_v13, %v19208_v62  ;;  %v7727_v48 = vadd.f32 %v7455_v9, %v18398_v56  ;;  %12092 = vmatprep.subr.bf16.mxu1 %v12091_v41  ;;  %v11728_v49 = vpop.f32.mrb[143].mxu1  ;;  %v11910_v60 = vpop.f32.mrb[143].mxu0  ;;  %v7895_v0 = vmax.f32 %v7814_v5, 0.0  ;;  %v19211_v62 = vld [vmem:[#allocation37_spill] sm:$0xff] }
 0x5f5   :  { %12094 = vmatpush3.bf16.msra.mxu1 %v18455_v39 }
 0x5f6   :  { %v7815_v8 = vadd.f32 %v18222_v47, %v7727_v48 }
 0x5f7   :  { %v6686_v17 = vpop.f32.mrb[144].mxu1  ;;  %v7460_v50 = vpop.f32.mrb[144].mxu0 }
 0x5f8   :  { %v7896_v32 = vmax.f32 %v7815_v8, 0.0  ;;  %v18633_v40 = vadd.f32 %v6686_v17, %v19209_v19  ;;  %v7728_v63 = vadd.f32 %v7460_v50, %v18411_v53  ;;  %v11731_v56 = vpop.f32.mrb[145].mxu1  ;;  %v11913_v16 = vpop.f32.mrb[145].mxu0  ;;  %8046 = vmatmul.mubr.f32.vlgmr.msra.gmra.mrb[196].mxu1 %v18488_v11 }
 0x5f9   :  { %8115 = vmatprep.mubr.f32.mxu1 %v7964_v59 }
 0x5fa   :  { %v18637_v39 = vpack.c.bf16 %v7896_v32, %v7895_v0  ;;  %v7816_v15 = vadd.f32 %v18222_v47, %v7728_v63  ;;  %v19212_v0 = vld [vmem:[#allocation38_spill] sm:$0xff] }
 0x5fb   :  { %v6691_v55 = vpop.f32.mrb[146].mxu1  ;;  %v7465_v26 = vpop.f32.mrb[146].mxu0 }
 0x5fc   :  { %v18641_v46 = vadd.f32 %v6691_v55, %v19210_v38  ;;  %v7729_v20 = vadd.f32 %v7465_v26, %v18422_v54  ;;  %v11734_v6 = vpop.f32.mrb[147].mxu1  ;;  %v11916_v41 = vpop.f32.mrb[147].mxu0  ;;  %v7897_v5 = vmax.f32 %v7816_v15, 0.0  ;;  %v19213_v38 = vld [vmem:[#allocation39_spill] sm:$0xff] }
 0x5fe   :  { %v7817_v53 = vadd.f32 %v18222_v47, %v7729_v20 }
 0x5ff   :  { %v6696_v13 = vpop.f32.mrb[148].mxu1  ;;  %v7470_v9 = vpop.f32.mrb[148].mxu0 }
 0x600   :  { %v7898_v11 = vmax.f32 %v7817_v53, 0.0  ;;  %v18646_v48 = vadd.f32 %v6696_v13, %v19211_v62  ;;  %v7730_v49 = vadd.f32 %v7470_v9, %v18435_v12  ;;  %v11737_v60 = vpop.f32.mrb[149].mxu1  ;;  %v11919_v59 = vpop.f32.mrb[149].mxu0 }
 0x602   :  { %v18649_v8 = vpack.c.bf16 %v7898_v11, %v7897_v5  ;;  %v7818_v54 = vadd.f32 %v18222_v47, %v7730_v49  ;;  %v19214_v11 = vld [vmem:[#allocation40_spill] sm:$0xff] }
 0x603   :  { %v6701_v17 = vpop.f32.mrb[150].mxu1  ;;  %v7475_v50 = vpop.f32.mrb[150].mxu0 }
 0x604   :  { %v18653_v32 = vadd.f32 %v6701_v17, %v19212_v0  ;;  %v7731_v19 = vadd.f32 %v7475_v50, %v18446_v52  ;;  %v11740_v63 = vpop.f32.mrb[151].mxu1  ;;  %v11922_v56 = vpop.f32.mrb[151].mxu0  ;;  %v7899_v12 = vmax.f32 %v7818_v54, 0.0 }
 0x606   :  { %v7819_v16 = vadd.f32 %v18222_v47, %v7731_v19  ;;  %v19215_v19 = vld [vmem:[#allocation41_spill] sm:$0xff] }
 0x607   :  { %v6706_v55 = vpop.f32.mrb[152].mxu1  ;;  %v7480_v26 = vpop.f32.mrb[152].mxu0 }
 0x608   :  { %v7900_v15 = vmax.f32 %v7819_v16, 0.0  ;;  %v18658_v20 = vadd.f32 %v6706_v55, %v19213_v38  ;;  %v7732_v6 = vadd.f32 %v7480_v26, %v18459_v45  ;;  %v11743_v41 = vpop.f32.mrb[153].mxu1  ;;  %v11925_v53 = vpop.f32.mrb[153].mxu0  ;;  %v19216_v38 = vld [vmem:[#allocation42_spill] sm:$0xff] }
 0x60a   :  { %v18661_v13 = vpack.c.bf16 %v7900_v15, %v7899_v12  ;;  %v7820_v52 = vadd.f32 %v18222_v47, %v7732_v6 }
 0x60b   :  { %v6711_v9 = vpop.f32.mrb[154].mxu1  ;;  %v7485_v5 = vpop.f32.mrb[154].mxu0 }
 0x60c   :  { %v18665_v62 = vadd.f32 %v6711_v9, %v19214_v11  ;;  %v7733_v49 = vadd.f32 %v7485_v5, %v18477_v24  ;;  %v11746_v60 = vpop.f32.mrb[155].mxu1  ;;  %v11928_v59 = vpop.f32.mrb[155].mxu0  ;;  %v7901_v45 = vmax.f32 %v7820_v52, 0.0 }
 0x60d   :  { %v19217_v60 = vld [vmem:[#allocation43_spill] sm:$0xff] }
 0x60e   :  { %v7821_v17 = vadd.f32 %v18222_v47, %v7733_v49 }
 0x60f   :  { %v6716_v50 = vpop.f32.mrb[156].mxu1  ;;  %v7490_v54 = vpop.f32.mrb[156].mxu0 }
 0x610   :  { %v7902_v0 = vmax.f32 %v7821_v17, 0.0  ;;  %v18670_v63 = vadd.f32 %v6716_v50, %v19215_v19  ;;  %v7734_v56 = vadd.f32 %v7490_v54, %v18494_v10  ;;  %v11749_v16 = vpop.f32.mrb[157].mxu1  ;;  %v11931_v55 = vpop.f32.mrb[157].mxu0 }
 0x612   :  { %v18673_v26 = vpack.c.bf16 %v7902_v0, %v7901_v45  ;;  %v7822_v24 = vadd.f32 %v18222_v47, %v7734_v56  ;;  %v19218_v56 = vld [vmem:[#allocation44_spill] sm:$0xff] }
 0x613   :  { %v6721_v12 = vpop.f32.mrb[158].mxu1  ;;  %v7495_v15 = vpop.f32.mrb[158].mxu0 }
 0x614   :  { %v18677_v6 = vadd.f32 %v6721_v12, %v19216_v38  ;;  %v7735_v41 = vadd.f32 %v7495_v15, %v18506_v22  ;;  %v11752_v53 = vpop.f32.mrb[159].mxu1  ;;  %v11934_v9 = vpop.f32.mrb[159].mxu0  ;;  %v7903_v10 = vmax.f32 %v7822_v24, 0.0 }
 0x616   :  { %v7823_v5 = vadd.f32 %v18222_v47, %v7735_v41 }
 0x617   :  { %v6726_v52 = vpop.f32.mrb[160].mxu1  ;;  %v7500_v11 = vpop.f32.mrb[160].mxu0 }
 0x618   :  { %v7904_v49 = vmax.f32 %v7823_v5, 0.0  ;;  %v18682_v59 = vadd.f32 %v6726_v52, %v19217_v60  ;;  %v7736_v17 = vadd.f32 %v7500_v11, %v18517_v36  ;;  %v11755_v50 = vpop.f32.mrb[161].mxu1  ;;  %v11937_v54 = vpop.f32.mrb[161].mxu0 }
 0x61a   :  { %v18685_v45 = vpack.c.bf16 %v7904_v49, %v7903_v10  ;;  %v7824_v22 = vadd.f32 %v18222_v47, %v7736_v17 }
 0x61b   :  { %v6731_v0 = vpop.f32.mrb[162].mxu1  ;;  %v7505_v19 = vpop.f32.mrb[162].mxu0 }
 0x61c   :  { %v18689_v16 = vadd.f32 %v6731_v0, %v19218_v56  ;;  %v7737_v55 = vadd.f32 %v7505_v19, %v18529_v37  ;;  %v11758_v12 = vpop.f32.mrb[163].mxu1  ;;  %v11940_v15 = vpop.f32.mrb[163].mxu0  ;;  %v7905_v36 = vmax.f32 %v7824_v22, 0.0 }
 0x61e   :  { %v7825_v24 = vadd.f32 %v18222_v47, %v7737_v55 }
 0x61f   :  { %v6736_v38 = vpop.f32.mrb[164].mxu1  ;;  %v7510_v41 = vpop.f32.mrb[164].mxu0 }
 0x620   :  { %v7906_v53 = vmax.f32 %v7825_v24, 0.0  ;;  %v18694_v9 = vadd.f32 %v6736_v38, %v17926_v57  ;;  %v7738_v5 = vadd.f32 %v7510_v41, %v18540_v21  ;;  %v11761_v52 = vpop.f32.mrb[165].mxu1  ;;  %v11943_v11 = vpop.f32.mrb[165].mxu0  ;;  %v18707_v57 = vld [vmem:[%s18885_s2] ss:$0 sm:$0xff] }
 0x622   :  { %v18697_v10 = vpack.c.bf16 %v7906_v53, %v7905_v36  ;;  %v7826_v37 = vadd.f32 %v18222_v47, %v7738_v5 }
 0x623   :  { %v6741_v49 = vpop.f32.mrb[166].mxu1  ;;  %v7515_v60 = vpop.f32.mrb[166].mxu0 }
 0x624   :  { %v18701_v17 = vadd.f32 %v6741_v49, %v17944_v29  ;;  %v7739_v50 = vadd.f32 %v7515_v60, %v18552_v2  ;;  %v11764_v54 = vpop.f32.mrb[167].mxu1  ;;  %v11946_v0 = vpop.f32.mrb[167].mxu0  ;;  %v7907_v56 = vmax.f32 %v7826_v37, 0.0 }
 0x626   :  { %v7827_v21 = vadd.f32 %v18707_v57, %v7739_v50 }
 0x627   :  { %v6746_v19 = vpop.f32.mrb[168].mxu1  ;;  %v7520_v22 = vpop.f32.mrb[168].mxu0 }
 0x628   :  { %v7908_v55 = vmax.f32 %v7827_v21, 0.0  ;;  %v18711_v47 = vadd.f32 %v6746_v19, %v17962_v14  ;;  %v7740_v29 = vadd.f32 %v7520_v22, %v18563_v25  ;;  %v11767_v12 = vpop.f32.mrb[169].mxu1  ;;  %v11949_v2 = vpop.f32.mrb[169].mxu0 }
 0x62a   :  { %v18714_v15 = vpack.c.bf16 %v7908_v55, %v7907_v56  ;;  %v7828_v41 = vadd.f32 %v18707_v57, %v7740_v29 }
 0x62b   :  { %v6751_v24 = vpop.f32.mrb[170].mxu1  ;;  %v7525_v38 = vpop.f32.mrb[170].mxu0 }
 0x62c   :  { %v18718_v36 = vadd.f32 %v6751_v24, %v17980_v51  ;;  %v7741_v53 = vadd.f32 %v7525_v38, %v18575_v34  ;;  %v11770_v5 = vpop.f32.mrb[171].mxu1  ;;  %v11952_v52 = vpop.f32.mrb[171].mxu0  ;;  %v7909_v25 = vmax.f32 %v7828_v41, 0.0 }
 0x62e   :  { %v7829_v14 = vadd.f32 %v18707_v57, %v7741_v53 }
 0x62f   :  { %v6756_v11 = vpop.f32.mrb[172].mxu1  ;;  %v7530_v49 = vpop.f32.mrb[172].mxu0 }
 0x630   :  { %v7910_v60 = vmax.f32 %v7829_v14, 0.0  ;;  %v18723_v37 = vadd.f32 %v6756_v11, %v17998_v42  ;;  %v7742_v50 = vadd.f32 %v7530_v49, %v18586_v7  ;;  %v11773_v54 = vpop.f32.mrb[173].mxu1  ;;  %v11955_v0 = vpop.f32.mrb[173].mxu0 }
 0x632   :  { %v18726_v21 = vpack.c.bf16 %v7910_v60, %v7909_v25  ;;  %v7830_v34 = vadd.f32 %v18707_v57, %v7742_v50 }
 0x633   :  { %v6761_v51 = vpop.f32.mrb[174].mxu1  ;;  %v7535_v19 = vpop.f32.mrb[174].mxu0 }
 0x634   :  { %v18730_v22 = vadd.f32 %v6761_v51, %v18016_v31  ;;  %v7743_v56 = vadd.f32 %v7535_v19, %v18593_v58  ;;  %v11776_v55 = vpop.f32.mrb[175].mxu1  ;;  %v11958_v29 = vpop.f32.mrb[175].mxu0  ;;  %v7911_v7 = vmax.f32 %v7830_v34, 0.0 }
 0x636   :  { %v7831_v42 = vadd.f32 %v18707_v57, %v7743_v56 }
 0x637   :  { %v6766_v12 = vpop.f32.mrb[176].mxu1  ;;  %v7540_v2 = vpop.f32.mrb[176].mxu0 }
 0x638   :  { %v7912_v24 = vmax.f32 %v7831_v42, 0.0  ;;  %v18735_v38 = vadd.f32 %v6766_v12, %v18034_v18  ;;  %v7744_v41 = vadd.f32 %v7540_v2, %v18598_v33  ;;  %v11779_v53 = vpop.f32.mrb[177].mxu1  ;;  %v11961_v5 = vpop.f32.mrb[177].mxu0 }
 0x63a   :  { %v12095_v52 = vpack.c.bf16 %v7912_v24, %v7911_v7  ;;  %v7832_v58 = vadd.f32 %v18707_v57, %v7744_v41 }
 0x63b   :  { %v6771_v31 = vpop.f32.mrb[178].mxu1  ;;  %v7545_v14 = vpop.f32.mrb[178].mxu0 }
 0x63c   :  { %v18740_v11 = vadd.f32 %v6771_v31, %v18052_v3  ;;  %v7745_v49 = vadd.f32 %v7545_v14, %v18604_v30  ;;  %12096 = vmatprep.subr.bf16.mxu1 %v12095_v52  ;;  %v11782_v25 = vpop.f32.mrb[179].mxu1  ;;  %v11964_v60 = vpop.f32.mrb[179].mxu0  ;;  %v7913_v54 = vmax.f32 %v7832_v58, 0.0 }
 0x63d   :  { %12098 = vmatpush3.bf16.msra.mxu1 %v18637_v39 }
 0x63e   :  { %v7833_v18 = vadd.f32 %v18707_v57, %v7745_v49 }
 0x63f   :  { %v6776_v33 = vpop.f32.mrb[180].mxu1  ;;  %v7550_v50 = vpop.f32.mrb[180].mxu0 }
 0x640   :  { %v7914_v0 = vmax.f32 %v7833_v18, 0.0  ;;  %v18746_v51 = vadd.f32 %v6776_v33, %v18070_v28  ;;  %v7746_v19 = vadd.f32 %v7550_v50, %v18609_v61  ;;  %v11785_v3 = vpop.f32.mrb[181].mxu1  ;;  %v11967_v34 = vpop.f32.mrb[181].mxu0 }
 0x642   :  { %v12099_v56 = vpack.c.bf16 %v7914_v0, %v7913_v54  ;;  %v7834_v29 = vadd.f32 %v18707_v57, %v7746_v19  ;;  %v19219_v54 = vld [vmem:[#allocation45_spill] sm:$0xff] }
 0x643   :  { %v6781_v30 = vpop.f32.mrb[182].mxu1  ;;  %v7555_v55 = vpop.f32.mrb[182].mxu0 }
 0x644   :  { %v18751_v39 = vadd.f32 %v6781_v30, %v18088_v35  ;;  %v7747_v42 = vadd.f32 %v7555_v55, %v18615_v27  ;;  %12100 = vmatprep.subr.bf16.mxu1 %v12099_v56  ;;  %v11788_v12 = vpop.f32.mrb[183].mxu1  ;;  %v11970_v2 = vpop.f32.mrb[183].mxu0  ;;  %v7915_v24 = vmax.f32 %v7834_v29, 0.0  ;;  %v19220_v55 = vld [vmem:[#allocation31_spill] sm:$0xff] }
 0x645   :  { %12102 = vmatpush3.bf16.msra.mxu1 %v18649_v8 }
 0x646   :  { %v7835_v28 = vadd.f32 %v18707_v57, %v7747_v42 }
 0x647   :  { %v6786_v61 = vpop.f32.mrb[184].mxu1  ;;  %v7560_v7 = vpop.f32.mrb[184].mxu0 }
 0x648   :  { %v7916_v41 = vmax.f32 %v7835_v28, 0.0  ;;  %v18757_v53 = vadd.f32 %v6786_v61, %v18106_v4  ;;  %v7748_v5 = vadd.f32 %v7560_v7, %v18625_v43  ;;  %v11791_v35 = vpop.f32.mrb[185].mxu1  ;;  %v11973_v52 = vpop.f32.mrb[185].mxu0 }
 0x64a   :  { %v12103_v31 = vpack.c.bf16 %v7916_v41, %v7915_v24  ;;  %v7836_v58 = vadd.f32 %v18707_v57, %v7748_v5  ;;  %v19221_v24 = vld [vmem:[#allocation32_spill] sm:$0xff] }
 0x64b   :  { %v6791_v27 = vpop.f32.mrb[186].mxu1  ;;  %v7565_v14 = vpop.f32.mrb[186].mxu0 }
 0x64c   :  { %v18762_v8 = vadd.f32 %v6791_v27, %v18124_v44  ;;  %v7749_v49 = vadd.f32 %v7565_v14, %v18633_v40  ;;  %12104 = vmatprep.subr.bf16.mxu1 %v12103_v31  ;;  %v11794_v25 = vpop.f32.mrb[187].mxu1  ;;  %v11976_v60 = vpop.f32.mrb[187].mxu0  ;;  %v7917_v33 = vmax.f32 %v7836_v58, 0.0  ;;  %v19222_v58 = vld [vmem:[#allocation46_spill] sm:$0xff] }
 0x64d   :  { %12106 = vmatpush3.bf16.msra.mxu1 %v18661_v13 }
 0x64e   :  { %v7837_v4 = vadd.f32 %v18707_v57, %v7749_v49 }
 0x64f   :  { %v6796_v43 = vpop.f32.mrb[188].mxu1  ;;  %v7570_v18 = vpop.f32.mrb[188].mxu0 }
 0x650   :  { %v7918_v50 = vmax.f32 %v7837_v4, 0.0  ;;  %v18768_v0 = vadd.f32 %v6796_v43, %v19219_v54  ;;  %v7750_v19 = vadd.f32 %v7570_v18, %v18641_v46  ;;  %v11797_v44 = vpop.f32.mrb[189].mxu1  ;;  %v11979_v3 = vpop.f32.mrb[189].mxu0 }
 0x652   :  { %v12107_v34 = vpack.c.bf16 %v7918_v50, %v7917_v33  ;;  %v7838_v30 = vadd.f32 %v18707_v57, %v7750_v19 }
 0x653   :  { %v6801_v40 = vpop.f32.mrb[190].mxu1  ;;  %v7575_v56 = vpop.f32.mrb[190].mxu0 }
 0x654   :  { %v18773_v13 = vadd.f32 %v6801_v40, %v19220_v55  ;;  %v7751_v29 = vadd.f32 %v7575_v56, %v18646_v48  ;;  %12108 = vmatprep.subr.bf16.mxu1 %v12107_v34  ;;  %v11800_v42 = vpop.f32.mrb[191].mxu1  ;;  %v11982_v12 = vpop.f32.mrb[191].mxu0  ;;  %v7919_v61 = vmax.f32 %v7838_v30, 0.0 }
 0x655   :  { %12110 = vmatpush3.bf16.msra.mxu1 %v18673_v26 }
 0x656   :  { %v7839_v2 = vadd.f32 %v18707_v57, %v7751_v29 }
 0x657   :  { %v6806_v46 = vpop.f32.mrb[192].mxu1  ;;  %v7580_v28 = vpop.f32.mrb[192].mxu0 }
 0x658   :  { %v7920_v7 = vmax.f32 %v7839_v2, 0.0  ;;  %v18779_v41 = vadd.f32 %v6806_v46, %v19221_v24  ;;  %v7752_v5 = vadd.f32 %v7580_v28, %v18653_v32  ;;  %v11803_v35 = vpop.f32.mrb[193].mxu1  ;;  %v11985_v52 = vpop.f32.mrb[193].mxu0 }
 0x659   :  { %v18803_v24 = vld.sshfl [vmem:[%s18886_s3 + $0x8] sm:$0x33 pattern:$0x76325410] }
 0x65a   :  { %v12111_v31 = vpack.c.bf16 %v7920_v7, %v7919_v61  ;;  %v7840_v14 = vadd.f32 %v18707_v57, %v7752_v5  ;;  %v7972_v52 = vcombine.high %v18803_v24, %v18803_v24 }
 0x65b   :  { %v6811_v48 = vpop.f32.mrb[194].mxu1  ;;  %v7585_v27 = vpop.f32.mrb[194].mxu0 }
 0x65c   :  { %v18784_v26 = vadd.f32 %v6811_v48, %v19222_v58  ;;  %v7753_v49 = vadd.f32 %v7585_v27, %v18658_v20  ;;  %12112 = vmatprep.subr.bf16.mxu1 %v12111_v31  ;;  %v11988_v25 = vpop.f32.mrb[195].mxu0  ;;  %v11806_v60 = vpop.f32.mrb[195].mxu1  ;;  %v7921_v43 = vmax.f32 %v7840_v14, 0.0  ;;  %v12193_v31 = vmov 0.0|0.0  }
 0x65d   :  { %12114 = vmatpush3.bf16.msra.mxu1 %v18685_v45 }
 0x65e   :  { %v7841_v4 = vadd.f32 %v18707_v57, %v7753_v49 }
 0x65f   :  { %v7590_v32 = vpop.f32.mrb[196].mxu0 }
 0x660   :  { %v7922_v18 = vmax.f32 %v7841_v4, 0.0  ;;  %v7754_v33 = vadd.f32 %v7590_v32, %v18665_v62  ;;  %v11991_v50 = vpop.f32.mrb[197].mxu0 }
 0x662   :  { %v12115_v54 = vpack.c.bf16 %v7922_v18, %v7921_v43  ;;  %v7842_v44 = vadd.f32 %v18707_v57, %v7754_v33 }
 0x663   :  { %v7595_v19 = vpop.f32.mrb[198].mxu0 }
 0x664   :  { %v7755_v3 = vadd.f32 %v7595_v19, %v18670_v63  ;;  %12116 = vmatprep.subr.bf16.mxu1 %v12115_v54  ;;  %v11994_v20 = vpop.f32.mrb[199].mxu0  ;;  %v7923_v40 = vmax.f32 %v7842_v44, 0.0 }
 0x665   :  { %12118 = vmatpush3.bf16.msra.mxu1 %v18697_v10 }
 0x666   :  { %v7843_v45 = vadd.f32 %v18707_v57, %v7755_v3 }
 0x667   :  { %v7600_v34 = vpop.f32.mrb[200].mxu0 }
 0x668   :  { %v7924_v56 = vmax.f32 %v7843_v45, 0.0  ;;  %v7756_v30 = vadd.f32 %v7600_v34, %v18677_v6  ;;  %v11997_v55 = vpop.f32.mrb[201].mxu0 }
 0x66a   :  { %v12119_v62 = vpack.c.bf16 %v7924_v56, %v7923_v40  ;;  %v7844_v42 = vadd.f32 %v18707_v57, %v7756_v30 }
 0x66b   :  { %v7605_v29 = vpop.f32.mrb[202].mxu0 }
 0x66c   :  { %v7757_v12 = vadd.f32 %v7605_v29, %v18682_v59  ;;  %12120 = vmatprep.subr.bf16.mxu1 %v12119_v62  ;;  %v12000_v63 = vpop.f32.mrb[203].mxu0  ;;  %v7925_v46 = vmax.f32 %v7844_v42, 0.0 }
 0x66d   :  { %12122 = vmatpush3.bf16.msra.mxu1 %v18714_v15 }
 0x66e   :  { %v7845_v10 = vadd.f32 %v18707_v57, %v7757_v12 }
 0x66f   :  { %v7610_v2 = vpop.f32.mrb[204].mxu0 }
 0x670   :  { %v7926_v28 = vmax.f32 %v7845_v10, 0.0  ;;  %v7758_v61 = vadd.f32 %v7610_v2, %v18689_v16  ;;  %v12003_v7 = vpop.f32.mrb[205].mxu0 }
 0x672   :  { %v12123_v6 = vpack.c.bf16 %v7926_v28, %v7925_v46  ;;  %v7846_v59 = vadd.f32 %v18707_v57, %v7758_v61 }
 0x673   :  { %v7615_v5 = vpop.f32.mrb[206].mxu0 }
 0x674   :  { %v7759_v35 = vadd.f32 %v7615_v5, %v18694_v9  ;;  %12124 = vmatprep.subr.bf16.mxu1 %v12123_v6  ;;  %v12006_v15 = vpop.f32.mrb[207].mxu0  ;;  %v7927_v27 = vmax.f32 %v7846_v59, 0.0 }
 0x675   :  { %12126 = vmatpush3.bf16.msra.mxu1 %v18726_v21 }
 0x676   :  { %v7847_v16 = vadd.f32 %v18707_v57, %v7759_v35  ;;  %12127 = vmatprep.subr.bf16.mxu1 %v12193_v31 }
 0x677   :  { %v7620_v48 = vpop.f32.mrb[208].mxu0 }
 0x678   :  { %v7928_v14 = vmax.f32 %v7847_v16, 0.0  ;;  %v7760_v58 = vadd.f32 %v7620_v48, %v18701_v17  ;;  %v12009_v49 = vpop.f32.mrb[209].mxu0  ;;  %8116 = vmatmul.mubr.f32.vlgmr.msra.gmra.mrb[198].mxu1 %v18621_v1 }
 0x679   :  { %9031 = vmatprep.mubr.msk.f32.mxu1 %vm7978_vm3, %v7972_v52 }
 0x67a   :  { %v12128_v9 = vpack.c.bf16 %v7928_v14, %v7927_v27  ;;  %v7848_v25 = vadd.f32 %v18707_v57, %v7760_v58 }
 0x67b   :  { %v7625_v21 = vpop.f32.mrb[210].mxu0 }
 0x67c   :  { %v7761_v60 = vadd.f32 %v7625_v21, %v18711_v47  ;;  %12129 = vmatpush1.bf16.msra.mxu1 %v12128_v9  ;;  %v12012_v4 = vpop.f32.mrb[211].mxu0  ;;  %v7929_v18 = vmax.f32 %v7848_v25, 0.0 }
 0x67d   :  { %12130 = vmatprep.subr.bf16.mxu1 %v12193_v31 }
 0x67e   :  { %v7849_v32 = vadd.f32 %v18707_v57, %v7761_v60 }
 0x67f   :  { %v7630_v43 = vpop.f32.mrb[212].mxu0 }
 0x680   :  { %v7930_v33 = vmax.f32 %v7849_v32, 0.0  ;;  %v7762_v17 = vadd.f32 %v7630_v43, %v18718_v36  ;;  %v12015_v50 = vpop.f32.mrb[213].mxu0 }
 0x682   :  { %v12131_v1 = vpack.c.bf16 %v7930_v33, %v7929_v18  ;;  %v7850_v19 = vadd.f32 %v18707_v57, %v7762_v17 }
 0x683   :  { %v7635_v54 = vpop.f32.mrb[214].mxu0 }
 0x684   :  { %v7763_v44 = vadd.f32 %v7635_v54, %v18723_v37  ;;  %12132 = vmatpush1.bf16.msra.mxu1 %v12131_v1  ;;  %v12018_v47 = vpop.f32.mrb[215].mxu0  ;;  %v7931_v45 = vmax.f32 %v7850_v19, 0.0 }
 0x685   :  { %12133 = vmatprep.subr.bf16.mxu1 %v12193_v31 }
 0x686   :  { %v7851_v3 = vadd.f32 %v18707_v57, %v7763_v44 }
 0x687   :  { %v7640_v20 = vpop.f32.mrb[216].mxu0 }
 0x688   :  { %v7932_v34 = vmax.f32 %v7851_v3, 0.0  ;;  %v7764_v40 = vadd.f32 %v7640_v20, %v18730_v22  ;;  %v12021_v56 = vpop.f32.mrb[217].mxu0 }
 0x68a   :  { %v12134_v36 = vpack.c.bf16 %v7932_v34, %v7931_v45  ;;  %v7852_v55 = vadd.f32 %v18707_v57, %v7764_v40 }
 0x68b   :  { %v7645_v30 = vpop.f32.mrb[218].mxu0 }
 0x68c   :  { %v7765_v62 = vadd.f32 %v7645_v30, %v18735_v38  ;;  %12135 = vmatpush1.bf16.msra.mxu1 %v12134_v36  ;;  %v12024_v37 = vpop.f32.mrb[219].mxu0  ;;  %v7933_v12 = vmax.f32 %v7852_v55, 0.0 }
 0x68d   :  { %12136 = vmatprep.subr.bf16.mxu1 %v12193_v31 }
 0x68e   :  { %v7853_v29 = vadd.f32 %v18707_v57, %v7765_v62 }
 0x68f   :  { %v7650_v42 = vpop.f32.mrb[220].mxu0 }
 0x690   :  { %v7934_v63 = vmax.f32 %v7853_v29, 0.0  ;;  %v7766_v10 = vadd.f32 %v7650_v42, %v18740_v11  ;;  %v12027_v2 = vpop.f32.mrb[221].mxu0 }
 0x692   :  { %v12137_v22 = vpack.c.bf16 %v7934_v63, %v7933_v12  ;;  %v7854_v28 = vadd.f32 %v18707_v57, %v7766_v10 }
 0x693   :  { %v7655_v46 = vpop.f32.mrb[222].mxu0 }
 0x694   :  { %v7767_v61 = vadd.f32 %v7655_v46, %v18746_v51  ;;  %12138 = vmatpush1.bf16.msra.mxu1 %v12137_v22  ;;  %v12030_v38 = vpop.f32.mrb[223].mxu0  ;;  %v7935_v5 = vmax.f32 %v7854_v28, 0.0 }
 0x695   :  { %12139 = vmatprep.subr.bf16.mxu1 %v12193_v31 }
 0x696   :  { %v7855_v7 = vadd.f32 %v18707_v57, %v7767_v61 }
 0x697   :  { %v7660_v6 = vpop.f32.mrb[224].mxu0 }
 0x698   :  { %v7936_v59 = vmax.f32 %v7855_v7, 0.0  ;;  %v7768_v35 = vadd.f32 %v7660_v6, %v18751_v39  ;;  %v12033_v15 = vpop.f32.mrb[225].mxu0 }
 0x69a   :  { %v12140_v11 = vpack.c.bf16 %v7936_v59, %v7935_v5  ;;  %v7856_v16 = vadd.f32 %v18707_v57, %v7768_v35 }
 0x69b   :  { %v7665_v52 = vpop.f32.mrb[226].mxu0 }
 0x69c   :  { %v7769_v48 = vadd.f32 %v7665_v52, %v18757_v53  ;;  %12141 = vmatpush1.bf16.msra.mxu1 %v12140_v11  ;;  %v12036_v51 = vpop.f32.mrb[227].mxu0  ;;  %v7937_v58 = vmax.f32 %v7856_v16, 0.0 }
 0x69d   :  { %12142 = vmatprep.subr.bf16.mxu1 %v12193_v31 }
 0x69e   :  { %v7857_v27 = vadd.f32 %v18707_v57, %v7769_v48 }
 0x69f   :  { %v7670_v14 = vpop.f32.mrb[228].mxu0 }
 0x6a0   :  { %v7938_v49 = vmax.f32 %v7857_v27, 0.0  ;;  %v7770_v9 = vadd.f32 %v7670_v14, %v18762_v8  ;;  %v12039_v21 = vpop.f32.mrb[229].mxu0 }
 0x6a2   :  { %v12143_v39 = vpack.c.bf16 %v7938_v49, %v7937_v58  ;;  %v7858_v60 = vadd.f32 %v18707_v57, %v7770_v9 }
 0x6a3   :  { %v7675_v25 = vpop.f32.mrb[230].mxu0 }
 0x6a4   :  { %v7771_v4 = vadd.f32 %v7675_v25, %v18768_v0  ;;  %12144 = vmatpush1.bf16.msra.mxu1 %v12143_v39  ;;  %v12042_v53 = vpop.f32.mrb[231].mxu0  ;;  %v7939_v18 = vmax.f32 %v7858_v60, 0.0 }
 0x6a5   :  { %12145 = vmatprep.subr.bf16.mxu1 %v12193_v31 }
 0x6a6   :  { %v7859_v32 = vadd.f32 %v18707_v57, %v7771_v4 }
 0x6a7   :  { %v7680_v43 = vpop.f32.mrb[232].mxu0 }
 0x6a8   :  { %v7940_v33 = vmax.f32 %v7859_v32, 0.0  ;;  %v7772_v17 = vadd.f32 %v7680_v43, %v18773_v13  ;;  %v12045_v50 = vpop.f32.mrb[233].mxu0 }
 0x6aa   :  { %v12146_v8 = vpack.c.bf16 %v7940_v33, %v7939_v18  ;;  %v7860_v54 = vadd.f32 %v18707_v57, %v7772_v17 }
 0x6ab   :  { %v7685_v1 = vpop.f32.mrb[234].mxu0 }
 0x6ac   :  { %v7773_v19 = vadd.f32 %v7685_v1, %v18779_v41  ;;  %12147 = vmatpush1.bf16.msra.mxu1 %v12146_v8  ;;  %v12048_v0 = vpop.f32.mrb[235].mxu0  ;;  %v7941_v3 = vmax.f32 %v7860_v54, 0.0 }
 0x6ad   :  { %12148 = vmatprep.subr.bf16.mxu1 %v12193_v31 }
 0x6ae   :  { %v7861_v44 = vadd.f32 %v18707_v57, %v7773_v19 }
 0x6af   :  { %v7690_v47 = vpop.f32.mrb[236].mxu0 }
 0x6b0   :  { %v7942_v20 = vmax.f32 %v7861_v44, 0.0  ;;  %v7774_v45 = vadd.f32 %v7690_v47, %v18784_v26  ;;  %v12051_v34 = vpop.f32.mrb[237].mxu0  ;;  %v8191_v26 = vld [vmem:[%s18887_s4] sm:$0xff] }
 0x6b2   :  { %v12149_v13 = vpack.c.bf16 %v7942_v20, %v7941_v3  ;;  %v7862_v40 = vadd.f32 %v18707_v57, %v7774_v45  ;;  %v8192_v57 = vld [vmem:[%s18887_s4 + $0x8] sm:$0xff] }
 0x6b3   :  { %v12152_v55 = vpack.c.bf16 %v8192_v57, %v8191_v26 }
 0x6b4   :  { %12150 = vmatpush1.bf16.msra.mxu1 %v12149_v13  ;;  %v7943_v56 = vmax.f32 %v7862_v40, 0.0 }
 0x6b5   :  { %8153 = vmatprep.subr.mxu1 %v18918_v23 }
 0x6b8   :  { %8154 = vmatpush1.msra.mxu1 %v7943_v56 }
 0x6b9   :  { %8186 = vmatmul.mubr.f32.vlgmr.msra.gmra.mrb[200].mxu1 %v18803_v24  ;;  %12151 = vmatprep.subr.bf16.mxu1 %v12193_v31  ;;  %v8193_v24 = vld [vmem:[%s18887_s4 + $0x10] sm:$0xff] }
 0x6ba   :  { %12060 = vmatprep.mubr.msk.f32.mxu1 %vm12191_vm2, %v18918_v23  ;;  %12153 = vmatpush3.bf16.msra.mxu1 %v12152_v55  ;;  %v8194_v23 = vld [vmem:[%s18887_s4 + $0x18] sm:$0xff]  ;;  %s12166_s4 = scalar_lea.vmem %s8284_s16, 32 }
 0x6bb   :  { %12154 = vmatprep.subr.bf16.mxu1 %v12193_v31  ;;  %v12155_v62 = vpack.c.bf16 %v8194_v23, %v8193_v24  ;;  %v9032_v31 = vld [vmem:[%s18888_s5] ss:$0 sm:$0xff]  ;;  %p12167_p0 = scmp.ne.s32.totalorder %s8284_s16, %s12166_s4  ;;  %p12172_p2 = scmp.lt.s32.totalorder %s12166_s4, %s12166_s4 }
 0x6bd   :  { %p12173_p3 = por %p12172_p2, %p12171_p1 }
 0x6be   :  { %12156 = vmatpush3.bf16.msra.mxu1 %v12155_v62 }
 0x6bf   :  { %p12174_p4 = pnand %p12173_p3, %p12167_p0 }
 0x6cb   :  { %v9804_v41 = vpop.f32.mrb[196].mxu1 }
 0x6cc   :  { %v9805_v36 = vpop.f32.mrb[197].mxu1 }
 0x6cd   :  { %v9806_v30 = vadd.f32 %v9805_v36, %v9804_v41 }
 0x74b   :  { %v9839_v37 = vpop.f32.mrb[198].mxu1 }
 0x74c   :  { %v9840_v29 = vpop.f32.mrb[199].mxu1 }
 0x74d   :  { %v9841_v42 = vadd.f32 %v9840_v29, %v9839_v37 }
 0x74f   :  { %v8118_v12 = vadd.f32 %v9841_v42, %v9806_v30 }
 0x78c   :  { %v8187_v63 = vpop.f32.mrb[200].mxu1 }
 0x78d   :  { %v8188_v10 = vadd.f32 %v8187_v63, %v8118_v12  ;;  %v8189_v2 = vpop.f32.mrb[201].mxu1 }
 0x78f   :  { %12061 = vmatmul.mubr.msk.f32.vlgmr.msra.gmra.mrb[202].mxu1 %vm8202_vm4, %v8188_v10 }
 0x862   :  { %v8272_v22 = vpop.f32.mrb[202].mxu1 }
 0x863   :  { %v8273_v46 = vadd.f32 %v9032_v31, %v8272_v22  ;;  %v12062_v28 = vpop.f32.mrb[203].mxu1 }
 0x865   :  { %8276 = vst [vmem:[#allocation2] sm:$0x3] %v8273_v46 }
 0x866   :  { %12177 = shalt.err (!%p12174_p4)
}
 0x867   :  { %s12178_s19 = scalar_lea.hbm %s18889_s6, 32 }
 0x868   :  { %p12179_p5 = scmp.ne.s32.totalorder %s18889_s6, %s12178_s19  ;;  %p12182_p6 = scmp.lt.u32.totalorder %s12178_s19, %s18889_s6 }
 0x86a   :  { %p12184_p7 = pnand %p12182_p6, %p12179_p5 }
 0x86c   :  { %12187 = shalt.err (!%p12184_p7)
}
 0x86d   :  { %8286 = dma.vmem_to_hbm [thread:$0]  %s8284_s16, 32, %s18889_s6, [#allocation3]  }
 0x86e   :  { %12188 = dma.done.wait [#allocation3], 32  }
 0x86f   :  { %12189 = vsyncadd [#allocation3], 4294967264 }
 0x870   :  { %8290 = vsyncpa [#allocation3], 1 }

</bundles_post_ra>
